<compile_context>
chip_gen: v7x
topology: tpu7x:2x2x1
jax: 0.10.0
libtpu: 0.0.40
codegen_flags: <defaults>
</compile_context>

<pallas_src>
import functools

import jax
import jax.numpy as jnp
from jax.experimental import pallas as pl
from jax.experimental.pallas import tpu as pltpu


def fused_regression_head_kernel(
        x_ref,                       # (1, H, W, Cin)        f32
        w1_ref, b1_ref,              # (3, 3, Cin, F) f32, (1, F) f32
        w2_ref, b2_ref,              # (3, 3, F, F)  bf16, (1, F) f32
        w3_ref, b3_ref,              # (3, 3, F, F)  bf16, (1, F) f32
        w4_ref, b4_ref,              # (3, 3, F, F)  bf16, (1, F) f32
        w5t_ref, b5_ref,             # (3, 3, 4, F)  bf16, (4, 1) f32
        o_ref,                       # (1, 4, H*W)   f32 (lane-dense, NCHW order)
        padf_ref,                    # VMEM (H+2, W+16, F) f32 scratch
        *, H, W):
    F = padf_ref.shape[-1]
    Wp = padf_ref.shape[1]
    Cin = x_ref.shape[-1]
    OFF = 8                          # interior column offset: f32 (8,128)-tile aligned

    f32 = jnp.float32
    bf16 = jnp.bfloat16

    # ---- zero only the 1-cell halo ring (interior is fully overwritten before
    # every use).  Unconditional: with a "parallel" batch grid each TensorCore
    # must initialize its own scratch.
    padf_ref[0:1, :, :] = jnp.zeros((1, Wp, F), f32)
    padf_ref[H + 1:H + 2, :, :] = jnp.zeros((1, Wp, F), f32)
    padf_ref[1:H + 1, OFF - 1:OFF, :] = jnp.zeros((H, 1, F), f32)
    padf_ref[1:H + 1, OFF + W:OFF + W + 1, :] = jnp.zeros((H, 1, F), f32)

    # ---- layer 1 (Cin tiny / lane-sparse): reuse lanes 0:Cin of the padded
    # scratch; 9 small f32 taps (K=Cin), accumulator initialized from tap 0.
    padf_ref[1:H + 1, OFF:OFF + W, 0:Cin] = x_ref[0].astype(f32)
    acc = None
    for kh in range(3):
        for kw in range(3):
            lhs = padf_ref[kh:kh + H, kw + OFF - 1:kw + OFF - 1 + W, 0:Cin]
            tap = jax.lax.dot_general(
                lhs, w1_ref[kh, kw],
                dimension_numbers=(((2,), (0,)), ((), ())),
                preferred_element_type=f32)                  # (H, W, F)
            acc = tap if acc is None else acc + tap
    a = jnp.maximum(acc + b1_ref[...], 0.0)                  # (H, W, F) f32

    # ---- layers 2..4: split-K accumulation, 9 bf16 matmuls (K = F) per layer
    # on shifted views of the padded scratch (no im2col materialisation).
    for w_ref, b_ref in ((w2_ref, b2_ref), (w3_ref, b3_ref), (w4_ref, b4_ref)):
        padf_ref[1:H + 1, OFF:OFF + W, :] = a                # sublane-aligned vst
        acc = None
        for kh in range(3):
            for kw in range(3):
                lhs = padf_ref[kh:kh + H,
                               kw + OFF - 1:kw + OFF - 1 + W, :].astype(bf16)
                tap = jax.lax.dot_general(
                    lhs, w_ref[kh, kw],
                    dimension_numbers=(((2,), (0,)), ((), ())),
                    preferred_element_type=f32)              # (H, W, F)
                acc = tap if acc is None else acc + tap
        a = jnp.maximum(acc + b_ref[...], 0.0)

    # ---- output layer (Cout=4, no ReLU): lane-dense (4, H*W) in NCHW order.
    padf_ref[1:H + 1, OFF:OFF + W, :] = a
    out = None
    for kh in range(3):
        for kw in range(3):
            lhs = padf_ref[kh:kh + H, kw + OFF - 1:kw + OFF - 1 + W, :]
            lhs = lhs.reshape(H * W, F).astype(bf16)
            tap = jax.lax.dot_general(
                w5t_ref[kh, kw], lhs,
                dimension_numbers=(((1,), (1,)), ((), ())),  # A @ B^T form
                preferred_element_type=f32)                  # (4, H*W)
            out = tap if out is None else out + tap
    out = out + b5_ref[...]
    o_ref[0] = out.astype(o_ref.dtype)


def regression_model_forward(x_nchw, params):
    """Forward pass matching RegressionModel.forward; returns NCHW (N, 4, H, W)."""
    N, Cin, H, W = x_nchw.shape
    (w1, b1), (w2, b2), (w3, b3), (w4, b4), (w5, b5) = params
    F = w1.shape[-1]
    assert F % 128 == 0, "design assumes feature_size is a multiple of 128 lanes"

    x_nhwc = jnp.transpose(x_nchw, (0, 2, 3, 1))             # NCHW -> NHWC (once)

    # bf16 weights for the MXU (activation LHS is cast in-kernel); f32 biases.
    w2b = w2.astype(jnp.bfloat16)
    w3b = w3.astype(jnp.bfloat16)
    w4b = w4.astype(jnp.bfloat16)
    w5t = jnp.transpose(w5, (0, 1, 3, 2)).astype(jnp.bfloat16)   # (3, 3, 4, F)

    const = dict(pipeline_mode=pl.Buffered(1))   # grid-invariant -> single buffer
    kernel = functools.partial(fused_regression_head_kernel, H=H, W=W)
    out = pl.pallas_call(
        kernel,
        out_shape=jax.ShapeDtypeStruct((N, 4, H * W), x_nchw.dtype),
        grid_spec=pltpu.PrefetchScalarGridSpec(
            num_scalar_prefetch=0,
            grid=(N,),
            in_specs=[
                pl.BlockSpec((1, H, W, Cin), lambda b: (b, 0, 0, 0)),            # x
                pl.BlockSpec((3, 3, Cin, F), lambda b: (0, 0, 0, 0), **const),   # w1
                pl.BlockSpec((1, F), lambda b: (0, 0), **const),                 # b1
                pl.BlockSpec((3, 3, F, F), lambda b: (0, 0, 0, 0), **const),     # w2
                pl.BlockSpec((1, F), lambda b: (0, 0), **const),                 # b2
                pl.BlockSpec((3, 3, F, F), lambda b: (0, 0, 0, 0), **const),     # w3
                pl.BlockSpec((1, F), lambda b: (0, 0), **const),                 # b3
                pl.BlockSpec((3, 3, F, F), lambda b: (0, 0, 0, 0), **const),     # w4
                pl.BlockSpec((1, F), lambda b: (0, 0), **const),                 # b4
                pl.BlockSpec((3, 3, 4, F), lambda b: (0, 0, 0, 0), **const),     # w5^T
                pl.BlockSpec((4, 1), lambda b: (0, 0), **const),                 # b5
            ],
            out_specs=pl.BlockSpec((1, 4, H * W), lambda b: (b, 0, 0)),
            scratch_shapes=[
                # Padded activation scratch; interior at column offset 8 so the
                # per-layer interior write is a full-tile aligned store.
                pltpu.VMEM((H + 2, W + 16, F), jnp.float32),
            ],
        ),
        compiler_params=pltpu.CompilerParams(
            dimension_semantics=("parallel",),                # v7x: 2 TCs split batch
            vmem_limit_bytes=32 * 1024 * 1024),
    )(x_nhwc,
      w1, b1.reshape(1, F),
      w2b, b2.reshape(1, F),
      w3b, b3.reshape(1, F),
      w4b, b4.reshape(1, F),
      w5t, b5.reshape(4, 1))

    # (N, 4, H*W) -> (N, 4, H, W): pure row-major relabeling, free in XLA.
    return out.reshape(N, 4, H, W)


def init_conv_params(key, cin, cout, k=3):
    """Deterministic PyTorch-like uniform init (fan_in = cin*k*k); HWIO weights."""
    kw, kb = jax.random.split(key)
    bound = 1.0 / jnp.sqrt(cin * k * k)
    w = jax.random.uniform(kw, (k, k, cin, cout), jnp.float32, -bound, bound)
    b = jax.random.uniform(kb, (cout,), jnp.float32, -bound, bound)
    return w, b


def make_regression_model_params(key, num_features_in, feature_size):
    keys = jax.random.split(key, 5)
    return [
        init_conv_params(keys[0], num_features_in, feature_size),
        init_conv_params(keys[1], feature_size, feature_size),
        init_conv_params(keys[2], feature_size, feature_size),
        init_conv_params(keys[3], feature_size, feature_size),
        init_conv_params(keys[4], feature_size, 4),          # self.output
    ]


def reference_forward(x_nchw, params):
    """Pure-JAX f32 reference using lax.conv_general_dilated (NCHW/OIHW)."""
    out = x_nchw
    for i, (w_hwio, b) in enumerate(params):
        w_oihw = jnp.transpose(w_hwio, (3, 2, 0, 1))
        out = jax.lax.conv_general_dilated(
            out, w_oihw, window_strides=(1, 1), padding=((1, 1), (1, 1)),
            dimension_numbers=("NCHW", "OIHW", "NCHW"))
        out = out + b[None, :, None, None]
        if i < len(params) - 1:
            out = jnp.maximum(out, 0.0)
    return out


if __name__ == "__main__":
    key = jax.random.PRNGKey(0)
    k_x, k_p = jax.random.split(key)

    N, C_in, H, W = 2, 4, 16, 16
    feature_size = 128   # one full 128-lane tile

    x = jax.random.normal(k_x, (N, C_in, H, W), jnp.float32)
    params = make_regression_model_params(k_p, C_in, feature_size)

    fwd = jax.jit(regression_model_forward)
    out = jax.block_until_ready(fwd(x, params))
    assert out.shape == (N, 4, H, W), out.shape

    ref = jax.block_until_ready(reference_forward(x, params))
    max_err = float(jnp.max(jnp.abs(out - ref)))
    # bf16 MXU operands in layers 2..5 -> relaxed tolerance vs the f32 reference.
    assert jnp.allclose(out, ref, atol=3e-2, rtol=3e-2), max_err

    print("KERNEL_OK")
</pallas_src>

<mosaic_0001>
module attributes {stable_mosaic.version = 11 : i64} {
  func.func @fused_regression_head_kernel(%arg0: i32, %arg1: memref<1x16x16x4xf32, #tpu.memory_space<vmem>>, %arg2: memref<3x3x4x128xf32, #tpu.memory_space<vmem>>, %arg3: memref<1x128xf32, #tpu.memory_space<vmem>>, %arg4: memref<3x3x128x128xbf16, #tpu.memory_space<vmem>>, %arg5: memref<1x128xf32, #tpu.memory_space<vmem>>, %arg6: memref<3x3x128x128xbf16, #tpu.memory_space<vmem>>, %arg7: memref<1x128xf32, #tpu.memory_space<vmem>>, %arg8: memref<3x3x128x128xbf16, #tpu.memory_space<vmem>>, %arg9: memref<1x128xf32, #tpu.memory_space<vmem>>, %arg10: memref<3x3x4x128xbf16, #tpu.memory_space<vmem>>, %arg11: memref<4x1xf32, #tpu.memory_space<vmem>>, %arg12: memref<1x4x256xf32, #tpu.memory_space<vmem>>, %arg13: memref<18x32x128xf32, #tpu.memory_space<vmem>>) attributes {dimension_semantics = [#tpu.dimension_semantics<parallel>], iteration_bounds = array<i64: 2>, scalar_prefetch = 0 : i64, scratch_operands = 1 : i64, tpu.core_type = #tpu.core_type<tc>, window_params = [{transform_indices = @transform_0, window_bounds = array<i64: 1, 16, 16, 4>}, {pipeline_mode = #tpu.pipeline_mode<synchronous>, transform_indices = @transform_1, window_bounds = array<i64: 3, 3, 4, 128>}, {pipeline_mode = #tpu.pipeline_mode<synchronous>, transform_indices = @transform_2, window_bounds = array<i64: 1, 128>}, {pipeline_mode = #tpu.pipeline_mode<synchronous>, transform_indices = @transform_3, window_bounds = array<i64: 3, 3, 128, 128>}, {pipeline_mode = #tpu.pipeline_mode<synchronous>, transform_indices = @transform_4, window_bounds = array<i64: 1, 128>}, {pipeline_mode = #tpu.pipeline_mode<synchronous>, transform_indices = @transform_5, window_bounds = array<i64: 3, 3, 128, 128>}, {pipeline_mode = #tpu.pipeline_mode<synchronous>, transform_indices = @transform_6, window_bounds = array<i64: 1, 128>}, {pipeline_mode = #tpu.pipeline_mode<synchronous>, transform_indices = @transform_7, window_bounds = array<i64: 3, 3, 128, 128>}, {pipeline_mode = #tpu.pipeline_mode<synchronous>, transform_indices = @transform_8, window_bounds = array<i64: 1, 128>}, {pipeline_mode = #tpu.pipeline_mode<synchronous>, transform_indices = @transform_9, window_bounds = array<i64: 3, 3, 4, 128>}, {pipeline_mode = #tpu.pipeline_mode<synchronous>, transform_indices = @transform_10, window_bounds = array<i64: 4, 1>}, {transform_indices = @transform_11, window_bounds = array<i64: 1, 4, 256>}]} {
    %cst = arith.constant 0.000000e+00 : f32
    %0 = vector.broadcast %cst : f32 to vector<1x32x128xf32>
    %c0 = arith.constant 0 : index
    %c0_0 = arith.constant 0 : index
    %c0_1 = arith.constant 0 : index
    %1 = vector.load %arg13[%c0, %c0_0, %c0_1] : memref<18x32x128xf32, #tpu.memory_space<vmem>>, vector<1x32x128xf32>
    tpu.vector_store %arg13[%c0, %c0_0, %c0_1], %0 {strides = array<i32>} : memref<18x32x128xf32, #tpu.memory_space<vmem>>, vector<1x32x128xf32>,
    %cst_2 = arith.constant 0.000000e+00 : f32
    %2 = vector.broadcast %cst_2 : f32 to vector<1x32x128xf32>
    %c17 = arith.constant 17 : index
    %c0_3 = arith.constant 0 : index
    %c0_4 = arith.constant 0 : index
    %3 = vector.load %arg13[%c17, %c0_3, %c0_4] : memref<18x32x128xf32, #tpu.memory_space<vmem>>, vector<1x32x128xf32>
    tpu.vector_store %arg13[%c17, %c0_3, %c0_4], %2 {strides = array<i32>} : memref<18x32x128xf32, #tpu.memory_space<vmem>>, vector<1x32x128xf32>,
    %cst_5 = arith.constant 0.000000e+00 : f32
    %4 = vector.broadcast %cst_5 : f32 to vector<16x1x128xf32>
    %c1 = arith.constant 1 : index
    %c7 = arith.constant 7 : index
    %c0_6 = arith.constant 0 : index
    %5 = vector.load %arg13[%c1, %c7, %c0_6] : memref<18x32x128xf32, #tpu.memory_space<vmem>>, vector<16x1x128xf32>
    tpu.vector_store %arg13[%c1, %c7, %c0_6], %4 {strides = array<i32>} : memref<18x32x128xf32, #tpu.memory_space<vmem>>, vector<16x1x128xf32>,
    %cst_7 = arith.constant 0.000000e+00 : f32
    %6 = vector.broadcast %cst_7 : f32 to vector<16x1x128xf32>
    %c1_8 = arith.constant 1 : index
    %c24 = arith.constant 24 : index
    %c0_9 = arith.constant 0 : index
    %7 = vector.load %arg13[%c1_8, %c24, %c0_9] : memref<18x32x128xf32, #tpu.memory_space<vmem>>, vector<16x1x128xf32>
    tpu.vector_store %arg13[%c1_8, %c24, %c0_9], %6 {strides = array<i32>} : memref<18x32x128xf32, #tpu.memory_space<vmem>>, vector<16x1x128xf32>,
    %c0_10 = arith.constant 0 : index
    %c0_11 = arith.constant 0 : index
    %c0_12 = arith.constant 0 : index
    %c0_13 = arith.constant 0 : index
    %8 = vector.load %arg1[%c0_10, %c0_11, %c0_12, %c0_13] : memref<1x16x16x4xf32, #tpu.memory_space<vmem>>, vector<1x16x16x4xf32>
    %9 = vector.shape_cast %8 : vector<1x16x16x4xf32> to vector<16x16x4xf32>
    %c1_14 = arith.constant 1 : index
    %c8 = arith.constant 8 : index
    %c0_15 = arith.constant 0 : index
    %10 = vector.load %arg13[%c1_14, %c8, %c0_15] : memref<18x32x128xf32, #tpu.memory_space<vmem>>, vector<16x16x4xf32>
    tpu.vector_store %arg13[%c1_14, %c8, %c0_15], %9 {strides = array<i32>} : memref<18x32x128xf32, #tpu.memory_space<vmem>>, vector<16x16x4xf32>,
    %c0_16 = arith.constant 0 : index
    %c7_17 = arith.constant 7 : index
    %c0_18 = arith.constant 0 : index
    %11 = vector.load %arg13[%c0_16, %c7_17, %c0_18] : memref<18x32x128xf32, #tpu.memory_space<vmem>>, vector<16x16x4xf32>
    %c0_19 = arith.constant 0 : index
    %c0_20 = arith.constant 0 : index
    %c0_21 = arith.constant 0 : index
    %c0_22 = arith.constant 0 : index
    %12 = vector.load %arg2[%c0_19, %c0_20, %c0_21, %c0_22] : memref<3x3x4x128xf32, #tpu.memory_space<vmem>>, vector<1x1x4x128xf32>
    %13 = vector.shape_cast %12 : vector<1x1x4x128xf32> to vector<4x128xf32>
    %cst_23 = arith.constant dense<0.000000e+00> : vector<16x16x128xf32>
    %14 = tpu.matmul %11, %13, %cst_23 {dimension_numbers = #tpu.dot_dimension_numbers<[2], [0], [0, 1], [1], [0, 0, 0, 1, 1, 1], [], []>} : vector<16x16x4xf32>, vector<4x128xf32>, vector<16x16x128xf32> -> vector<16x16x128xf32>
    %c0_24 = arith.constant 0 : index
    %c8_25 = arith.constant 8 : index
    %c0_26 = arith.constant 0 : index
    %15 = vector.load %arg13[%c0_24, %c8_25, %c0_26] : memref<18x32x128xf32, #tpu.memory_space<vmem>>, vector<16x16x4xf32>
    %c0_27 = arith.constant 0 : index
    %c1_28 = arith.constant 1 : index
    %c0_29 = arith.constant 0 : index
    %c0_30 = arith.constant 0 : index
    %16 = vector.load %arg2[%c0_27, %c1_28, %c0_29, %c0_30] : memref<3x3x4x128xf32, #tpu.memory_space<vmem>>, vector<1x1x4x128xf32>
    %17 = vector.shape_cast %16 : vector<1x1x4x128xf32> to vector<4x128xf32>
    %cst_31 = arith.constant dense<0.000000e+00> : vector<16x16x128xf32>
    %18 = tpu.matmul %15, %17, %cst_31 {dimension_numbers = #tpu.dot_dimension_numbers<[2], [0], [0, 1], [1], [0, 0, 0, 1, 1, 1], [], []>} : vector<16x16x4xf32>, vector<4x128xf32>, vector<16x16x128xf32> -> vector<16x16x128xf32>
    %19 = arith.addf %14, %18 : vector<16x16x128xf32>
    %c0_32 = arith.constant 0 : index
    %c9 = arith.constant 9 : index
    %c0_33 = arith.constant 0 : index
    %20 = vector.load %arg13[%c0_32, %c9, %c0_33] : memref<18x32x128xf32, #tpu.memory_space<vmem>>, vector<16x16x4xf32>
    %c0_34 = arith.constant 0 : index
    %c2 = arith.constant 2 : index
    %c0_35 = arith.constant 0 : index
    %c0_36 = arith.constant 0 : index
    %21 = vector.load %arg2[%c0_34, %c2, %c0_35, %c0_36] : memref<3x3x4x128xf32, #tpu.memory_space<vmem>>, vector<1x1x4x128xf32>
    %22 = vector.shape_cast %21 : vector<1x1x4x128xf32> to vector<4x128xf32>
    %cst_37 = arith.constant dense<0.000000e+00> : vector<16x16x128xf32>
    %23 = tpu.matmul %20, %22, %cst_37 {dimension_numbers = #tpu.dot_dimension_numbers<[2], [0], [0, 1], [1], [0, 0, 0, 1, 1, 1], [], []>} : vector<16x16x4xf32>, vector<4x128xf32>, vector<16x16x128xf32> -> vector<16x16x128xf32>
    %24 = arith.addf %19, %23 : vector<16x16x128xf32>
    %c1_38 = arith.constant 1 : index
    %c7_39 = arith.constant 7 : index
    %c0_40 = arith.constant 0 : index
    %25 = vector.load %arg13[%c1_38, %c7_39, %c0_40] : memref<18x32x128xf32, #tpu.memory_space<vmem>>, vector<16x16x4xf32>
    %c1_41 = arith.constant 1 : index
    %c0_42 = arith.constant 0 : index
    %c0_43 = arith.constant 0 : index
    %c0_44 = arith.constant 0 : index
    %26 = vector.load %arg2[%c1_41, %c0_42, %c0_43, %c0_44] : memref<3x3x4x128xf32, #tpu.memory_space<vmem>>, vector<1x1x4x128xf32>
    %27 = vector.shape_cast %26 : vector<1x1x4x128xf32> to vector<4x128xf32>
    %cst_45 = arith.constant dense<0.000000e+00> : vector<16x16x128xf32>
    %28 = tpu.matmul %25, %27, %cst_45 {dimension_numbers = #tpu.dot_dimension_numbers<[2], [0], [0, 1], [1], [0, 0, 0, 1, 1, 1], [], []>} : vector<16x16x4xf32>, vector<4x128xf32>, vector<16x16x128xf32> -> vector<16x16x128xf32>
    %29 = arith.addf %24, %28 : vector<16x16x128xf32>
    %c1_46 = arith.constant 1 : index
    %c8_47 = arith.constant 8 : index
    %c0_48 = arith.constant 0 : index
    %30 = vector.load %arg13[%c1_46, %c8_47, %c0_48] : memref<18x32x128xf32, #tpu.memory_space<vmem>>, vector<16x16x4xf32>
    %c1_49 = arith.constant 1 : index
    %c1_50 = arith.constant 1 : index
    %c0_51 = arith.constant 0 : index
    %c0_52 = arith.constant 0 : index
    %31 = vector.load %arg2[%c1_49, %c1_50, %c0_51, %c0_52] : memref<3x3x4x128xf32, #tpu.memory_space<vmem>>, vector<1x1x4x128xf32>
    %32 = vector.shape_cast %31 : vector<1x1x4x128xf32> to vector<4x128xf32>
    %cst_53 = arith.constant dense<0.000000e+00> : vector<16x16x128xf32>
    %33 = tpu.matmul %30, %32, %cst_53 {dimension_numbers = #tpu.dot_dimension_numbers<[2], [0], [0, 1], [1], [0, 0, 0, 1, 1, 1], [], []>} : vector<16x16x4xf32>, vector<4x128xf32>, vector<16x16x128xf32> -> vector<16x16x128xf32>
    %34 = arith.addf %29, %33 : vector<16x16x128xf32>
    %c1_54 = arith.constant 1 : index
    %c9_55 = arith.constant 9 : index
    %c0_56 = arith.constant 0 : index
    %35 = vector.load %arg13[%c1_54, %c9_55, %c0_56] : memref<18x32x128xf32, #tpu.memory_space<vmem>>, vector<16x16x4xf32>
    %c1_57 = arith.constant 1 : index
    %c2_58 = arith.constant 2 : index
    %c0_59 = arith.constant 0 : index
    %c0_60 = arith.constant 0 : index
    %36 = vector.load %arg2[%c1_57, %c2_58, %c0_59, %c0_60] : memref<3x3x4x128xf32, #tpu.memory_space<vmem>>, vector<1x1x4x128xf32>
    %37 = vector.shape_cast %36 : vector<1x1x4x128xf32> to vector<4x128xf32>
    %cst_61 = arith.constant dense<0.000000e+00> : vector<16x16x128xf32>
    %38 = tpu.matmul %35, %37, %cst_61 {dimension_numbers = #tpu.dot_dimension_numbers<[2], [0], [0, 1], [1], [0, 0, 0, 1, 1, 1], [], []>} : vector<16x16x4xf32>, vector<4x128xf32>, vector<16x16x128xf32> -> vector<16x16x128xf32>
    %39 = arith.addf %34, %38 : vector<16x16x128xf32>
    %c2_62 = arith.constant 2 : index
    %c7_63 = arith.constant 7 : index
    %c0_64 = arith.constant 0 : index
    %40 = vector.load %arg13[%c2_62, %c7_63, %c0_64] : memref<18x32x128xf32, #tpu.memory_space<vmem>>, vector<16x16x4xf32>
    %c2_65 = arith.constant 2 : index
    %c0_66 = arith.constant 0 : index
    %c0_67 = arith.constant 0 : index
    %c0_68 = arith.constant 0 : index
    %41 = vector.load %arg2[%c2_65, %c0_66, %c0_67, %c0_68] : memref<3x3x4x128xf32, #tpu.memory_space<vmem>>, vector<1x1x4x128xf32>
    %42 = vector.shape_cast %41 : vector<1x1x4x128xf32> to vector<4x128xf32>
    %cst_69 = arith.constant dense<0.000000e+00> : vector<16x16x128xf32>
    %43 = tpu.matmul %40, %42, %cst_69 {dimension_numbers = #tpu.dot_dimension_numbers<[2], [0], [0, 1], [1], [0, 0, 0, 1, 1, 1], [], []>} : vector<16x16x4xf32>, vector<4x128xf32>, vector<16x16x128xf32> -> vector<16x16x128xf32>
    %44 = arith.addf %39, %43 : vector<16x16x128xf32>
    %c2_70 = arith.constant 2 : index
    %c8_71 = arith.constant 8 : index
    %c0_72 = arith.constant 0 : index
    %45 = vector.load %arg13[%c2_70, %c8_71, %c0_72] : memref<18x32x128xf32, #tpu.memory_space<vmem>>, vector<16x16x4xf32>
    %c2_73 = arith.constant 2 : index
    %c1_74 = arith.constant 1 : index
    %c0_75 = arith.constant 0 : index
    %c0_76 = arith.constant 0 : index
    %46 = vector.load %arg2[%c2_73, %c1_74, %c0_75, %c0_76] : memref<3x3x4x128xf32, #tpu.memory_space<vmem>>, vector<1x1x4x128xf32>
    %47 = vector.shape_cast %46 : vector<1x1x4x128xf32> to vector<4x128xf32>
    %cst_77 = arith.constant dense<0.000000e+00> : vector<16x16x128xf32>
    %48 = tpu.matmul %45, %47, %cst_77 {dimension_numbers = #tpu.dot_dimension_numbers<[2], [0], [0, 1], [1], [0, 0, 0, 1, 1, 1], [], []>} : vector<16x16x4xf32>, vector<4x128xf32>, vector<16x16x128xf32> -> vector<16x16x128xf32>
    %49 = arith.addf %44, %48 : vector<16x16x128xf32>
    %c2_78 = arith.constant 2 : index
    %c9_79 = arith.constant 9 : index
    %c0_80 = arith.constant 0 : index
    %50 = vector.load %arg13[%c2_78, %c9_79, %c0_80] : memref<18x32x128xf32, #tpu.memory_space<vmem>>, vector<16x16x4xf32>
    %c2_81 = arith.constant 2 : index
    %c2_82 = arith.constant 2 : index
    %c0_83 = arith.constant 0 : index
    %c0_84 = arith.constant 0 : index
    %51 = vector.load %arg2[%c2_81, %c2_82, %c0_83, %c0_84] : memref<3x3x4x128xf32, #tpu.memory_space<vmem>>, vector<1x1x4x128xf32>
    %52 = vector.shape_cast %51 : vector<1x1x4x128xf32> to vector<4x128xf32>
    %cst_85 = arith.constant dense<0.000000e+00> : vector<16x16x128xf32>
    %53 = tpu.matmul %50, %52, %cst_85 {dimension_numbers = #tpu.dot_dimension_numbers<[2], [0], [0, 1], [1], [0, 0, 0, 1, 1, 1], [], []>} : vector<16x16x4xf32>, vector<4x128xf32>, vector<16x16x128xf32> -> vector<16x16x128xf32>
    %54 = arith.addf %49, %53 : vector<16x16x128xf32>
    %c0_86 = arith.constant 0 : index
    %c0_87 = arith.constant 0 : index
    %55 = vector.load %arg3[%c0_86, %c0_87] : memref<1x128xf32, #tpu.memory_space<vmem>>, vector<1x128xf32>
    %56 = vector.shape_cast %55 : vector<1x128xf32> to vector<1x1x128xf32>
    %57 = vector.broadcast %56 : vector<1x1x128xf32> to vector<16x16x128xf32>
    %58 = arith.addf %54, %57 : vector<16x16x128xf32>
    %cst_88 = arith.constant 0.000000e+00 : f32
    %59 = vector.broadcast %cst_88 : f32 to vector<16x16x128xf32>
    %60 = arith.maximumf %58, %59 : vector<16x16x128xf32>
    %c1_89 = arith.constant 1 : index
    %c8_90 = arith.constant 8 : index
    %c0_91 = arith.constant 0 : index
    %61 = vector.load %arg13[%c1_89, %c8_90, %c0_91] : memref<18x32x128xf32, #tpu.memory_space<vmem>>, vector<16x16x128xf32>
    tpu.vector_store %arg13[%c1_89, %c8_90, %c0_91], %60 {strides = array<i32>} : memref<18x32x128xf32, #tpu.memory_space<vmem>>, vector<16x16x128xf32>,
    %c0_92 = arith.constant 0 : index
    %c7_93 = arith.constant 7 : index
    %c0_94 = arith.constant 0 : index
    %62 = vector.load %arg13[%c0_92, %c7_93, %c0_94] : memref<18x32x128xf32, #tpu.memory_space<vmem>>, vector<16x16x128xf32>
    %63 = arith.truncf %62 : vector<16x16x128xf32> to vector<16x16x128xbf16>
    %c0_95 = arith.constant 0 : index
    %c0_96 = arith.constant 0 : index
    %c0_97 = arith.constant 0 : index
    %c0_98 = arith.constant 0 : index
    %64 = vector.load %arg4[%c0_95, %c0_96, %c0_97, %c0_98] : memref<3x3x128x128xbf16, #tpu.memory_space<vmem>>, vector<1x1x128x128xbf16>
    %65 = vector.shape_cast %64 : vector<1x1x128x128xbf16> to vector<128x128xbf16>
    %cst_99 = arith.constant dense<0.000000e+00> : vector<16x16x128xf32>
    %66 = tpu.matmul %63, %65, %cst_99 {dimension_numbers = #tpu.dot_dimension_numbers<[2], [0], [0, 1], [1], [0, 0, 0, 1, 1, 1], [], []>} : vector<16x16x128xbf16>, vector<128x128xbf16>, vector<16x16x128xf32> -> vector<16x16x128xf32>
    %c0_100 = arith.constant 0 : index
    %c8_101 = arith.constant 8 : index
    %c0_102 = arith.constant 0 : index
    %67 = vector.load %arg13[%c0_100, %c8_101, %c0_102] : memref<18x32x128xf32, #tpu.memory_space<vmem>>, vector<16x16x128xf32>
    %68 = arith.truncf %67 : vector<16x16x128xf32> to vector<16x16x128xbf16>
    %c0_103 = arith.constant 0 : index
    %c1_104 = arith.constant 1 : index
    %c0_105 = arith.constant 0 : index
    %c0_106 = arith.constant 0 : index
    %69 = vector.load %arg4[%c0_103, %c1_104, %c0_105, %c0_106] : memref<3x3x128x128xbf16, #tpu.memory_space<vmem>>, vector<1x1x128x128xbf16>
    %70 = vector.shape_cast %69 : vector<1x1x128x128xbf16> to vector<128x128xbf16>
    %cst_107 = arith.constant dense<0.000000e+00> : vector<16x16x128xf32>
    %71 = tpu.matmul %68, %70, %cst_107 {dimension_numbers = #tpu.dot_dimension_numbers<[2], [0], [0, 1], [1], [0, 0, 0, 1, 1, 1], [], []>} : vector<16x16x128xbf16>, vector<128x128xbf16>, vector<16x16x128xf32> -> vector<16x16x128xf32>
    %72 = arith.addf %66, %71 : vector<16x16x128xf32>
    %c0_108 = arith.constant 0 : index
    %c9_109 = arith.constant 9 : index
    %c0_110 = arith.constant 0 : index
    %73 = vector.load %arg13[%c0_108, %c9_109, %c0_110] : memref<18x32x128xf32, #tpu.memory_space<vmem>>, vector<16x16x128xf32>
    %74 = arith.truncf %73 : vector<16x16x128xf32> to vector<16x16x128xbf16>
    %c0_111 = arith.constant 0 : index
    %c2_112 = arith.constant 2 : index
    %c0_113 = arith.constant 0 : index
    %c0_114 = arith.constant 0 : index
    %75 = vector.load %arg4[%c0_111, %c2_112, %c0_113, %c0_114] : memref<3x3x128x128xbf16, #tpu.memory_space<vmem>>, vector<1x1x128x128xbf16>
    %76 = vector.shape_cast %75 : vector<1x1x128x128xbf16> to vector<128x128xbf16>
    %cst_115 = arith.constant dense<0.000000e+00> : vector<16x16x128xf32>
    %77 = tpu.matmul %74, %76, %cst_115 {dimension_numbers = #tpu.dot_dimension_numbers<[2], [0], [0, 1], [1], [0, 0, 0, 1, 1, 1], [], []>} : vector<16x16x128xbf16>, vector<128x128xbf16>, vector<16x16x128xf32> -> vector<16x16x128xf32>
    %78 = arith.addf %72, %77 : vector<16x16x128xf32>
    %c1_116 = arith.constant 1 : index
    %c7_117 = arith.constant 7 : index
    %c0_118 = arith.constant 0 : index
    %79 = vector.load %arg13[%c1_116, %c7_117, %c0_118] : memref<18x32x128xf32, #tpu.memory_space<vmem>>, vector<16x16x128xf32>
    %80 = arith.truncf %79 : vector<16x16x128xf32> to vector<16x16x128xbf16>
    %c1_119 = arith.constant 1 : index
    %c0_120 = arith.constant 0 : index
    %c0_121 = arith.constant 0 : index
    %c0_122 = arith.constant 0 : index
    %81 = vector.load %arg4[%c1_119, %c0_120, %c0_121, %c0_122] : memref<3x3x128x128xbf16, #tpu.memory_space<vmem>>, vector<1x1x128x128xbf16>
    %82 = vector.shape_cast %81 : vector<1x1x128x128xbf16> to vector<128x128xbf16>
    %cst_123 = arith.constant dense<0.000000e+00> : vector<16x16x128xf32>
    %83 = tpu.matmul %80, %82, %cst_123 {dimension_numbers = #tpu.dot_dimension_numbers<[2], [0], [0, 1], [1], [0, 0, 0, 1, 1, 1], [], []>} : vector<16x16x128xbf16>, vector<128x128xbf16>, vector<16x16x128xf32> -> vector<16x16x128xf32>
    %84 = arith.addf %78, %83 : vector<16x16x128xf32>
    %c1_124 = arith.constant 1 : index
    %c8_125 = arith.constant 8 : index
    %c0_126 = arith.constant 0 : index
    %85 = vector.load %arg13[%c1_124, %c8_125, %c0_126] : memref<18x32x128xf32, #tpu.memory_space<vmem>>, vector<16x16x128xf32>
    %86 = arith.truncf %85 : vector<16x16x128xf32> to vector<16x16x128xbf16>
    %c1_127 = arith.constant 1 : index
    %c1_128 = arith.constant 1 : index
    %c0_129 = arith.constant 0 : index
    %c0_130 = arith.constant 0 : index
    %87 = vector.load %arg4[%c1_127, %c1_128, %c0_129, %c0_130] : memref<3x3x128x128xbf16, #tpu.memory_space<vmem>>, vector<1x1x128x128xbf16>
    %88 = vector.shape_cast %87 : vector<1x1x128x128xbf16> to vector<128x128xbf16>
    %cst_131 = arith.constant dense<0.000000e+00> : vector<16x16x128xf32>
    %89 = tpu.matmul %86, %88, %cst_131 {dimension_numbers = #tpu.dot_dimension_numbers<[2], [0], [0, 1], [1], [0, 0, 0, 1, 1, 1], [], []>} : vector<16x16x128xbf16>, vector<128x128xbf16>, vector<16x16x128xf32> -> vector<16x16x128xf32>
    %90 = arith.addf %84, %89 : vector<16x16x128xf32>
    %c1_132 = arith.constant 1 : index
    %c9_133 = arith.constant 9 : index
    %c0_134 = arith.constant 0 : index
    %91 = vector.load %arg13[%c1_132, %c9_133, %c0_134] : memref<18x32x128xf32, #tpu.memory_space<vmem>>, vector<16x16x128xf32>
    %92 = arith.truncf %91 : vector<16x16x128xf32> to vector<16x16x128xbf16>
    %c1_135 = arith.constant 1 : index
    %c2_136 = arith.constant 2 : index
    %c0_137 = arith.constant 0 : index
    %c0_138 = arith.constant 0 : index
    %93 = vector.load %arg4[%c1_135, %c2_136, %c0_137, %c0_138] : memref<3x3x128x128xbf16, #tpu.memory_space<vmem>>, vector<1x1x128x128xbf16>
    %94 = vector.shape_cast %93 : vector<1x1x128x128xbf16> to vector<128x128xbf16>
    %cst_139 = arith.constant dense<0.000000e+00> : vector<16x16x128xf32>
    %95 = tpu.matmul %92, %94, %cst_139 {dimension_numbers = #tpu.dot_dimension_numbers<[2], [0], [0, 1], [1], [0, 0, 0, 1, 1, 1], [], []>} : vector<16x16x128xbf16>, vector<128x128xbf16>, vector<16x16x128xf32> -> vector<16x16x128xf32>
    %96 = arith.addf %90, %95 : vector<16x16x128xf32>
    %c2_140 = arith.constant 2 : index
    %c7_141 = arith.constant 7 : index
    %c0_142 = arith.constant 0 : index
    %97 = vector.load %arg13[%c2_140, %c7_141, %c0_142] : memref<18x32x128xf32, #tpu.memory_space<vmem>>, vector<16x16x128xf32>
    %98 = arith.truncf %97 : vector<16x16x128xf32> to vector<16x16x128xbf16>
    %c2_143 = arith.constant 2 : index
    %c0_144 = arith.constant 0 : index
    %c0_145 = arith.constant 0 : index
    %c0_146 = arith.constant 0 : index
    %99 = vector.load %arg4[%c2_143, %c0_144, %c0_145, %c0_146] : memref<3x3x128x128xbf16, #tpu.memory_space<vmem>>, vector<1x1x128x128xbf16>
    %100 = vector.shape_cast %99 : vector<1x1x128x128xbf16> to vector<128x128xbf16>
    %cst_147 = arith.constant dense<0.000000e+00> : vector<16x16x128xf32>
    %101 = tpu.matmul %98, %100, %cst_147 {dimension_numbers = #tpu.dot_dimension_numbers<[2], [0], [0, 1], [1], [0, 0, 0, 1, 1, 1], [], []>} : vector<16x16x128xbf16>, vector<128x128xbf16>, vector<16x16x128xf32> -> vector<16x16x128xf32>
    %102 = arith.addf %96, %101 : vector<16x16x128xf32>
    %c2_148 = arith.constant 2 : index
    %c8_149 = arith.constant 8 : index
    %c0_150 = arith.constant 0 : index
    %103 = vector.load %arg13[%c2_148, %c8_149, %c0_150] : memref<18x32x128xf32, #tpu.memory_space<vmem>>, vector<16x16x128xf32>
    %104 = arith.truncf %103 : vector<16x16x128xf32> to vector<16x16x128xbf16>
    %c2_151 = arith.constant 2 : index
    %c1_152 = arith.constant 1 : index
    %c0_153 = arith.constant 0 : index
    %c0_154 = arith.constant 0 : index
    %105 = vector.load %arg4[%c2_151, %c1_152, %c0_153, %c0_154] : memref<3x3x128x128xbf16, #tpu.memory_space<vmem>>, vector<1x1x128x128xbf16>
    %106 = vector.shape_cast %105 : vector<1x1x128x128xbf16> to vector<128x128xbf16>
    %cst_155 = arith.constant dense<0.000000e+00> : vector<16x16x128xf32>
    %107 = tpu.matmul %104, %106, %cst_155 {dimension_numbers = #tpu.dot_dimension_numbers<[2], [0], [0, 1], [1], [0, 0, 0, 1, 1, 1], [], []>} : vector<16x16x128xbf16>, vector<128x128xbf16>, vector<16x16x128xf32> -> vector<16x16x128xf32>
    %108 = arith.addf %102, %107 : vector<16x16x128xf32>
    %c2_156 = arith.constant 2 : index
    %c9_157 = arith.constant 9 : index
    %c0_158 = arith.constant 0 : index
    %109 = vector.load %arg13[%c2_156, %c9_157, %c0_158] : memref<18x32x128xf32, #tpu.memory_space<vmem>>, vector<16x16x128xf32>
    %110 = arith.truncf %109 : vector<16x16x128xf32> to vector<16x16x128xbf16>
    %c2_159 = arith.constant 2 : index
    %c2_160 = arith.constant 2 : index
    %c0_161 = arith.constant 0 : index
    %c0_162 = arith.constant 0 : index
    %111 = vector.load %arg4[%c2_159, %c2_160, %c0_161, %c0_162] : memref<3x3x128x128xbf16, #tpu.memory_space<vmem>>, vector<1x1x128x128xbf16>
    %112 = vector.shape_cast %111 : vector<1x1x128x128xbf16> to vector<128x128xbf16>
    %cst_163 = arith.constant dense<0.000000e+00> : vector<16x16x128xf32>
    %113 = tpu.matmul %110, %112, %cst_163 {dimension_numbers = #tpu.dot_dimension_numbers<[2], [0], [0, 1], [1], [0, 0, 0, 1, 1, 1], [], []>} : vector<16x16x128xbf16>, vector<128x128xbf16>, vector<16x16x128xf32> -> vector<16x16x128xf32>
    %114 = arith.addf %108, %113 : vector<16x16x128xf32>
    %c0_164 = arith.constant 0 : index
    %c0_165 = arith.constant 0 : index
    %115 = vector.load %arg5[%c0_164, %c0_165] : memref<1x128xf32, #tpu.memory_space<vmem>>, vector<1x128xf32>
    %116 = vector.shape_cast %115 : vector<1x128xf32> to vector<1x1x128xf32>
    %117 = vector.broadcast %116 : vector<1x1x128xf32> to vector<16x16x128xf32>
    %118 = arith.addf %114, %117 : vector<16x16x128xf32>
    %cst_166 = arith.constant 0.000000e+00 : f32
    %119 = vector.broadcast %cst_166 : f32 to vector<16x16x128xf32>
    %120 = arith.maximumf %118, %119 : vector<16x16x128xf32>
    %c1_167 = arith.constant 1 : index
    %c8_168 = arith.constant 8 : index
    %c0_169 = arith.constant 0 : index
    %121 = vector.load %arg13[%c1_167, %c8_168, %c0_169] : memref<18x32x128xf32, #tpu.memory_space<vmem>>, vector<16x16x128xf32>
    tpu.vector_store %arg13[%c1_167, %c8_168, %c0_169], %120 {strides = array<i32>} : memref<18x32x128xf32, #tpu.memory_space<vmem>>, vector<16x16x128xf32>,
    %c0_170 = arith.constant 0 : index
    %c7_171 = arith.constant 7 : index
    %c0_172 = arith.constant 0 : index
    %122 = vector.load %arg13[%c0_170, %c7_171, %c0_172] : memref<18x32x128xf32, #tpu.memory_space<vmem>>, vector<16x16x128xf32>
    %123 = arith.truncf %122 : vector<16x16x128xf32> to vector<16x16x128xbf16>
    %c0_173 = arith.constant 0 : index
    %c0_174 = arith.constant 0 : index
    %c0_175 = arith.constant 0 : index
    %c0_176 = arith.constant 0 : index
    %124 = vector.load %arg6[%c0_173, %c0_174, %c0_175, %c0_176] : memref<3x3x128x128xbf16, #tpu.memory_space<vmem>>, vector<1x1x128x128xbf16>
    %125 = vector.shape_cast %124 : vector<1x1x128x128xbf16> to vector<128x128xbf16>
    %cst_177 = arith.constant dense<0.000000e+00> : vector<16x16x128xf32>
    %126 = tpu.matmul %123, %125, %cst_177 {dimension_numbers = #tpu.dot_dimension_numbers<[2], [0], [0, 1], [1], [0, 0, 0, 1, 1, 1], [], []>} : vector<16x16x128xbf16>, vector<128x128xbf16>, vector<16x16x128xf32> -> vector<16x16x128xf32>
    %c0_178 = arith.constant 0 : index
    %c8_179 = arith.constant 8 : index
    %c0_180 = arith.constant 0 : index
    %127 = vector.load %arg13[%c0_178, %c8_179, %c0_180] : memref<18x32x128xf32, #tpu.memory_space<vmem>>, vector<16x16x128xf32>
    %128 = arith.truncf %127 : vector<16x16x128xf32> to vector<16x16x128xbf16>
    %c0_181 = arith.constant 0 : index
    %c1_182 = arith.constant 1 : index
    %c0_183 = arith.constant 0 : index
    %c0_184 = arith.constant 0 : index
    %129 = vector.load %arg6[%c0_181, %c1_182, %c0_183, %c0_184] : memref<3x3x128x128xbf16, #tpu.memory_space<vmem>>, vector<1x1x128x128xbf16>
    %130 = vector.shape_cast %129 : vector<1x1x128x128xbf16> to vector<128x128xbf16>
    %cst_185 = arith.constant dense<0.000000e+00> : vector<16x16x128xf32>
    %131 = tpu.matmul %128, %130, %cst_185 {dimension_numbers = #tpu.dot_dimension_numbers<[2], [0], [0, 1], [1], [0, 0, 0, 1, 1, 1], [], []>} : vector<16x16x128xbf16>, vector<128x128xbf16>, vector<16x16x128xf32> -> vector<16x16x128xf32>
    %132 = arith.addf %126, %131 : vector<16x16x128xf32>
    %c0_186 = arith.constant 0 : index
    %c9_187 = arith.constant 9 : index
    %c0_188 = arith.constant 0 : index
    %133 = vector.load %arg13[%c0_186, %c9_187, %c0_188] : memref<18x32x128xf32, #tpu.memory_space<vmem>>, vector<16x16x128xf32>
    %134 = arith.truncf %133 : vector<16x16x128xf32> to vector<16x16x128xbf16>
    %c0_189 = arith.constant 0 : index
    %c2_190 = arith.constant 2 : index
    %c0_191 = arith.constant 0 : index
    %c0_192 = arith.constant 0 : index
    %135 = vector.load %arg6[%c0_189, %c2_190, %c0_191, %c0_192] : memref<3x3x128x128xbf16, #tpu.memory_space<vmem>>, vector<1x1x128x128xbf16>
    %136 = vector.shape_cast %135 : vector<1x1x128x128xbf16> to vector<128x128xbf16>
    %cst_193 = arith.constant dense<0.000000e+00> : vector<16x16x128xf32>
    %137 = tpu.matmul %134, %136, %cst_193 {dimension_numbers = #tpu.dot_dimension_numbers<[2], [0], [0, 1], [1], [0, 0, 0, 1, 1, 1], [], []>} : vector<16x16x128xbf16>, vector<128x128xbf16>, vector<16x16x128xf32> -> vector<16x16x128xf32>
    %138 = arith.addf %132, %137 : vector<16x16x128xf32>
    %c1_194 = arith.constant 1 : index
    %c7_195 = arith.constant 7 : index
    %c0_196 = arith.constant 0 : index
    %139 = vector.load %arg13[%c1_194, %c7_195, %c0_196] : memref<18x32x128xf32, #tpu.memory_space<vmem>>, vector<16x16x128xf32>
    %140 = arith.truncf %139 : vector<16x16x128xf32> to vector<16x16x128xbf16>
    %c1_197 = arith.constant 1 : index
    %c0_198 = arith.constant 0 : index
    %c0_199 = arith.constant 0 : index
    %c0_200 = arith.constant 0 : index
    %141 = vector.load %arg6[%c1_197, %c0_198, %c0_199, %c0_200] : memref<3x3x128x128xbf16, #tpu.memory_space<vmem>>, vector<1x1x128x128xbf16>
    %142 = vector.shape_cast %141 : vector<1x1x128x128xbf16> to vector<128x128xbf16>
    %cst_201 = arith.constant dense<0.000000e+00> : vector<16x16x128xf32>
    %143 = tpu.matmul %140, %142, %cst_201 {dimension_numbers = #tpu.dot_dimension_numbers<[2], [0], [0, 1], [1], [0, 0, 0, 1, 1, 1], [], []>} : vector<16x16x128xbf16>, vector<128x128xbf16>, vector<16x16x128xf32> -> vector<16x16x128xf32>
    %144 = arith.addf %138, %143 : vector<16x16x128xf32>
    %c1_202 = arith.constant 1 : index
    %c8_203 = arith.constant 8 : index
    %c0_204 = arith.constant 0 : index
    %145 = vector.load %arg13[%c1_202, %c8_203, %c0_204] : memref<18x32x128xf32, #tpu.memory_space<vmem>>, vector<16x16x128xf32>
    %146 = arith.truncf %145 : vector<16x16x128xf32> to vector<16x16x128xbf16>
    %c1_205 = arith.constant 1 : index
    %c1_206 = arith.constant 1 : index
    %c0_207 = arith.constant 0 : index
    %c0_208 = arith.constant 0 : index
    %147 = vector.load %arg6[%c1_205, %c1_206, %c0_207, %c0_208] : memref<3x3x128x128xbf16, #tpu.memory_space<vmem>>, vector<1x1x128x128xbf16>
    %148 = vector.shape_cast %147 : vector<1x1x128x128xbf16> to vector<128x128xbf16>
    %cst_209 = arith.constant dense<0.000000e+00> : vector<16x16x128xf32>
    %149 = tpu.matmul %146, %148, %cst_209 {dimension_numbers = #tpu.dot_dimension_numbers<[2], [0], [0, 1], [1], [0, 0, 0, 1, 1, 1], [], []>} : vector<16x16x128xbf16>, vector<128x128xbf16>, vector<16x16x128xf32> -> vector<16x16x128xf32>
    %150 = arith.addf %144, %149 : vector<16x16x128xf32>
    %c1_210 = arith.constant 1 : index
    %c9_211 = arith.constant 9 : index
    %c0_212 = arith.constant 0 : index
    %151 = vector.load %arg13[%c1_210, %c9_211, %c0_212] : memref<18x32x128xf32, #tpu.memory_space<vmem>>, vector<16x16x128xf32>
    %152 = arith.truncf %151 : vector<16x16x128xf32> to vector<16x16x128xbf16>
    %c1_213 = arith.constant 1 : index
    %c2_214 = arith.constant 2 : index
    %c0_215 = arith.constant 0 : index
    %c0_216 = arith.constant 0 : index
    %153 = vector.load %arg6[%c1_213, %c2_214, %c0_215, %c0_216] : memref<3x3x128x128xbf16, #tpu.memory_space<vmem>>, vector<1x1x128x128xbf16>
    %154 = vector.shape_cast %153 : vector<1x1x128x128xbf16> to vector<128x128xbf16>
    %cst_217 = arith.constant dense<0.000000e+00> : vector<16x16x128xf32>
    %155 = tpu.matmul %152, %154, %cst_217 {dimension_numbers = #tpu.dot_dimension_numbers<[2], [0], [0, 1], [1], [0, 0, 0, 1, 1, 1], [], []>} : vector<16x16x128xbf16>, vector<128x128xbf16>, vector<16x16x128xf32> -> vector<16x16x128xf32>
    %156 = arith.addf %150, %155 : vector<16x16x128xf32>
    %c2_218 = arith.constant 2 : index
    %c7_219 = arith.constant 7 : index
    %c0_220 = arith.constant 0 : index
    %157 = vector.load %arg13[%c2_218, %c7_219, %c0_220] : memref<18x32x128xf32, #tpu.memory_space<vmem>>, vector<16x16x128xf32>
    %158 = arith.truncf %157 : vector<16x16x128xf32> to vector<16x16x128xbf16>
    %c2_221 = arith.constant 2 : index
    %c0_222 = arith.constant 0 : index
    %c0_223 = arith.constant 0 : index
    %c0_224 = arith.constant 0 : index
    %159 = vector.load %arg6[%c2_221, %c0_222, %c0_223, %c0_224] : memref<3x3x128x128xbf16, #tpu.memory_space<vmem>>, vector<1x1x128x128xbf16>
    %160 = vector.shape_cast %159 : vector<1x1x128x128xbf16> to vector<128x128xbf16>
    %cst_225 = arith.constant dense<0.000000e+00> : vector<16x16x128xf32>
    %161 = tpu.matmul %158, %160, %cst_225 {dimension_numbers = #tpu.dot_dimension_numbers<[2], [0], [0, 1], [1], [0, 0, 0, 1, 1, 1], [], []>} : vector<16x16x128xbf16>, vector<128x128xbf16>, vector<16x16x128xf32> -> vector<16x16x128xf32>
    %162 = arith.addf %156, %161 : vector<16x16x128xf32>
    %c2_226 = arith.constant 2 : index
    %c8_227 = arith.constant 8 : index
    %c0_228 = arith.constant 0 : index
    %163 = vector.load %arg13[%c2_226, %c8_227, %c0_228] : memref<18x32x128xf32, #tpu.memory_space<vmem>>, vector<16x16x128xf32>
    %164 = arith.truncf %163 : vector<16x16x128xf32> to vector<16x16x128xbf16>
    %c2_229 = arith.constant 2 : index
    %c1_230 = arith.constant 1 : index
    %c0_231 = arith.constant 0 : index
    %c0_232 = arith.constant 0 : index
    %165 = vector.load %arg6[%c2_229, %c1_230, %c0_231, %c0_232] : memref<3x3x128x128xbf16, #tpu.memory_space<vmem>>, vector<1x1x128x128xbf16>
    %166 = vector.shape_cast %165 : vector<1x1x128x128xbf16> to vector<128x128xbf16>
    %cst_233 = arith.constant dense<0.000000e+00> : vector<16x16x128xf32>
    %167 = tpu.matmul %164, %166, %cst_233 {dimension_numbers = #tpu.dot_dimension_numbers<[2], [0], [0, 1], [1], [0, 0, 0, 1, 1, 1], [], []>} : vector<16x16x128xbf16>, vector<128x128xbf16>, vector<16x16x128xf32> -> vector<16x16x128xf32>
    %168 = arith.addf %162, %167 : vector<16x16x128xf32>
    %c2_234 = arith.constant 2 : index
    %c9_235 = arith.constant 9 : index
    %c0_236 = arith.constant 0 : index
    %169 = vector.load %arg13[%c2_234, %c9_235, %c0_236] : memref<18x32x128xf32, #tpu.memory_space<vmem>>, vector<16x16x128xf32>
    %170 = arith.truncf %169 : vector<16x16x128xf32> to vector<16x16x128xbf16>
    %c2_237 = arith.constant 2 : index
    %c2_238 = arith.constant 2 : index
    %c0_239 = arith.constant 0 : index
    %c0_240 = arith.constant 0 : index
    %171 = vector.load %arg6[%c2_237, %c2_238, %c0_239, %c0_240] : memref<3x3x128x128xbf16, #tpu.memory_space<vmem>>, vector<1x1x128x128xbf16>
    %172 = vector.shape_cast %171 : vector<1x1x128x128xbf16> to vector<128x128xbf16>
    %cst_241 = arith.constant dense<0.000000e+00> : vector<16x16x128xf32>
    %173 = tpu.matmul %170, %172, %cst_241 {dimension_numbers = #tpu.dot_dimension_numbers<[2], [0], [0, 1], [1], [0, 0, 0, 1, 1, 1], [], []>} : vector<16x16x128xbf16>, vector<128x128xbf16>, vector<16x16x128xf32> -> vector<16x16x128xf32>
    %174 = arith.addf %168, %173 : vector<16x16x128xf32>
    %c0_242 = arith.constant 0 : index
    %c0_243 = arith.constant 0 : index
    %175 = vector.load %arg7[%c0_242, %c0_243] : memref<1x128xf32, #tpu.memory_space<vmem>>, vector<1x128xf32>
    %176 = vector.shape_cast %175 : vector<1x128xf32> to vector<1x1x128xf32>
    %177 = vector.broadcast %176 : vector<1x1x128xf32> to vector<16x16x128xf32>
    %178 = arith.addf %174, %177 : vector<16x16x128xf32>
    %cst_244 = arith.constant 0.000000e+00 : f32
    %179 = vector.broadcast %cst_244 : f32 to vector<16x16x128xf32>
    %180 = arith.maximumf %178, %179 : vector<16x16x128xf32>
    %c1_245 = arith.constant 1 : index
    %c8_246 = arith.constant 8 : index
    %c0_247 = arith.constant 0 : index
    %181 = vector.load %arg13[%c1_245, %c8_246, %c0_247] : memref<18x32x128xf32, #tpu.memory_space<vmem>>, vector<16x16x128xf32>
    tpu.vector_store %arg13[%c1_245, %c8_246, %c0_247], %180 {strides = array<i32>} : memref<18x32x128xf32, #tpu.memory_space<vmem>>, vector<16x16x128xf32>,
    %c0_248 = arith.constant 0 : index
    %c7_249 = arith.constant 7 : index
    %c0_250 = arith.constant 0 : index
    %182 = vector.load %arg13[%c0_248, %c7_249, %c0_250] : memref<18x32x128xf32, #tpu.memory_space<vmem>>, vector<16x16x128xf32>
    %183 = arith.truncf %182 : vector<16x16x128xf32> to vector<16x16x128xbf16>
    %c0_251 = arith.constant 0 : index
    %c0_252 = arith.constant 0 : index
    %c0_253 = arith.constant 0 : index
    %c0_254 = arith.constant 0 : index
    %184 = vector.load %arg8[%c0_251, %c0_252, %c0_253, %c0_254] : memref<3x3x128x128xbf16, #tpu.memory_space<vmem>>, vector<1x1x128x128xbf16>
    %185 = vector.shape_cast %184 : vector<1x1x128x128xbf16> to vector<128x128xbf16>
    %cst_255 = arith.constant dense<0.000000e+00> : vector<16x16x128xf32>
    %186 = tpu.matmul %183, %185, %cst_255 {dimension_numbers = #tpu.dot_dimension_numbers<[2], [0], [0, 1], [1], [0, 0, 0, 1, 1, 1], [], []>} : vector<16x16x128xbf16>, vector<128x128xbf16>, vector<16x16x128xf32> -> vector<16x16x128xf32>
    %c0_256 = arith.constant 0 : index
    %c8_257 = arith.constant 8 : index
    %c0_258 = arith.constant 0 : index
    %187 = vector.load %arg13[%c0_256, %c8_257, %c0_258] : memref<18x32x128xf32, #tpu.memory_space<vmem>>, vector<16x16x128xf32>
    %188 = arith.truncf %187 : vector<16x16x128xf32> to vector<16x16x128xbf16>
    %c0_259 = arith.constant 0 : index
    %c1_260 = arith.constant 1 : index
    %c0_261 = arith.constant 0 : index
    %c0_262 = arith.constant 0 : index
    %189 = vector.load %arg8[%c0_259, %c1_260, %c0_261, %c0_262] : memref<3x3x128x128xbf16, #tpu.memory_space<vmem>>, vector<1x1x128x128xbf16>
    %190 = vector.shape_cast %189 : vector<1x1x128x128xbf16> to vector<128x128xbf16>
    %cst_263 = arith.constant dense<0.000000e+00> : vector<16x16x128xf32>
    %191 = tpu.matmul %188, %190, %cst_263 {dimension_numbers = #tpu.dot_dimension_numbers<[2], [0], [0, 1], [1], [0, 0, 0, 1, 1, 1], [], []>} : vector<16x16x128xbf16>, vector<128x128xbf16>, vector<16x16x128xf32> -> vector<16x16x128xf32>
    %192 = arith.addf %186, %191 : vector<16x16x128xf32>
    %c0_264 = arith.constant 0 : index
    %c9_265 = arith.constant 9 : index
    %c0_266 = arith.constant 0 : index
    %193 = vector.load %arg13[%c0_264, %c9_265, %c0_266] : memref<18x32x128xf32, #tpu.memory_space<vmem>>, vector<16x16x128xf32>
    %194 = arith.truncf %193 : vector<16x16x128xf32> to vector<16x16x128xbf16>
    %c0_267 = arith.constant 0 : index
    %c2_268 = arith.constant 2 : index
    %c0_269 = arith.constant 0 : index
    %c0_270 = arith.constant 0 : index
    %195 = vector.load %arg8[%c0_267, %c2_268, %c0_269, %c0_270] : memref<3x3x128x128xbf16, #tpu.memory_space<vmem>>, vector<1x1x128x128xbf16>
    %196 = vector.shape_cast %195 : vector<1x1x128x128xbf16> to vector<128x128xbf16>
    %cst_271 = arith.constant dense<0.000000e+00> : vector<16x16x128xf32>
    %197 = tpu.matmul %194, %196, %cst_271 {dimension_numbers = #tpu.dot_dimension_numbers<[2], [0], [0, 1], [1], [0, 0, 0, 1, 1, 1], [], []>} : vector<16x16x128xbf16>, vector<128x128xbf16>, vector<16x16x128xf32> -> vector<16x16x128xf32>
    %198 = arith.addf %192, %197 : vector<16x16x128xf32>
    %c1_272 = arith.constant 1 : index
    %c7_273 = arith.constant 7 : index
    %c0_274 = arith.constant 0 : index
    %199 = vector.load %arg13[%c1_272, %c7_273, %c0_274] : memref<18x32x128xf32, #tpu.memory_space<vmem>>, vector<16x16x128xf32>
    %200 = arith.truncf %199 : vector<16x16x128xf32> to vector<16x16x128xbf16>
    %c1_275 = arith.constant 1 : index
    %c0_276 = arith.constant 0 : index
    %c0_277 = arith.constant 0 : index
    %c0_278 = arith.constant 0 : index
    %201 = vector.load %arg8[%c1_275, %c0_276, %c0_277, %c0_278] : memref<3x3x128x128xbf16, #tpu.memory_space<vmem>>, vector<1x1x128x128xbf16>
    %202 = vector.shape_cast %201 : vector<1x1x128x128xbf16> to vector<128x128xbf16>
    %cst_279 = arith.constant dense<0.000000e+00> : vector<16x16x128xf32>
    %203 = tpu.matmul %200, %202, %cst_279 {dimension_numbers = #tpu.dot_dimension_numbers<[2], [0], [0, 1], [1], [0, 0, 0, 1, 1, 1], [], []>} : vector<16x16x128xbf16>, vector<128x128xbf16>, vector<16x16x128xf32> -> vector<16x16x128xf32>
    %204 = arith.addf %198, %203 : vector<16x16x128xf32>
    %c1_280 = arith.constant 1 : index
    %c8_281 = arith.constant 8 : index
    %c0_282 = arith.constant 0 : index
    %205 = vector.load %arg13[%c1_280, %c8_281, %c0_282] : memref<18x32x128xf32, #tpu.memory_space<vmem>>, vector<16x16x128xf32>
    %206 = arith.truncf %205 : vector<16x16x128xf32> to vector<16x16x128xbf16>
    %c1_283 = arith.constant 1 : index
    %c1_284 = arith.constant 1 : index
    %c0_285 = arith.constant 0 : index
    %c0_286 = arith.constant 0 : index
    %207 = vector.load %arg8[%c1_283, %c1_284, %c0_285, %c0_286] : memref<3x3x128x128xbf16, #tpu.memory_space<vmem>>, vector<1x1x128x128xbf16>
    %208 = vector.shape_cast %207 : vector<1x1x128x128xbf16> to vector<128x128xbf16>
    %cst_287 = arith.constant dense<0.000000e+00> : vector<16x16x128xf32>
    %209 = tpu.matmul %206, %208, %cst_287 {dimension_numbers = #tpu.dot_dimension_numbers<[2], [0], [0, 1], [1], [0, 0, 0, 1, 1, 1], [], []>} : vector<16x16x128xbf16>, vector<128x128xbf16>, vector<16x16x128xf32> -> vector<16x16x128xf32>
    %210 = arith.addf %204, %209 : vector<16x16x128xf32>
    %c1_288 = arith.constant 1 : index
    %c9_289 = arith.constant 9 : index
    %c0_290 = arith.constant 0 : index
    %211 = vector.load %arg13[%c1_288, %c9_289, %c0_290] : memref<18x32x128xf32, #tpu.memory_space<vmem>>, vector<16x16x128xf32>
    %212 = arith.truncf %211 : vector<16x16x128xf32> to vector<16x16x128xbf16>
    %c1_291 = arith.constant 1 : index
    %c2_292 = arith.constant 2 : index
    %c0_293 = arith.constant 0 : index
    %c0_294 = arith.constant 0 : index
    %213 = vector.load %arg8[%c1_291, %c2_292, %c0_293, %c0_294] : memref<3x3x128x128xbf16, #tpu.memory_space<vmem>>, vector<1x1x128x128xbf16>
    %214 = vector.shape_cast %213 : vector<1x1x128x128xbf16> to vector<128x128xbf16>
    %cst_295 = arith.constant dense<0.000000e+00> : vector<16x16x128xf32>
    %215 = tpu.matmul %212, %214, %cst_295 {dimension_numbers = #tpu.dot_dimension_numbers<[2], [0], [0, 1], [1], [0, 0, 0, 1, 1, 1], [], []>} : vector<16x16x128xbf16>, vector<128x128xbf16>, vector<16x16x128xf32> -> vector<16x16x128xf32>
    %216 = arith.addf %210, %215 : vector<16x16x128xf32>
    %c2_296 = arith.constant 2 : index
    %c7_297 = arith.constant 7 : index
    %c0_298 = arith.constant 0 : index
    %217 = vector.load %arg13[%c2_296, %c7_297, %c0_298] : memref<18x32x128xf32, #tpu.memory_space<vmem>>, vector<16x16x128xf32>
    %218 = arith.truncf %217 : vector<16x16x128xf32> to vector<16x16x128xbf16>
    %c2_299 = arith.constant 2 : index
    %c0_300 = arith.constant 0 : index
    %c0_301 = arith.constant 0 : index
    %c0_302 = arith.constant 0 : index
    %219 = vector.load %arg8[%c2_299, %c0_300, %c0_301, %c0_302] : memref<3x3x128x128xbf16, #tpu.memory_space<vmem>>, vector<1x1x128x128xbf16>
    %220 = vector.shape_cast %219 : vector<1x1x128x128xbf16> to vector<128x128xbf16>
    %cst_303 = arith.constant dense<0.000000e+00> : vector<16x16x128xf32>
    %221 = tpu.matmul %218, %220, %cst_303 {dimension_numbers = #tpu.dot_dimension_numbers<[2], [0], [0, 1], [1], [0, 0, 0, 1, 1, 1], [], []>} : vector<16x16x128xbf16>, vector<128x128xbf16>, vector<16x16x128xf32> -> vector<16x16x128xf32>
    %222 = arith.addf %216, %221 : vector<16x16x128xf32>
    %c2_304 = arith.constant 2 : index
    %c8_305 = arith.constant 8 : index
    %c0_306 = arith.constant 0 : index
    %223 = vector.load %arg13[%c2_304, %c8_305, %c0_306] : memref<18x32x128xf32, #tpu.memory_space<vmem>>, vector<16x16x128xf32>
    %224 = arith.truncf %223 : vector<16x16x128xf32> to vector<16x16x128xbf16>
    %c2_307 = arith.constant 2 : index
    %c1_308 = arith.constant 1 : index
    %c0_309 = arith.constant 0 : index
    %c0_310 = arith.constant 0 : index
    %225 = vector.load %arg8[%c2_307, %c1_308, %c0_309, %c0_310] : memref<3x3x128x128xbf16, #tpu.memory_space<vmem>>, vector<1x1x128x128xbf16>
    %226 = vector.shape_cast %225 : vector<1x1x128x128xbf16> to vector<128x128xbf16>
    %cst_311 = arith.constant dense<0.000000e+00> : vector<16x16x128xf32>
    %227 = tpu.matmul %224, %226, %cst_311 {dimension_numbers = #tpu.dot_dimension_numbers<[2], [0], [0, 1], [1], [0, 0, 0, 1, 1, 1], [], []>} : vector<16x16x128xbf16>, vector<128x128xbf16>, vector<16x16x128xf32> -> vector<16x16x128xf32>
    %228 = arith.addf %222, %227 : vector<16x16x128xf32>
    %c2_312 = arith.constant 2 : index
    %c9_313 = arith.constant 9 : index
    %c0_314 = arith.constant 0 : index
    %229 = vector.load %arg13[%c2_312, %c9_313, %c0_314] : memref<18x32x128xf32, #tpu.memory_space<vmem>>, vector<16x16x128xf32>
    %230 = arith.truncf %229 : vector<16x16x128xf32> to vector<16x16x128xbf16>
    %c2_315 = arith.constant 2 : index
    %c2_316 = arith.constant 2 : index
    %c0_317 = arith.constant 0 : index
    %c0_318 = arith.constant 0 : index
    %231 = vector.load %arg8[%c2_315, %c2_316, %c0_317, %c0_318] : memref<3x3x128x128xbf16, #tpu.memory_space<vmem>>, vector<1x1x128x128xbf16>
    %232 = vector.shape_cast %231 : vector<1x1x128x128xbf16> to vector<128x128xbf16>
    %cst_319 = arith.constant dense<0.000000e+00> : vector<16x16x128xf32>
    %233 = tpu.matmul %230, %232, %cst_319 {dimension_numbers = #tpu.dot_dimension_numbers<[2], [0], [0, 1], [1], [0, 0, 0, 1, 1, 1], [], []>} : vector<16x16x128xbf16>, vector<128x128xbf16>, vector<16x16x128xf32> -> vector<16x16x128xf32>
    %234 = arith.addf %228, %233 : vector<16x16x128xf32>
    %c0_320 = arith.constant 0 : index
    %c0_321 = arith.constant 0 : index
    %235 = vector.load %arg9[%c0_320, %c0_321] : memref<1x128xf32, #tpu.memory_space<vmem>>, vector<1x128xf32>
    %236 = vector.shape_cast %235 : vector<1x128xf32> to vector<1x1x128xf32>
    %237 = vector.broadcast %236 : vector<1x1x128xf32> to vector<16x16x128xf32>
    %238 = arith.addf %234, %237 : vector<16x16x128xf32>
    %cst_322 = arith.constant 0.000000e+00 : f32
    %239 = vector.broadcast %cst_322 : f32 to vector<16x16x128xf32>
    %240 = arith.maximumf %238, %239 : vector<16x16x128xf32>
    %c1_323 = arith.constant 1 : index
    %c8_324 = arith.constant 8 : index
    %c0_325 = arith.constant 0 : index
    %241 = vector.load %arg13[%c1_323, %c8_324, %c0_325] : memref<18x32x128xf32, #tpu.memory_space<vmem>>, vector<16x16x128xf32>
    tpu.vector_store %arg13[%c1_323, %c8_324, %c0_325], %240 {strides = array<i32>} : memref<18x32x128xf32, #tpu.memory_space<vmem>>, vector<16x16x128xf32>,
    %c0_326 = arith.constant 0 : index
    %c7_327 = arith.constant 7 : index
    %c0_328 = arith.constant 0 : index
    %242 = vector.load %arg13[%c0_326, %c7_327, %c0_328] : memref<18x32x128xf32, #tpu.memory_space<vmem>>, vector<16x16x128xf32>
    %243 = vector.shape_cast %242 : vector<16x16x128xf32> to vector<256x128xf32>
    %244 = arith.truncf %243 : vector<256x128xf32> to vector<256x128xbf16>
    %c0_329 = arith.constant 0 : index
    %c0_330 = arith.constant 0 : index
    %c0_331 = arith.constant 0 : index
    %c0_332 = arith.constant 0 : index
    %245 = vector.load %arg10[%c0_329, %c0_330, %c0_331, %c0_332] : memref<3x3x4x128xbf16, #tpu.memory_space<vmem>>, vector<1x1x4x128xbf16>
    %246 = vector.shape_cast %245 : vector<1x1x4x128xbf16> to vector<4x128xbf16>
    %cst_333 = arith.constant dense<0.000000e+00> : vector<4x256xf32>
    %247 = tpu.matmul %246, %244, %cst_333 {dimension_numbers = #tpu.dot_dimension_numbers<[1], [1], [0], [0], [0, 0, 1, 0], [], []>} : vector<4x128xbf16>, vector<256x128xbf16>, vector<4x256xf32> -> vector<4x256xf32>
    %c0_334 = arith.constant 0 : index
    %c8_335 = arith.constant 8 : index
    %c0_336 = arith.constant 0 : index
    %248 = vector.load %arg13[%c0_334, %c8_335, %c0_336] : memref<18x32x128xf32, #tpu.memory_space<vmem>>, vector<16x16x128xf32>
    %249 = vector.shape_cast %248 : vector<16x16x128xf32> to vector<256x128xf32>
    %250 = arith.truncf %249 : vector<256x128xf32> to vector<256x128xbf16>
    %c0_337 = arith.constant 0 : index
    %c1_338 = arith.constant 1 : index
    %c0_339 = arith.constant 0 : index
    %c0_340 = arith.constant 0 : index
    %251 = vector.load %arg10[%c0_337, %c1_338, %c0_339, %c0_340] : memref<3x3x4x128xbf16, #tpu.memory_space<vmem>>, vector<1x1x4x128xbf16>
    %252 = vector.shape_cast %251 : vector<1x1x4x128xbf16> to vector<4x128xbf16>
    %cst_341 = arith.constant dense<0.000000e+00> : vector<4x256xf32>
    %253 = tpu.matmul %252, %250, %cst_341 {dimension_numbers = #tpu.dot_dimension_numbers<[1], [1], [0], [0], [0, 0, 1, 0], [], []>} : vector<4x128xbf16>, vector<256x128xbf16>, vector<4x256xf32> -> vector<4x256xf32>
    %254 = arith.addf %247, %253 : vector<4x256xf32>
    %c0_342 = arith.constant 0 : index
    %c9_343 = arith.constant 9 : index
    %c0_344 = arith.constant 0 : index
    %255 = vector.load %arg13[%c0_342, %c9_343, %c0_344] : memref<18x32x128xf32, #tpu.memory_space<vmem>>, vector<16x16x128xf32>
    %256 = vector.shape_cast %255 : vector<16x16x128xf32> to vector<256x128xf32>
    %257 = arith.truncf %256 : vector<256x128xf32> to vector<256x128xbf16>
    %c0_345 = arith.constant 0 : index
    %c2_346 = arith.constant 2 : index
    %c0_347 = arith.constant 0 : index
    %c0_348 = arith.constant 0 : index
    %258 = vector.load %arg10[%c0_345, %c2_346, %c0_347, %c0_348] : memref<3x3x4x128xbf16, #tpu.memory_space<vmem>>, vector<1x1x4x128xbf16>
    %259 = vector.shape_cast %258 : vector<1x1x4x128xbf16> to vector<4x128xbf16>
    %cst_349 = arith.constant dense<0.000000e+00> : vector<4x256xf32>
    %260 = tpu.matmul %259, %257, %cst_349 {dimension_numbers = #tpu.dot_dimension_numbers<[1], [1], [0], [0], [0, 0, 1, 0], [], []>} : vector<4x128xbf16>, vector<256x128xbf16>, vector<4x256xf32> -> vector<4x256xf32>
    %261 = arith.addf %254, %260 : vector<4x256xf32>
    %c1_350 = arith.constant 1 : index
    %c7_351 = arith.constant 7 : index
    %c0_352 = arith.constant 0 : index
    %262 = vector.load %arg13[%c1_350, %c7_351, %c0_352] : memref<18x32x128xf32, #tpu.memory_space<vmem>>, vector<16x16x128xf32>
    %263 = vector.shape_cast %262 : vector<16x16x128xf32> to vector<256x128xf32>
    %264 = arith.truncf %263 : vector<256x128xf32> to vector<256x128xbf16>
    %c1_353 = arith.constant 1 : index
    %c0_354 = arith.constant 0 : index
    %c0_355 = arith.constant 0 : index
    %c0_356 = arith.constant 0 : index
    %265 = vector.load %arg10[%c1_353, %c0_354, %c0_355, %c0_356] : memref<3x3x4x128xbf16, #tpu.memory_space<vmem>>, vector<1x1x4x128xbf16>
    %266 = vector.shape_cast %265 : vector<1x1x4x128xbf16> to vector<4x128xbf16>
    %cst_357 = arith.constant dense<0.000000e+00> : vector<4x256xf32>
    %267 = tpu.matmul %266, %264, %cst_357 {dimension_numbers = #tpu.dot_dimension_numbers<[1], [1], [0], [0], [0, 0, 1, 0], [], []>} : vector<4x128xbf16>, vector<256x128xbf16>, vector<4x256xf32> -> vector<4x256xf32>
    %268 = arith.addf %261, %267 : vector<4x256xf32>
    %c1_358 = arith.constant 1 : index
    %c8_359 = arith.constant 8 : index
    %c0_360 = arith.constant 0 : index
    %269 = vector.load %arg13[%c1_358, %c8_359, %c0_360] : memref<18x32x128xf32, #tpu.memory_space<vmem>>, vector<16x16x128xf32>
    %270 = vector.shape_cast %269 : vector<16x16x128xf32> to vector<256x128xf32>
    %271 = arith.truncf %270 : vector<256x128xf32> to vector<256x128xbf16>
    %c1_361 = arith.constant 1 : index
    %c1_362 = arith.constant 1 : index
    %c0_363 = arith.constant 0 : index
    %c0_364 = arith.constant 0 : index
    %272 = vector.load %arg10[%c1_361, %c1_362, %c0_363, %c0_364] : memref<3x3x4x128xbf16, #tpu.memory_space<vmem>>, vector<1x1x4x128xbf16>
    %273 = vector.shape_cast %272 : vector<1x1x4x128xbf16> to vector<4x128xbf16>
    %cst_365 = arith.constant dense<0.000000e+00> : vector<4x256xf32>
    %274 = tpu.matmul %273, %271, %cst_365 {dimension_numbers = #tpu.dot_dimension_numbers<[1], [1], [0], [0], [0, 0, 1, 0], [], []>} : vector<4x128xbf16>, vector<256x128xbf16>, vector<4x256xf32> -> vector<4x256xf32>
    %275 = arith.addf %268, %274 : vector<4x256xf32>
    %c1_366 = arith.constant 1 : index
    %c9_367 = arith.constant 9 : index
    %c0_368 = arith.constant 0 : index
    %276 = vector.load %arg13[%c1_366, %c9_367, %c0_368] : memref<18x32x128xf32, #tpu.memory_space<vmem>>, vector<16x16x128xf32>
    %277 = vector.shape_cast %276 : vector<16x16x128xf32> to vector<256x128xf32>
    %278 = arith.truncf %277 : vector<256x128xf32> to vector<256x128xbf16>
    %c1_369 = arith.constant 1 : index
    %c2_370 = arith.constant 2 : index
    %c0_371 = arith.constant 0 : index
    %c0_372 = arith.constant 0 : index
    %279 = vector.load %arg10[%c1_369, %c2_370, %c0_371, %c0_372] : memref<3x3x4x128xbf16, #tpu.memory_space<vmem>>, vector<1x1x4x128xbf16>
    %280 = vector.shape_cast %279 : vector<1x1x4x128xbf16> to vector<4x128xbf16>
    %cst_373 = arith.constant dense<0.000000e+00> : vector<4x256xf32>
    %281 = tpu.matmul %280, %278, %cst_373 {dimension_numbers = #tpu.dot_dimension_numbers<[1], [1], [0], [0], [0, 0, 1, 0], [], []>} : vector<4x128xbf16>, vector<256x128xbf16>, vector<4x256xf32> -> vector<4x256xf32>
    %282 = arith.addf %275, %281 : vector<4x256xf32>
    %c2_374 = arith.constant 2 : index
    %c7_375 = arith.constant 7 : index
    %c0_376 = arith.constant 0 : index
    %283 = vector.load %arg13[%c2_374, %c7_375, %c0_376] : memref<18x32x128xf32, #tpu.memory_space<vmem>>, vector<16x16x128xf32>
    %284 = vector.shape_cast %283 : vector<16x16x128xf32> to vector<256x128xf32>
    %285 = arith.truncf %284 : vector<256x128xf32> to vector<256x128xbf16>
    %c2_377 = arith.constant 2 : index
    %c0_378 = arith.constant 0 : index
    %c0_379 = arith.constant 0 : index
    %c0_380 = arith.constant 0 : index
    %286 = vector.load %arg10[%c2_377, %c0_378, %c0_379, %c0_380] : memref<3x3x4x128xbf16, #tpu.memory_space<vmem>>, vector<1x1x4x128xbf16>
    %287 = vector.shape_cast %286 : vector<1x1x4x128xbf16> to vector<4x128xbf16>
    %cst_381 = arith.constant dense<0.000000e+00> : vector<4x256xf32>
    %288 = tpu.matmul %287, %285, %cst_381 {dimension_numbers = #tpu.dot_dimension_numbers<[1], [1], [0], [0], [0, 0, 1, 0], [], []>} : vector<4x128xbf16>, vector<256x128xbf16>, vector<4x256xf32> -> vector<4x256xf32>
    %289 = arith.addf %282, %288 : vector<4x256xf32>
    %c2_382 = arith.constant 2 : index
    %c8_383 = arith.constant 8 : index
    %c0_384 = arith.constant 0 : index
    %290 = vector.load %arg13[%c2_382, %c8_383, %c0_384] : memref<18x32x128xf32, #tpu.memory_space<vmem>>, vector<16x16x128xf32>
    %291 = vector.shape_cast %290 : vector<16x16x128xf32> to vector<256x128xf32>
    %292 = arith.truncf %291 : vector<256x128xf32> to vector<256x128xbf16>
    %c2_385 = arith.constant 2 : index
    %c1_386 = arith.constant 1 : index
    %c0_387 = arith.constant 0 : index
    %c0_388 = arith.constant 0 : index
    %293 = vector.load %arg10[%c2_385, %c1_386, %c0_387, %c0_388] : memref<3x3x4x128xbf16, #tpu.memory_space<vmem>>, vector<1x1x4x128xbf16>
    %294 = vector.shape_cast %293 : vector<1x1x4x128xbf16> to vector<4x128xbf16>
    %cst_389 = arith.constant dense<0.000000e+00> : vector<4x256xf32>
    %295 = tpu.matmul %294, %292, %cst_389 {dimension_numbers = #tpu.dot_dimension_numbers<[1], [1], [0], [0], [0, 0, 1, 0], [], []>} : vector<4x128xbf16>, vector<256x128xbf16>, vector<4x256xf32> -> vector<4x256xf32>
    %296 = arith.addf %289, %295 : vector<4x256xf32>
    %c2_390 = arith.constant 2 : index
    %c9_391 = arith.constant 9 : index
    %c0_392 = arith.constant 0 : index
    %297 = vector.load %arg13[%c2_390, %c9_391, %c0_392] : memref<18x32x128xf32, #tpu.memory_space<vmem>>, vector<16x16x128xf32>
    %298 = vector.shape_cast %297 : vector<16x16x128xf32> to vector<256x128xf32>
    %299 = arith.truncf %298 : vector<256x128xf32> to vector<256x128xbf16>
    %c2_393 = arith.constant 2 : index
    %c2_394 = arith.constant 2 : index
    %c0_395 = arith.constant 0 : index
    %c0_396 = arith.constant 0 : index
    %300 = vector.load %arg10[%c2_393, %c2_394, %c0_395, %c0_396] : memref<3x3x4x128xbf16, #tpu.memory_space<vmem>>, vector<1x1x4x128xbf16>
    %301 = vector.shape_cast %300 : vector<1x1x4x128xbf16> to vector<4x128xbf16>
    %cst_397 = arith.constant dense<0.000000e+00> : vector<4x256xf32>
    %302 = tpu.matmul %301, %299, %cst_397 {dimension_numbers = #tpu.dot_dimension_numbers<[1], [1], [0], [0], [0, 0, 1, 0], [], []>} : vector<4x128xbf16>, vector<256x128xbf16>, vector<4x256xf32> -> vector<4x256xf32>
    %303 = arith.addf %296, %302 : vector<4x256xf32>
    %c0_398 = arith.constant 0 : index
    %c0_399 = arith.constant 0 : index
    %304 = vector.load %arg11[%c0_398, %c0_399] : memref<4x1xf32, #tpu.memory_space<vmem>>, vector<4x1xf32>
    %305 = vector.broadcast %304 : vector<4x1xf32> to vector<4x256xf32>
    %306 = arith.addf %303, %305 : vector<4x256xf32>
    %c0_400 = arith.constant 0 : index
    %c0_401 = arith.constant 0 : index
    %c0_402 = arith.constant 0 : index
    %307 = vector.load %arg12[%c0_400, %c0_401, %c0_402] : memref<1x4x256xf32, #tpu.memory_space<vmem>>, vector<1x4x256xf32>
    %308 = vector.shape_cast %307 : vector<1x4x256xf32> to vector<4x256xf32>
    %309 = vector.shape_cast %306 : vector<4x256xf32> to vector<1x4x256xf32>
    tpu.vector_store %arg12[%c0_400, %c0_401, %c0_402], %309 {strides = array<i32>} : memref<1x4x256xf32, #tpu.memory_space<vmem>>, vector<1x4x256xf32>,
    return
  }
  func.func @transform_0(%arg0: i32) -> (i32, i32, i32, i32) {
    %c0_i32 = arith.constant 0 : i32
    %c0_i32_0 = arith.constant 0 : i32
    %c0_i32_1 = arith.constant 0 : i32
    %c0_i32_2 = arith.constant 0 : i32
    return %arg0, %c0_i32, %c0_i32_0, %c0_i32_1 : i32, i32, i32, i32
  }
  func.func @transform_1(%arg0: i32) -> (i32, i32, i32, i32) {
    %c0_i32 = arith.constant 0 : i32
    %c0_i32_0 = arith.constant 0 : i32
    %c0_i32_1 = arith.constant 0 : i32
    %c0_i32_2 = arith.constant 0 : i32
    %c0_i32_3 = arith.constant 0 : i32
    return %c0_i32, %c0_i32_0, %c0_i32_1, %c0_i32_2 : i32, i32, i32, i32
  }
  func.func @transform_2(%arg0: i32) -> (i32, i32) {
    %c0_i32 = arith.constant 0 : i32
    %c0_i32_0 = arith.constant 0 : i32
    %c0_i32_1 = arith.constant 0 : i32
    return %c0_i32, %c0_i32_0 : i32, i32
  }
  func.func @transform_3(%arg0: i32) -> (i32, i32, i32, i32) {
    %c0_i32 = arith.constant 0 : i32
    %c0_i32_0 = arith.constant 0 : i32
    %c0_i32_1 = arith.constant 0 : i32
    %c0_i32_2 = arith.constant 0 : i32
    %c0_i32_3 = arith.constant 0 : i32
    return %c0_i32, %c0_i32_0, %c0_i32_1, %c0_i32_2 : i32, i32, i32, i32
  }
  func.func @transform_4(%arg0: i32) -> (i32, i32) {
    %c0_i32 = arith.constant 0 : i32
    %c0_i32_0 = arith.constant 0 : i32
    %c0_i32_1 = arith.constant 0 : i32
    return %c0_i32, %c0_i32_0 : i32, i32
  }
  func.func @transform_5(%arg0: i32) -> (i32, i32, i32, i32) {
    %c0_i32 = arith.constant 0 : i32
    %c0_i32_0 = arith.constant 0 : i32
    %c0_i32_1 = arith.constant 0 : i32
    %c0_i32_2 = arith.constant 0 : i32
    %c0_i32_3 = arith.constant 0 : i32
    return %c0_i32, %c0_i32_0, %c0_i32_1, %c0_i32_2 : i32, i32, i32, i32
  }
  func.func @transform_6(%arg0: i32) -> (i32, i32) {
    %c0_i32 = arith.constant 0 : i32
    %c0_i32_0 = arith.constant 0 : i32
    %c0_i32_1 = arith.constant 0 : i32
    return %c0_i32, %c0_i32_0 : i32, i32
  }
  func.func @transform_7(%arg0: i32) -> (i32, i32, i32, i32) {
    %c0_i32 = arith.constant 0 : i32
    %c0_i32_0 = arith.constant 0 : i32
    %c0_i32_1 = arith.constant 0 : i32
    %c0_i32_2 = arith.constant 0 : i32
    %c0_i32_3 = arith.constant 0 : i32
    return %c0_i32, %c0_i32_0, %c0_i32_1, %c0_i32_2 : i32, i32, i32, i32
  }
  func.func @transform_8(%arg0: i32) -> (i32, i32) {
    %c0_i32 = arith.constant 0 : i32
    %c0_i32_0 = arith.constant 0 : i32
    %c0_i32_1 = arith.constant 0 : i32
    return %c0_i32, %c0_i32_0 : i32, i32
  }
  func.func @transform_9(%arg0: i32) -> (i32, i32, i32, i32) {
    %c0_i32 = arith.constant 0 : i32
    %c0_i32_0 = arith.constant 0 : i32
    %c0_i32_1 = arith.constant 0 : i32
    %c0_i32_2 = arith.constant 0 : i32
    %c0_i32_3 = arith.constant 0 : i32
    return %c0_i32, %c0_i32_0, %c0_i32_1, %c0_i32_2 : i32, i32, i32, i32
  }
  func.func @transform_10(%arg0: i32) -> (i32, i32) {
    %c0_i32 = arith.constant 0 : i32
    %c0_i32_0 = arith.constant 0 : i32
    %c0_i32_1 = arith.constant 0 : i32
    return %c0_i32, %c0_i32_0 : i32, i32
  }
  func.func @transform_11(%arg0: i32) -> (i32, i32, i32) {
    %c0_i32 = arith.constant 0 : i32
    %c0_i32_0 = arith.constant 0 : i32
    %c0_i32_1 = arith.constant 0 : i32
    return %arg0, %c0_i32, %c0_i32_0 : i32, i32, i32
  }
}

</mosaic_0001>

<bundles_post_ra>
// kernel: regression_model_forward.1
= control target key start
LH: loop header
LB: loop body
LE: loop exit
PB: predicated region body
PF: predicated region fallthrough
CT: control target
= control target key end

     0   :  { %s18474_s17 = smov 0   ;;  %s21106_s0 = inlined_call_operand.vmem [shape: f32[2,16,16,4], index: 0, kind: input, shape index: {}]   ;;  %s21107_s1 = inlined_call_operand.vmem [shape: f32[3,3,4,128], index: 1, kind: input, shape index: {}]   ;;  %s21108_s2 = inlined_call_operand.vmem [shape: f32[1,128], index: 2, kind: input, shape index: {}]   ;;  %s21109_s3 = inlined_call_operand.vmem [shape: bf16[3,3,128,128], index: 3, kind: input, shape index: {}]   ;;  %s21110_s4 = inlined_call_operand.vmem [shape: f32[1,128], index: 4, kind: input, shape index: {}]   ;;  %s21111_s5 = inlined_call_operand.vmem [shape: bf16[3,3,128,128], index: 5, kind: input, shape index: {}]   ;;  %s21112_s6 = inlined_call_operand.vmem [shape: f32[1,128], index: 6, kind: input, shape index: {}]   ;;  %s21113_s7 = inlined_call_operand.vmem [shape: bf16[3,3,128,128], index: 7, kind: input, shape index: {}]   ;;  %s21114_s8 = inlined_call_operand.vmem [shape: f32[1,128], index: 8, kind: input, shape index: {}]   ;;  %s21115_s9 = inlined_call_operand.vmem [shape: bf16[3,3,4,128], index: 9, kind: input, shape index: {}]   ;;  %s21116_s10 = inlined_call_operand.vmem [shape: f32[4,1], index: 10, kind: input, shape index: {}]   ;;  %s21117_s11 = inlined_call_operand.vmem [shape: f32[2,4,256], index: 11, kind: output, shape index: {}]  }
   0x1 LB: > { %s13321_s18 = sadd.s32 4294967295, %s18410_s17   ;;  %p13325_p0 = scmp.ge.s32.totalorder %s18410_s17, 1  ;;  %s18410_s17 = sphi %s18474_s17, %s21_s17  }
   0x2   : > { %p337_p1 = scmp.lt.s32.totalorder %s18410_s17, 3 }
   0x4   : > { %p338_p2 = pnand %p13325_p0, %p337_p1 }
   0x6   : > { %341 = sbr.rel (%p338_p2) target bundleno = 3503 (0xdaf), region = 64 }
   0xd   : > { %v13330_v0 = vld [vmem:[%s21107_s1 + $0x4] sm:$0xf]  ;;  %vm658_vm0 = vcmask 1043456   ;;  %vm462_vm1 = vcmask 31744   ;;  %p18487_p3 = scmp.lt.s32.totalorder %s13321_s18, 1  ;;  %v18412_v1 = vmov 0.0  }
   0xe   : > { %15358 = vmatprep.subr.msk.mxu0 %vm658_vm0, %v13330_v0  ;;  %389 = vst [vmem:[#allocation2 + $0x8] sm:$0xff] %v18412_v1  ;;  %15360 = vmatprep.mubr.msk.f32.mxu0 %vm462_vm1, %v18412_v1  ;;  %388 = vst [vmem:[#allocation2] sm:$0xff] %v18412_v1  ;;  %v527_v2 = vld [vmem:[%s21107_s1] sm:$0xf]  ;;  %v18499_v3 = vld [vmem:[%s21107_s1 + $0x8] sm:$0xf] }
   0xf   : > { %390 = vst [vmem:[#allocation2 + $0x10] sm:$0xff] %v18412_v1  ;;  %391 = vst [vmem:[#allocation2 + $0x18] sm:$0xff] %v18412_v1  ;;  %15359 = vmatpush3.msk.msra.mxu0 %vm658_vm0, %v13330_v0  ;;  %s21183_s18 = smov (!%p18487_p3, %s13321_s18), 1  ;;  %17104 = vmatprep.subr.msk.mxu1 %vm658_vm0, %v13330_v0  ;;  %v18599_v50 = vld [vmem:[%s21107_s1 + $0xc] sm:$0xf] }
  0x10   : > { %393 = vst [vmem:[#allocation2 + $0x220] sm:$0xff] %v18412_v1  ;;  %394 = vst [vmem:[#allocation2 + $0x228] sm:$0xff] %v18412_v1  ;;  %15408 = vmatprep.subr.msk.mxu0 %vm658_vm0, %v527_v2  ;;  %15361 = vmatmul.mubr.msk.f32.vlgmr.msra.gmra.mrb[0].mxu0 %vm462_vm1, %v18412_v1  ;;  %s14249_s26 = sshll.u32 %s21183_s18, 8 }
  0x11   : > { %395 = vst [vmem:[#allocation2 + $0x230] sm:$0xff] %v18412_v1  ;;  %396 = vst [vmem:[#allocation2 + $0x238] sm:$0xff] %v18412_v1  ;;  %15409 = vmatpush3.msk.msra.mxu0 %vm658_vm0, %v527_v2  ;;  %17105 = vmatpush3.msk.msra.mxu1 %vm658_vm0, %v13330_v0  ;;  %s18517_s29 = scalar_lea.vmem %s21106_s0, %s14249_s26  ;;  %s14250_s26 = sshll.u32 %s21183_s18, 3 }
  0x12   : > { %398 = vst [vmem:[#allocation2 + $0x27] sm:$0x1] %v18412_v1  ;;  %399 = vst [vmem:[#allocation2 + $0x47] sm:$0x1] %v18412_v1  ;;  %15458 = vmatprep.subr.msk.mxu0 %vm658_vm0, %v18499_v3  ;;  %v430_v4 = vld [vmem:[%s18517_s29] sm:$0xff]  ;;  %v431_v5 = vld [vmem:[%s18517_s29 + $0x8] sm:$0xff] }
  0x13   : > { %400 = vst [vmem:[#allocation2 + $0x67] sm:$0x1] %v18412_v1  ;;  %401 = vst [vmem:[#allocation2 + $0x87] sm:$0x1] %v18412_v1  ;;  %v432_v6 = vld [vmem:[%s18517_s29 + $0x10] sm:$0xff]  ;;  %v433_v7 = vld [vmem:[%s18517_s29 + $0x18] sm:$0xff] }
  0x14   : > { %402 = vst [vmem:[#allocation2 + $0xa7] sm:$0x1] %v18412_v1  ;;  %403 = vst [vmem:[#allocation2 + $0xc7] sm:$0x1] %v18412_v1  ;;  %v434_v8 = vld [vmem:[%s18517_s29 + $0x20] sm:$0xff]  ;;  %v435_v9 = vld [vmem:[%s18517_s29 + $0x28] sm:$0xff] }
  0x15   : > { %404 = vst [vmem:[#allocation2 + $0xe7] sm:$0x1] %v18412_v1  ;;  %405 = vst [vmem:[#allocation2 + $0x107] sm:$0x1] %v18412_v1  ;;  %v436_v10 = vld [vmem:[%s18517_s29 + $0x30] sm:$0xff]  ;;  %v437_v11 = vld [vmem:[%s18517_s29 + $0x38] sm:$0xff] }
  0x16   : > { %406 = vst [vmem:[#allocation2 + $0x127] sm:$0x1] %v18412_v1  ;;  %407 = vst [vmem:[#allocation2 + $0x147] sm:$0x1] %v18412_v1  ;;  %v438_v12 = vld [vmem:[%s18517_s29 + $0x40] sm:$0xff]  ;;  %v439_v13 = vld [vmem:[%s18517_s29 + $0x48] sm:$0xff] }
  0x17   : > { %408 = vst [vmem:[#allocation2 + $0x167] sm:$0x1] %v18412_v1  ;;  %409 = vst [vmem:[#allocation2 + $0x187] sm:$0x1] %v18412_v1  ;;  %v440_v14 = vld [vmem:[%s18517_s29 + $0x50] sm:$0xff]  ;;  %v441_v15 = vld [vmem:[%s18517_s29 + $0x58] sm:$0xff] }
  0x18   : > { %410 = vst [vmem:[#allocation2 + $0x1a7] sm:$0x1] %v18412_v1  ;;  %411 = vst [vmem:[#allocation2 + $0x1c7] sm:$0x1] %v18412_v1  ;;  %v442_v16 = vld [vmem:[%s18517_s29 + $0x60] sm:$0xff]  ;;  %v443_v17 = vld [vmem:[%s18517_s29 + $0x68] sm:$0xff] }
  0x19   : > { %412 = vst [vmem:[#allocation2 + $0x1e7] sm:$0x1] %v18412_v1  ;;  %413 = vst [vmem:[#allocation2 + $0x207] sm:$0x1] %v18412_v1  ;;  %v444_v18 = vld [vmem:[%s18517_s29 + $0x70] sm:$0xff]  ;;  %v445_v19 = vld [vmem:[%s18517_s29 + $0x78] sm:$0xff] }
  0x1a   : > { %414 = vst [vmem:[#allocation2 + $0x38] sm:$0x1] %v18412_v1  ;;  %415 = vst [vmem:[#allocation2 + $0x58] sm:$0x1] %v18412_v1  ;;  %v446_v20 = vld [vmem:[%s18517_s29 + $0x80] sm:$0xff]  ;;  %v447_v21 = vld [vmem:[%s18517_s29 + $0x88] sm:$0xff] }
  0x1b   : > { %416 = vst [vmem:[#allocation2 + $0x78] sm:$0x1] %v18412_v1  ;;  %417 = vst [vmem:[#allocation2 + $0x98] sm:$0x1] %v18412_v1  ;;  %v448_v22 = vld [vmem:[%s18517_s29 + $0x90] sm:$0xff]  ;;  %v449_v23 = vld [vmem:[%s18517_s29 + $0x98] sm:$0xff] }
  0x1c   : > { %418 = vst [vmem:[#allocation2 + $0xb8] sm:$0x1] %v18412_v1  ;;  %419 = vst [vmem:[#allocation2 + $0xd8] sm:$0x1] %v18412_v1  ;;  %v450_v24 = vld [vmem:[%s18517_s29 + $0xa0] sm:$0xff]  ;;  %v451_v25 = vld [vmem:[%s18517_s29 + $0xa8] sm:$0xff] }
  0x1d   : > { %420 = vst [vmem:[#allocation2 + $0xf8] sm:$0x1] %v18412_v1  ;;  %421 = vst [vmem:[#allocation2 + $0x118] sm:$0x1] %v18412_v1  ;;  %v452_v35 = vld [vmem:[%s18517_s29 + $0xb0] sm:$0xff]  ;;  %v453_v36 = vld [vmem:[%s18517_s29 + $0xb8] sm:$0xff] }
  0x1e   : > { %422 = vst [vmem:[#allocation2 + $0x138] sm:$0x1] %v18412_v1  ;;  %423 = vst [vmem:[#allocation2 + $0x158] sm:$0x1] %v18412_v1  ;;  %v454_v37 = vld [vmem:[%s18517_s29 + $0xc0] sm:$0xff]  ;;  %v455_v38 = vld [vmem:[%s18517_s29 + $0xc8] sm:$0xff] }
  0x1f   : > { %424 = vst [vmem:[#allocation2 + $0x178] sm:$0x1] %v18412_v1  ;;  %425 = vst [vmem:[#allocation2 + $0x198] sm:$0x1] %v18412_v1  ;;  %v456_v39 = vld [vmem:[%s18517_s29 + $0xd0] sm:$0xff]  ;;  %v457_v40 = vld [vmem:[%s18517_s29 + $0xd8] sm:$0xff] }
  0x20   : > { %426 = vst [vmem:[#allocation2 + $0x1b8] sm:$0x1] %v18412_v1  ;;  %427 = vst [vmem:[#allocation2 + $0x1d8] sm:$0x1] %v18412_v1  ;;  %v458_v41 = vld [vmem:[%s18517_s29 + $0xe0] sm:$0xff]  ;;  %v459_v42 = vld [vmem:[%s18517_s29 + $0xe8] sm:$0xff] }
  0x21   : > { %428 = vst [vmem:[#allocation2 + $0x1f8] sm:$0x1] %v18412_v1  ;;  %429 = vst [vmem:[#allocation2 + $0x218] sm:$0x1] %v18412_v1  ;;  %v495_v48 = vld [vmem:[#allocation2 + $0x7] sm:$0xff]  ;;  %v496_v49 = vld [vmem:[#allocation2 + $0xf] sm:$0xff] }
  0x22   : > { %463 = vst.msk [vmem:[#allocation2 + $0x28] sm:$0xff] %vm462_vm1, %v430_v4  ;;  %464 = vst.msk [vmem:[#allocation2 + $0x30] sm:$0xff] %vm462_vm1, %v431_v5 }
  0x23   : > { %465 = vst.msk [vmem:[#allocation2 + $0x48] sm:$0xff] %vm462_vm1, %v432_v6  ;;  %466 = vst.msk [vmem:[#allocation2 + $0x50] sm:$0xff] %vm462_vm1, %v433_v7 }
  0x24   : > { %467 = vst.msk [vmem:[#allocation2 + $0x68] sm:$0xff] %vm462_vm1, %v434_v8  ;;  %468 = vst.msk [vmem:[#allocation2 + $0x70] sm:$0xff] %vm462_vm1, %v435_v9 }
  0x25   : > { %469 = vst.msk [vmem:[#allocation2 + $0x88] sm:$0xff] %vm462_vm1, %v436_v10  ;;  %470 = vst.msk [vmem:[#allocation2 + $0x90] sm:$0xff] %vm462_vm1, %v437_v11 }
  0x26   : > { %471 = vst.msk [vmem:[#allocation2 + $0xa8] sm:$0xff] %vm462_vm1, %v438_v12  ;;  %472 = vst.msk [vmem:[#allocation2 + $0xb0] sm:$0xff] %vm462_vm1, %v439_v13 }
  0x27   : > { %473 = vst.msk [vmem:[#allocation2 + $0xc8] sm:$0xff] %vm462_vm1, %v440_v14  ;;  %474 = vst.msk [vmem:[#allocation2 + $0xd0] sm:$0xff] %vm462_vm1, %v441_v15  ;;  %v460_v14 = vld [vmem:[%s18517_s29 + $0xf0] sm:$0xff] }
  0x28   : > { %475 = vst.msk [vmem:[#allocation2 + $0xe8] sm:$0xff] %vm462_vm1, %v442_v16  ;;  %476 = vst.msk [vmem:[#allocation2 + $0xf0] sm:$0xff] %vm462_vm1, %v443_v17  ;;  %v461_v16 = vld [vmem:[%s18517_s29 + $0xf8] sm:$0xff]  ;;  %s386_s29 = scalar_lea.vmem %s21117_s11, %s14250_s26 }
  0x29   : > { %477 = vst.msk [vmem:[#allocation2 + $0x108] sm:$0xff] %vm462_vm1, %v444_v18  ;;  %478 = vst.msk [vmem:[#allocation2 + $0x110] sm:$0xff] %vm462_vm1, %v445_v19  ;;  %v530_v26 = vld [vmem:[#allocation2 + $0x28] sm:$0xff]  ;;  %v531_v27 = vld [vmem:[#allocation2 + $0x30] sm:$0xff] }
  0x2a   : > { %479 = vst.msk [vmem:[#allocation2 + $0x128] sm:$0xff] %vm462_vm1, %v446_v20  ;;  %480 = vst.msk [vmem:[#allocation2 + $0x130] sm:$0xff] %vm462_vm1, %v447_v21  ;;  %v532_v28 = vld [vmem:[#allocation2 + $0x48] sm:$0xff]  ;;  %15363 = vmatprep.mubr.msk.f32.mxu0 %vm462_vm1, %v530_v26  ;;  %v533_v29 = vld [vmem:[#allocation2 + $0x50] sm:$0xff] }
  0x2b   : > { %481 = vst.msk [vmem:[#allocation2 + $0x148] sm:$0xff] %vm462_vm1, %v448_v22  ;;  %482 = vst.msk [vmem:[#allocation2 + $0x150] sm:$0xff] %vm462_vm1, %v449_v23  ;;  %15364 = vmatmul.mubr.msk.f32.gmra.mrb[2].mxu0 %vm462_vm1, %v531_v27  ;;  %v534_v30 = vld [vmem:[#allocation2 + $0x68] sm:$0xff]  ;;  %v535_v31 = vld [vmem:[#allocation2 + $0x70] sm:$0xff] }
  0x2c   : > { %483 = vst.msk [vmem:[#allocation2 + $0x168] sm:$0xff] %vm462_vm1, %v450_v24  ;;  %484 = vst.msk [vmem:[#allocation2 + $0x170] sm:$0xff] %vm462_vm1, %v451_v25  ;;  %15366 = vmatprep.mubr.msk.f32.mxu0 %vm462_vm1, %v532_v28  ;;  %v536_v32 = vld [vmem:[#allocation2 + $0x88] sm:$0xff]  ;;  %v537_v33 = vld [vmem:[#allocation2 + $0x90] sm:$0xff] }
  0x2d   : > { %v538_v34 = vld [vmem:[#allocation2 + $0xa8] sm:$0xff]  ;;  %485 = vst.msk [vmem:[#allocation2 + $0x188] sm:$0xff] %vm462_vm1, %v452_v35  ;;  %486 = vst.msk [vmem:[#allocation2 + $0x190] sm:$0xff] %vm462_vm1, %v453_v36  ;;  %v539_v43 = vld [vmem:[#allocation2 + $0xb0] sm:$0xff] }
  0x2e   : > { %487 = vst.msk [vmem:[#allocation2 + $0x1a8] sm:$0xff] %vm462_vm1, %v454_v37  ;;  %488 = vst.msk [vmem:[#allocation2 + $0x1b0] sm:$0xff] %vm462_vm1, %v455_v38  ;;  %v540_v44 = vld [vmem:[#allocation2 + $0xc8] sm:$0xff]  ;;  %v541_v45 = vld [vmem:[#allocation2 + $0xd0] sm:$0xff] }
  0x2f   : > { %15367 = vmatmul.mubr.msk.f32.gmra.mrb[4].mxu0 %vm462_vm1, %v533_v29  ;;  %489 = vst.msk [vmem:[#allocation2 + $0x1c8] sm:$0xff] %vm462_vm1, %v456_v39  ;;  %490 = vst.msk [vmem:[#allocation2 + $0x1d0] sm:$0xff] %vm462_vm1, %v457_v40  ;;  %v542_v46 = vld [vmem:[#allocation2 + $0xe8] sm:$0xff]  ;;  %v543_v47 = vld [vmem:[#allocation2 + $0xf0] sm:$0xff] }
  0x30   : > { %15369 = vmatprep.mubr.msk.f32.mxu0 %vm462_vm1, %v534_v30  ;;  %491 = vst.msk [vmem:[#allocation2 + $0x1e8] sm:$0xff] %vm462_vm1, %v458_v41  ;;  %492 = vst.msk [vmem:[#allocation2 + $0x1f0] sm:$0xff] %vm462_vm1, %v459_v42  ;;  %v497_v51 = vld [vmem:[#allocation2 + $0x27] sm:$0xff]  ;;  %v498_v52 = vld [vmem:[#allocation2 + $0x2f] sm:$0xff] }
  0x31   : > { %v499_v53 = vld [vmem:[#allocation2 + $0x47] sm:$0xff]  ;;  %v500_v54 = vld [vmem:[#allocation2 + $0x4f] sm:$0xff]  ;;  %493 = vst.msk [vmem:[#allocation2 + $0x208] sm:$0xff] %vm462_vm1, %v460_v14  ;;  %494 = vst.msk [vmem:[#allocation2 + $0x210] sm:$0xff] %vm462_vm1, %v461_v16 }
  0x32   : > { %v501_v55 = vld [vmem:[#allocation2 + $0x67] sm:$0xff]  ;;  %v502_v56 = vld [vmem:[#allocation2 + $0x6f] sm:$0xff] }
  0x33   : > { %15370 = vmatmul.mubr.msk.f32.gmra.mrb[6].mxu0 %vm462_vm1, %v535_v31  ;;  %v503_v57 = vld [vmem:[#allocation2 + $0x87] sm:$0xff]  ;;  %v504_v58 = vld [vmem:[#allocation2 + $0x8f] sm:$0xff] }
  0x34   : > { %15372 = vmatprep.mubr.msk.f32.mxu0 %vm462_vm1, %v536_v32  ;;  %v505_v59 = vld [vmem:[#allocation2 + $0xa7] sm:$0xff]  ;;  %v506_v60 = vld [vmem:[#allocation2 + $0xaf] sm:$0xff] }
  0x35   : > { %v507_v61 = vld [vmem:[#allocation2 + $0xc7] sm:$0xff]  ;;  %v508_v62 = vld [vmem:[#allocation2 + $0xcf] sm:$0xff] }
  0x36   : > { %v509_v63 = vld [vmem:[#allocation2 + $0xe7] sm:$0xff]  ;;  %v18617_v0 = vld [vmem:[#allocation2 + $0xef] sm:$0xff] }
  0x37   : > { %15373 = vmatmul.mubr.msk.f32.gmra.mrb[8].mxu0 %vm462_vm1, %v537_v33  ;;  %v18620_v1 = vld [vmem:[#allocation2 + $0x107] sm:$0xff]  ;;  %v18623_v2 = vld [vmem:[#allocation2 + $0x10f] sm:$0xff] }
  0x38   : > { %15375 = vmatprep.mubr.msk.f32.mxu0 %vm462_vm1, %v538_v34  ;;  %v18631_v4 = vld [vmem:[#allocation2 + $0x12f] sm:$0xff]  ;;  %v18635_v5 = vld [vmem:[#allocation2 + $0x147] sm:$0xff] }
  0x39   : > { %v18639_v6 = vld [vmem:[#allocation2 + $0x14f] sm:$0xff]  ;;  %v18643_v7 = vld [vmem:[#allocation2 + $0x167] sm:$0xff] }
  0x3a   : > { %v18647_v8 = vld [vmem:[#allocation2 + $0x16f] sm:$0xff]  ;;  %v18651_v9 = vld [vmem:[#allocation2 + $0x187] sm:$0xff] }
  0x3b   : > { %15376 = vmatmul.mubr.msk.f32.gmra.mrb[10].mxu0 %vm462_vm1, %v539_v43  ;;  %v18655_v10 = vld [vmem:[#allocation2 + $0x18f] sm:$0xff]  ;;  %v18659_v11 = vld [vmem:[#allocation2 + $0x1a7] sm:$0xff] }
  0x3c   : > { %15378 = vmatprep.mubr.msk.f32.mxu0 %vm462_vm1, %v540_v44  ;;  %v18663_v12 = vld [vmem:[#allocation2 + $0x1af] sm:$0xff]  ;;  %v18667_v13 = vld [vmem:[#allocation2 + $0x1c7] sm:$0xff] }
  0x3d   : > { %v18672_v15 = vld [vmem:[#allocation2 + $0x1cf] sm:$0xff]  ;;  %v18678_v17 = vld [vmem:[#allocation2 + $0x1e7] sm:$0xff] }
  0x3e   : > { %v18683_v18 = vld [vmem:[#allocation2 + $0x1ef] sm:$0xff] }
  0x3f   : > { %15379 = vmatmul.mubr.msk.f32.gmra.mrb[12].mxu0 %vm462_vm1, %v541_v45  ;;  %v1211_v19 = vld [vmem:[#allocation2 + $0x9] sm:$0xff]  ;;  %v1212_v20 = vld [vmem:[#allocation2 + $0x11] sm:$0xff] }
  0x40   : > { %15381 = vmatprep.mubr.msk.f32.mxu0 %vm462_vm1, %v542_v46  ;;  %v18691_v21 = vld [vmem:[#allocation2 + $0x29] sm:$0xff]  ;;  %v18699_v23 = vld [vmem:[#allocation2 + $0x31] sm:$0xff] }
  0x41   : > { %v18697_v22 = vld [vmem:[%s21107_s1 + $0x10] sm:$0xf]  ;;  %v18756_v37 = vld [vmem:[#allocation2 + $0x108] sm:$0xff] }
  0x42   : > { %v18702_v24 = vld [vmem:[#allocation2 + $0x49] sm:$0xff]  ;;  %v18710_v25 = vld [vmem:[#allocation2 + $0x51] sm:$0xff]  ;;  %15384 = vmatprep.mubr.msk.f32.mxu1 %vm462_vm1, %v18756_v37 }
  0x43   : > { %15382 = vmatmul.mubr.msk.f32.gmra.mrb[14].mxu0 %vm462_vm1, %v543_v47  ;;  %v18714_v26 = vld [vmem:[#allocation2 + $0x69] sm:$0xff]  ;;  %v18718_v27 = vld [vmem:[#allocation2 + $0x71] sm:$0xff] }
  0x44   : > { %15410 = vmatprep.mubr.msk.f32.mxu0 %vm462_vm1, %v495_v48  ;;  %v18722_v28 = vld [vmem:[#allocation2 + $0x89] sm:$0xff]  ;;  %v18726_v29 = vld [vmem:[#allocation2 + $0x91] sm:$0xff] }
  0x45   : > { %v18730_v30 = vld [vmem:[#allocation2 + $0xa9] sm:$0xff]  ;;  %v18734_v31 = vld [vmem:[#allocation2 + $0xb1] sm:$0xff] }
  0x46   : > { %v18738_v32 = vld [vmem:[#allocation2 + $0xc9] sm:$0xff]  ;;  %v18742_v33 = vld [vmem:[#allocation2 + $0xd1] sm:$0xff] }
  0x47   : > { %15411 = vmatmul.mubr.msk.f32.vlgmr.msra.gmra.mrb[0].mxu0 %vm462_vm1, %v496_v49  ;;  %v18746_v34 = vld [vmem:[#allocation2 + $0xe9] sm:$0xff]  ;;  %v18750_v35 = vld [vmem:[#allocation2 + $0xf1] sm:$0xff] }
  0x48   : > { %15459 = vmatpush3.msk.msra.mxu0 %vm658_vm0, %v18499_v3  ;;  %15413 = vmatprep.mubr.msk.f32.mxu0 %vm462_vm1, %v497_v51  ;;  %v18627_v3 = vld [vmem:[#allocation2 + $0x127] sm:$0xff]  ;;  %v18760_v38 = vld [vmem:[#allocation2 + $0x110] sm:$0xff] }
  0x49   : > { %15508 = vmatprep.subr.msk.mxu0 %vm658_vm0, %v18599_v50  ;;  %v18754_v36 = vld [vmem:[#allocation2 + $0x109] sm:$0xff]  ;;  %15385 = vmatmul.mubr.msk.f32.vlgmr.msra.gmra.mrb[0].mxu1 %vm462_vm1, %v18760_v38  ;;  %v18766_v39 = vld [vmem:[#allocation2 + $0x111] sm:$0xff] }
  0x4a   : > { %v18770_v40 = vld [vmem:[#allocation2 + $0x129] sm:$0xff]  ;;  %v18782_v43 = vld [vmem:[#allocation2 + $0x131] sm:$0xff] }
  0x4b   : > { %15414 = vmatmul.mubr.msk.f32.gmra.mrb[2].mxu0 %vm462_vm1, %v498_v52  ;;  %v18772_v41 = vld [vmem:[#allocation2 + $0x128] sm:$0xff]  ;;  %v18776_v42 = vld [vmem:[#allocation2 + $0x130] sm:$0xff] }
  0x4c   : > { %15416 = vmatprep.mubr.msk.f32.mxu0 %vm462_vm1, %v499_v53  ;;  %15387 = vmatprep.mubr.msk.f32.mxu1 %vm462_vm1, %v18772_v41  ;;  %v18786_v44 = vld [vmem:[#allocation2 + $0x149] sm:$0xff]  ;;  %v18798_v47 = vld [vmem:[#allocation2 + $0x151] sm:$0xff] }
  0x4d   : > { %15388 = vmatmul.mubr.msk.f32.gmra.mrb[2].mxu1 %vm462_vm1, %v18776_v42  ;;  %v18788_v45 = vld [vmem:[#allocation2 + $0x148] sm:$0xff]  ;;  %v18792_v46 = vld [vmem:[#allocation2 + $0x150] sm:$0xff] }
  0x4e   : > { %15390 = vmatprep.mubr.msk.f32.mxu1 %vm462_vm1, %v18788_v45  ;;  %v18802_v48 = vld [vmem:[#allocation2 + $0x169] sm:$0xff]  ;;  %v18814_v51 = vld [vmem:[#allocation2 + $0x171] sm:$0xff] }
  0x4f   : > { %15417 = vmatmul.mubr.msk.f32.gmra.mrb[4].mxu0 %vm462_vm1, %v500_v54  ;;  %v18804_v49 = vld [vmem:[#allocation2 + $0x168] sm:$0xff]  ;;  %21142 = vst [vmem:[#allocation3_spill] sm:$0xff] %v18814_v51  ;;  %v18824_v54 = vld [vmem:[#allocation2 + $0x190] sm:$0xff] }
  0x50   : > { %15419 = vmatprep.mubr.msk.f32.mxu0 %vm462_vm1, %v501_v55  ;;  %v18818_v52 = vld [vmem:[#allocation2 + $0x189] sm:$0xff]  ;;  %v18830_v55 = vld [vmem:[#allocation2 + $0x191] sm:$0xff] }
  0x51   : > { %15391 = vmatmul.mubr.msk.f32.gmra.mrb[4].mxu1 %vm462_vm1, %v18792_v46  ;;  %21143 = vst [vmem:[#allocation4_spill] sm:$0xff] %v18818_v52  ;;  %v18820_v53 = vld [vmem:[#allocation2 + $0x188] sm:$0xff] }
  0x52   : > { %15393 = vmatprep.mubr.msk.f32.mxu1 %vm462_vm1, %v18804_v49  ;;  %v18866_v14 = vld [vmem:[#allocation2 + $0x1e9] sm:$0xff] }
  0x53   : > { %15420 = vmatmul.mubr.msk.f32.gmra.mrb[6].mxu0 %vm462_vm1, %v502_v56  ;;  %v18834_v56 = vld [vmem:[#allocation2 + $0x1a9] sm:$0xff]  ;;  %21149 = vst [vmem:[#allocation10_spill] sm:$0xff] %v18866_v14 }
  0x54   : > { %15422 = vmatprep.mubr.msk.f32.mxu0 %vm462_vm1, %v503_v57  ;;  %21144 = vst [vmem:[#allocation5_spill] sm:$0xff] %v18834_v56  ;;  %v18836_v57 = vld [vmem:[#allocation2 + $0x1a8] sm:$0xff] }
  0x55   : > { %21145 = vst [vmem:[#allocation6_spill] sm:$0xff] %v18836_v57  ;;  %v18868_v16 = vld [vmem:[#allocation2 + $0x1e8] sm:$0xff] }
  0x56   : > { %21150 = vst [vmem:[#allocation11_spill] sm:$0xff] %v18868_v16 }
  0x57   : > { %15423 = vmatmul.mubr.msk.f32.gmra.mrb[8].mxu0 %vm462_vm1, %v504_v58  ;;  %v18840_v58 = vld [vmem:[#allocation2 + $0x1b0] sm:$0xff] }
  0x58   : > { %15425 = vmatprep.mubr.msk.f32.mxu0 %vm462_vm1, %v505_v59  ;;  %v18846_v59 = vld [vmem:[#allocation2 + $0x1b1] sm:$0xff] }
  0x59   : > { %21146 = vst [vmem:[#allocation7_spill] sm:$0xff] %v18846_v59 }
  0x5b   : > { %15426 = vmatmul.mubr.msk.f32.gmra.mrb[10].mxu0 %vm462_vm1, %v506_v60  ;;  %v18850_v60 = vld [vmem:[#allocation2 + $0x1c9] sm:$0xff] }
  0x5c   : > { %15428 = vmatprep.mubr.msk.f32.mxu0 %vm462_vm1, %v507_v61  ;;  %21147 = vst [vmem:[#allocation8_spill] sm:$0xff] %v18850_v60  ;;  %v18852_v61 = vld [vmem:[#allocation2 + $0x1c8] sm:$0xff] }
  0x5f   : > { %15429 = vmatmul.mubr.msk.f32.gmra.mrb[12].mxu0 %vm462_vm1, %v508_v62  ;;  %v18856_v62 = vld [vmem:[#allocation2 + $0x1d0] sm:$0xff] }
  0x60   : > { %15431 = vmatprep.mubr.msk.f32.mxu0 %vm462_vm1, %v509_v63  ;;  %v18862_v63 = vld [vmem:[#allocation2 + $0x1d1] sm:$0xff] }
  0x61   : > { %21148 = vst [vmem:[#allocation9_spill] sm:$0xff] %v18862_v63 }
  0x63   : > { %15432 = vmatmul.mubr.msk.f32.gmra.mrb[14].mxu0 %vm462_vm1, %v18617_v0 }
  0x64   : > { %15434 = vmatprep.mubr.msk.f32.mxu0 %vm462_vm1, %v18620_v1 }
  0x67   : > { %15435 = vmatmul.mubr.msk.f32.gmra.mrb[16].mxu0 %vm462_vm1, %v18623_v2 }
  0x68   : > { %15437 = vmatprep.mubr.msk.f32.mxu0 %vm462_vm1, %v18627_v3 }
  0x6b   : > { %15438 = vmatmul.mubr.msk.f32.gmra.mrb[18].mxu0 %vm462_vm1, %v18631_v4 }
  0x6c   : > { %15440 = vmatprep.mubr.msk.f32.mxu0 %vm462_vm1, %v18635_v5 }
  0x6f   : > { %15441 = vmatmul.mubr.msk.f32.gmra.mrb[20].mxu0 %vm462_vm1, %v18639_v6 }
  0x70   : > { %15443 = vmatprep.mubr.msk.f32.mxu0 %vm462_vm1, %v18643_v7 }
  0x73   : > { %15444 = vmatmul.mubr.msk.f32.gmra.mrb[22].mxu0 %vm462_vm1, %v18647_v8 }
  0x74   : > { %15446 = vmatprep.mubr.msk.f32.mxu0 %vm462_vm1, %v18651_v9 }
  0x77   : > { %15447 = vmatmul.mubr.msk.f32.gmra.mrb[24].mxu0 %vm462_vm1, %v18655_v10 }
  0x78   : > { %15449 = vmatprep.mubr.msk.f32.mxu0 %vm462_vm1, %v18659_v11 }
  0x7b   : > { %15450 = vmatmul.mubr.msk.f32.gmra.mrb[26].mxu0 %vm462_vm1, %v18663_v12 }
  0x7c   : > { %15452 = vmatprep.mubr.msk.f32.mxu0 %vm462_vm1, %v18667_v13 }
  0x7f   : > { %15453 = vmatmul.mubr.msk.f32.gmra.mrb[28].mxu0 %vm462_vm1, %v18672_v15 }
  0x80   : > { %15455 = vmatprep.mubr.msk.f32.mxu0 %vm462_vm1, %v18678_v17 }
  0x83   : > { %15456 = vmatmul.mubr.msk.f32.gmra.mrb[30].mxu0 %vm462_vm1, %v18683_v18 }
  0x84   : > { %15460 = vmatprep.mubr.msk.f32.mxu0 %vm462_vm1, %v1211_v19  ;;  %v18872_v19 = vld [vmem:[#allocation2 + $0x1f0] sm:$0xff] }
  0x87   : > { %15461 = vmatmul.mubr.msk.f32.vlgmr.msra.gmra.mrb[0].mxu0 %vm462_vm1, %v1212_v20  ;;  %v18882_v20 = vld [vmem:[#allocation2 + $0x1f1] sm:$0xff] }
  0x88   : > { %15509 = vmatpush3.msk.msra.mxu0 %vm658_vm0, %v18599_v50  ;;  %15463 = vmatprep.mubr.msk.f32.mxu0 %vm462_vm1, %v18691_v21  ;;  %v18808_v50 = vld [vmem:[#allocation2 + $0x170] sm:$0xff]  ;;  %21151 = vst [vmem:[#allocation12_spill] sm:$0xff] %v18882_v20 }
  0x89   : > { %15558 = vmatprep.subr.msk.mxu0 %vm658_vm0, %v18697_v22  ;;  %15394 = vmatmul.mubr.msk.f32.gmra.mrb[6].mxu1 %vm462_vm1, %v18808_v50 }
  0x8a   : > { %15396 = vmatprep.mubr.msk.f32.mxu1 %vm462_vm1, %v18820_v53 }
  0x8b   : > { %15464 = vmatmul.mubr.msk.f32.gmra.mrb[2].mxu0 %vm462_vm1, %v18699_v23 }
  0x8c   : > { %15466 = vmatprep.mubr.msk.f32.mxu0 %vm462_vm1, %v18702_v24 }
  0x8d   : > { %15397 = vmatmul.mubr.msk.f32.gmra.mrb[8].mxu1 %vm462_vm1, %v18824_v54 }
  0x8e   : > { %15399 = vmatprep.mubr.msk.f32.mxu1 %vm462_vm1, %v18836_v57 }
  0x8f   : > { %15467 = vmatmul.mubr.msk.f32.gmra.mrb[4].mxu0 %vm462_vm1, %v18710_v25 }
  0x90   : > { %15469 = vmatprep.mubr.msk.f32.mxu0 %vm462_vm1, %v18714_v26 }
  0x91   : > { %15400 = vmatmul.mubr.msk.f32.gmra.mrb[10].mxu1 %vm462_vm1, %v18840_v58 }
  0x92   : > { %15402 = vmatprep.mubr.msk.f32.mxu1 %vm462_vm1, %v18852_v61 }
  0x93   : > { %15470 = vmatmul.mubr.msk.f32.gmra.mrb[6].mxu0 %vm462_vm1, %v18718_v27 }
  0x94   : > { %15472 = vmatprep.mubr.msk.f32.mxu0 %vm462_vm1, %v18722_v28 }
  0x95   : > { %15403 = vmatmul.mubr.msk.f32.gmra.mrb[12].mxu1 %vm462_vm1, %v18856_v62 }
  0x96   : > { %15405 = vmatprep.mubr.msk.f32.mxu1 %vm462_vm1, %v18868_v16 }
  0x97   : > { %15473 = vmatmul.mubr.msk.f32.gmra.mrb[8].mxu0 %vm462_vm1, %v18726_v29 }
  0x98   : > { %15475 = vmatprep.mubr.msk.f32.mxu0 %vm462_vm1, %v18730_v30 }
  0x99   : > { %15406 = vmatmul.mubr.msk.f32.gmra.mrb[14].mxu1 %vm462_vm1, %v18872_v19 }
  0x9b   : > { %15476 = vmatmul.mubr.msk.f32.gmra.mrb[10].mxu0 %vm462_vm1, %v18734_v31 }
  0x9c   : > { %15478 = vmatprep.mubr.msk.f32.mxu0 %vm462_vm1, %v18738_v32 }
  0x9f   : > { %15479 = vmatmul.mubr.msk.f32.gmra.mrb[12].mxu0 %vm462_vm1, %v18742_v33 }
  0xa0   : > { %15481 = vmatprep.mubr.msk.f32.mxu0 %vm462_vm1, %v18746_v34 }
  0xa3   : > { %15482 = vmatmul.mubr.msk.f32.gmra.mrb[14].mxu0 %vm462_vm1, %v18750_v35 }
  0xa4   : > { %15484 = vmatprep.mubr.msk.f32.mxu0 %vm462_vm1, %v18754_v36 }
  0xa7   : > { %15485 = vmatmul.mubr.msk.f32.gmra.mrb[16].mxu0 %vm462_vm1, %v18766_v39 }
  0xa8   : > { %15487 = vmatprep.mubr.msk.f32.mxu0 %vm462_vm1, %v18770_v40 }
  0xab   : > { %15488 = vmatmul.mubr.msk.f32.gmra.mrb[18].mxu0 %vm462_vm1, %v18782_v43 }
  0xac   : > { %15490 = vmatprep.mubr.msk.f32.mxu0 %vm462_vm1, %v18786_v44 }
  0xaf   : > { %15491 = vmatmul.mubr.msk.f32.gmra.mrb[20].mxu0 %vm462_vm1, %v18798_v47 }
  0xb0   : > { %15493 = vmatprep.mubr.msk.f32.mxu0 %vm462_vm1, %v18802_v48 }
  0xb3   : > { %15494 = vmatmul.mubr.msk.f32.gmra.mrb[22].mxu0 %vm462_vm1, %v18814_v51 }
  0xb4   : > { %15496 = vmatprep.mubr.msk.f32.mxu0 %vm462_vm1, %v18818_v52 }
  0xb7   : > { %15497 = vmatmul.mubr.msk.f32.gmra.mrb[24].mxu0 %vm462_vm1, %v18830_v55 }
  0xb8   : > { %15499 = vmatprep.mubr.msk.f32.mxu0 %vm462_vm1, %v18834_v56  ;;  %v18358_v56 = vld [vmem:[#allocation2 + $0x2f] sm:$0xff] }
  0xbb   : > { %15500 = vmatmul.mubr.msk.f32.gmra.mrb[26].mxu0 %vm462_vm1, %v18846_v59  ;;  %v13499_v59 = vld [vmem:[%s21107_s1 + $0x14] sm:$0xf] }
  0xbc   : > { %15502 = vmatprep.mubr.msk.f32.mxu0 %vm462_vm1, %v18850_v60  ;;  %v18357_v60 = vld [vmem:[#allocation2 + $0x27] sm:$0xff] }
  0xbf   : > { %15503 = vmatmul.mubr.msk.f32.gmra.mrb[28].mxu0 %vm462_vm1, %v18862_v63  ;;  %v18893_v63 = vld [vmem:[#allocation2 + $0x47] sm:$0xff] }
  0xc0   : > { %15505 = vmatprep.mubr.msk.f32.mxu0 %vm462_vm1, %v18866_v14  ;;  %21152 = vst [vmem:[#allocation13_spill] sm:$0xff] %v18893_v63 }
  0xc3   : > { %15506 = vmatmul.mubr.msk.f32.gmra.mrb[30].mxu0 %vm462_vm1, %v18882_v20  ;;  %v18898_v20 = vld [vmem:[#allocation2 + $0x4f] sm:$0xff] }
  0xc4   : > { %15510 = vmatprep.mubr.msk.f32.mxu0 %vm462_vm1, %v18357_v60  ;;  %21153 = vst [vmem:[#allocation14_spill] sm:$0xff] %v18898_v20  ;;  %v18902_v60 = vld [vmem:[#allocation2 + $0x67] sm:$0xff] }
  0xc5   : > { %21154 = vst [vmem:[#allocation15_spill] sm:$0xff] %v18902_v60 }
  0xc7   : > { %15511 = vmatmul.mubr.msk.f32.vlgmr.msra.gmra.mrb[0].mxu0 %vm462_vm1, %v18358_v56  ;;  %v18906_v56 = vld [vmem:[#allocation2 + $0x6f] sm:$0xff] }
  0xc8   : > { %15559 = vmatpush3.msk.msra.mxu0 %vm658_vm0, %v18697_v22  ;;  %15513 = vmatprep.mubr.msk.f32.mxu0 %vm462_vm1, %v18893_v63  ;;  %21155 = vst [vmem:[#allocation16_spill] sm:$0xff] %v18906_v56  ;;  %v18910_v22 = vld [vmem:[#allocation2 + $0x87] sm:$0xff]  ;;  %v18914_v63 = vld [vmem:[#allocation2 + $0x8f] sm:$0xff] }
  0xc9   : > { %15608 = vmatprep.subr.msk.mxu0 %vm658_vm0, %v13499_v59  ;;  %21156 = vst [vmem:[#allocation17_spill] sm:$0xff] %v18910_v22  ;;  %21157 = vst [vmem:[#allocation18_spill] sm:$0xff] %v18914_v63 }
  0xcb   : > { %15514 = vmatmul.mubr.msk.f32.gmra.mrb[2].mxu0 %vm462_vm1, %v18898_v20  ;;  %v18918_v20 = vld [vmem:[#allocation2 + $0xa7] sm:$0xff] }
  0xcc   : > { %15516 = vmatprep.mubr.msk.f32.mxu0 %vm462_vm1, %v18902_v60  ;;  %v18922_v60 = vld [vmem:[#allocation2 + $0xaf] sm:$0xff] }
  0xcf   : > { %15517 = vmatmul.mubr.msk.f32.gmra.mrb[4].mxu0 %vm462_vm1, %v18906_v56  ;;  %v18926_v56 = vld [vmem:[#allocation2 + $0xc7] sm:$0xff] }
  0xd0   : > { %15519 = vmatprep.mubr.msk.f32.mxu0 %vm462_vm1, %v18910_v22  ;;  %v18930_v22 = vld [vmem:[#allocation2 + $0xcf] sm:$0xff] }
  0xd3   : > { %15520 = vmatmul.mubr.msk.f32.gmra.mrb[6].mxu0 %vm462_vm1, %v18914_v63  ;;  %v18934_v63 = vld [vmem:[#allocation2 + $0xe7] sm:$0xff] }
  0xd4   : > { %15522 = vmatprep.mubr.msk.f32.mxu0 %vm462_vm1, %v18918_v20 }
  0xd7   : > { %15523 = vmatmul.mubr.msk.f32.gmra.mrb[8].mxu0 %vm462_vm1, %v18922_v60 }
  0xd8   : > { %15525 = vmatprep.mubr.msk.f32.mxu0 %vm462_vm1, %v18926_v56 }
  0xdb   : > { %15526 = vmatmul.mubr.msk.f32.gmra.mrb[10].mxu0 %vm462_vm1, %v18930_v22 }
  0xdc   : > { %15528 = vmatprep.mubr.msk.f32.mxu0 %vm462_vm1, %v18934_v63 }
  0xdf   : > { %15529 = vmatmul.mubr.msk.f32.gmra.mrb[12].mxu0 %vm462_vm1, %v18617_v0  ;;  %v18970_v0 = vld [vmem:[#allocation2 + $0x207] sm:$0xff] }
  0xe0   : > { %15531 = vmatprep.mubr.msk.f32.mxu0 %vm462_vm1, %v18620_v1  ;;  %v18976_v1 = vld [vmem:[#allocation2 + $0x20f] sm:$0xff] }
  0xe3   : > { %15532 = vmatmul.mubr.msk.f32.gmra.mrb[14].mxu0 %vm462_vm1, %v18623_v2  ;;  %v18370_v2 = vld [vmem:[#allocation2 + $0x28] sm:$0xff] }
  0xe4   : > { %15534 = vmatprep.mubr.msk.f32.mxu0 %vm462_vm1, %v18627_v3  ;;  %v13533_v3 = vld [vmem:[%s21107_s1 + $0x18] sm:$0xf] }
  0xe7   : > { %15535 = vmatmul.mubr.msk.f32.gmra.mrb[16].mxu0 %vm462_vm1, %v18631_v4  ;;  %v18371_v4 = vld [vmem:[#allocation2 + $0x30] sm:$0xff] }
  0xe8   : > { %15537 = vmatprep.mubr.msk.f32.mxu0 %vm462_vm1, %v18635_v5  ;;  %v18986_v5 = vld [vmem:[#allocation2 + $0x48] sm:$0xff] }
  0xeb   : > { %15538 = vmatmul.mubr.msk.f32.gmra.mrb[18].mxu0 %vm462_vm1, %v18639_v6  ;;  %v18991_v6 = vld [vmem:[#allocation2 + $0x50] sm:$0xff] }
  0xec   : > { %15540 = vmatprep.mubr.msk.f32.mxu0 %vm462_vm1, %v18643_v7  ;;  %v18995_v7 = vld [vmem:[#allocation2 + $0x68] sm:$0xff] }
  0xef   : > { %15541 = vmatmul.mubr.msk.f32.gmra.mrb[20].mxu0 %vm462_vm1, %v18647_v8  ;;  %v18999_v8 = vld [vmem:[#allocation2 + $0x70] sm:$0xff] }
  0xf0   : > { %15543 = vmatprep.mubr.msk.f32.mxu0 %vm462_vm1, %v18651_v9  ;;  %v19003_v9 = vld [vmem:[#allocation2 + $0x88] sm:$0xff] }
  0xf3   : > { %15544 = vmatmul.mubr.msk.f32.gmra.mrb[22].mxu0 %vm462_vm1, %v18655_v10  ;;  %v19007_v10 = vld [vmem:[#allocation2 + $0x90] sm:$0xff] }
  0xf4   : > { %15546 = vmatprep.mubr.msk.f32.mxu0 %vm462_vm1, %v18659_v11  ;;  %v19011_v11 = vld [vmem:[#allocation2 + $0xa8] sm:$0xff] }
  0xf7   : > { %15547 = vmatmul.mubr.msk.f32.gmra.mrb[24].mxu0 %vm462_vm1, %v18663_v12  ;;  %v19015_v12 = vld [vmem:[#allocation2 + $0xb0] sm:$0xff] }
  0xf8   : > { %15549 = vmatprep.mubr.msk.f32.mxu0 %vm462_vm1, %v18667_v13  ;;  %v19019_v13 = vld [vmem:[#allocation2 + $0xc8] sm:$0xff] }
  0xfb   : > { %15550 = vmatmul.mubr.msk.f32.gmra.mrb[26].mxu0 %vm462_vm1, %v18672_v15  ;;  %v19023_v15 = vld [vmem:[#allocation2 + $0xd0] sm:$0xff] }
  0xfc   : > { %15552 = vmatprep.mubr.msk.f32.mxu0 %vm462_vm1, %v18678_v17 }
  0xff   : > { %15553 = vmatmul.mubr.msk.f32.gmra.mrb[28].mxu0 %vm462_vm1, %v18683_v18 }
 0x100   : > { %15555 = vmatprep.mubr.msk.f32.mxu0 %vm462_vm1, %v18970_v0 }
 0x103   : > { %15556 = vmatmul.mubr.msk.f32.gmra.mrb[30].mxu0 %vm462_vm1, %v18976_v1 }
 0x104   : > { %15560 = vmatprep.mubr.msk.f32.mxu0 %vm462_vm1, %v18370_v2  ;;  %v19031_v2 = vld [vmem:[#allocation2 + $0xf0] sm:$0xff] }
 0x107   : > { %15561 = vmatmul.mubr.msk.f32.vlgmr.msra.gmra.mrb[0].mxu0 %vm462_vm1, %v18371_v4  ;;  %v19065_v4 = vld [vmem:[#allocation2 + $0x208] sm:$0xff] }
 0x108   : > { %15609 = vmatpush3.msk.msra.mxu0 %vm658_vm0, %v13499_v59  ;;  %15563 = vmatprep.mubr.msk.f32.mxu0 %vm462_vm1, %v18986_v5  ;;  %v19027_v59 = vld [vmem:[#allocation2 + $0xe8] sm:$0xff] }
 0x109   : > { %15658 = vmatprep.subr.msk.mxu0 %vm658_vm0, %v13533_v3 }
 0x10b   : > { %15564 = vmatmul.mubr.msk.f32.gmra.mrb[2].mxu0 %vm462_vm1, %v18991_v6 }
 0x10c   : > { %15566 = vmatprep.mubr.msk.f32.mxu0 %vm462_vm1, %v18995_v7 }
 0x10f   : > { %15567 = vmatmul.mubr.msk.f32.gmra.mrb[4].mxu0 %vm462_vm1, %v18999_v8 }
 0x110   : > { %15569 = vmatprep.mubr.msk.f32.mxu0 %vm462_vm1, %v19003_v9 }
 0x113   : > { %15570 = vmatmul.mubr.msk.f32.gmra.mrb[6].mxu0 %vm462_vm1, %v19007_v10 }
 0x114   : > { %15572 = vmatprep.mubr.msk.f32.mxu0 %vm462_vm1, %v19011_v11 }
 0x117   : > { %15573 = vmatmul.mubr.msk.f32.gmra.mrb[8].mxu0 %vm462_vm1, %v19015_v12 }
 0x118   : > { %15575 = vmatprep.mubr.msk.f32.mxu0 %vm462_vm1, %v19019_v13 }
 0x11b   : > { %15576 = vmatmul.mubr.msk.f32.gmra.mrb[10].mxu0 %vm462_vm1, %v19023_v15 }
 0x11c   : > { %15578 = vmatprep.mubr.msk.f32.mxu0 %vm462_vm1, %v19027_v59 }
 0x11f   : > { %15579 = vmatmul.mubr.msk.f32.gmra.mrb[12].mxu0 %vm462_vm1, %v19031_v2 }
 0x120   : > { %15581 = vmatprep.mubr.msk.f32.mxu0 %vm462_vm1, %v18756_v37 }
 0x123   : > { %15582 = vmatmul.mubr.msk.f32.gmra.mrb[14].mxu0 %vm462_vm1, %v18760_v38 }
 0x124   : > { %15584 = vmatprep.mubr.msk.f32.mxu0 %vm462_vm1, %v18772_v41 }
 0x127   : > { %15585 = vmatmul.mubr.msk.f32.gmra.mrb[16].mxu0 %vm462_vm1, %v18776_v42 }
 0x128   : > { %15587 = vmatprep.mubr.msk.f32.mxu0 %vm462_vm1, %v18788_v45 }
 0x12b   : > { %15588 = vmatmul.mubr.msk.f32.gmra.mrb[18].mxu0 %vm462_vm1, %v18792_v46 }
 0x12c   : > { %15590 = vmatprep.mubr.msk.f32.mxu0 %vm462_vm1, %v18804_v49 }
 0x12f   : > { %15591 = vmatmul.mubr.msk.f32.gmra.mrb[20].mxu0 %vm462_vm1, %v18808_v50 }
 0x130   : > { %15593 = vmatprep.mubr.msk.f32.mxu0 %vm462_vm1, %v18820_v53 }
 0x133   : > { %15594 = vmatmul.mubr.msk.f32.gmra.mrb[22].mxu0 %vm462_vm1, %v18824_v54 }
 0x134   : > { %15596 = vmatprep.mubr.msk.f32.mxu0 %vm462_vm1, %v18836_v57  ;;  %v19071_v57 = vld [vmem:[#allocation2 + $0x210] sm:$0xff] }
 0x137   : > { %15597 = vmatmul.mubr.msk.f32.gmra.mrb[24].mxu0 %vm462_vm1, %v18840_v58 }
 0x138   : > { %15599 = vmatprep.mubr.msk.f32.mxu0 %vm462_vm1, %v18852_v61 }
 0x13b   : > { %15600 = vmatmul.mubr.msk.f32.gmra.mrb[26].mxu0 %vm462_vm1, %v18856_v62 }
 0x13c   : > { %15602 = vmatprep.mubr.msk.f32.mxu0 %vm462_vm1, %v18868_v16  ;;  %v13567_v16 = vld [vmem:[%s21107_s1 + $0x1c] sm:$0xf] }
 0x13f   : > { %15603 = vmatmul.mubr.msk.f32.gmra.mrb[28].mxu0 %vm462_vm1, %v18872_v19 }
 0x140   : > { %15605 = vmatprep.mubr.msk.f32.mxu0 %vm462_vm1, %v19065_v4 }
 0x143   : > { %15606 = vmatmul.mubr.msk.f32.gmra.mrb[30].mxu0 %vm462_vm1, %v19071_v57 }
 0x144   : > { %15610 = vmatprep.mubr.msk.f32.mxu0 %vm462_vm1, %v18691_v21  ;;  %v21158_v21 = vld [vmem:[#allocation5_spill] sm:$0xff] }
 0x147   : > { %15611 = vmatmul.mubr.msk.f32.vlgmr.msra.gmra.mrb[0].mxu0 %vm462_vm1, %v18699_v23  ;;  %v21159_v23 = vld [vmem:[#allocation7_spill] sm:$0xff] }
 0x148   : > { %15659 = vmatpush3.msk.msra.mxu0 %vm658_vm0, %v13533_v3  ;;  %15613 = vmatprep.mubr.msk.f32.mxu0 %vm462_vm1, %v18702_v24  ;;  %v21160_v24 = vld [vmem:[#allocation8_spill] sm:$0xff]  ;;  %v21161_v3 = vld [vmem:[#allocation9_spill] sm:$0xff] }
 0x149   : > { %15708 = vmatprep.subr.msk.mxu0 %vm658_vm0, %v13567_v16 }
 0x14b   : > { %15614 = vmatmul.mubr.msk.f32.gmra.mrb[2].mxu0 %vm462_vm1, %v18710_v25 }
 0x14c   : > { %15616 = vmatprep.mubr.msk.f32.mxu0 %vm462_vm1, %v18714_v26 }
 0x14f   : > { %15617 = vmatmul.mubr.msk.f32.gmra.mrb[4].mxu0 %vm462_vm1, %v18718_v27 }
 0x150   : > { %15619 = vmatprep.mubr.msk.f32.mxu0 %vm462_vm1, %v18722_v28 }
 0x153   : > { %15620 = vmatmul.mubr.msk.f32.gmra.mrb[6].mxu0 %vm462_vm1, %v18726_v29 }
 0x154   : > { %15622 = vmatprep.mubr.msk.f32.mxu0 %vm462_vm1, %v18730_v30 }
 0x157   : > { %15623 = vmatmul.mubr.msk.f32.gmra.mrb[8].mxu0 %vm462_vm1, %v18734_v31 }
 0x158   : > { %15625 = vmatprep.mubr.msk.f32.mxu0 %vm462_vm1, %v18738_v32 }
 0x15b   : > { %15626 = vmatmul.mubr.msk.f32.gmra.mrb[10].mxu0 %vm462_vm1, %v18742_v33 }
 0x15c   : > { %15628 = vmatprep.mubr.msk.f32.mxu0 %vm462_vm1, %v18746_v34 }
 0x15f   : > { %15629 = vmatmul.mubr.msk.f32.gmra.mrb[12].mxu0 %vm462_vm1, %v18750_v35 }
 0x160   : > { %15631 = vmatprep.mubr.msk.f32.mxu0 %vm462_vm1, %v18754_v36 }
 0x163   : > { %15632 = vmatmul.mubr.msk.f32.gmra.mrb[14].mxu0 %vm462_vm1, %v18766_v39 }
 0x164   : > { %15634 = vmatprep.mubr.msk.f32.mxu0 %vm462_vm1, %v18770_v40 }
 0x167   : > { %15635 = vmatmul.mubr.msk.f32.gmra.mrb[16].mxu0 %vm462_vm1, %v18782_v43 }
 0x168   : > { %15637 = vmatprep.mubr.msk.f32.mxu0 %vm462_vm1, %v18786_v44 }
 0x16b   : > { %15638 = vmatmul.mubr.msk.f32.gmra.mrb[18].mxu0 %vm462_vm1, %v18798_v47 }
 0x16c   : > { %15640 = vmatprep.mubr.msk.f32.mxu0 %vm462_vm1, %v18802_v48 }
 0x16f   : > { %15641 = vmatmul.mubr.msk.f32.gmra.mrb[20].mxu0 %vm462_vm1, %v18814_v51  ;;  %v19138_v51 = vld [vmem:[#allocation2 + $0x209] sm:$0xff] }
 0x170   : > { %15643 = vmatprep.mubr.msk.f32.mxu0 %vm462_vm1, %v18818_v52  ;;  %21162 = vst [vmem:[#allocation7_spill] sm:$0xff] %v19138_v51  ;;  %v21163_v52 = vld [vmem:[#allocation12_spill] sm:$0xff] }
 0x173   : > { %15644 = vmatmul.mubr.msk.f32.gmra.mrb[22].mxu0 %vm462_vm1, %v18830_v55 }
 0x174   : > { %15646 = vmatprep.mubr.msk.f32.mxu0 %vm462_vm1, %v21158_v21  ;;  %v19144_v21 = vld [vmem:[#allocation2 + $0x211] sm:$0xff] }
 0x175   : > { %21164 = vst [vmem:[#allocation19_spill] sm:$0xff] %v19144_v21 }
 0x177   : > { %15647 = vmatmul.mubr.msk.f32.gmra.mrb[24].mxu0 %vm462_vm1, %v21159_v23 }
 0x178   : > { %15649 = vmatprep.mubr.msk.f32.mxu0 %vm462_vm1, %v21160_v24  ;;  %v21165_v24 = vld [vmem:[#allocation13_spill] sm:$0xff] }
 0x17b   : > { %15650 = vmatmul.mubr.msk.f32.gmra.mrb[26].mxu0 %vm462_vm1, %v21161_v3  ;;  %v21166_v3 = vld [vmem:[#allocation14_spill] sm:$0xff] }
 0x17c   : > { %15652 = vmatprep.mubr.msk.f32.mxu0 %vm462_vm1, %v18866_v14  ;;  %v13601_v14 = vld [vmem:[%s21107_s1 + $0x20] sm:$0xf] }
 0x17f   : > { %15653 = vmatmul.mubr.msk.f32.gmra.mrb[28].mxu0 %vm462_vm1, %v21163_v52  ;;  %v21167_v52 = vld [vmem:[#allocation15_spill] sm:$0xff] }
 0x180   : > { %15655 = vmatprep.mubr.msk.f32.mxu0 %vm462_vm1, %v19138_v51  ;;  %v21168_v51 = vld [vmem:[#allocation16_spill] sm:$0xff] }
 0x183   : > { %15656 = vmatmul.mubr.msk.f32.gmra.mrb[30].mxu0 %vm462_vm1, %v19144_v21  ;;  %v21169_v21 = vld [vmem:[#allocation17_spill] sm:$0xff] }
 0x184   : > { %15660 = vmatprep.mubr.msk.f32.mxu0 %vm462_vm1, %v21165_v24  ;;  %v21170_v24 = vld [vmem:[#allocation18_spill] sm:$0xff] }
 0x187   : > { %15661 = vmatmul.mubr.msk.f32.vlgmr.msra.gmra.mrb[0].mxu0 %vm462_vm1, %v21166_v3  ;;  %v18393_v3 = vld [vmem:[#allocation2 + $0x187] sm:$0xff] }
 0x188   : > { %15709 = vmatpush3.msk.msra.mxu0 %vm658_vm0, %v13567_v16  ;;  %15663 = vmatprep.mubr.msk.f32.mxu0 %vm462_vm1, %v21167_v52  ;;  %v18385_v52 = vld [vmem:[#allocation2 + $0x107] sm:$0xff]  ;;  %v18386_v16 = vld [vmem:[#allocation2 + $0x10f] sm:$0xff] }
 0x189   : > { %15758 = vmatprep.subr.msk.mxu0 %vm658_vm0, %v13601_v14 }
 0x18b   : > { %15664 = vmatmul.mubr.msk.f32.gmra.mrb[2].mxu0 %vm462_vm1, %v21168_v51  ;;  %v18384_v51 = vld [vmem:[#allocation2 + $0xef] sm:$0xff] }
 0x18c   : > { %15666 = vmatprep.mubr.msk.f32.mxu0 %vm462_vm1, %v21169_v21  ;;  %v18392_v21 = vld [vmem:[#allocation2 + $0x16f] sm:$0xff] }
 0x18f   : > { %15667 = vmatmul.mubr.msk.f32.gmra.mrb[4].mxu0 %vm462_vm1, %v21170_v24  ;;  %v18394_v24 = vld [vmem:[#allocation2 + $0x18f] sm:$0xff] }
 0x190   : > { %15669 = vmatprep.mubr.msk.f32.mxu0 %vm462_vm1, %v18918_v20  ;;  %v18387_v20 = vld [vmem:[#allocation2 + $0x127] sm:$0xff] }
 0x193   : > { %15670 = vmatmul.mubr.msk.f32.gmra.mrb[6].mxu0 %vm462_vm1, %v18922_v60  ;;  %v18388_v60 = vld [vmem:[#allocation2 + $0x12f] sm:$0xff] }
 0x194   : > { %15672 = vmatprep.mubr.msk.f32.mxu0 %vm462_vm1, %v18926_v56  ;;  %v18389_v56 = vld [vmem:[#allocation2 + $0x147] sm:$0xff] }
 0x197   : > { %15673 = vmatmul.mubr.msk.f32.gmra.mrb[8].mxu0 %vm462_vm1, %v18930_v22  ;;  %v18390_v22 = vld [vmem:[#allocation2 + $0x14f] sm:$0xff] }
 0x198   : > { %15675 = vmatprep.mubr.msk.f32.mxu0 %vm462_vm1, %v18934_v63  ;;  %v18391_v63 = vld [vmem:[#allocation2 + $0x167] sm:$0xff] }
 0x19b   : > { %15676 = vmatmul.mubr.msk.f32.gmra.mrb[10].mxu0 %vm462_vm1, %v18384_v51  ;;  %v18395_v51 = vld [vmem:[#allocation2 + $0x1a7] sm:$0xff] }
 0x19c   : > { %15678 = vmatprep.mubr.msk.f32.mxu0 %vm462_vm1, %v18385_v52  ;;  %v18396_v52 = vld [vmem:[#allocation2 + $0x1af] sm:$0xff] }
 0x19f   : > { %15679 = vmatmul.mubr.msk.f32.gmra.mrb[12].mxu0 %vm462_vm1, %v18386_v16  ;;  %v18397_v16 = vld [vmem:[#allocation2 + $0x1c7] sm:$0xff] }
 0x1a0   : > { %15681 = vmatprep.mubr.msk.f32.mxu0 %vm462_vm1, %v18387_v20  ;;  %v18398_v20 = vld [vmem:[#allocation2 + $0x1cf] sm:$0xff] }
 0x1a3   : > { %15682 = vmatmul.mubr.msk.f32.gmra.mrb[14].mxu0 %vm462_vm1, %v18388_v60  ;;  %v2802_v60 = vld [vmem:[#allocation2 + $0x227] sm:$0xff] }
 0x1a4   : > { %15684 = vmatprep.mubr.msk.f32.mxu0 %vm462_vm1, %v18389_v56  ;;  %v2803_v56 = vld [vmem:[#allocation2 + $0x22f] sm:$0xff] }
 0x1a7   : > { %15685 = vmatmul.mubr.msk.f32.gmra.mrb[16].mxu0 %vm462_vm1, %v18390_v22  ;;  %v18141_v22 = vld [vmem:[%s21109_s3 + $0x40] sm:$0xff]  }
 0x1a8   : > { %15687 = vmatprep.mubr.msk.f32.mxu0 %vm462_vm1, %v18391_v63  ;;  %15808 = vmatprep.subr.bf16.mxu1 %v18141_v22 }
 0x1a9   : > { %15809 = vmatpush3.bf16.msra.mxu1 %v18141_v22 }
 0x1ab   : > { %15688 = vmatmul.mubr.msk.f32.gmra.mrb[18].mxu0 %vm462_vm1, %v18392_v21 }
 0x1ac   : > { %15690 = vmatprep.mubr.msk.f32.mxu0 %vm462_vm1, %v18393_v3 }
 0x1af   : > { %15691 = vmatmul.mubr.msk.f32.gmra.mrb[20].mxu0 %vm462_vm1, %v18394_v24 }
 0x1b0   : > { %15693 = vmatprep.mubr.msk.f32.mxu0 %vm462_vm1, %v18395_v51 }
 0x1b3   : > { %15694 = vmatmul.mubr.msk.f32.gmra.mrb[22].mxu0 %vm462_vm1, %v18396_v52 }
 0x1b4   : > { %15696 = vmatprep.mubr.msk.f32.mxu0 %vm462_vm1, %v18397_v16 }
 0x1b7   : > { %15697 = vmatmul.mubr.msk.f32.gmra.mrb[24].mxu0 %vm462_vm1, %v18398_v20  ;;  %v18151_v20 = vld [vmem:[%s21109_s3 + $0x10] sm:$0xff]  }
 0x1b8   : > { %15699 = vmatprep.mubr.msk.f32.mxu0 %vm462_vm1, %v18678_v17  ;;  %v18142_v17 = vld [vmem:[%s21109_s3 + $0x48] sm:$0xff]  }
 0x1b9   : > { %15810 = vmatprep.subr.bf16.mxu1 %v18142_v17 }
 0x1ba   : > { %15811 = vmatpush3.bf16.msra.mxu1 %v18142_v17 }
 0x1bb   : > { %15700 = vmatmul.mubr.msk.f32.gmra.mrb[26].mxu0 %vm462_vm1, %v18683_v18  ;;  %v18143_v18 = vld [vmem:[%s21109_s3 + $0x50] sm:$0xff]  }
 0x1bc   : > { %15702 = vmatprep.mubr.msk.f32.mxu0 %vm462_vm1, %v18970_v0  ;;  %15812 = vmatprep.subr.bf16.mxu1 %v18143_v18  ;;  %v18144_v0 = vld [vmem:[%s21109_s3 + $0x58] sm:$0xff]  }
 0x1be   : > { %15813 = vmatpush3.bf16.msra.mxu1 %v18143_v18 }
 0x1bf   : > { %15703 = vmatmul.mubr.msk.f32.gmra.mrb[28].mxu0 %vm462_vm1, %v18976_v1  ;;  %15814 = vmatprep.subr.bf16.mxu1 %v18144_v0 }
 0x1c0   : > { %15705 = vmatprep.mubr.msk.f32.mxu0 %vm462_vm1, %v2802_v60 }
 0x1c2   : > { %15815 = vmatpush3.bf16.msra.mxu1 %v18144_v0 }
 0x1c3   : > { %15706 = vmatmul.mubr.msk.f32.gmra.mrb[30].mxu0 %vm462_vm1, %v2803_v56 }
 0x1c4   : > { %15710 = vmatprep.mubr.msk.f32.mxu0 %vm462_vm1, %v18986_v5 }
 0x1c7   : > { %15711 = vmatmul.mubr.msk.f32.vlgmr.msra.gmra.mrb[0].mxu0 %vm462_vm1, %v18991_v6  ;;  %v19386_v6 = vld [vmem:[%s21108_s2] ss:$0 sm:$0xff] }
 0x1c8   : > { %15759 = vmatpush3.msk.msra.mxu0 %vm658_vm0, %v13601_v14  ;;  %15713 = vmatprep.mubr.msk.f32.mxu0 %vm462_vm1, %v18995_v7 }
 0x1cb   : > { %15714 = vmatmul.mubr.msk.f32.gmra.mrb[2].mxu0 %vm462_vm1, %v18999_v8 }
 0x1cc   : > { %15716 = vmatprep.mubr.msk.f32.mxu0 %vm462_vm1, %v19003_v9 }
 0x1cf   : > { %15717 = vmatmul.mubr.msk.f32.gmra.mrb[4].mxu0 %vm462_vm1, %v19007_v10 }
 0x1d0   : > { %15719 = vmatprep.mubr.msk.f32.mxu0 %vm462_vm1, %v19011_v11 }
 0x1d3   : > { %15720 = vmatmul.mubr.msk.f32.gmra.mrb[6].mxu0 %vm462_vm1, %v19015_v12 }
 0x1d4   : > { %15722 = vmatprep.mubr.msk.f32.mxu0 %vm462_vm1, %v19019_v13 }
 0x1d7   : > { %15723 = vmatmul.mubr.msk.f32.gmra.mrb[8].mxu0 %vm462_vm1, %v19023_v15 }
 0x1d8   : > { %15725 = vmatprep.mubr.msk.f32.mxu0 %vm462_vm1, %v19027_v59 }
 0x1db   : > { %15726 = vmatmul.mubr.msk.f32.gmra.mrb[10].mxu0 %vm462_vm1, %v19031_v2 }
 0x1dc   : > { %15728 = vmatprep.mubr.msk.f32.mxu0 %vm462_vm1, %v18756_v37  ;;  %v21171_v37 = vld [vmem:[#allocation6_spill] sm:$0xff] }
 0x1df   : > { %15729 = vmatmul.mubr.msk.f32.gmra.mrb[12].mxu0 %vm462_vm1, %v18760_v38  ;;  %v21172_v38 = vld [vmem:[#allocation11_spill] sm:$0xff] }
 0x1e0   : > { %15731 = vmatprep.mubr.msk.f32.mxu0 %vm462_vm1, %v18772_v41  ;;  %v18399_v41 = vld [vmem:[#allocation2 + $0x8] sm:$0xff] }
 0x1e3   : > { %15732 = vmatmul.mubr.msk.f32.gmra.mrb[14].mxu0 %vm462_vm1, %v18776_v42  ;;  %v18400_v42 = vld [vmem:[#allocation2 + $0x49] sm:$0xff] }
 0x1e4   : > { %15734 = vmatprep.mubr.msk.f32.mxu0 %vm462_vm1, %v18788_v45  ;;  %v18149_v45 = vld [vmem:[%s21109_s3] sm:$0xff]  }
 0x1e7   : > { %15735 = vmatmul.mubr.msk.f32.gmra.mrb[16].mxu0 %vm462_vm1, %v18792_v46  ;;  %v19351_v46 = vpop.f32.mrb[0].mxu1 }
 0x1e8   : > { %15737 = vmatprep.mubr.msk.f32.mxu0 %vm462_vm1, %v18804_v49 }
 0x1eb   : > { %15738 = vmatmul.mubr.msk.f32.gmra.mrb[18].mxu0 %vm462_vm1, %v18808_v50 }
 0x1ec   : > { %15740 = vmatprep.mubr.msk.f32.mxu0 %vm462_vm1, %v18820_v53 }
 0x1ef   : > { %15741 = vmatmul.mubr.msk.f32.gmra.mrb[20].mxu0 %vm462_vm1, %v18824_v54 }
 0x1f0   : > { %15743 = vmatprep.mubr.msk.f32.mxu0 %vm462_vm1, %v21171_v37 }
 0x1f3   : > { %15744 = vmatmul.mubr.msk.f32.gmra.mrb[22].mxu0 %vm462_vm1, %v18840_v58 }
 0x1f4   : > { %15746 = vmatprep.mubr.msk.f32.mxu0 %vm462_vm1, %v18852_v61 }
 0x1f7   : > { %15747 = vmatmul.mubr.msk.f32.gmra.mrb[24].mxu0 %vm462_vm1, %v18856_v62 }
 0x1f8   : > { %15749 = vmatprep.mubr.msk.f32.mxu0 %vm462_vm1, %v21172_v38  ;;  %v18152_v38 = vld [vmem:[%s21109_s3 + $0x18] sm:$0xff]  }
 0x1fb   : > { %15750 = vmatmul.mubr.msk.f32.gmra.mrb[26].mxu0 %vm462_vm1, %v18872_v19 }
 0x1fc   : > { %15752 = vmatprep.mubr.msk.f32.mxu0 %vm462_vm1, %v19065_v4 }
 0x1ff   : > { %15753 = vmatmul.mubr.msk.f32.gmra.mrb[28].mxu0 %vm462_vm1, %v19071_v57 }
 0x200   : > { %15755 = vmatprep.mubr.msk.f32.mxu0 %vm462_vm1, %v18399_v41 }
 0x203   : > { %15756 = vmatmul.mubr.msk.f32.gmra.mrb[30].mxu0 %vm462_vm1, %v18399_v41 }
 0x204   : > { %15760 = vmatprep.mubr.msk.f32.mxu0 %vm462_vm1, %v18400_v42 }
 0x207   : > { %15761 = vmatmul.mubr.msk.f32.vlgmr.msra.gmra.mrb[0].mxu0 %vm462_vm1, %v18710_v25  ;;  %v21173_v25 = vld [vmem:[#allocation3_spill] sm:$0xff] }
 0x208   : > { %15763 = vmatprep.mubr.msk.f32.mxu0 %vm462_vm1, %v18714_v26  ;;  %v21174_v26 = vld [vmem:[#allocation4_spill] sm:$0xff] }
 0x20b   : > { %15764 = vmatmul.mubr.msk.f32.gmra.mrb[2].mxu0 %vm462_vm1, %v18718_v27  ;;  %v21175_v27 = vld [vmem:[#allocation5_spill] sm:$0xff] }
 0x20c   : > { %15766 = vmatprep.mubr.msk.f32.mxu0 %vm462_vm1, %v18722_v28  ;;  %v21176_v28 = vld [vmem:[#allocation8_spill] sm:$0xff] }
 0x20f   : > { %15767 = vmatmul.mubr.msk.f32.gmra.mrb[4].mxu0 %vm462_vm1, %v18726_v29  ;;  %v21177_v29 = vld [vmem:[#allocation9_spill] sm:$0xff] }
 0x210   : > { %15769 = vmatprep.mubr.msk.f32.mxu0 %vm462_vm1, %v18730_v30  ;;  %v21178_v30 = vld [vmem:[#allocation10_spill] sm:$0xff] }
 0x213   : > { %15770 = vmatmul.mubr.msk.f32.gmra.mrb[6].mxu0 %vm462_vm1, %v18734_v31  ;;  %v21179_v31 = vld [vmem:[#allocation12_spill] sm:$0xff] }
 0x214   : > { %15772 = vmatprep.mubr.msk.f32.mxu0 %vm462_vm1, %v18738_v32  ;;  %v21180_v32 = vld [vmem:[#allocation7_spill] sm:$0xff] }
 0x217   : > { %15773 = vmatmul.mubr.msk.f32.gmra.mrb[8].mxu0 %vm462_vm1, %v18742_v33  ;;  %v3582_v33 = vld [vmem:[#allocation2 + $0x229] sm:$0xff] }
 0x218   : > { %15775 = vmatprep.mubr.msk.f32.mxu0 %vm462_vm1, %v18746_v34  ;;  %v21181_v34 = vld [vmem:[#allocation19_spill] sm:$0xff] }
 0x21b   : > { %15776 = vmatmul.mubr.msk.f32.gmra.mrb[10].mxu0 %vm462_vm1, %v18750_v35  ;;  %v3583_v35 = vld [vmem:[#allocation2 + $0x231] sm:$0xff] }
 0x21c   : > { %15778 = vmatprep.mubr.msk.f32.mxu0 %vm462_vm1, %v18754_v36  ;;  %v18145_v36 = vld [vmem:[%s21109_s3 + $0x60] sm:$0xff]  }
 0x21d   : > { %15816 = vmatprep.subr.bf16.mxu1 %v18145_v36 }
 0x21e   : > { %15817 = vmatpush3.bf16.msra.mxu1 %v18145_v36 }
 0x21f   : > { %15779 = vmatmul.mubr.msk.f32.gmra.mrb[12].mxu0 %vm462_vm1, %v18766_v39  ;;  %v18146_v39 = vld [vmem:[%s21109_s3 + $0x68] sm:$0xff]  }
 0x220   : > { %15781 = vmatprep.mubr.msk.f32.mxu0 %vm462_vm1, %v18770_v40  ;;  %15818 = vmatprep.subr.bf16.mxu1 %v18146_v39  ;;  %v18147_v40 = vld [vmem:[%s21109_s3 + $0x70] sm:$0xff]  }
 0x222   : > { %15819 = vmatpush3.bf16.msra.mxu1 %v18146_v39 }
 0x223   : > { %15782 = vmatmul.mubr.msk.f32.gmra.mrb[14].mxu0 %vm462_vm1, %v18782_v43  ;;  %15820 = vmatprep.subr.bf16.mxu1 %v18147_v40  ;;  %v18148_v43 = vld [vmem:[%s21109_s3 + $0x78] sm:$0xff]  }
 0x224   : > { %15784 = vmatprep.mubr.msk.f32.mxu0 %vm462_vm1, %v18786_v44  ;;  %v4141_v44 = vpack.c.bf16 %v18399_v41, %v18399_v41 }
 0x226   : > { %15821 = vmatpush3.bf16.msra.mxu1 %v18147_v40  ;;  %15824 = vmatprep.mubr.bf16.mxu1 %v4141_v44  ;;  %v18154_v40 = vld [vmem:[%s21109_s3 + $0x28] sm:$0xff]  }
 0x227   : > { %15785 = vmatmul.mubr.msk.f32.gmra.mrb[16].mxu0 %vm462_vm1, %v18798_v47  ;;  %15822 = vmatprep.subr.bf16.mxu1 %v18148_v43  ;;  %v19353_v47 = vpop.f32.mrb[1].mxu1 }
 0x228   : > { %15787 = vmatprep.mubr.msk.f32.mxu0 %vm462_vm1, %v18802_v48  ;;  %v19355_v48 = vpop.f32.mrb[2].mxu1 }
 0x229   : > { %v19357_v49 = vpop.f32.mrb[3].mxu1 }
 0x22a   : > { %15823 = vmatpush3.bf16.msra.mxu1 %v18148_v43  ;;  %v19359_v50 = vpop.f32.mrb[4].mxu1 }
 0x22b   : > { %15788 = vmatmul.mubr.msk.f32.gmra.mrb[18].mxu0 %vm462_vm1, %v21173_v25  ;;  %15856 = vmatprep.subr.bf16.mxu1 %v18149_v45  ;;  %v19361_v53 = vpop.f32.mrb[5].mxu1 }
 0x22c   : > { %15790 = vmatprep.mubr.msk.f32.mxu0 %vm462_vm1, %v21174_v26  ;;  %v19363_v54 = vpop.f32.mrb[6].mxu1 }
 0x22f   : > { %15791 = vmatmul.mubr.msk.f32.gmra.mrb[20].mxu0 %vm462_vm1, %v18830_v55  ;;  %v19365_v55 = vpop.f32.mrb[7].mxu1 }
 0x230   : > { %15793 = vmatprep.mubr.msk.f32.mxu0 %vm462_vm1, %v21175_v27  ;;  %v19367_v57 = vpop.f32.mrb[8].mxu1 }
 0x231   : > { %v19369_v58 = vpop.f32.mrb[9].mxu1 }
 0x232   : > { %v19371_v61 = vpop.f32.mrb[10].mxu1 }
 0x233   : > { %15794 = vmatmul.mubr.msk.f32.gmra.mrb[22].mxu0 %vm462_vm1, %v21159_v23  ;;  %v19373_v62 = vpop.f32.mrb[11].mxu1  ;;  %v18150_v23 = vld [vmem:[%s21109_s3 + $0x8] sm:$0xff]  }
 0x234   : > { %15796 = vmatprep.mubr.msk.f32.mxu0 %vm462_vm1, %v21176_v28  ;;  %v19375_v14 = vpop.f32.mrb[12].mxu1 }
 0x235   : > { %v19377_v19 = vpop.f32.mrb[13].mxu1 }
 0x236   : > { %v19379_v1 = vpop.f32.mrb[14].mxu1 }
 0x237   : > { %15797 = vmatmul.mubr.msk.f32.gmra.mrb[24].mxu0 %vm462_vm1, %v21177_v29  ;;  %v19381_v5 = vpop.f32.mrb[15].mxu1 }
 0x238   : > { %15799 = vmatprep.mubr.msk.f32.mxu0 %vm462_vm1, %v21178_v30  ;;  %v18153_v30 = vld [vmem:[%s21109_s3 + $0x20] sm:$0xff]  }
 0x23b   : > { %15800 = vmatmul.mubr.msk.f32.gmra.mrb[26].mxu0 %vm462_vm1, %v21179_v31 }
 0x23c   : > { %15802 = vmatprep.mubr.msk.f32.mxu0 %vm462_vm1, %v21180_v32 }
 0x23f   : > { %15803 = vmatmul.mubr.msk.f32.gmra.mrb[28].mxu0 %vm462_vm1, %v21181_v34 }
 0x240   : > { %15805 = vmatprep.mubr.msk.f32.mxu0 %vm462_vm1, %v3582_v33 }
 0x243   : > { %15806 = vmatmul.mubr.msk.f32.gmra.mrb[30].mxu0 %vm462_vm1, %v3583_v35 }
 0x2da   : > { %v15762_v7 = vpop.f32.mrb[0].mxu0 }
 0x2db   : > { %v3950_v8 = vadd.f32 %v15762_v7, %v19386_v6  ;;  %v3751_v9 = vpop.f32.mrb[1].mxu0 }
 0x2dc   : > { %v3949_v10 = vadd.f32 %v19386_v6, %v3751_v9 }
 0x2dd   : > { %v3982_v11 = vmax.f32 %v3950_v8, 0.0 }
 0x2de   : > { %v3981_v12 = vmax.f32 %v3949_v10, 0.0  ;;  %v15765_v13 = vpop.f32.mrb[2].mxu0 }
 0x2df   : > { %4014 = vst [vmem:[#allocation2 + $0x30] sm:$0xff] %v3982_v11  ;;  %v3952_v15 = vadd.f32 %v15765_v13, %v19386_v6  ;;  %v3761_v59 = vpop.f32.mrb[3].mxu0 }
 0x2e0   : > { %4013 = vst [vmem:[#allocation2 + $0x28] sm:$0xff] %v3981_v12  ;;  %v3951_v2 = vadd.f32 %v19386_v6, %v3761_v59  ;;  %v4142_v4 = vpack.c.bf16 %v3982_v11, %v3981_v12  ;;  %v18155_v11 = vld [vmem:[%s21109_s3 + $0x30] sm:$0xff]  }
 0x2e1   : > { %v3984_v63 = vmax.f32 %v3952_v15, 0.0 }
 0x2e2   : > { %v3983_v21 = vmax.f32 %v3951_v2, 0.0  ;;  %v15768_v3 = vpop.f32.mrb[4].mxu0  ;;  %15825 = vmatmul.mubr.bf16.vlgmr.msra.gmra.mrb[16].mxu1 %v4142_v4 }
 0x2e3   : > { %4016 = vst [vmem:[#allocation2 + $0x50] sm:$0xff] %v3984_v63  ;;  %v3954_v24 = vadd.f32 %v15768_v3, %v19386_v6  ;;  %v3771_v51 = vpop.f32.mrb[5].mxu0  ;;  %15857 = vmatpush3.bf16.msra.mxu1 %v18149_v45 }
 0x2e4   : > { %4015 = vst [vmem:[#allocation2 + $0x48] sm:$0xff] %v3983_v21  ;;  %v3953_v52 = vadd.f32 %v19386_v6, %v3771_v51  ;;  %v4143_v16 = vpack.c.bf16 %v3984_v63, %v3983_v21  ;;  %15858 = vmatprep.subr.bf16.mxu1 %v18150_v23  ;;  %v18156_v63 = vld [vmem:[%s21109_s3 + $0x38] sm:$0xff]  }
 0x2e5   : > { %v3986_v60 = vmax.f32 %v3954_v24, 0.0 }
 0x2e6   : > { %v3985_v56 = vmax.f32 %v3953_v52, 0.0  ;;  %v15771_v22 = vpop.f32.mrb[6].mxu0  ;;  %15828 = vmatprep.mubr.bf16.mxu1 %v4143_v16 }
 0x2e7   : > { %4018 = vst [vmem:[#allocation2 + $0x70] sm:$0xff] %v3986_v60  ;;  %v3956_v17 = vadd.f32 %v15771_v22, %v19386_v6  ;;  %v3781_v18 = vpop.f32.mrb[7].mxu0  ;;  %15859 = vmatpush3.bf16.msra.mxu1 %v18150_v23 }
 0x2e8   : > { %4017 = vst [vmem:[#allocation2 + $0x68] sm:$0xff] %v3985_v56  ;;  %v3955_v0 = vadd.f32 %v19386_v6, %v3781_v18  ;;  %v4144_v37 = vpack.c.bf16 %v3986_v60, %v3985_v56  ;;  %15860 = vmatprep.subr.bf16.mxu1 %v18151_v20  ;;  %v19430_v60 = vld [vmem:[%s21109_s3 + $0x80] sm:$0xff]  }
 0x2e9   : > { %v3988_v41 = vmax.f32 %v3956_v17, 0.0 }
 0x2ea   : > { %v3987_v42 = vmax.f32 %v3955_v0, 0.0  ;;  %v15774_v25 = vpop.f32.mrb[8].mxu0  ;;  %15829 = vmatmul.mubr.bf16.gmra.mrb[20].mxu1 %v4144_v37 }
 0x2eb   : > { %4020 = vst [vmem:[#allocation2 + $0x90] sm:$0xff] %v3988_v41  ;;  %v3958_v26 = vadd.f32 %v15774_v25, %v19386_v6  ;;  %v3791_v27 = vpop.f32.mrb[9].mxu0  ;;  %15861 = vmatpush3.bf16.msra.mxu1 %v18151_v20 }
 0x2ec   : > { %4019 = vst [vmem:[#allocation2 + $0x88] sm:$0xff] %v3987_v42  ;;  %v3957_v28 = vadd.f32 %v19386_v6, %v3791_v27  ;;  %v4145_v29 = vpack.c.bf16 %v3988_v41, %v3987_v42  ;;  %15862 = vmatprep.subr.bf16.mxu1 %v18152_v38 }
 0x2ed   : > { %v3990_v31 = vmax.f32 %v3958_v26, 0.0 }
 0x2ee   : > { %v3989_v32 = vmax.f32 %v3957_v28, 0.0  ;;  %v15777_v33 = vpop.f32.mrb[10].mxu0  ;;  %15832 = vmatprep.mubr.bf16.mxu1 %v4145_v29 }
 0x2ef   : > { %4022 = vst [vmem:[#allocation2 + $0xb0] sm:$0xff] %v3990_v31  ;;  %v3960_v34 = vadd.f32 %v15777_v33, %v19386_v6  ;;  %v3801_v35 = vpop.f32.mrb[11].mxu0  ;;  %15863 = vmatpush3.bf16.msra.mxu1 %v18152_v38 }
 0x2f0   : > { %4021 = vst [vmem:[#allocation2 + $0xa8] sm:$0xff] %v3989_v32  ;;  %v3959_v36 = vadd.f32 %v19386_v6, %v3801_v35  ;;  %v4146_v39 = vpack.c.bf16 %v3990_v31, %v3989_v32  ;;  %15864 = vmatprep.subr.bf16.mxu1 %v18153_v30 }
 0x2f1   : > { %v3992_v43 = vmax.f32 %v3960_v34, 0.0 }
 0x2f2   : > { %v3991_v44 = vmax.f32 %v3959_v36, 0.0  ;;  %v15780_v45 = vpop.f32.mrb[12].mxu0  ;;  %15833 = vmatmul.mubr.bf16.gmra.mrb[24].mxu1 %v4146_v39 }
 0x2f3   : > { %4024 = vst [vmem:[#allocation2 + $0xd0] sm:$0xff] %v3992_v43  ;;  %v3962_v7 = vadd.f32 %v15780_v45, %v19386_v6  ;;  %v3811_v8 = vpop.f32.mrb[13].mxu0  ;;  %15865 = vmatpush3.bf16.msra.mxu1 %v18153_v30 }
 0x2f4   : > { %4023 = vst [vmem:[#allocation2 + $0xc8] sm:$0xff] %v3991_v44  ;;  %v3961_v9 = vadd.f32 %v19386_v6, %v3811_v8  ;;  %v4147_v10 = vpack.c.bf16 %v3992_v43, %v3991_v44  ;;  %15866 = vmatprep.subr.bf16.mxu1 %v18154_v40 }
 0x2f5   : > { %v3994_v12 = vmax.f32 %v3962_v7, 0.0 }
 0x2f6   : > { %v3993_v13 = vmax.f32 %v3961_v9, 0.0  ;;  %v15783_v15 = vpop.f32.mrb[14].mxu0  ;;  %15836 = vmatprep.mubr.bf16.mxu1 %v4147_v10 }
 0x2f7   : > { %4026 = vst [vmem:[#allocation2 + $0xf0] sm:$0xff] %v3994_v12  ;;  %v3964_v59 = vadd.f32 %v15783_v15, %v19386_v6  ;;  %v3821_v2 = vpop.f32.mrb[15].mxu0  ;;  %15867 = vmatpush3.bf16.msra.mxu1 %v18154_v40 }
 0x2f8   : > { %4025 = vst [vmem:[#allocation2 + $0xe8] sm:$0xff] %v3993_v13  ;;  %v3963_v4 = vadd.f32 %v19386_v6, %v3821_v2  ;;  %v4148_v23 = vpack.c.bf16 %v3994_v12, %v3993_v13  ;;  %15868 = vmatprep.subr.bf16.mxu1 %v18155_v11 }
 0x2f9   : > { %v3996_v21 = vmax.f32 %v3964_v59, 0.0 }
 0x2fa   : > { %v3995_v3 = vmax.f32 %v3963_v4, 0.0  ;;  %v15786_v24 = vpop.f32.mrb[16].mxu0  ;;  %15837 = vmatmul.mubr.bf16.gmra.mrb[28].mxu1 %v4148_v23 }
 0x2fb   : > { %4028 = vst [vmem:[#allocation2 + $0x110] sm:$0xff] %v3996_v21  ;;  %v17106_v51 = vadd.f32 %v15786_v24, %v19351_v46  ;;  %v3831_v52 = vpop.f32.mrb[17].mxu0  ;;  %15869 = vmatpush3.bf16.msra.mxu1 %v18155_v11 }
 0x2fc   : > { %4027 = vst [vmem:[#allocation2 + $0x108] sm:$0xff] %v3995_v3  ;;  %v17107_v16 = vadd.f32 %v3831_v52, %v19353_v47  ;;  %v4149_v20 = vpack.c.bf16 %v3996_v21, %v3995_v3  ;;  %15870 = vmatprep.subr.bf16.mxu1 %v18156_v63 }
 0x2fd   : > { %v3966_v56 = vadd.f32 %v17106_v51, %v19386_v6 }
 0x2fe   : > { %v3965_v22 = vadd.f32 %v17107_v16, %v19386_v6  ;;  %v15789_v17 = vpop.f32.mrb[18].mxu0  ;;  %15840 = vmatprep.mubr.bf16.mxu1 %v4149_v20  ;;  %v4045_v20 = vld [vmem:[#allocation2 + $0x7] sm:$0xff] }
 0x2ff   : > { %v3998_v18 = vmax.f32 %v3966_v56, 0.0  ;;  %v17108_v46 = vadd.f32 %v15789_v17, %v19355_v48  ;;  %v3841_v0 = vpop.f32.mrb[19].mxu0  ;;  %15871 = vmatpush3.bf16.msra.mxu1 %v18156_v63  ;;  %v4046_v56 = vld [vmem:[#allocation2 + $0xf] sm:$0xff] }
 0x300   : > { %v3997_v37 = vmax.f32 %v3965_v22, 0.0  ;;  %v17109_v47 = vadd.f32 %v3841_v0, %v19357_v49  ;;  %15904 = vmatprep.subr.bf16.mxu1 %v19430_v60  ;;  %v4077_v0 = vpack.c.bf16 %v4046_v56, %v4045_v20 }
 0x301   : > { %4030 = vst [vmem:[#allocation2 + $0x130] sm:$0xff] %v3998_v18  ;;  %v3968_v38 = vadd.f32 %v17108_v46, %v19386_v6 }
 0x302   : > { %4029 = vst [vmem:[#allocation2 + $0x128] sm:$0xff] %v3997_v37  ;;  %v3967_v41 = vadd.f32 %v17109_v47, %v19386_v6  ;;  %v15792_v42 = vpop.f32.mrb[20].mxu0  ;;  %v4150_v25 = vpack.c.bf16 %v3998_v18, %v3997_v37 }
 0x303   : > { %v4000_v26 = vmax.f32 %v3968_v38, 0.0  ;;  %v17110_v27 = vadd.f32 %v15792_v42, %v19359_v50  ;;  %v3851_v28 = vpop.f32.mrb[21].mxu0  ;;  %v4048_v42 = vld [vmem:[#allocation2 + $0x2f] sm:$0xff] }
 0x304   : > { %v19440_v48 = vmax.f32 %v3967_v41, 0.0  ;;  %v17111_v29 = vadd.f32 %v3851_v28, %v19361_v53  ;;  %15841 = vmatmul.mubr.bf16.gmra.mrb[32].mxu1 %v4150_v25  ;;  %v4049_v25 = vld [vmem:[#allocation2 + $0x47] sm:$0xff] }
 0x305   : > { %4032 = vst [vmem:[#allocation2 + $0x150] sm:$0xff] %v4000_v26  ;;  %v3970_v49 = vadd.f32 %v17110_v27, %v19386_v6 }
 0x306   : > { %4031 = vst [vmem:[#allocation2 + $0x148] sm:$0xff] %v19440_v48  ;;  %v3969_v30 = vadd.f32 %v17111_v29, %v19386_v6  ;;  %v15795_v31 = vpop.f32.mrb[22].mxu0  ;;  %v4151_v32 = vpack.c.bf16 %v4000_v26, %v19440_v48  ;;  %v4050_v26 = vld [vmem:[#allocation2 + $0x4f] sm:$0xff] }
 0x307   : > { %v4002_v33 = vmax.f32 %v3970_v49, 0.0  ;;  %v17112_v34 = vadd.f32 %v15795_v31, %v19363_v54  ;;  %v3861_v50 = vpop.f32.mrb[23].mxu0  ;;  %v19489_v28 = vpack.c.bf16 %v4050_v26, %v4049_v25  ;;  %v18159_v29 = vld [vmem:[%s21109_s3 + $0x90] sm:$0xff]   ;;  %v4051_v49 = vld [vmem:[#allocation2 + $0x67] sm:$0xff] }
 0x308   : > { %v4001_v35 = vmax.f32 %v3969_v30, 0.0  ;;  %v17113_v36 = vadd.f32 %v3861_v50, %v19365_v55  ;;  %15844 = vmatprep.mubr.bf16.mxu1 %v4151_v32  ;;  %v4052_v30 = vld [vmem:[#allocation2 + $0x6f] sm:$0xff]  ;;  %v4053_v31 = vld [vmem:[#allocation2 + $0x87] sm:$0xff] }
 0x309   : > { %4034 = vst [vmem:[#allocation2 + $0x170] sm:$0xff] %v4002_v33  ;;  %v3972_v53 = vadd.f32 %v17112_v34, %v19386_v6  ;;  %v4054_v32 = vld [vmem:[#allocation2 + $0x8f] sm:$0xff]  ;;  %v18160_v34 = vld [vmem:[%s21109_s3 + $0x98] sm:$0xff]   ;;  %v18161_v50 = vld [vmem:[%s21109_s3 + $0xa0] sm:$0xff]  }
 0x30a   : > { %4033 = vst [vmem:[#allocation2 + $0x168] sm:$0xff] %v4001_v35  ;;  %v3971_v39 = vadd.f32 %v17113_v36, %v19386_v6  ;;  %v15798_v40 = vpop.f32.mrb[24].mxu0  ;;  %v19451_v43 = vpack.c.bf16 %v4002_v33, %v4001_v35  ;;  %v19497_v33 = vpack.c.bf16 %v4052_v30, %v4051_v49  ;;  %v4055_v35 = vld [vmem:[#allocation2 + $0xa7] sm:$0xff]  ;;  %v4056_v36 = vld [vmem:[#allocation2 + $0xaf] sm:$0xff] }
 0x30b   : > { %v4004_v44 = vmax.f32 %v3972_v53, 0.0  ;;  %v17114_v45 = vadd.f32 %v15798_v40, %v19367_v57  ;;  %v3871_v7 = vpop.f32.mrb[25].mxu0  ;;  %v4057_v53 = vld [vmem:[#allocation2 + $0xc7] sm:$0xff]  ;;  %v19509_v40 = vpack.c.bf16 %v4056_v36, %v4055_v35  ;;  %v4597_v25 = vld [vmem:[#allocation2 + $0x51] sm:$0xff] }
 0x30c   : > { %v4003_v8 = vmax.f32 %v3971_v39, 0.0  ;;  %v17115_v54 = vadd.f32 %v3871_v7, %v19369_v58  ;;  %15845 = vmatmul.mubr.bf16.gmra.mrb[36].mxu1 %v19451_v43  ;;  %v4058_v39 = vld [vmem:[#allocation2 + $0xcf] sm:$0xff]  ;;  %v18168_v35 = vld [vmem:[%s21109_s3 + $0xd8] sm:$0xff]  }
 0x30d   : > { %4036 = vst [vmem:[#allocation2 + $0x190] sm:$0xff] %v4004_v44  ;;  %v3974_v55 = vadd.f32 %v17114_v45, %v19386_v6  ;;  %v19514_v45 = vpack.c.bf16 %v4058_v39, %v4057_v53  ;;  %v18163_v7 = vld [vmem:[%s21109_s3 + $0xb0] sm:$0xff]   ;;  %v18169_v53 = vld [vmem:[%s21109_s3 + $0xe0] sm:$0xff]  }
 0x30e   : > { %4035 = vst [vmem:[#allocation2 + $0x188] sm:$0xff] %v4003_v8  ;;  %v3973_v9 = vadd.f32 %v17115_v54, %v19386_v6  ;;  %v15801_v10 = vpop.f32.mrb[26].mxu0  ;;  %v19458_v11 = vpack.c.bf16 %v4004_v44, %v4003_v8  ;;  %v18162_v44 = vld [vmem:[%s21109_s3 + $0xa8] sm:$0xff]   ;;  %v18167_v49 = vld [vmem:[%s21109_s3 + $0xd0] sm:$0xff]  }
 0x30f   : > { %v4006_v12 = vmax.f32 %v3974_v55, 0.0  ;;  %v17116_v13 = vadd.f32 %v15801_v10, %v19371_v61  ;;  %v3881_v15 = vpop.f32.mrb[27].mxu0  ;;  %v4059_v8 = vld [vmem:[#allocation2 + $0xe7] sm:$0xff]  ;;  %v4060_v54 = vld [vmem:[#allocation2 + $0xef] sm:$0xff] }
 0x310   : > { %v4005_v57 = vmax.f32 %v3973_v9, 0.0  ;;  %v17117_v59 = vadd.f32 %v3881_v15, %v19373_v62  ;;  %15848 = vmatprep.mubr.bf16.mxu1 %v19458_v11  ;;  %v4061_v55 = vld [vmem:[#allocation2 + $0x107] sm:$0xff]  ;;  %v4062_v9 = vld [vmem:[#allocation2 + $0x10f] sm:$0xff]  ;;  %v19521_v10 = vpack.c.bf16 %v4060_v54, %v4059_v8 }
 0x311   : > { %4038 = vst [vmem:[#allocation2 + $0x1b0] sm:$0xff] %v4006_v12  ;;  %v3976_v58 = vadd.f32 %v17116_v13, %v19386_v6  ;;  %v19526_v13 = vpack.c.bf16 %v4062_v9, %v4061_v55  ;;  %v18165_v15 = vld [vmem:[%s21109_s3 + $0xc0] sm:$0xff]   ;;  %v4598_v30 = vld [vmem:[#allocation2 + $0x69] sm:$0xff]  ;;  %v4605_v8 = vld [vmem:[#allocation2 + $0xd1] sm:$0xff] }
 0x312   : > { %4037 = vst [vmem:[#allocation2 + $0x1a8] sm:$0xff] %v4005_v57  ;;  %v3975_v2 = vadd.f32 %v17117_v59, %v19386_v6  ;;  %v15804_v4 = vpop.f32.mrb[28].mxu0  ;;  %v19465_v23 = vpack.c.bf16 %v4006_v12, %v4005_v57  ;;  %v18164_v12 = vld [vmem:[%s21109_s3 + $0xb8] sm:$0xff]   ;;  %v4063_v57 = vld [vmem:[#allocation2 + $0x127] sm:$0xff]  ;;  %v4064_v59 = vld [vmem:[#allocation2 + $0x12f] sm:$0xff] }
 0x313   : > { %v4008_v63 = vmax.f32 %v3976_v58, 0.0  ;;  %v17118_v21 = vadd.f32 %v15804_v4, %v19375_v14  ;;  %v3891_v3 = vpop.f32.mrb[29].mxu0  ;;  %v4065_v58 = vld [vmem:[#allocation2 + $0x147] sm:$0xff]  ;;  %v19533_v4 = vpack.c.bf16 %v4064_v59, %v4063_v57  ;;  %v4607_v57 = vld [vmem:[#allocation2 + $0xf1] sm:$0xff] }
 0x314   : > { %v4007_v61 = vmax.f32 %v3975_v2, 0.0  ;;  %v17119_v24 = vadd.f32 %v3891_v3, %v19377_v19  ;;  %15849 = vmatmul.mubr.bf16.gmra.mrb[40].mxu1 %v19465_v23  ;;  %v4066_v2 = vld [vmem:[#allocation2 + $0x14f] sm:$0xff] }
 0x315   : > { %4040 = vst [vmem:[#allocation2 + $0x1d0] sm:$0xff] %v4008_v63  ;;  %v3978_v62 = vadd.f32 %v17118_v21, %v19386_v6  ;;  %v4067_v21 = vld [vmem:[#allocation2 + $0x167] sm:$0xff]  ;;  %v4068_v3 = vld [vmem:[#allocation2 + $0x16f] sm:$0xff] }
 0x316   : > { %4039 = vst [vmem:[#allocation2 + $0x1c8] sm:$0xff] %v4007_v61  ;;  %v3977_v51 = vadd.f32 %v17119_v24, %v19386_v6  ;;  %v15807_v52 = vpop.f32.mrb[30].mxu0  ;;  %v19472_v16 = vpack.c.bf16 %v4008_v63, %v4007_v61  ;;  %v19535_v63 = vpack.c.bf16 %v4066_v2, %v4065_v58  ;;  %v4069_v61 = vld [vmem:[#allocation2 + $0x187] sm:$0xff]  ;;  %v4070_v24 = vld [vmem:[#allocation2 + $0x18f] sm:$0xff] }
 0x317   : > { %v4010_v22 = vmax.f32 %v3978_v62, 0.0  ;;  %v17120_v14 = vadd.f32 %v15807_v52, %v19379_v1  ;;  %v3901_v17 = vpop.f32.mrb[31].mxu0  ;;  %v19539_v62 = vpack.c.bf16 %v4068_v3, %v4067_v21  ;;  %v4602_v39 = vld [vmem:[#allocation2 + $0xa9] sm:$0xff]  ;;  %v4609_v58 = vld [vmem:[#allocation2 + $0x111] sm:$0xff] }
 0x318   : > { %v4009_v18 = vmax.f32 %v3977_v51, 0.0  ;;  %v17121_v19 = vadd.f32 %v3901_v17, %v19381_v5  ;;  %15852 = vmatprep.mubr.bf16.mxu1 %v19472_v16  ;;  %v4047_v5 = vld [vmem:[#allocation2 + $0x27] sm:$0xff]  ;;  %v19541_v51 = vpack.c.bf16 %v4070_v24, %v4069_v61  ;;  %v18172_v21 = vld [vmem:[%s21109_s3 + $0xf8] sm:$0xff]  }
 0x319   : > { %4042 = vst [vmem:[#allocation2 + $0x1f0] sm:$0xff] %v4010_v22  ;;  %v3980_v46 = vadd.f32 %v17120_v14, %v19386_v6  ;;  %v19484_v27 = vpack.c.bf16 %v4048_v42, %v4047_v5  ;;  %v4071_v52 = vld [vmem:[#allocation2 + $0x1a7] sm:$0xff]  ;;  %v4072_v20 = vld [vmem:[#allocation2 + $0x1af] sm:$0xff] }
 0x31a   : > { %4041 = vst [vmem:[#allocation2 + $0x1e8] sm:$0xff] %v4009_v18  ;;  %v3979_v37 = vadd.f32 %v17121_v19, %v19386_v6  ;;  %v19479_v47 = vpack.c.bf16 %v4010_v22, %v4009_v18  ;;  %v18158_v6 = vld [vmem:[%s21109_s3 + $0x88] sm:$0xff]   ;;  %v19545_v14 = vpack.c.bf16 %v4072_v20, %v4071_v52  ;;  %v4593_v19 = vld [vmem:[#allocation2 + $0x11] sm:$0xff]  ;;  %v18173_v61 = vld [vmem:[%s21109_s3 + $0x100] sm:$0xff]  }
 0x31b   : > { %v4012_v38 = vmax.f32 %v3980_v46, 0.0  ;;  %v4592_v18 = vld [vmem:[#allocation2 + $0x9] sm:$0xff]  ;;  %v4595_v5 = vld [vmem:[#allocation2 + $0x31] sm:$0xff] }
 0x31c   : > { %v4011_v41 = vmax.f32 %v3979_v37, 0.0  ;;  %15853 = vmatmul.mubr.bf16.gmra.mrb[44].mxu1 %v19479_v47  ;;  %v4624_v37 = vpack.c.bf16 %v4593_v19, %v4592_v18  ;;  %v4596_v42 = vld [vmem:[#allocation2 + $0x49] sm:$0xff]  ;;  %v4611_v52 = vld [vmem:[#allocation2 + $0x131] sm:$0xff] }
 0x31d   : > { %4044 = vst [vmem:[#allocation2 + $0x210] sm:$0xff] %v4012_v38  ;;  %15872 = vmatprep.mubr.bf16.mxu1 %v4077_v0  ;;  %v4073_v56 = vld [vmem:[#allocation2 + $0x1c7] sm:$0xff]  ;;  %v4074_v22 = vld [vmem:[#allocation2 + $0x1cf] sm:$0xff] }
 0x31e   : > { %4043 = vst [vmem:[#allocation2 + $0x208] sm:$0xff] %v4011_v41  ;;  %v19482_v1 = vpack.c.bf16 %v4012_v38, %v4011_v41  ;;  %v19547_v17 = vpack.c.bf16 %v4074_v22, %v4073_v56  ;;  %v4594_v41 = vld [vmem:[#allocation2 + $0x29] sm:$0xff]  ;;  %v4613_v56 = vld [vmem:[#allocation2 + $0x151] sm:$0xff] }
 0x31f   : > { %v19554_v26 = vpack.c.bf16 %v4595_v5, %v4594_v41  ;;  %v18170_v55 = vld [vmem:[%s21109_s3 + $0xe8] sm:$0xff]  }
 0x320   : > { %v4608_v59 = vld [vmem:[#allocation2 + $0x109] sm:$0xff] }
 0x321   : > { %v4075_v46 = vld [vmem:[#allocation2 + $0x1e7] sm:$0xff]  ;;  %v4076_v0 = vld [vmem:[#allocation2 + $0x1ef] sm:$0xff]  ;;  %v19595_v3 = vpack.c.bf16 %v4609_v58, %v4608_v59 }
 0x322   : > { %v19551_v38 = vpack.c.bf16 %v4076_v0, %v4075_v46  ;;  %v4610_v24 = vld [vmem:[#allocation2 + $0x129] sm:$0xff]  ;;  %v4615_v46 = vld [vmem:[#allocation2 + $0x171] sm:$0xff] }
 0x323   : > { %v4612_v20 = vld [vmem:[#allocation2 + $0x149] sm:$0xff]  ;;  %v19602_v22 = vpack.c.bf16 %v4611_v52, %v4610_v24 }
 0x324   : > { %15873 = vmatmul.mubr.bf16.vlgmr.msra.gmra.mrb[16].mxu1 %v19484_v27  ;;  %v19604_v18 = vpack.c.bf16 %v4613_v56, %v4612_v20  ;;  %v4614_v19 = vld [vmem:[#allocation2 + $0x169] sm:$0xff] }
 0x325   : > { %15905 = vmatpush3.bf16.msra.mxu1 %v19430_v60  ;;  %15876 = vmatprep.mubr.bf16.mxu1 %v19489_v28  ;;  %v19502_v60 = vpack.c.bf16 %v4054_v32, %v4053_v31  ;;  %v4599_v31 = vld [vmem:[#allocation2 + $0x71] sm:$0xff]  ;;  %v4600_v32 = vld [vmem:[#allocation2 + $0x89] sm:$0xff]  ;;  %v19608_v41 = vpack.c.bf16 %v4615_v46, %v4614_v19 }
 0x326   : > { %15906 = vmatprep.subr.bf16.mxu1 %v18158_v6  ;;  %v4616_v0 = vld [vmem:[#allocation2 + $0x189] sm:$0xff] }
 0x327   : > { %v5204_v59 = vld [vmem:[#allocation2 + $0x28] sm:$0xff]  ;;  %v5205_v58 = vld [vmem:[#allocation2 + $0x30] sm:$0xff] }
 0x328   : > { %v5206_v24 = vld [vmem:[#allocation2 + $0x48] sm:$0xff]  ;;  %v5207_v52 = vld [vmem:[#allocation2 + $0x50] sm:$0xff] }
 0x329   : > { %15907 = vmatpush3.bf16.msra.mxu1 %v18158_v6  ;;  %v18166_v6 = vld [vmem:[%s21109_s3 + $0xc8] sm:$0xff]   ;;  %v5209_v56 = vld [vmem:[#allocation2 + $0x70] sm:$0xff]  ;;  %v19665_v19 = vpack.c.bf16 %v5207_v52, %v5206_v24 }
 0x32a   : > { %15908 = vmatprep.subr.bf16.mxu1 %v18159_v29  ;;  %v5208_v20 = vld [vmem:[#allocation2 + $0x68] sm:$0xff]  ;;  %v5221_v24 = vld [vmem:[#allocation2 + $0x130] sm:$0xff] }
 0x32b   : > { %v18182_v46 = vld [vmem:[%s21109_s3 + $0x148] sm:$0xff]  }
 0x32c   : > { %15877 = vmatmul.mubr.bf16.gmra.mrb[20].mxu1 %v19497_v33 }
 0x32d   : > { %15880 = vmatprep.mubr.bf16.mxu1 %v19502_v60  ;;  %15909 = vmatpush3.bf16.msra.mxu1 %v18159_v29  ;;  %v19559_v29 = vpack.c.bf16 %v4597_v25, %v4596_v42  ;;  %v4618_v42 = vld [vmem:[#allocation2 + $0x1a9] sm:$0xff]  ;;  %v4619_v25 = vld [vmem:[#allocation2 + $0x1b1] sm:$0xff] }
 0x32e   : > { %15910 = vmatprep.subr.bf16.mxu1 %v18160_v34 }
 0x331   : > { %15911 = vmatpush3.bf16.msra.mxu1 %v18160_v34  ;;  %v4601_v34 = vld [vmem:[#allocation2 + $0x91] sm:$0xff] }
 0x332   : > { %15912 = vmatprep.subr.bf16.mxu1 %v18161_v50  ;;  %v19571_v36 = vpack.c.bf16 %v4601_v34, %v4600_v32  ;;  %v4622_v32 = vld [vmem:[#allocation2 + $0x1e9] sm:$0xff]  ;;  %v4623_v34 = vld [vmem:[#allocation2 + $0x1f1] sm:$0xff] }
 0x334   : > { %15881 = vmatmul.mubr.bf16.gmra.mrb[24].mxu1 %v19509_v40 }
 0x335   : > { %15884 = vmatprep.mubr.bf16.mxu1 %v19514_v45  ;;  %15913 = vmatpush3.bf16.msra.mxu1 %v18161_v50  ;;  %v19566_v50 = vpack.c.bf16 %v4599_v31, %v4598_v30  ;;  %v19614_v30 = vpack.c.bf16 %v4619_v25, %v4618_v42  ;;  %v5210_v42 = vld [vmem:[#allocation2 + $0x88] sm:$0xff]  ;;  %v5211_v25 = vld [vmem:[#allocation2 + $0x90] sm:$0xff] }
 0x336   : > { %15914 = vmatprep.subr.bf16.mxu1 %v18162_v44 }
 0x339   : > { %15915 = vmatpush3.bf16.msra.mxu1 %v18162_v44  ;;  %v4603_v44 = vld [vmem:[#allocation2 + $0xb1] sm:$0xff] }
 0x33a   : > { %15916 = vmatprep.subr.bf16.mxu1 %v18163_v7  ;;  %v19578_v54 = vpack.c.bf16 %v4603_v44, %v4602_v39  ;;  %v18175_v39 = vld [vmem:[%s21109_s3 + $0x110] sm:$0xff]   ;;  %v18177_v44 = vld [vmem:[%s21109_s3 + $0x120] sm:$0xff]  }
 0x33c   : > { %15885 = vmatmul.mubr.bf16.gmra.mrb[28].mxu1 %v19521_v10 }
 0x33d   : > { %15888 = vmatprep.mubr.bf16.mxu1 %v19526_v13  ;;  %15917 = vmatpush3.bf16.msra.mxu1 %v18163_v7  ;;  %v4604_v7 = vld [vmem:[#allocation2 + $0xc9] sm:$0xff] }
 0x33e   : > { %15918 = vmatprep.subr.bf16.mxu1 %v18164_v12  ;;  %v19583_v9 = vpack.c.bf16 %v4605_v8, %v4604_v7  ;;  %v18178_v7 = vld [vmem:[%s21109_s3 + $0x128] sm:$0xff]   ;;  %v18179_v8 = vld [vmem:[%s21109_s3 + $0x130] sm:$0xff]  }
 0x341   : > { %15919 = vmatpush3.bf16.msra.mxu1 %v18164_v12  ;;  %v18171_v12 = vld [vmem:[%s21109_s3 + $0xf0] sm:$0xff]  }
 0x342   : > { %15952 = vmatprep.subr.bf16.mxu1 %v18165_v15 }
 0x344   : > { %15889 = vmatmul.mubr.bf16.gmra.mrb[32].mxu1 %v19533_v4 }
 0x345   : > { %15892 = vmatprep.mubr.bf16.mxu1 %v19535_v63 }
 0x34c   : > { %15893 = vmatmul.mubr.bf16.gmra.mrb[36].mxu1 %v19539_v62 }
 0x34d   : > { %15896 = vmatprep.mubr.bf16.mxu1 %v19541_v51 }
 0x354   : > { %15897 = vmatmul.mubr.bf16.gmra.mrb[40].mxu1 %v19545_v14 }
 0x355   : > { %15900 = vmatprep.mubr.bf16.mxu1 %v19547_v17 }
 0x35c   : > { %15901 = vmatmul.mubr.bf16.gmra.mrb[44].mxu1 %v19551_v38 }
 0x35d   : > { %15920 = vmatprep.mubr.bf16.mxu1 %v4624_v37  ;;  %v4617_v37 = vld [vmem:[#allocation2 + $0x191] sm:$0xff] }
 0x35e   : > { %v19610_v5 = vpack.c.bf16 %v4617_v37, %v4616_v0  ;;  %v19670_v0 = vpack.c.bf16 %v5209_v56, %v5208_v20  ;;  %v18183_v37 = vld [vmem:[%s21109_s3 + $0x150] sm:$0xff]   ;;  %v18188_v20 = vld [vmem:[%s21109_s3 + $0x178] sm:$0xff]  }
 0x364   : > { %15921 = vmatmul.mubr.bf16.vlgmr.msra.gmra.mrb[16].mxu1 %v19554_v26 }
 0x365   : > { %15953 = vmatpush3.bf16.msra.mxu1 %v18165_v15  ;;  %15924 = vmatprep.mubr.bf16.mxu1 %v19559_v29  ;;  %v4606_v15 = vld [vmem:[#allocation2 + $0xe9] sm:$0xff] }
 0x366   : > { %15954 = vmatprep.subr.bf16.mxu1 %v18166_v6  ;;  %v19590_v2 = vpack.c.bf16 %v4607_v57, %v4606_v15  ;;  %v4928_v15 = vld [vmem:[#allocation2 + $0x207] sm:$0xff]  ;;  %v4929_v57 = vld [vmem:[#allocation2 + $0x20f] sm:$0xff] }
 0x369   : > { %15955 = vmatpush3.bf16.msra.mxu1 %v18166_v6  ;;  %v4620_v6 = vld [vmem:[#allocation2 + $0x1c9] sm:$0xff] }
 0x36a   : > { %15956 = vmatprep.subr.bf16.mxu1 %v18167_v49 }
 0x36c   : > { %15925 = vmatmul.mubr.bf16.gmra.mrb[20].mxu1 %v19566_v50 }
 0x36d   : > { %15928 = vmatprep.mubr.bf16.mxu1 %v19571_v36  ;;  %15957 = vmatpush3.bf16.msra.mxu1 %v18167_v49  ;;  %v4621_v49 = vld [vmem:[#allocation2 + $0x1d1] sm:$0xff] }
 0x36e   : > { %15958 = vmatprep.subr.bf16.mxu1 %v18168_v35  ;;  %v19616_v31 = vpack.c.bf16 %v4621_v49, %v4620_v6  ;;  %v5212_v6 = vld [vmem:[#allocation2 + $0xa8] sm:$0xff]  ;;  %v5213_v49 = vld [vmem:[#allocation2 + $0xb0] sm:$0xff] }
 0x371   : > { %15959 = vmatpush3.bf16.msra.mxu1 %v18168_v35  ;;  %v19620_v35 = vpack.c.bf16 %v4623_v34, %v4622_v32  ;;  %v19677_v32 = vpack.c.bf16 %v5211_v25, %v5210_v42  ;;  %v18184_v34 = vld [vmem:[%s21109_s3 + $0x158] sm:$0xff]   ;;  %v6140_v25 = vld [vmem:[#allocation2 + $0x168] sm:$0xff] }
 0x372   : > { %15960 = vmatprep.subr.bf16.mxu1 %v18169_v53 }
 0x374   : > { %15929 = vmatmul.mubr.bf16.gmra.mrb[24].mxu1 %v19578_v54 }
 0x375   : > { %15932 = vmatprep.mubr.bf16.mxu1 %v19583_v9  ;;  %15961 = vmatpush3.bf16.msra.mxu1 %v18169_v53  ;;  %v18174_v53 = vld [vmem:[%s21109_s3 + $0x108] sm:$0xff]  }
 0x376   : > { %15962 = vmatprep.subr.bf16.mxu1 %v18170_v55 }
 0x379   : > { %15963 = vmatpush3.bf16.msra.mxu1 %v18170_v55  ;;  %v18180_v55 = vld [vmem:[%s21109_s3 + $0x138] sm:$0xff]  }
 0x37a   : > { %15964 = vmatprep.subr.bf16.mxu1 %v18171_v12 }
 0x37c   : > { %15933 = vmatmul.mubr.bf16.gmra.mrb[28].mxu1 %v19590_v2 }
 0x37d   : > { %15936 = vmatprep.mubr.bf16.mxu1 %v19595_v3  ;;  %15965 = vmatpush3.bf16.msra.mxu1 %v18171_v12  ;;  %v18181_v12 = vld [vmem:[%s21109_s3 + $0x140] sm:$0xff]  }
 0x37e   : > { %15966 = vmatprep.subr.bf16.mxu1 %v18172_v21 }
 0x381   : > { %15967 = vmatpush3.bf16.msra.mxu1 %v18172_v21  ;;  %v19662_v21 = vpack.c.bf16 %v4929_v57, %v4928_v15  ;;  %v18187_v57 = vld [vmem:[%s21109_s3 + $0x170] sm:$0xff]  }
 0x382   : > { %16000 = vmatprep.subr.bf16.mxu1 %v18173_v61 }
 0x384   : > { %15937 = vmatmul.mubr.bf16.gmra.mrb[32].mxu1 %v19602_v22 }
 0x385   : > { %15940 = vmatprep.mubr.bf16.mxu1 %v19604_v18 }
 0x38c   : > { %15941 = vmatmul.mubr.bf16.gmra.mrb[36].mxu1 %v19608_v41 }
 0x38d   : > { %15944 = vmatprep.mubr.bf16.mxu1 %v19610_v5 }
 0x394   : > { %15945 = vmatmul.mubr.bf16.gmra.mrb[40].mxu1 %v19614_v30 }
 0x395   : > { %15948 = vmatprep.mubr.bf16.mxu1 %v19616_v31 }
 0x39c   : > { %15949 = vmatmul.mubr.bf16.gmra.mrb[44].mxu1 %v19620_v35 }
 0x39d   : > { %15968 = vmatprep.mubr.bf16.mxu1 %v19484_v27  ;;  %v18176_v27 = vld [vmem:[%s21109_s3 + $0x118] sm:$0xff]  }
 0x3a4   : > { %15969 = vmatmul.mubr.bf16.vlgmr.msra.gmra.mrb[16].mxu1 %v19489_v28 }
 0x3a5   : > { %16001 = vmatpush3.bf16.msra.mxu1 %v18173_v61  ;;  %15972 = vmatprep.mubr.bf16.mxu1 %v19497_v33  ;;  %v5236_v61 = vpack.c.bf16 %v5205_v58, %v5204_v59  ;;  %v5218_v59 = vld [vmem:[#allocation2 + $0x108] sm:$0xff]  ;;  %v5219_v58 = vld [vmem:[#allocation2 + $0x110] sm:$0xff] }
 0x3a6   : > { %16002 = vmatprep.subr.bf16.mxu1 %v18174_v53  ;;  %v19701_v52 = vpack.c.bf16 %v5219_v58, %v5218_v59  ;;  %v6151_v59 = vld [vmem:[#allocation2 + $0x210] sm:$0xff] }
 0x3a9   : > { %16003 = vmatpush3.bf16.msra.mxu1 %v18174_v53  ;;  %v19682_v53 = vpack.c.bf16 %v5213_v49, %v5212_v6  ;;  %v6141_v6 = vld [vmem:[#allocation2 + $0x170] sm:$0xff]  ;;  %v6142_v49 = vld [vmem:[#allocation2 + $0x188] sm:$0xff] }
 0x3aa   : > { %16004 = vmatprep.subr.bf16.mxu1 %v18175_v39 }
 0x3ac   : > { %15973 = vmatmul.mubr.bf16.gmra.mrb[20].mxu1 %v19502_v60 }
 0x3ad   : > { %15976 = vmatprep.mubr.bf16.mxu1 %v19509_v40  ;;  %16005 = vmatpush3.bf16.msra.mxu1 %v18175_v39  ;;  %v18185_v39 = vld [vmem:[%s21109_s3 + $0x160] sm:$0xff]  }
 0x3ae   : > { %16006 = vmatprep.subr.bf16.mxu1 %v18176_v27 }
 0x3b1   : > { %16007 = vmatpush3.bf16.msra.mxu1 %v18176_v27  ;;  %v5214_v27 = vld [vmem:[#allocation2 + $0xc8] sm:$0xff] }
 0x3b2   : > { %16008 = vmatprep.subr.bf16.mxu1 %v18177_v44 }
 0x3b4   : > { %15977 = vmatmul.mubr.bf16.gmra.mrb[24].mxu1 %v19514_v45 }
 0x3b5   : > { %15980 = vmatprep.mubr.bf16.mxu1 %v19521_v10  ;;  %16009 = vmatpush3.bf16.msra.mxu1 %v18177_v44  ;;  %v5215_v44 = vld [vmem:[#allocation2 + $0xd0] sm:$0xff] }
 0x3b6   : > { %16010 = vmatprep.subr.bf16.mxu1 %v18178_v7 }
 0x3b9   : > { %16011 = vmatpush3.bf16.msra.mxu1 %v18178_v7  ;;  %v5216_v7 = vld [vmem:[#allocation2 + $0xe8] sm:$0xff] }
 0x3ba   : > { %16012 = vmatprep.subr.bf16.mxu1 %v18179_v8 }
 0x3bc   : > { %15981 = vmatmul.mubr.bf16.gmra.mrb[28].mxu1 %v19526_v13 }
 0x3bd   : > { %15984 = vmatprep.mubr.bf16.mxu1 %v19533_v4  ;;  %16013 = vmatpush3.bf16.msra.mxu1 %v18179_v8  ;;  %v5217_v8 = vld [vmem:[#allocation2 + $0xf0] sm:$0xff] }
 0x3be   : > { %16014 = vmatprep.subr.bf16.mxu1 %v18180_v55  ;;  %v19694_v15 = vpack.c.bf16 %v5217_v8, %v5216_v7  ;;  %v6147_v7 = vld [vmem:[#allocation2 + $0x1d0] sm:$0xff] }
 0x3c1   : > { %16015 = vmatpush3.bf16.msra.mxu1 %v18180_v55  ;;  %v19689_v55 = vpack.c.bf16 %v5215_v44, %v5214_v27  ;;  %v6145_v27 = vld [vmem:[#allocation2 + $0x1b0] sm:$0xff]  ;;  %v6146_v44 = vld [vmem:[#allocation2 + $0x1c8] sm:$0xff] }
 0x3c2   : > { %16048 = vmatprep.subr.bf16.mxu1 %v18181_v12 }
 0x3c4   : > { %15985 = vmatmul.mubr.bf16.gmra.mrb[32].mxu1 %v19535_v63 }
 0x3c5   : > { %15988 = vmatprep.mubr.bf16.mxu1 %v19539_v62 }
 0x3cc   : > { %15989 = vmatmul.mubr.bf16.gmra.mrb[36].mxu1 %v19541_v51 }
 0x3cd   : > { %15992 = vmatprep.mubr.bf16.mxu1 %v19545_v14 }
 0x3d4   : > { %15993 = vmatmul.mubr.bf16.gmra.mrb[40].mxu1 %v19547_v17 }
 0x3d5   : > { %15996 = vmatprep.mubr.bf16.mxu1 %v19551_v38 }
 0x3dc   : > { %15997 = vmatmul.mubr.bf16.gmra.mrb[44].mxu1 %v19662_v21 }
 0x3dd   : > { %16016 = vmatprep.mubr.bf16.mxu1 %v5236_v61  ;;  %v5220_v61 = vld [vmem:[#allocation2 + $0x128] sm:$0xff] }
 0x3de   : > { %v19706_v56 = vpack.c.bf16 %v5221_v24, %v5220_v61  ;;  %v6428_v24 = vld [vmem:[#allocation2 + $0x49] sm:$0xff] }
 0x3e4   : > { %16017 = vmatmul.mubr.bf16.vlgmr.msra.gmra.mrb[16].mxu1 %v19665_v19 }
 0x3e5   : > { %16049 = vmatpush3.bf16.msra.mxu1 %v18181_v12  ;;  %16020 = vmatprep.mubr.bf16.mxu1 %v19670_v0  ;;  %v18186_v12 = vld [vmem:[%s21109_s3 + $0x168] sm:$0xff]  }
 0x3e6   : > { %16050 = vmatprep.subr.bf16.mxu1 %v18182_v46 }
 0x3e9   : > { %16051 = vmatpush3.bf16.msra.mxu1 %v18182_v46  ;;  %v18189_v46 = vld [vmem:[%s21109_s3 + $0x180] sm:$0xff]  }
 0x3ea   : > { %16052 = vmatprep.subr.bf16.mxu1 %v18183_v37 }
 0x3ec   : > { %16021 = vmatmul.mubr.bf16.gmra.mrb[20].mxu1 %v19677_v32 }
 0x3ed   : > { %16024 = vmatprep.mubr.bf16.mxu1 %v19682_v53  ;;  %16053 = vmatpush3.bf16.msra.mxu1 %v18183_v37  ;;  %v19713_v37 = vld [vmem:[#allocation2 + $0x150] sm:$0xff] }
 0x3ee   : > { %16054 = vmatprep.subr.bf16.mxu1 %v18184_v34  ;;  %v5245_v42 = vpack.c.bf16 %v19713_v37, %v19440_v48  ;;  %v18190_v48 = vld [vmem:[%s21109_s3 + $0x188] sm:$0xff]  }
 0x3f1   : > { %16055 = vmatpush3.bf16.msra.mxu1 %v18184_v34  ;;  %v6163_v34 = vpack.c.bf16 %v6141_v6, %v6140_v25  ;;  %v18219_v25 = vld [vmem:[%s21111_s5 + $0x70] sm:$0xff]   ;;  %v18220_v6 = vld [vmem:[%s21111_s5 + $0x78] sm:$0xff]  }
 0x3f2   : > { %16056 = vmatprep.subr.bf16.mxu1 %v18185_v39 }
 0x3f4   : > { %16025 = vmatmul.mubr.bf16.gmra.mrb[24].mxu1 %v19689_v55 }
 0x3f5   : > { %16028 = vmatprep.mubr.bf16.mxu1 %v19694_v15  ;;  %16057 = vmatpush3.bf16.msra.mxu1 %v18185_v39  ;;  %v6144_v39 = vld [vmem:[#allocation2 + $0x1a8] sm:$0xff] }
 0x3f6   : > { %16058 = vmatprep.subr.bf16.mxu1 %v18186_v12  ;;  %v6165_v8 = vpack.c.bf16 %v6145_v27, %v6144_v39 }
 0x3f9   : > { %16059 = vmatpush3.bf16.msra.mxu1 %v18186_v12  ;;  %v6148_v12 = vld [vmem:[#allocation2 + $0x1e8] sm:$0xff] }
 0x3fa   : > { %16060 = vmatprep.subr.bf16.mxu1 %v18187_v57 }
 0x3fc   : > { %16029 = vmatmul.mubr.bf16.gmra.mrb[28].mxu1 %v19701_v52 }
 0x3fd   : > { %16032 = vmatprep.mubr.bf16.mxu1 %v19706_v56  ;;  %16061 = vmatpush3.bf16.msra.mxu1 %v18187_v57  ;;  %v6150_v57 = vld [vmem:[#allocation2 + $0x208] sm:$0xff] }
 0x3fe   : > { %16062 = vmatprep.subr.bf16.mxu1 %v18188_v20  ;;  %v6168_v61 = vpack.c.bf16 %v6151_v59, %v6150_v57 }
 0x401   : > { %16063 = vmatpush3.bf16.msra.mxu1 %v18188_v20 }
 0x402   : > { %16096 = vmatprep.subr.bf16.mxu1 %v18189_v46 }
 0x404   : > { %16033 = vmatmul.mubr.bf16.gmra.mrb[32].mxu1 %v5245_v42  ;;  %v6433_v42 = vld [vmem:[#allocation2 + $0x91] sm:$0xff] }
 0x405   : > { %16036 = vmatprep.mubr.bf16.mxu1 %v19451_v43  ;;  %v18191_v43 = vld [vmem:[%s21109_s3 + $0x190] sm:$0xff]  }
 0x40c   : > { %16037 = vmatmul.mubr.bf16.gmra.mrb[36].mxu1 %v19458_v11  ;;  %v18192_v11 = vld [vmem:[%s21109_s3 + $0x198] sm:$0xff]  }
 0x40d   : > { %16040 = vmatprep.mubr.bf16.mxu1 %v19465_v23  ;;  %v18193_v23 = vld [vmem:[%s21109_s3 + $0x1a0] sm:$0xff]  }
 0x414   : > { %16041 = vmatmul.mubr.bf16.gmra.mrb[40].mxu1 %v19472_v16  ;;  %v18194_v16 = vld [vmem:[%s21109_s3 + $0x1a8] sm:$0xff]  }
 0x415   : > { %16044 = vmatprep.mubr.bf16.mxu1 %v19479_v47  ;;  %v18195_v47 = vld [vmem:[%s21109_s3 + $0x1b0] sm:$0xff]  }
 0x41c   : > { %16045 = vmatmul.mubr.bf16.gmra.mrb[44].mxu1 %v19482_v1  ;;  %v18196_v1 = vld [vmem:[%s21109_s3 + $0x1b8] sm:$0xff]  }
 0x41d   : > { %16064 = vmatprep.mubr.bf16.mxu1 %v19554_v26  ;;  %v18197_v26 = vld [vmem:[%s21109_s3 + $0x1c0] sm:$0xff]  }
 0x424   : > { %16065 = vmatmul.mubr.bf16.vlgmr.msra.gmra.mrb[16].mxu1 %v19559_v29  ;;  %v18401_v29 = vld [vmem:[#allocation2 + $0x8] sm:$0xff] }
 0x425   : > { %16097 = vmatpush3.bf16.msra.mxu1 %v18189_v46  ;;  %16068 = vmatprep.mubr.bf16.mxu1 %v19566_v50  ;;  %v19762_v50 = vpack.c.bf16 %v18401_v29, %v18401_v29  ;;  %v6431_v46 = vld [vmem:[#allocation2 + $0x71] sm:$0xff]  ;;  %v6438_v29 = vld [vmem:[#allocation2 + $0xe9] sm:$0xff] }
 0x426   : > { %16098 = vmatprep.subr.bf16.mxu1 %v18190_v48 }
 0x427   : > { %16256 = vmatprep.mubr.bf16.mxu0 %v19762_v50 }
 0x429   : > { %16099 = vmatpush3.bf16.msra.mxu1 %v18190_v48 }
 0x42a   : > { %16100 = vmatprep.subr.bf16.mxu1 %v18191_v43 }
 0x42c   : > { %16069 = vmatmul.mubr.bf16.gmra.mrb[20].mxu1 %v19571_v36  ;;  %v5540_v36 = vld [vmem:[#allocation2 + $0x209] sm:$0xff] }
 0x42d   : > { %16072 = vmatprep.mubr.bf16.mxu1 %v19578_v54  ;;  %16101 = vmatpush3.bf16.msra.mxu1 %v18191_v43  ;;  %v5541_v54 = vld [vmem:[#allocation2 + $0x211] sm:$0xff] }
 0x42e   : > { %16102 = vmatprep.subr.bf16.mxu1 %v18192_v11 }
 0x431   : > { %16103 = vmatpush3.bf16.msra.mxu1 %v18192_v11  ;;  %v6434_v11 = vld [vmem:[#allocation2 + $0xa9] sm:$0xff] }
 0x432   : > { %16104 = vmatprep.subr.bf16.mxu1 %v18193_v23 }
 0x434   : > { %16073 = vmatmul.mubr.bf16.gmra.mrb[24].mxu1 %v19583_v9  ;;  %v19765_v9 = vpack.c.bf16 %v5541_v54, %v5540_v36  ;;  %v6439_v36 = vld [vmem:[#allocation2 + $0xf1] sm:$0xff] }
 0x435   : > { %16076 = vmatprep.mubr.bf16.mxu1 %v19590_v2  ;;  %16105 = vmatpush3.bf16.msra.mxu1 %v18193_v23  ;;  %v18198_v2 = vld [vmem:[%s21109_s3 + $0x1c8] sm:$0xff]   ;;  %v6435_v23 = vld [vmem:[#allocation2 + $0xb1] sm:$0xff] }
 0x436   : > { %16106 = vmatprep.subr.bf16.mxu1 %v18194_v16  ;;  %v6441_v54 = vld [vmem:[#allocation2 + $0x111] sm:$0xff] }
 0x439   : > { %16107 = vmatpush3.bf16.msra.mxu1 %v18194_v16  ;;  %v6436_v16 = vld [vmem:[#allocation2 + $0xc9] sm:$0xff] }
 0x43a   : > { %16108 = vmatprep.subr.bf16.mxu1 %v18195_v47 }
 0x43c   : > { %16077 = vmatmul.mubr.bf16.gmra.mrb[28].mxu1 %v19595_v3  ;;  %v18199_v3 = vld [vmem:[%s21109_s3 + $0x1d0] sm:$0xff]  }
 0x43d   : > { %16080 = vmatprep.mubr.bf16.mxu1 %v19602_v22  ;;  %16109 = vmatpush3.bf16.msra.mxu1 %v18195_v47  ;;  %v18213_v22 = vld [vmem:[%s21111_s5 + $0x40] sm:$0xff]   ;;  %v6437_v47 = vld [vmem:[#allocation2 + $0xd1] sm:$0xff] }
 0x43e   : > { %16110 = vmatprep.subr.bf16.mxu1 %v18196_v1  ;;  %16240 = vmatprep.subr.bf16.mxu0 %v18213_v22 }
 0x43f   : > { %16241 = vmatpush3.bf16.msra.mxu0 %v18213_v22  ;;  %v6449_v22 = vld [vmem:[#allocation2 + $0x191] sm:$0xff] }
 0x441   : > { %16111 = vmatpush3.bf16.msra.mxu1 %v18196_v1  ;;  %v6463_v1 = vpack.c.bf16 %v6435_v23, %v6434_v11  ;;  %v18223_v23 = vld [vmem:[%s21111_s5 + $0x10] sm:$0xff]  }
 0x442   : > { %16144 = vmatprep.subr.bf16.mxu1 %v18197_v26 }
 0x444   : > { %16081 = vmatmul.mubr.bf16.gmra.mrb[32].mxu1 %v19604_v18  ;;  %v18217_v18 = vld [vmem:[%s21111_s5 + $0x60] sm:$0xff]  }
 0x445   : > { %16084 = vmatprep.mubr.bf16.mxu1 %v19608_v41  ;;  %v18208_v41 = vld [vmem:[%s21109_s3 + $0x218] sm:$0xff]  }
 0x44c   : > { %16085 = vmatmul.mubr.bf16.gmra.mrb[36].mxu1 %v19610_v5  ;;  %v18218_v5 = vld [vmem:[%s21111_s5 + $0x68] sm:$0xff]  }
 0x44d   : > { %16088 = vmatprep.mubr.bf16.mxu1 %v19614_v30  ;;  %v18209_v30 = vld [vmem:[%s21109_s3 + $0x220] sm:$0xff]  }
 0x454   : > { %16089 = vmatmul.mubr.bf16.gmra.mrb[40].mxu1 %v19616_v31  ;;  %v18210_v31 = vld [vmem:[%s21109_s3 + $0x228] sm:$0xff]  }
 0x455   : > { %16092 = vmatprep.mubr.bf16.mxu1 %v19620_v35  ;;  %v18211_v35 = vld [vmem:[%s21109_s3 + $0x230] sm:$0xff]  }
 0x45c   : > { %16093 = vmatmul.mubr.bf16.gmra.mrb[44].mxu1 %v19765_v9 }
 0x45d   : > { %16112 = vmatprep.mubr.bf16.mxu1 %v19489_v28  ;;  %v18200_v28 = vld [vmem:[%s21109_s3 + $0x1d8] sm:$0xff]  }
 0x464   : > { %16113 = vmatmul.mubr.bf16.vlgmr.msra.gmra.mrb[16].mxu1 %v19497_v33  ;;  %v18201_v33 = vld [vmem:[%s21109_s3 + $0x1e0] sm:$0xff]  }
 0x465   : > { %16145 = vmatpush3.bf16.msra.mxu1 %v18197_v26  ;;  %16116 = vmatprep.mubr.bf16.mxu1 %v19502_v60  ;;  %v18202_v60 = vld [vmem:[%s21109_s3 + $0x1e8] sm:$0xff]   ;;  %v6464_v26 = vpack.c.bf16 %v6437_v47, %v6436_v16 }
 0x466   : > { %16146 = vmatprep.subr.bf16.mxu1 %v18198_v2 }
 0x469   : > { %16147 = vmatpush3.bf16.msra.mxu1 %v18198_v2  ;;  %v6465_v2 = vpack.c.bf16 %v6439_v36, %v6438_v29  ;;  %v18224_v36 = vld [vmem:[%s21111_s5 + $0x18] sm:$0xff]  }
 0x46a   : > { %16148 = vmatprep.subr.bf16.mxu1 %v18199_v3 }
 0x46c   : > { %16117 = vmatmul.mubr.bf16.gmra.mrb[20].mxu1 %v19509_v40  ;;  %v18203_v40 = vld [vmem:[%s21109_s3 + $0x1f0] sm:$0xff]  }
 0x46d   : > { %16120 = vmatprep.mubr.bf16.mxu1 %v19514_v45  ;;  %16149 = vmatpush3.bf16.msra.mxu1 %v18199_v3  ;;  %v18204_v45 = vld [vmem:[%s21109_s3 + $0x1f8] sm:$0xff]  }
 0x46e   : > { %16150 = vmatprep.subr.bf16.mxu1 %v18200_v28 }
 0x471   : > { %16151 = vmatpush3.bf16.msra.mxu1 %v18200_v28  ;;  %v6442_v28 = vld [vmem:[#allocation2 + $0x129] sm:$0xff] }
 0x472   : > { %16152 = vmatprep.subr.bf16.mxu1 %v18201_v33 }
 0x474   : > { %16121 = vmatmul.mubr.bf16.gmra.mrb[24].mxu1 %v19521_v10  ;;  %v18205_v10 = vld [vmem:[%s21109_s3 + $0x200] sm:$0xff]  }
 0x475   : > { %16124 = vmatprep.mubr.bf16.mxu1 %v19526_v13  ;;  %16153 = vmatpush3.bf16.msra.mxu1 %v18201_v33  ;;  %v5846_v13 = vld [vmem:[#allocation2 + $0x227] sm:$0xff]  ;;  %v6443_v33 = vld [vmem:[#allocation2 + $0x131] sm:$0xff] }
 0x476   : > { %16154 = vmatprep.subr.bf16.mxu1 %v18202_v60 }
 0x479   : > { %16155 = vmatpush3.bf16.msra.mxu1 %v18202_v60  ;;  %v6444_v60 = vld [vmem:[#allocation2 + $0x149] sm:$0xff] }
 0x47a   : > { %16156 = vmatprep.subr.bf16.mxu1 %v18203_v40 }
 0x47c   : > { %16125 = vmatmul.mubr.bf16.gmra.mrb[28].mxu1 %v19533_v4  ;;  %v5847_v4 = vld [vmem:[#allocation2 + $0x22f] sm:$0xff] }
 0x47d   : > { %16128 = vmatprep.mubr.bf16.mxu1 %v19535_v63  ;;  %16157 = vmatpush3.bf16.msra.mxu1 %v18203_v40  ;;  %v5863_v63 = vpack.c.bf16 %v5847_v4, %v5846_v13  ;;  %v6445_v40 = vld [vmem:[#allocation2 + $0x151] sm:$0xff]  ;;  %v6446_v13 = vld [vmem:[#allocation2 + $0x169] sm:$0xff] }
 0x47e   : > { %16158 = vmatprep.subr.bf16.mxu1 %v18204_v45  ;;  %v6447_v4 = vld [vmem:[#allocation2 + $0x171] sm:$0xff] }
 0x481   : > { %16159 = vmatpush3.bf16.msra.mxu1 %v18204_v45  ;;  %v6467_v45 = vpack.c.bf16 %v6443_v33, %v6442_v28 }
 0x482   : > { %16192 = vmatprep.subr.bf16.mxu1 %v18205_v10 }
 0x484   : > { %16129 = vmatmul.mubr.bf16.gmra.mrb[32].mxu1 %v19539_v62  ;;  %v18214_v62 = vld [vmem:[%s21111_s5 + $0x48] sm:$0xff]  }
 0x485   : > { %16132 = vmatprep.mubr.bf16.mxu1 %v19541_v51  ;;  %16242 = vmatprep.subr.bf16.mxu0 %v18214_v62  ;;  %v18215_v51 = vld [vmem:[%s21111_s5 + $0x50] sm:$0xff]  }
 0x486   : > { %16243 = vmatpush3.bf16.msra.mxu0 %v18214_v62  ;;  %v6469_v62 = vpack.c.bf16 %v6447_v4, %v6446_v13 }
 0x487   : > { %16244 = vmatprep.subr.bf16.mxu0 %v18215_v51 }
 0x48a   : > { %16245 = vmatpush3.bf16.msra.mxu0 %v18215_v51 }
 0x48c   : > { %16133 = vmatmul.mubr.bf16.gmra.mrb[36].mxu1 %v19545_v14  ;;  %v18206_v14 = vld [vmem:[%s21109_s3 + $0x208] sm:$0xff]  }
 0x48d   : > { %16136 = vmatprep.mubr.bf16.mxu1 %v19547_v17  ;;  %v18216_v17 = vld [vmem:[%s21111_s5 + $0x58] sm:$0xff]  }
 0x48e   : > { %16246 = vmatprep.subr.bf16.mxu0 %v18216_v17 }
 0x48f   : > { %16247 = vmatpush3.bf16.msra.mxu0 %v18216_v17  ;;  %v6451_v17 = vld [vmem:[#allocation2 + $0x1b1] sm:$0xff] }
 0x490   : > { %16248 = vmatprep.subr.bf16.mxu0 %v18217_v18 }
 0x493   : > { %16249 = vmatpush3.bf16.msra.mxu0 %v18217_v18  ;;  %v6453_v18 = vld [vmem:[#allocation2 + $0x1d1] sm:$0xff] }
 0x494   : > { %16137 = vmatmul.mubr.bf16.gmra.mrb[40].mxu1 %v19551_v38  ;;  %v18207_v38 = vld [vmem:[%s21109_s3 + $0x210] sm:$0xff]   ;;  %16250 = vmatprep.subr.bf16.mxu0 %v18218_v5 }
 0x495   : > { %16140 = vmatprep.mubr.bf16.mxu1 %v19662_v21  ;;  %v6138_v21 = vld [vmem:[#allocation2 + $0x148] sm:$0xff] }
 0x497   : > { %16251 = vmatpush3.bf16.msra.mxu0 %v18218_v5 }
 0x498   : > { %16252 = vmatprep.subr.bf16.mxu0 %v18219_v25 }
 0x49b   : > { %16253 = vmatpush3.bf16.msra.mxu0 %v18219_v25 }
 0x49c   : > { %16141 = vmatmul.mubr.bf16.gmra.mrb[44].mxu1 %v5863_v63  ;;  %v6448_v63 = vld [vmem:[#allocation2 + $0x189] sm:$0xff]  ;;  %16254 = vmatprep.subr.bf16.mxu0 %v18220_v6 }
 0x49d   : > { %16160 = vmatprep.mubr.bf16.mxu1 %v19665_v19  ;;  %v18212_v19 = vld [vmem:[%s21109_s3 + $0x238] sm:$0xff]   ;;  %v6470_v51 = vpack.c.bf16 %v6449_v22, %v6448_v63 }
 0x49f   : > { %16255 = vmatpush3.bf16.msra.mxu0 %v18220_v6 }
 0x4a4   : > { %16161 = vmatmul.mubr.bf16.vlgmr.msra.gmra.mrb[16].mxu1 %v19670_v0  ;;  %v6162_v0 = vpack.c.bf16 %v19713_v37, %v6138_v21  ;;  %v6432_v37 = vld [vmem:[#allocation2 + $0x89] sm:$0xff] }
 0x4a5   : > { %16193 = vmatpush3.bf16.msra.mxu1 %v18205_v10  ;;  %16164 = vmatprep.mubr.bf16.mxu1 %v19677_v32  ;;  %v6143_v32 = vld [vmem:[#allocation2 + $0x190] sm:$0xff]  ;;  %v6462_v43 = vpack.c.bf16 %v6433_v42, %v6432_v37  ;;  %v6468_v10 = vpack.c.bf16 %v6445_v40, %v6444_v60 }
 0x4a6   : > { %16194 = vmatprep.subr.bf16.mxu1 %v18206_v14  ;;  %v6458_v21 = vld [vmem:[#allocation2 + $0x229] sm:$0xff] }
 0x4a9   : > { %16195 = vmatpush3.bf16.msra.mxu1 %v18206_v14  ;;  %v6450_v14 = vld [vmem:[#allocation2 + $0x1a9] sm:$0xff] }
 0x4aa   : > { %16196 = vmatprep.subr.bf16.mxu1 %v18207_v38 }
 0x4ac   : > { %16165 = vmatmul.mubr.bf16.gmra.mrb[20].mxu1 %v19682_v53  ;;  %v6164_v53 = vpack.c.bf16 %v6143_v32, %v6142_v49  ;;  %v19869_v49 = vld [vmem:[%s21110_s4] ss:$0 sm:$0xff] }
 0x4ad   : > { %16168 = vmatprep.mubr.bf16.mxu1 %v19689_v55  ;;  %16197 = vmatpush3.bf16.msra.mxu1 %v18207_v38  ;;  %v6166_v55 = vpack.c.bf16 %v6147_v7, %v6146_v44  ;;  %v6452_v38 = vld [vmem:[#allocation2 + $0x1c9] sm:$0xff] }
 0x4ae   : > { %16198 = vmatprep.subr.bf16.mxu1 %v18208_v41  ;;  %v6472_v5 = vpack.c.bf16 %v6453_v18, %v6452_v38 }
 0x4b1   : > { %16199 = vmatpush3.bf16.msra.mxu1 %v18208_v41  ;;  %v6471_v41 = vpack.c.bf16 %v6451_v17, %v6450_v14 }
 0x4b2   : > { %16200 = vmatprep.subr.bf16.mxu1 %v18209_v30 }
 0x4b4   : > { %16169 = vmatmul.mubr.bf16.gmra.mrb[24].mxu1 %v19694_v15  ;;  %v6149_v15 = vld [vmem:[#allocation2 + $0x1f0] sm:$0xff] }
 0x4b5   : > { %16172 = vmatprep.mubr.bf16.mxu1 %v19701_v52  ;;  %16201 = vmatpush3.bf16.msra.mxu1 %v18209_v30  ;;  %v6167_v58 = vpack.c.bf16 %v6149_v15, %v6148_v12  ;;  %v6429_v52 = vld [vmem:[#allocation2 + $0x51] sm:$0xff]  ;;  %v6454_v30 = vld [vmem:[#allocation2 + $0x1e9] sm:$0xff] }
 0x4b6   : > { %16202 = vmatprep.subr.bf16.mxu1 %v18210_v31  ;;  %v6460_v20 = vpack.c.bf16 %v6429_v52, %v6428_v24  ;;  %v18222_v24 = vld [vmem:[%s21111_s5 + $0x8] sm:$0xff]  }
 0x4b9   : > { %16203 = vmatpush3.bf16.msra.mxu1 %v18210_v31  ;;  %v6455_v31 = vld [vmem:[#allocation2 + $0x1f1] sm:$0xff] }
 0x4ba   : > { %16204 = vmatprep.subr.bf16.mxu1 %v18211_v35 }
 0x4bc   : > { %16173 = vmatmul.mubr.bf16.gmra.mrb[28].mxu1 %v19706_v56  ;;  %v6430_v56 = vld [vmem:[#allocation2 + $0x69] sm:$0xff] }
 0x4bd   : > { %16176 = vmatprep.mubr.bf16.mxu1 %v6162_v0  ;;  %16205 = vmatpush3.bf16.msra.mxu1 %v18211_v35  ;;  %v6461_v48 = vpack.c.bf16 %v6431_v46, %v6430_v56  ;;  %v6473_v35 = vpack.c.bf16 %v6455_v31, %v6454_v30 }
 0x4be   : > { %16206 = vmatprep.subr.bf16.mxu1 %v18212_v19 }
 0x4c1   : > { %16207 = vmatpush3.bf16.msra.mxu1 %v18212_v19  ;;  %v6459_v19 = vld [vmem:[#allocation2 + $0x231] sm:$0xff] }
 0x4c2   : > { %v6475_v0 = vpack.c.bf16 %v6459_v19, %v6458_v21  ;;  %v18227_v21 = vld [vmem:[%s21111_s5 + $0x30] sm:$0xff]  }
 0x4c4   : > { %16177 = vmatmul.mubr.bf16.gmra.mrb[32].mxu1 %v6163_v34 }
 0x4c5   : > { %16180 = vmatprep.mubr.bf16.mxu1 %v6164_v53 }
 0x4cc   : > { %16181 = vmatmul.mubr.bf16.gmra.mrb[36].mxu1 %v6165_v8 }
 0x4cd   : > { %16184 = vmatprep.mubr.bf16.mxu1 %v6166_v55 }
 0x4d4   : > { %16185 = vmatmul.mubr.bf16.gmra.mrb[40].mxu1 %v6167_v58 }
 0x4d5   : > { %16188 = vmatprep.mubr.bf16.mxu1 %v6168_v61 }
 0x4dc   : > { %16189 = vmatmul.mubr.bf16.gmra.mrb[44].mxu1 %v19762_v50  ;;  %v6440_v50 = vld [vmem:[#allocation2 + $0x109] sm:$0xff] }
 0x4dd   : > { %16208 = vmatprep.mubr.bf16.mxu1 %v6460_v20  ;;  %v6466_v3 = vpack.c.bf16 %v6441_v54, %v6440_v50 }
 0x4e4   : > { %16209 = vmatmul.mubr.bf16.vlgmr.msra.gmra.mrb[16].mxu1 %v6461_v48 }
 0x4e5   : > { %16212 = vmatprep.mubr.bf16.mxu1 %v6462_v43 }
 0x4ec   : > { %16213 = vmatmul.mubr.bf16.gmra.mrb[20].mxu1 %v6463_v1 }
 0x4ed   : > { %16216 = vmatprep.mubr.bf16.mxu1 %v6464_v26 }
 0x4f4   : > { %16217 = vmatmul.mubr.bf16.gmra.mrb[24].mxu1 %v6465_v2 }
 0x4f5   : > { %16220 = vmatprep.mubr.bf16.mxu1 %v6466_v3 }
 0x4fc   : > { %16221 = vmatmul.mubr.bf16.gmra.mrb[28].mxu1 %v6467_v45 }
 0x4fd   : > { %16224 = vmatprep.mubr.bf16.mxu1 %v6468_v10  ;;  %v18225_v10 = vld [vmem:[%s21111_s5 + $0x20] sm:$0xff]  }
 0x504   : > { %16225 = vmatmul.mubr.bf16.gmra.mrb[32].mxu1 %v6469_v62 }
 0x505   : > { %16228 = vmatprep.mubr.bf16.mxu1 %v6470_v51  ;;  %v18226_v51 = vld [vmem:[%s21111_s5 + $0x28] sm:$0xff]  }
 0x50c   : > { %16229 = vmatmul.mubr.bf16.gmra.mrb[36].mxu1 %v6471_v41 }
 0x50d   : > { %16232 = vmatprep.mubr.bf16.mxu1 %v6472_v5 }
 0x514   : > { %16233 = vmatmul.mubr.bf16.gmra.mrb[40].mxu1 %v6473_v35 }
 0x515   : > { %16236 = vmatprep.mubr.bf16.mxu1 %v19765_v9  ;;  %v18221_v9 = vld [vmem:[%s21111_s5] sm:$0xff]  }
 0x516   : > { %16288 = vmatprep.subr.bf16.mxu0 %v18221_v9 }
 0x51c   : > { %16237 = vmatmul.mubr.bf16.gmra.mrb[44].mxu1 %v6475_v0 }
 0x5b7   : > { %v16210_v32 = vpop.f32.mrb[16].mxu1 }
 0x5b8   : > { %v6743_v34 = vadd.f32 %v16210_v32, %v19869_v49  ;;  %v6575_v53 = vpop.f32.mrb[17].mxu1  ;;  %v18228_v32 = vld [vmem:[%s21111_s5 + $0x38] sm:$0xff]  }
 0x5b9   : > { %v6741_v39 = vadd.f32 %v19869_v49, %v6575_v53  ;;  %v16211_v27 = vpop.f32.mrb[18].mxu1 }
 0x5ba   : > { %v6775_v44 = vmax.f32 %v6743_v34, 0.0  ;;  %v6744_v7 = vadd.f32 %v16211_v27, %v19869_v49  ;;  %v6578_v8 = vpop.f32.mrb[19].mxu1 }
 0x5bb   : > { %v6773_v55 = vmax.f32 %v6741_v39, 0.0  ;;  %v6742_v12 = vadd.f32 %v19869_v49, %v6578_v8 }
 0x5bc   : > { %6807 = vst [vmem:[#allocation2 + $0x48] sm:$0xff] %v6775_v44  ;;  %v6776_v15 = vmax.f32 %v6744_v7, 0.0 }
 0x5bd   : > { %6805 = vst [vmem:[#allocation2 + $0x28] sm:$0xff] %v6773_v55  ;;  %v6774_v57 = vmax.f32 %v6742_v12, 0.0 }
 0x5be   : > { %6808 = vst [vmem:[#allocation2 + $0x50] sm:$0xff] %v6776_v15  ;;  %v6935_v59 = vpack.c.bf16 %v6776_v15, %v6775_v44  ;;  %v19926_v15 = vld [vmem:[%s21111_s5 + $0x80] sm:$0xff]  }
 0x5bf   : > { %6806 = vst [vmem:[#allocation2 + $0x30] sm:$0xff] %v6774_v57  ;;  %v16214_v58 = vpop.f32.mrb[20].mxu1  ;;  %v6934_v61 = vpack.c.bf16 %v6774_v57, %v6773_v55 }
 0x5c0   : > { %v6747_v52 = vadd.f32 %v16214_v58, %v19869_v49  ;;  %v6591_v20 = vpop.f32.mrb[21].mxu1 }
 0x5c1   : > { %v6745_v56 = vadd.f32 %v19869_v49, %v6591_v20  ;;  %v16215_v46 = vpop.f32.mrb[22].mxu1  ;;  %16257 = vmatmul.mubr.bf16.vlgmr.msra.gmra.mrb[32].mxu0 %v6934_v61 }
 0x5c2   : > { %v6779_v37 = vmax.f32 %v6747_v52, 0.0  ;;  %v6748_v42 = vadd.f32 %v16215_v46, %v19869_v49  ;;  %v6594_v48 = vpop.f32.mrb[23].mxu1  ;;  %16289 = vmatpush3.bf16.msra.mxu0 %v18221_v9  ;;  %16260 = vmatprep.mubr.bf16.mxu0 %v6935_v59 }
 0x5c3   : > { %v6777_v43 = vmax.f32 %v6745_v56, 0.0  ;;  %v6746_v11 = vadd.f32 %v19869_v49, %v6594_v48  ;;  %16290 = vmatprep.subr.bf16.mxu0 %v18222_v24 }
 0x5c4   : > { %6811 = vst [vmem:[#allocation2 + $0x88] sm:$0xff] %v6779_v37  ;;  %v6780_v16 = vmax.f32 %v6748_v42, 0.0 }
 0x5c5   : > { %6809 = vst [vmem:[#allocation2 + $0x68] sm:$0xff] %v6777_v43  ;;  %v6778_v47 = vmax.f32 %v6746_v11, 0.0 }
 0x5c6   : > { %6812 = vst [vmem:[#allocation2 + $0x90] sm:$0xff] %v6780_v16  ;;  %16291 = vmatpush3.bf16.msra.mxu0 %v18222_v24  ;;  %v6937_v1 = vpack.c.bf16 %v6780_v16, %v6779_v37 }
 0x5c7   : > { %6810 = vst [vmem:[#allocation2 + $0x70] sm:$0xff] %v6778_v47  ;;  %v16218_v26 = vpop.f32.mrb[24].mxu1  ;;  %v6936_v29 = vpack.c.bf16 %v6778_v47, %v6777_v43  ;;  %16292 = vmatprep.subr.bf16.mxu0 %v18223_v23 }
 0x5c8   : > { %v6751_v50 = vadd.f32 %v16218_v26, %v19869_v49  ;;  %v6607_v54 = vpop.f32.mrb[25].mxu1 }
 0x5c9   : > { %v6749_v2 = vadd.f32 %v19869_v49, %v6607_v54  ;;  %v16219_v3 = vpop.f32.mrb[26].mxu1  ;;  %16261 = vmatmul.mubr.bf16.gmra.mrb[36].mxu0 %v6936_v29 }
 0x5ca   : > { %v6783_v28 = vmax.f32 %v6751_v50, 0.0  ;;  %v6752_v33 = vadd.f32 %v16219_v3, %v19869_v49  ;;  %v6610_v60 = vpop.f32.mrb[27].mxu1  ;;  %16264 = vmatprep.mubr.bf16.mxu0 %v6937_v1  ;;  %16293 = vmatpush3.bf16.msra.mxu0 %v18223_v23 }
 0x5cb   : > { %v6781_v40 = vmax.f32 %v6749_v2, 0.0  ;;  %v6750_v45 = vadd.f32 %v19869_v49, %v6610_v60  ;;  %16294 = vmatprep.subr.bf16.mxu0 %v18224_v36 }
 0x5cc   : > { %6815 = vst [vmem:[#allocation2 + $0xc8] sm:$0xff] %v6783_v28  ;;  %v6784_v13 = vmax.f32 %v6752_v33, 0.0 }
 0x5cd   : > { %6813 = vst [vmem:[#allocation2 + $0xa8] sm:$0xff] %v6781_v40  ;;  %v19895_v4 = vmax.f32 %v6750_v45, 0.0 }
 0x5ce   : > { %6816 = vst [vmem:[#allocation2 + $0xd0] sm:$0xff] %v6784_v13  ;;  %v6939_v63 = vpack.c.bf16 %v6784_v13, %v6783_v28  ;;  %16295 = vmatpush3.bf16.msra.mxu0 %v18224_v36 }
 0x5cf   : > { %6814 = vst [vmem:[#allocation2 + $0xb0] sm:$0xff] %v19895_v4  ;;  %v16222_v22 = vpop.f32.mrb[28].mxu1  ;;  %v6938_v62 = vpack.c.bf16 %v19895_v4, %v6781_v40  ;;  %16296 = vmatprep.subr.bf16.mxu0 %v18225_v10 }
 0x5d0   : > { %v6755_v14 = vadd.f32 %v16222_v22, %v19869_v49  ;;  %v6623_v17 = vpop.f32.mrb[29].mxu1 }
 0x5d1   : > { %v6753_v38 = vadd.f32 %v19869_v49, %v6623_v17  ;;  %v16223_v18 = vpop.f32.mrb[30].mxu1  ;;  %16265 = vmatmul.mubr.bf16.gmra.mrb[40].mxu0 %v6938_v62 }
 0x5d2   : > { %v6787_v41 = vmax.f32 %v6755_v14, 0.0  ;;  %v6756_v5 = vadd.f32 %v16223_v18, %v19869_v49  ;;  %v6626_v30 = vpop.f32.mrb[31].mxu1  ;;  %16268 = vmatprep.mubr.bf16.mxu0 %v6939_v63  ;;  %16297 = vmatpush3.bf16.msra.mxu0 %v18225_v10 }
 0x5d3   : > { %v6785_v31 = vmax.f32 %v6753_v38, 0.0  ;;  %v6754_v35 = vadd.f32 %v19869_v49, %v6626_v30  ;;  %16298 = vmatprep.subr.bf16.mxu0 %v18226_v51  ;;  %v6837_v30 = vld [vmem:[#allocation2 + $0x7] sm:$0xff] }
 0x5d4   : > { %6819 = vst [vmem:[#allocation2 + $0x108] sm:$0xff] %v6787_v41  ;;  %v19909_v19 = vmax.f32 %v6756_v5, 0.0 }
 0x5d5   : > { %6817 = vst [vmem:[#allocation2 + $0xe8] sm:$0xff] %v6785_v31  ;;  %v6786_v0 = vmax.f32 %v6754_v35, 0.0 }
 0x5d6   : > { %6820 = vst [vmem:[#allocation2 + $0x110] sm:$0xff] %v19909_v19  ;;  %v6941_v25 = vpack.c.bf16 %v19909_v19, %v6787_v41  ;;  %16299 = vmatpush3.bf16.msra.mxu0 %v18226_v51 }
 0x5d7   : > { %6818 = vst [vmem:[#allocation2 + $0xf0] sm:$0xff] %v6786_v0  ;;  %v16226_v6 = vpop.f32.mrb[32].mxu1  ;;  %v19913_v9 = vpack.c.bf16 %v6786_v0, %v6785_v31  ;;  %16300 = vmatprep.subr.bf16.mxu0 %v18227_v21  ;;  %v6838_v31 = vld [vmem:[#allocation2 + $0xf] sm:$0xff] }
 0x5d8   : > { %v6759_v34 = vadd.f32 %v16226_v6, %v19869_v49  ;;  %v6639_v53 = vpop.f32.mrb[33].mxu1  ;;  %v6869_v0 = vpack.c.bf16 %v6838_v31, %v6837_v30 }
 0x5d9   : > { %v6757_v39 = vadd.f32 %v19869_v49, %v6639_v53  ;;  %v16227_v27 = vpop.f32.mrb[34].mxu1  ;;  %16269 = vmatmul.mubr.bf16.gmra.mrb[44].mxu0 %v19913_v9  ;;  %v6839_v53 = vld [vmem:[#allocation2 + $0x27] sm:$0xff] }
 0x5da   : > { %v6791_v44 = vmax.f32 %v6759_v34, 0.0  ;;  %v6760_v7 = vadd.f32 %v16227_v27, %v19869_v49  ;;  %v6642_v8 = vpop.f32.mrb[35].mxu1  ;;  %16272 = vmatprep.mubr.bf16.mxu0 %v6941_v25  ;;  %16301 = vmatpush3.bf16.msra.mxu0 %v18227_v21  ;;  %v6842_v34 = vld [vmem:[#allocation2 + $0x4f] sm:$0xff] }
 0x5db   : > { %v6789_v55 = vmax.f32 %v6757_v39, 0.0  ;;  %v6758_v12 = vadd.f32 %v19869_v49, %v6642_v8  ;;  %16302 = vmatprep.subr.bf16.mxu0 %v18228_v32  ;;  %v6841_v39 = vld [vmem:[#allocation2 + $0x47] sm:$0xff]  ;;  %v6844_v8 = vld [vmem:[#allocation2 + $0x6f] sm:$0xff] }
 0x5dc   : > { %6823 = vst [vmem:[#allocation2 + $0x148] sm:$0xff] %v6791_v44  ;;  %v6792_v57 = vmax.f32 %v6760_v7, 0.0  ;;  %v18230_v27 = vld [vmem:[%s21111_s5 + $0x88] sm:$0xff]   ;;  %v18231_v7 = vld [vmem:[%s21111_s5 + $0x90] sm:$0xff]  }
 0x5dd   : > { %6821 = vst [vmem:[#allocation2 + $0x128] sm:$0xff] %v6789_v55  ;;  %v6790_v59 = vmax.f32 %v6758_v12, 0.0  ;;  %v6843_v12 = vld [vmem:[#allocation2 + $0x67] sm:$0xff] }
 0x5de   : > { %6824 = vst [vmem:[#allocation2 + $0x150] sm:$0xff] %v6792_v57  ;;  %v19928_v58 = vpack.c.bf16 %v6792_v57, %v6791_v44  ;;  %16303 = vmatpush3.bf16.msra.mxu0 %v18228_v32  ;;  %v6840_v32 = vld [vmem:[#allocation2 + $0x2f] sm:$0xff]  ;;  %v19969_v44 = vpack.c.bf16 %v6842_v34, %v6841_v39  ;;  %v19977_v57 = vpack.c.bf16 %v6844_v8, %v6843_v12 }
 0x5df   : > { %6822 = vst [vmem:[#allocation2 + $0x130] sm:$0xff] %v6790_v59  ;;  %v16230_v61 = vpop.f32.mrb[36].mxu1  ;;  %v19930_v24 = vpack.c.bf16 %v6790_v59, %v6789_v55  ;;  %16336 = vmatprep.subr.bf16.mxu0 %v19926_v15  ;;  %v6846_v55 = vld [vmem:[#allocation2 + $0x8f] sm:$0xff]  ;;  %v6845_v59 = vld [vmem:[#allocation2 + $0x87] sm:$0xff] }
 0x5e0   : > { %v6763_v52 = vadd.f32 %v16230_v61, %v19869_v49  ;;  %v6655_v20 = vpop.f32.mrb[37].mxu1  ;;  %v18232_v61 = vld [vmem:[%s21111_s5 + $0x98] sm:$0xff]   ;;  %v7386_v39 = vld [vmem:[#allocation2 + $0x29] sm:$0xff] }
 0x5e1   : > { %v6761_v56 = vadd.f32 %v19869_v49, %v6655_v20  ;;  %v16231_v46 = vpop.f32.mrb[38].mxu1  ;;  %16273 = vmatmul.mubr.bf16.gmra.mrb[48].mxu0 %v19930_v24  ;;  %v6848_v20 = vld [vmem:[#allocation2 + $0xaf] sm:$0xff] }
 0x5e2   : > { %v6795_v37 = vmax.f32 %v6763_v52, 0.0  ;;  %v6764_v42 = vadd.f32 %v16231_v46, %v19869_v49  ;;  %v6658_v48 = vpop.f32.mrb[39].mxu1  ;;  %16276 = vmatprep.mubr.bf16.mxu0 %v19928_v58  ;;  %v18233_v52 = vld [vmem:[%s21111_s5 + $0xa0] sm:$0xff]   ;;  %v7389_v8 = vld [vmem:[#allocation2 + $0x51] sm:$0xff]  ;;  %v18238_v12 = vld [vmem:[%s21111_s5 + $0xc8] sm:$0xff]  }
 0x5e3   : > { %v6793_v43 = vmax.f32 %v6761_v56, 0.0  ;;  %v6762_v11 = vadd.f32 %v19869_v49, %v6658_v48  ;;  %v6850_v56 = vld [vmem:[#allocation2 + $0xcf] sm:$0xff]  ;;  %v6847_v46 = vld [vmem:[#allocation2 + $0xa7] sm:$0xff] }
 0x5e4   : > { %6827 = vst [vmem:[#allocation2 + $0x188] sm:$0xff] %v6795_v37  ;;  %v6796_v23 = vmax.f32 %v6764_v42, 0.0  ;;  %v6849_v42 = vld [vmem:[#allocation2 + $0xc7] sm:$0xff] }
 0x5e5   : > { %6825 = vst [vmem:[#allocation2 + $0x168] sm:$0xff] %v6793_v43  ;;  %v6794_v16 = vmax.f32 %v6762_v11, 0.0  ;;  %v18234_v48 = vld [vmem:[%s21111_s5 + $0xa8] sm:$0xff]   ;;  %v18235_v11 = vld [vmem:[%s21111_s5 + $0xb0] sm:$0xff]  }
 0x5e6   : > { %6828 = vst [vmem:[#allocation2 + $0x190] sm:$0xff] %v6796_v23  ;;  %v19939_v47 = vpack.c.bf16 %v6796_v23, %v6795_v37  ;;  %v19989_v37 = vpack.c.bf16 %v6848_v20, %v6847_v46  ;;  %v6852_v23 = vld [vmem:[#allocation2 + $0xef] sm:$0xff] }
 0x5e7   : > { %6826 = vst [vmem:[#allocation2 + $0x170] sm:$0xff] %v6794_v16  ;;  %v16234_v1 = vpop.f32.mrb[40].mxu1  ;;  %v19941_v26 = vpack.c.bf16 %v6794_v16, %v6793_v43  ;;  %v19994_v43 = vpack.c.bf16 %v6850_v56, %v6849_v42  ;;  %v6854_v16 = vld [vmem:[#allocation2 + $0x10f] sm:$0xff] }
 0x5e8   : > { %v6767_v29 = vadd.f32 %v16234_v1, %v19869_v49  ;;  %v6671_v36 = vpop.f32.mrb[41].mxu1  ;;  %v6851_v1 = vld [vmem:[#allocation2 + $0xe7] sm:$0xff]  ;;  %v7391_v20 = vld [vmem:[#allocation2 + $0x71] sm:$0xff] }
 0x5e9   : > { %v6765_v50 = vadd.f32 %v19869_v49, %v6671_v36  ;;  %v16235_v54 = vpop.f32.mrb[42].mxu1  ;;  %16277 = vmatmul.mubr.bf16.gmra.mrb[52].mxu0 %v19941_v26  ;;  %v6853_v36 = vld [vmem:[#allocation2 + $0x107] sm:$0xff]  ;;  %v7393_v46 = vld [vmem:[#allocation2 + $0x91] sm:$0xff] }
 0x5ea   : > { %v6799_v2 = vmax.f32 %v6767_v29, 0.0  ;;  %v6768_v3 = vadd.f32 %v16235_v54, %v19869_v49  ;;  %v6674_v28 = vpop.f32.mrb[43].mxu1  ;;  %16280 = vmatprep.mubr.bf16.mxu0 %v19939_v47  ;;  %v20001_v29 = vpack.c.bf16 %v6852_v23, %v6851_v1  ;;  %v20006_v54 = vpack.c.bf16 %v6854_v16, %v6853_v36  ;;  %v7392_v56 = vld [vmem:[#allocation2 + $0x89] sm:$0xff]  ;;  %v18241_v23 = vld [vmem:[%s21111_s5 + $0xe0] sm:$0xff]   ;;  %v7395_v1 = vld [vmem:[#allocation2 + $0xb1] sm:$0xff] }
 0x5eb   : > { %v6797_v33 = vmax.f32 %v6765_v50, 0.0  ;;  %v6766_v60 = vadd.f32 %v19869_v49, %v6674_v28  ;;  %v18236_v50 = vld [vmem:[%s21111_s5 + $0xb8] sm:$0xff]   ;;  %v6858_v28 = vld [vmem:[#allocation2 + $0x14f] sm:$0xff] }
 0x5ec   : > { %6831 = vst [vmem:[#allocation2 + $0x1c8] sm:$0xff] %v6799_v2  ;;  %v6800_v40 = vmax.f32 %v6768_v3, 0.0  ;;  %v6856_v3 = vld [vmem:[#allocation2 + $0x12f] sm:$0xff] }
 0x5ed   : > { %6829 = vst [vmem:[#allocation2 + $0x1a8] sm:$0xff] %v6797_v33  ;;  %v6798_v45 = vmax.f32 %v6766_v60, 0.0  ;;  %v7394_v16 = vld [vmem:[#allocation2 + $0xa9] sm:$0xff] }
 0x5ee   : > { %6832 = vst [vmem:[#allocation2 + $0x1d0] sm:$0xff] %v6800_v40  ;;  %v19949_v10 = vpack.c.bf16 %v6800_v40, %v6799_v2  ;;  %v18237_v2 = vld [vmem:[%s21111_s5 + $0xc0] sm:$0xff]   ;;  %v7396_v36 = vld [vmem:[#allocation2 + $0xc9] sm:$0xff] }
 0x5ef   : > { %6830 = vst [vmem:[#allocation2 + $0x1b0] sm:$0xff] %v6798_v45  ;;  %v16238_v13 = vpop.f32.mrb[44].mxu1  ;;  %v19951_v63 = vpack.c.bf16 %v6798_v45, %v6797_v33  ;;  %v6855_v33 = vld [vmem:[#allocation2 + $0x127] sm:$0xff] }
 0x5f0   : > { %v6771_v22 = vadd.f32 %v16238_v13, %v19869_v49  ;;  %v6687_v62 = vpop.f32.mrb[45].mxu1  ;;  %v20013_v60 = vpack.c.bf16 %v6856_v3, %v6855_v33  ;;  %v6857_v40 = vld [vmem:[#allocation2 + $0x147] sm:$0xff]  ;;  %v6860_v13 = vld [vmem:[#allocation2 + $0x16f] sm:$0xff] }
 0x5f1   : > { %v6769_v51 = vadd.f32 %v19869_v49, %v6687_v62  ;;  %v16239_v14 = vpop.f32.mrb[46].mxu1  ;;  %16281 = vmatmul.mubr.bf16.gmra.mrb[56].mxu0 %v19951_v63  ;;  %v20015_v45 = vpack.c.bf16 %v6858_v28, %v6857_v40  ;;  %v6859_v62 = vld [vmem:[#allocation2 + $0x167] sm:$0xff]  ;;  %v18243_v33 = vld [vmem:[%s21111_s5 + $0xf0] sm:$0xff]  }
 0x5f2   : > { %v6803_v17 = vmax.f32 %v6771_v22, 0.0  ;;  %v6772_v38 = vadd.f32 %v16239_v14, %v19869_v49  ;;  %v6690_v18 = vpop.f32.mrb[47].mxu1  ;;  %16284 = vmatprep.mubr.bf16.mxu0 %v19949_v10  ;;  %v6862_v22 = vld [vmem:[#allocation2 + $0x18f] sm:$0xff]  ;;  %v6861_v14 = vld [vmem:[#allocation2 + $0x187] sm:$0xff] }
 0x5f3   : > { %v6801_v41 = vmax.f32 %v6769_v51, 0.0  ;;  %v6770_v5 = vadd.f32 %v19869_v49, %v6690_v18  ;;  %v19964_v49 = vpack.c.bf16 %v6840_v32, %v6839_v53  ;;  %v20019_v51 = vpack.c.bf16 %v6860_v13, %v6859_v62  ;;  %v6865_v30 = vld [vmem:[#allocation2 + $0x1c7] sm:$0xff]  ;;  %v7399_v13 = vld [vmem:[#allocation2 + $0xf1] sm:$0xff] }
 0x5f4   : > { %6835 = vst [vmem:[#allocation2 + $0x208] sm:$0xff] %v6803_v17  ;;  %v6804_v35 = vmax.f32 %v6772_v38, 0.0  ;;  %v18242_v3 = vld [vmem:[%s21111_s5 + $0xe8] sm:$0xff]   ;;  %v7401_v62 = vld [vmem:[#allocation2 + $0x111] sm:$0xff] }
 0x5f5   : > { %6833 = vst [vmem:[#allocation2 + $0x1e8] sm:$0xff] %v6801_v41  ;;  %v6802_v21 = vmax.f32 %v6770_v5, 0.0  ;;  %v6866_v18 = vld [vmem:[#allocation2 + $0x1cf] sm:$0xff] }
 0x5f6   : > { %6836 = vst [vmem:[#allocation2 + $0x210] sm:$0xff] %v6804_v35  ;;  %v19959_v25 = vpack.c.bf16 %v6804_v35, %v6803_v17  ;;  %v20021_v17 = vpack.c.bf16 %v6862_v22, %v6861_v14  ;;  %v6864_v38 = vld [vmem:[#allocation2 + $0x1af] sm:$0xff]  ;;  %v20027_v31 = vpack.c.bf16 %v6866_v18, %v6865_v30 }
 0x5f7   : > { %6834 = vst [vmem:[#allocation2 + $0x1f0] sm:$0xff] %v6802_v21  ;;  %v19961_v6 = vpack.c.bf16 %v6802_v21, %v6801_v41  ;;  %v6863_v41 = vld [vmem:[#allocation2 + $0x1a7] sm:$0xff]  ;;  %v7385_v21 = vld [vmem:[#allocation2 + $0x11] sm:$0xff] }
 0x5f8   : > { %v20025_v5 = vpack.c.bf16 %v6864_v38, %v6863_v41  ;;  %v7384_v35 = vld [vmem:[#allocation2 + $0x9] sm:$0xff]  ;;  %v18244_v38 = vld [vmem:[%s21111_s5 + $0xf8] sm:$0xff]   ;;  %v18245_v41 = vld [vmem:[%s21111_s5 + $0x100] sm:$0xff]  }
 0x5f9   : > { %16285 = vmatmul.mubr.bf16.gmra.mrb[60].mxu0 %v19961_v6  ;;  %v7416_v34 = vpack.c.bf16 %v7385_v21, %v7384_v35  ;;  %v7398_v40 = vld [vmem:[#allocation2 + $0xe9] sm:$0xff]  ;;  %v7403_v35 = vld [vmem:[#allocation2 + $0x131] sm:$0xff] }
 0x5fa   : > { %16304 = vmatprep.mubr.bf16.mxu0 %v6869_v0  ;;  %v7400_v22 = vld [vmem:[#allocation2 + $0x109] sm:$0xff]  ;;  %v20070_v14 = vpack.c.bf16 %v7399_v13, %v7398_v40 }
 0x5fb   : > { %v20075_v18 = vpack.c.bf16 %v7401_v62, %v7400_v22  ;;  %v7402_v30 = vld [vmem:[#allocation2 + $0x129] sm:$0xff]  ;;  %v18252_v22 = vld [vmem:[%s21111_s5 + $0x138] sm:$0xff]   ;;  %v18253_v62 = vld [vmem:[%s21111_s5 + $0x140] sm:$0xff]  }
 0x5fc   : > { %v6867_v32 = vld [vmem:[#allocation2 + $0x1e7] sm:$0xff]  ;;  %v18251_v13 = vld [vmem:[%s21111_s5 + $0x130] sm:$0xff]  }
 0x5fd   : > { %v7404_v21 = vld [vmem:[#allocation2 + $0x149] sm:$0xff] }
 0x5fe   : > { %v6868_v0 = vld [vmem:[#allocation2 + $0x1ef] sm:$0xff] }
 0x5ff   : > { %v20031_v53 = vpack.c.bf16 %v6868_v0, %v6867_v32  ;;  %v7405_v0 = vld [vmem:[#allocation2 + $0x151] sm:$0xff]  ;;  %v20082_v32 = vpack.c.bf16 %v7403_v35, %v7402_v30  ;;  %v18250_v40 = vld [vmem:[%s21111_s5 + $0x128] sm:$0xff]  }
 0x600   : > { %v7720_v30 = vld [vmem:[#allocation2 + $0x207] sm:$0xff] }
 0x601   : > { %16305 = vmatmul.mubr.bf16.vlgmr.msra.gmra.mrb[32].mxu0 %v19964_v49 }
 0x602   : > { %16337 = vmatpush3.bf16.msra.mxu0 %v19926_v15  ;;  %16308 = vmatprep.mubr.bf16.mxu0 %v19969_v44  ;;  %v19982_v15 = vpack.c.bf16 %v6846_v55, %v6845_v59 }
 0x603   : > { %16338 = vmatprep.subr.bf16.mxu0 %v18230_v27 }
 0x606   : > { %16339 = vmatpush3.bf16.msra.mxu0 %v18230_v27  ;;  %v7387_v27 = vld [vmem:[#allocation2 + $0x31] sm:$0xff] }
 0x607   : > { %16340 = vmatprep.subr.bf16.mxu0 %v18231_v7  ;;  %v20034_v55 = vpack.c.bf16 %v7387_v27, %v7386_v39  ;;  %v7406_v39 = vld [vmem:[#allocation2 + $0x169] sm:$0xff]  ;;  %v7407_v27 = vld [vmem:[#allocation2 + $0x171] sm:$0xff] }
 0x609   : > { %16309 = vmatmul.mubr.bf16.gmra.mrb[36].mxu0 %v19977_v57 }
 0x60a   : > { %16312 = vmatprep.mubr.bf16.mxu0 %v19982_v15  ;;  %16341 = vmatpush3.bf16.msra.mxu0 %v18231_v7  ;;  %v7388_v7 = vld [vmem:[#allocation2 + $0x49] sm:$0xff] }
 0x60b   : > { %16342 = vmatprep.subr.bf16.mxu0 %v18232_v61  ;;  %v20039_v59 = vpack.c.bf16 %v7389_v8, %v7388_v7  ;;  %v7408_v7 = vld [vmem:[#allocation2 + $0x189] sm:$0xff]  ;;  %v7409_v8 = vld [vmem:[#allocation2 + $0x191] sm:$0xff] }
 0x60e   : > { %16343 = vmatpush3.bf16.msra.mxu0 %v18232_v61  ;;  %v18239_v61 = vld [vmem:[%s21111_s5 + $0xd0] sm:$0xff]  }
 0x60f   : > { %16344 = vmatprep.subr.bf16.mxu0 %v18233_v52 }
 0x611   : > { %16313 = vmatmul.mubr.bf16.gmra.mrb[40].mxu0 %v19989_v37 }
 0x612   : > { %16316 = vmatprep.mubr.bf16.mxu0 %v19994_v43  ;;  %16345 = vmatpush3.bf16.msra.mxu0 %v18233_v52  ;;  %v7390_v52 = vld [vmem:[#allocation2 + $0x69] sm:$0xff] }
 0x613   : > { %16346 = vmatprep.subr.bf16.mxu0 %v18234_v48  ;;  %v20046_v42 = vpack.c.bf16 %v7391_v20, %v7390_v52  ;;  %v7410_v52 = vld [vmem:[#allocation2 + $0x1a9] sm:$0xff]  ;;  %v7411_v20 = vld [vmem:[#allocation2 + $0x1b1] sm:$0xff] }
 0x616   : > { %16347 = vmatpush3.bf16.msra.mxu0 %v18234_v48  ;;  %v18240_v48 = vld [vmem:[%s21111_s5 + $0xd8] sm:$0xff]  }
 0x617   : > { %16348 = vmatprep.subr.bf16.mxu0 %v18235_v11 }
 0x619   : > { %16317 = vmatmul.mubr.bf16.gmra.mrb[44].mxu0 %v20001_v29 }
 0x61a   : > { %16320 = vmatprep.mubr.bf16.mxu0 %v20006_v54  ;;  %16349 = vmatpush3.bf16.msra.mxu0 %v18235_v11  ;;  %v20051_v11 = vpack.c.bf16 %v7393_v46, %v7392_v56  ;;  %v7412_v56 = vld [vmem:[#allocation2 + $0x1c9] sm:$0xff]  ;;  %v7413_v46 = vld [vmem:[#allocation2 + $0x1d1] sm:$0xff] }
 0x61b   : > { %16350 = vmatprep.subr.bf16.mxu0 %v18236_v50 }
 0x61e   : > { %16351 = vmatpush3.bf16.msra.mxu0 %v18236_v50  ;;  %v7397_v50 = vld [vmem:[#allocation2 + $0xd1] sm:$0xff] }
 0x61f   : > { %16384 = vmatprep.subr.bf16.mxu0 %v18237_v2  ;;  %v20063_v28 = vpack.c.bf16 %v7397_v50, %v7396_v36  ;;  %v18246_v50 = vld [vmem:[%s21111_s5 + $0x108] sm:$0xff]  }
 0x621   : > { %16321 = vmatmul.mubr.bf16.gmra.mrb[48].mxu0 %v20013_v60 }
 0x622   : > { %16324 = vmatprep.mubr.bf16.mxu0 %v20015_v45 }
 0x629   : > { %16325 = vmatmul.mubr.bf16.gmra.mrb[52].mxu0 %v20019_v51 }
 0x62a   : > { %16328 = vmatprep.mubr.bf16.mxu0 %v20021_v17 }
 0x631   : > { %16329 = vmatmul.mubr.bf16.gmra.mrb[56].mxu0 %v20025_v5 }
 0x632   : > { %16332 = vmatprep.mubr.bf16.mxu0 %v20027_v31 }
 0x639   : > { %16333 = vmatmul.mubr.bf16.gmra.mrb[60].mxu0 %v20031_v53 }
 0x63a   : > { %16352 = vmatprep.mubr.bf16.mxu0 %v7416_v34  ;;  %v20084_v34 = vpack.c.bf16 %v7405_v0, %v7404_v21  ;;  %v7996_v21 = vld [vmem:[#allocation2 + $0x28] sm:$0xff] }
 0x641   : > { %16353 = vmatmul.mubr.bf16.vlgmr.msra.gmra.mrb[32].mxu0 %v20034_v55 }
 0x642   : > { %16385 = vmatpush3.bf16.msra.mxu0 %v18237_v2  ;;  %16356 = vmatprep.mubr.bf16.mxu0 %v20039_v59  ;;  %v20058_v2 = vpack.c.bf16 %v7395_v1, %v7394_v16  ;;  %v7414_v16 = vld [vmem:[#allocation2 + $0x1e9] sm:$0xff]  ;;  %v7415_v1 = vld [vmem:[#allocation2 + $0x1f1] sm:$0xff] }
 0x643   : > { %16386 = vmatprep.subr.bf16.mxu0 %v18238_v12  ;;  %v20100_v36 = vpack.c.bf16 %v7415_v1, %v7414_v16  ;;  %v8003_v16 = vld [vmem:[#allocation2 + $0x90] sm:$0xff]  ;;  %v20157_v1 = vld [vmem:[#allocation2 + $0xa8] sm:$0xff] }
 0x646   : > { %16387 = vmatpush3.bf16.msra.mxu0 %v18238_v12  ;;  %v20088_v12 = vpack.c.bf16 %v7407_v27, %v7406_v39  ;;  %v7999_v39 = vld [vmem:[#allocation2 + $0x50] sm:$0xff] }
 0x647   : > { %16388 = vmatprep.subr.bf16.mxu0 %v18239_v61  ;;  %v8001_v27 = vld [vmem:[#allocation2 + $0x70] sm:$0xff] }
 0x649   : > { %16357 = vmatmul.mubr.bf16.gmra.mrb[36].mxu0 %v20046_v42 }
 0x64a   : > { %16360 = vmatprep.mubr.bf16.mxu0 %v20051_v11  ;;  %16389 = vmatpush3.bf16.msra.mxu0 %v18239_v61  ;;  %v20090_v61 = vpack.c.bf16 %v7409_v8, %v7408_v7  ;;  %v7998_v7 = vld [vmem:[#allocation2 + $0x48] sm:$0xff] }
 0x64b   : > { %16390 = vmatprep.subr.bf16.mxu0 %v18240_v48  ;;  %v20145_v8 = vpack.c.bf16 %v7999_v39, %v7998_v7  ;;  %v18282_v39 = vld [vmem:[%s21111_s5 + $0x228] sm:$0xff]   ;;  %v18283_v7 = vld [vmem:[%s21111_s5 + $0x230] sm:$0xff]  }
 0x64e   : > { %16391 = vmatpush3.bf16.msra.mxu0 %v18240_v48  ;;  %v20094_v48 = vpack.c.bf16 %v7411_v20, %v7410_v52  ;;  %v8000_v52 = vld [vmem:[#allocation2 + $0x68] sm:$0xff] }
 0x64f   : > { %16392 = vmatprep.subr.bf16.mxu0 %v18241_v23  ;;  %v18254_v20 = vld [vmem:[%s21111_s5 + $0x148] sm:$0xff]  }
 0x651   : > { %16361 = vmatmul.mubr.bf16.gmra.mrb[40].mxu0 %v20058_v2 }
 0x652   : > { %16364 = vmatprep.mubr.bf16.mxu0 %v20063_v28  ;;  %16393 = vmatpush3.bf16.msra.mxu0 %v18241_v23  ;;  %v20096_v23 = vpack.c.bf16 %v7413_v46, %v7412_v56  ;;  %v20150_v56 = vpack.c.bf16 %v8001_v27, %v8000_v52  ;;  %v18255_v46 = vld [vmem:[%s21111_s5 + $0x150] sm:$0xff]  }
 0x653   : > { %16394 = vmatprep.subr.bf16.mxu0 %v18242_v3  ;;  %v8931_v52 = vld [vmem:[#allocation2 + $0x150] sm:$0xff] }
 0x656   : > { %16395 = vmatpush3.bf16.msra.mxu0 %v18242_v3  ;;  %v18247_v3 = vld [vmem:[%s21111_s5 + $0x110] sm:$0xff]  }
 0x657   : > { %16396 = vmatprep.subr.bf16.mxu0 %v18243_v33 }
 0x659   : > { %16365 = vmatmul.mubr.bf16.gmra.mrb[44].mxu0 %v20070_v14 }
 0x65a   : > { %16368 = vmatprep.mubr.bf16.mxu0 %v20075_v18  ;;  %16397 = vmatpush3.bf16.msra.mxu0 %v18243_v33  ;;  %v18249_v33 = vld [vmem:[%s21111_s5 + $0x120] sm:$0xff]  }
 0x65b   : > { %16398 = vmatprep.subr.bf16.mxu0 %v18244_v38 }
 0x65e   : > { %16399 = vmatpush3.bf16.msra.mxu0 %v18244_v38  ;;  %v7721_v38 = vld [vmem:[#allocation2 + $0x20f] sm:$0xff] }
 0x65f   : > { %16432 = vmatprep.subr.bf16.mxu0 %v18245_v41  ;;  %v20142_v35 = vpack.c.bf16 %v7721_v38, %v7720_v30  ;;  %v18258_v38 = vld [vmem:[%s21111_s5 + $0x168] sm:$0xff]  }
 0x661   : > { %16369 = vmatmul.mubr.bf16.gmra.mrb[48].mxu0 %v20082_v32 }
 0x662   : > { %16372 = vmatprep.mubr.bf16.mxu0 %v20084_v34 }
 0x669   : > { %16373 = vmatmul.mubr.bf16.gmra.mrb[52].mxu0 %v20088_v12 }
 0x66a   : > { %16376 = vmatprep.mubr.bf16.mxu0 %v20090_v61 }
 0x671   : > { %16377 = vmatmul.mubr.bf16.gmra.mrb[56].mxu0 %v20094_v48 }
 0x672   : > { %16380 = vmatprep.mubr.bf16.mxu0 %v20096_v23 }
 0x679   : > { %16381 = vmatmul.mubr.bf16.gmra.mrb[60].mxu0 %v20100_v36 }
 0x67a   : > { %16400 = vmatprep.mubr.bf16.mxu0 %v19964_v49  ;;  %v18248_v49 = vld [vmem:[%s21111_s5 + $0x118] sm:$0xff]  }
 0x681   : > { %16401 = vmatmul.mubr.bf16.vlgmr.msra.gmra.mrb[32].mxu0 %v19969_v44 }
 0x682   : > { %16433 = vmatpush3.bf16.msra.mxu0 %v18245_v41  ;;  %16404 = vmatprep.mubr.bf16.mxu0 %v19977_v57  ;;  %v7997_v41 = vld [vmem:[#allocation2 + $0x30] sm:$0xff] }
 0x683   : > { %16434 = vmatprep.subr.bf16.mxu0 %v18246_v50  ;;  %v8028_v0 = vpack.c.bf16 %v7997_v41, %v7996_v21  ;;  %v20180_v41 = vld [vmem:[#allocation2 + $0x108] sm:$0xff]  ;;  %v18260_v21 = vld [vmem:[%s21111_s5 + $0x178] sm:$0xff]  }
 0x684   : > { %v8035_v30 = vpack.c.bf16 %v19909_v19, %v20180_v41  ;;  %v18262_v19 = vld [vmem:[%s21111_s5 + $0x188] sm:$0xff]  }
 0x686   : > { %16435 = vmatpush3.bf16.msra.mxu0 %v18246_v50  ;;  %v8002_v50 = vld [vmem:[#allocation2 + $0x88] sm:$0xff] }
 0x687   : > { %16436 = vmatprep.subr.bf16.mxu0 %v18247_v3 }
 0x689   : > { %16405 = vmatmul.mubr.bf16.gmra.mrb[36].mxu0 %v19982_v15 }
 0x68a   : > { %16408 = vmatprep.mubr.bf16.mxu0 %v19989_v37  ;;  %16437 = vmatpush3.bf16.msra.mxu0 %v18247_v3  ;;  %v20159_v3 = vpack.c.bf16 %v8003_v16, %v8002_v50  ;;  %v18284_v16 = vld [vmem:[%s21111_s5 + $0x238] sm:$0xff]   ;;  %v8933_v50 = vld [vmem:[#allocation2 + $0x170] sm:$0xff] }
 0x68b   : > { %16438 = vmatprep.subr.bf16.mxu0 %v18248_v49 }
 0x68e   : > { %16439 = vmatpush3.bf16.msra.mxu0 %v18248_v49  ;;  %v18256_v49 = vld [vmem:[%s21111_s5 + $0x158] sm:$0xff]  }
 0x68f   : > { %16440 = vmatprep.subr.bf16.mxu0 %v18249_v33 }
 0x691   : > { %16409 = vmatmul.mubr.bf16.gmra.mrb[40].mxu0 %v19994_v43 }
 0x692   : > { %16412 = vmatprep.mubr.bf16.mxu0 %v20001_v29  ;;  %16441 = vmatpush3.bf16.msra.mxu0 %v18249_v33  ;;  %v8032_v33 = vpack.c.bf16 %v19895_v4, %v20157_v1  ;;  %v18259_v4 = vld [vmem:[%s21111_s5 + $0x170] sm:$0xff]  }
 0x693   : > { %16442 = vmatprep.subr.bf16.mxu0 %v18250_v40 }
 0x696   : > { %16443 = vmatpush3.bf16.msra.mxu0 %v18250_v40  ;;  %v18257_v40 = vld [vmem:[%s21111_s5 + $0x160] sm:$0xff]  }
 0x697   : > { %16444 = vmatprep.subr.bf16.mxu0 %v18251_v13 }
 0x699   : > { %16413 = vmatmul.mubr.bf16.gmra.mrb[44].mxu0 %v20006_v54 }
 0x69a   : > { %16416 = vmatprep.mubr.bf16.mxu0 %v20013_v60  ;;  %16445 = vmatpush3.bf16.msra.mxu0 %v18251_v13  ;;  %v8007_v13 = vld [vmem:[#allocation2 + $0xd0] sm:$0xff] }
 0x69b   : > { %16446 = vmatprep.subr.bf16.mxu0 %v18252_v22 }
 0x69e   : > { %16447 = vmatpush3.bf16.msra.mxu0 %v18252_v22  ;;  %v8006_v22 = vld [vmem:[#allocation2 + $0xc8] sm:$0xff] }
 0x69f   : > { %16480 = vmatprep.subr.bf16.mxu0 %v18253_v62 }
 0x6a1   : > { %16417 = vmatmul.mubr.bf16.gmra.mrb[48].mxu0 %v20015_v45 }
 0x6a2   : > { %16420 = vmatprep.mubr.bf16.mxu0 %v20019_v51 }
 0x6a9   : > { %16421 = vmatmul.mubr.bf16.gmra.mrb[52].mxu0 %v20021_v17 }
 0x6aa   : > { %16424 = vmatprep.mubr.bf16.mxu0 %v20025_v5 }
 0x6b1   : > { %16425 = vmatmul.mubr.bf16.gmra.mrb[56].mxu0 %v20027_v31 }
 0x6b2   : > { %16428 = vmatprep.mubr.bf16.mxu0 %v20031_v53 }
 0x6b9   : > { %16429 = vmatmul.mubr.bf16.gmra.mrb[60].mxu0 %v20142_v35 }
 0x6ba   : > { %16448 = vmatprep.mubr.bf16.mxu0 %v8028_v0 }
 0x6c1   : > { %16449 = vmatmul.mubr.bf16.vlgmr.msra.gmra.mrb[32].mxu0 %v20145_v8 }
 0x6c2   : > { %16481 = vmatpush3.bf16.msra.mxu0 %v18253_v62  ;;  %16452 = vmatprep.mubr.bf16.mxu0 %v20150_v56  ;;  %v20170_v62 = vpack.c.bf16 %v8007_v13, %v8006_v22  ;;  %v8937_v22 = vld [vmem:[#allocation2 + $0x1b0] sm:$0xff] }
 0x6c3   : > { %16482 = vmatprep.subr.bf16.mxu0 %v18254_v20 }
 0x6c6   : > { %16483 = vmatpush3.bf16.msra.mxu0 %v18254_v20  ;;  %v8928_v20 = vld [vmem:[#allocation2 + $0x128] sm:$0xff] }
 0x6c7   : > { %16484 = vmatprep.subr.bf16.mxu0 %v18255_v46 }
 0x6c9   : > { %16453 = vmatmul.mubr.bf16.gmra.mrb[36].mxu0 %v20159_v3 }
 0x6ca   : > { %16456 = vmatprep.mubr.bf16.mxu0 %v8032_v33  ;;  %16485 = vmatpush3.bf16.msra.mxu0 %v18255_v46  ;;  %v8930_v46 = vld [vmem:[#allocation2 + $0x148] sm:$0xff] }
 0x6cb   : > { %16486 = vmatprep.subr.bf16.mxu0 %v18256_v49 }
 0x6ce   : > { %16487 = vmatpush3.bf16.msra.mxu0 %v18256_v49  ;;  %v8932_v49 = vld [vmem:[#allocation2 + $0x168] sm:$0xff] }
 0x6cf   : > { %16488 = vmatprep.subr.bf16.mxu0 %v18257_v40  ;;  %v8955_v33 = vpack.c.bf16 %v8933_v50, %v8932_v49  ;;  %v18291_v50 = vld [vmem:[%s21113_s7 + $0x70] sm:$0xff]   ;;  %v20341_v49 = vld [vmem:[%s21112_s6] ss:$0 sm:$0xff] }
 0x6d1   : > { %16457 = vmatmul.mubr.bf16.gmra.mrb[40].mxu0 %v20170_v62 }
 0x6d2   : > { %16460 = vmatprep.mubr.bf16.mxu0 %v19913_v9  ;;  %16489 = vmatpush3.bf16.msra.mxu0 %v18257_v40  ;;  %v18261_v9 = vld [vmem:[%s21111_s5 + $0x180] sm:$0xff]   ;;  %v8934_v40 = vld [vmem:[#allocation2 + $0x188] sm:$0xff] }
 0x6d3   : > { %16490 = vmatprep.subr.bf16.mxu0 %v18258_v38 }
 0x6d6   : > { %16491 = vmatpush3.bf16.msra.mxu0 %v18258_v38  ;;  %v8936_v38 = vld [vmem:[#allocation2 + $0x1a8] sm:$0xff] }
 0x6d7   : > { %16492 = vmatprep.subr.bf16.mxu0 %v18259_v4 }
 0x6d9   : > { %16461 = vmatmul.mubr.bf16.gmra.mrb[44].mxu0 %v8035_v30 }
 0x6da   : > { %16464 = vmatprep.mubr.bf16.mxu0 %v19930_v24  ;;  %16493 = vmatpush3.bf16.msra.mxu0 %v18259_v4  ;;  %v18264_v24 = vld [vmem:[%s21111_s5 + $0x198] sm:$0xff]   ;;  %v8957_v4 = vpack.c.bf16 %v8937_v22, %v8936_v38 }
 0x6db   : > { %16494 = vmatprep.subr.bf16.mxu0 %v18260_v21 }
 0x6de   : > { %16495 = vmatpush3.bf16.msra.mxu0 %v18260_v21  ;;  %v8941_v21 = vld [vmem:[#allocation2 + $0x1f0] sm:$0xff] }
 0x6df   : > { %16528 = vmatprep.subr.bf16.mxu0 %v18261_v9 }
 0x6e1   : > { %16465 = vmatmul.mubr.bf16.gmra.mrb[48].mxu0 %v19928_v58  ;;  %v18263_v58 = vld [vmem:[%s21111_s5 + $0x190] sm:$0xff]  }
 0x6e2   : > { %16468 = vmatprep.mubr.bf16.mxu0 %v19941_v26  ;;  %v18266_v26 = vld [vmem:[%s21111_s5 + $0x1a8] sm:$0xff]  }
 0x6e9   : > { %16469 = vmatmul.mubr.bf16.gmra.mrb[52].mxu0 %v19939_v47  ;;  %v18265_v47 = vld [vmem:[%s21111_s5 + $0x1a0] sm:$0xff]  }
 0x6ea   : > { %16472 = vmatprep.mubr.bf16.mxu0 %v19951_v63  ;;  %v18268_v63 = vld [vmem:[%s21111_s5 + $0x1b8] sm:$0xff]  }
 0x6f1   : > { %16473 = vmatmul.mubr.bf16.gmra.mrb[56].mxu0 %v19949_v10  ;;  %v18267_v10 = vld [vmem:[%s21111_s5 + $0x1b0] sm:$0xff]  }
 0x6f2   : > { %16476 = vmatprep.mubr.bf16.mxu0 %v19961_v6  ;;  %v18402_v6 = vld [vmem:[#allocation2 + $0x8] sm:$0xff] }
 0x6f9   : > { %16477 = vmatmul.mubr.bf16.gmra.mrb[60].mxu0 %v19959_v25  ;;  %v18269_v25 = vld [vmem:[%s21111_s5 + $0x1c0] sm:$0xff]  }
 0x6fa   : > { %16496 = vmatprep.mubr.bf16.mxu0 %v20034_v55  ;;  %v20237_v55 = vpack.c.bf16 %v18402_v6, %v18402_v6  ;;  %v9223_v6 = vld [vmem:[#allocation2 + $0x71] sm:$0xff] }
 0x6fc   : > { %16688 = vmatprep.mubr.bf16.mxu1 %v20237_v55 }
 0x701   : > { %16497 = vmatmul.mubr.bf16.vlgmr.msra.gmra.mrb[32].mxu0 %v20039_v59  ;;  %v8332_v59 = vld [vmem:[#allocation2 + $0x209] sm:$0xff] }
 0x702   : > { %16529 = vmatpush3.bf16.msra.mxu0 %v18261_v9  ;;  %16500 = vmatprep.mubr.bf16.mxu0 %v20046_v42  ;;  %v8333_v42 = vld [vmem:[#allocation2 + $0x211] sm:$0xff] }
 0x703   : > { %16530 = vmatprep.subr.bf16.mxu0 %v18262_v19  ;;  %v8943_v9 = vld [vmem:[#allocation2 + $0x210] sm:$0xff] }
 0x706   : > { %16531 = vmatpush3.bf16.msra.mxu0 %v18262_v19  ;;  %v8940_v19 = vld [vmem:[#allocation2 + $0x1e8] sm:$0xff] }
 0x707   : > { %16532 = vmatprep.subr.bf16.mxu0 %v18263_v58 }
 0x709   : > { %16501 = vmatmul.mubr.bf16.gmra.mrb[36].mxu0 %v20051_v11  ;;  %v20240_v11 = vpack.c.bf16 %v8333_v42, %v8332_v59  ;;  %v9224_v59 = vld [vmem:[#allocation2 + $0x89] sm:$0xff]  ;;  %v9225_v42 = vld [vmem:[#allocation2 + $0x91] sm:$0xff] }
 0x70a   : > { %16504 = vmatprep.mubr.bf16.mxu0 %v20058_v2  ;;  %16533 = vmatpush3.bf16.msra.mxu0 %v18263_v58  ;;  %v18270_v2 = vld [vmem:[%s21111_s5 + $0x1c8] sm:$0xff]   ;;  %v8959_v58 = vpack.c.bf16 %v8941_v21, %v8940_v19 }
 0x70b   : > { %16534 = vmatprep.subr.bf16.mxu0 %v18264_v24 }
 0x70e   : > { %16535 = vmatpush3.bf16.msra.mxu0 %v18264_v24  ;;  %v8942_v24 = vld [vmem:[#allocation2 + $0x208] sm:$0xff] }
 0x70f   : > { %16536 = vmatprep.subr.bf16.mxu0 %v18265_v47 }
 0x711   : > { %16505 = vmatmul.mubr.bf16.gmra.mrb[40].mxu0 %v20063_v28  ;;  %v18271_v28 = vld [vmem:[%s21111_s5 + $0x1d0] sm:$0xff]  }
 0x712   : > { %16508 = vmatprep.mubr.bf16.mxu0 %v20070_v14  ;;  %16537 = vmatpush3.bf16.msra.mxu0 %v18265_v47  ;;  %v18285_v14 = vld [vmem:[%s21113_s7 + $0x40] sm:$0xff]   ;;  %v8960_v47 = vpack.c.bf16 %v8943_v9, %v8942_v24 }
 0x713   : > { %16538 = vmatprep.subr.bf16.mxu0 %v18266_v26  ;;  %16672 = vmatprep.subr.bf16.mxu1 %v18285_v14 }
 0x714   : > { %16673 = vmatpush3.bf16.msra.mxu1 %v18285_v14 }
 0x716   : > { %16539 = vmatpush3.bf16.msra.mxu0 %v18266_v26  ;;  %v9220_v26 = vld [vmem:[#allocation2 + $0x49] sm:$0xff] }
 0x717   : > { %16540 = vmatprep.subr.bf16.mxu0 %v18267_v10 }
 0x719   : > { %16509 = vmatmul.mubr.bf16.gmra.mrb[44].mxu0 %v20075_v18  ;;  %v8921_v18 = vld [vmem:[#allocation2 + $0xb0] sm:$0xff] }
 0x71a   : > { %16512 = vmatprep.mubr.bf16.mxu0 %v20082_v32  ;;  %16541 = vmatpush3.bf16.msra.mxu0 %v18267_v10  ;;  %v18289_v32 = vld [vmem:[%s21113_s7 + $0x60] sm:$0xff]   ;;  %v9221_v10 = vld [vmem:[#allocation2 + $0x51] sm:$0xff] }
 0x71b   : > { %16542 = vmatprep.subr.bf16.mxu0 %v18268_v63 }
 0x71e   : > { %16543 = vmatpush3.bf16.msra.mxu0 %v18268_v63  ;;  %v9252_v63 = vpack.c.bf16 %v9221_v10, %v9220_v26  ;;  %v18294_v26 = vld [vmem:[%s21113_s7 + $0x8] sm:$0xff]  }
 0x71f   : > { %16576 = vmatprep.subr.bf16.mxu0 %v18269_v25 }
 0x721   : > { %16513 = vmatmul.mubr.bf16.gmra.mrb[48].mxu0 %v20084_v34  ;;  %v8949_v34 = vpack.c.bf16 %v8921_v18, %v20157_v1  ;;  %v8954_v1 = vpack.c.bf16 %v8931_v52, %v8930_v46  ;;  %v9246_v52 = vld [vmem:[#allocation2 + $0x1e9] sm:$0xff] }
 0x722   : > { %16516 = vmatprep.mubr.bf16.mxu0 %v20088_v12  ;;  %v18280_v12 = vld [vmem:[%s21111_s5 + $0x218] sm:$0xff]   ;;  %v9250_v46 = vld [vmem:[#allocation2 + $0x229] sm:$0xff] }
 0x729   : > { %16517 = vmatmul.mubr.bf16.gmra.mrb[52].mxu0 %v20090_v61  ;;  %v18290_v61 = vld [vmem:[%s21113_s7 + $0x68] sm:$0xff]  }
 0x72a   : > { %16520 = vmatprep.mubr.bf16.mxu0 %v20094_v48  ;;  %v18281_v48 = vld [vmem:[%s21111_s5 + $0x220] sm:$0xff]  }
 0x731   : > { %16521 = vmatmul.mubr.bf16.gmra.mrb[56].mxu0 %v20096_v23  ;;  %v8925_v23 = vld [vmem:[#allocation2 + $0xf0] sm:$0xff] }
 0x732   : > { %16524 = vmatprep.mubr.bf16.mxu0 %v20100_v36  ;;  %v8927_v36 = vld [vmem:[#allocation2 + $0x110] sm:$0xff] }
 0x733   : > { %v8952_v27 = vpack.c.bf16 %v8927_v36, %v20180_v41  ;;  %v8938_v41 = vld [vmem:[#allocation2 + $0x1c8] sm:$0xff] }
 0x739   : > { %16525 = vmatmul.mubr.bf16.gmra.mrb[60].mxu0 %v20240_v11 }
 0x73a   : > { %16544 = vmatprep.mubr.bf16.mxu0 %v19969_v44  ;;  %v18272_v44 = vld [vmem:[%s21111_s5 + $0x1d8] sm:$0xff]  }
 0x741   : > { %16545 = vmatmul.mubr.bf16.vlgmr.msra.gmra.mrb[32].mxu0 %v19977_v57  ;;  %v18273_v57 = vld [vmem:[%s21111_s5 + $0x1e0] sm:$0xff]  }
 0x742   : > { %16577 = vmatpush3.bf16.msra.mxu0 %v18269_v25  ;;  %16548 = vmatprep.mubr.bf16.mxu0 %v19982_v15  ;;  %v18274_v15 = vld [vmem:[%s21111_s5 + $0x1e8] sm:$0xff]  }
 0x743   : > { %16578 = vmatprep.subr.bf16.mxu0 %v18270_v2  ;;  %v9222_v25 = vld [vmem:[#allocation2 + $0x69] sm:$0xff] }
 0x746   : > { %16579 = vmatpush3.bf16.msra.mxu0 %v18270_v2  ;;  %v9253_v2 = vpack.c.bf16 %v9223_v6, %v9222_v25 }
 0x747   : > { %16580 = vmatprep.subr.bf16.mxu0 %v18271_v28 }
 0x749   : > { %16549 = vmatmul.mubr.bf16.gmra.mrb[36].mxu0 %v19989_v37  ;;  %v18275_v37 = vld [vmem:[%s21111_s5 + $0x1f0] sm:$0xff]  }
 0x74a   : > { %16552 = vmatprep.mubr.bf16.mxu0 %v19994_v43  ;;  %16581 = vmatpush3.bf16.msra.mxu0 %v18271_v28  ;;  %v18276_v43 = vld [vmem:[%s21111_s5 + $0x1f8] sm:$0xff]   ;;  %v9254_v28 = vpack.c.bf16 %v9225_v42, %v9224_v59 }
 0x74b   : > { %16582 = vmatprep.subr.bf16.mxu0 %v18272_v44 }
 0x74e   : > { %16583 = vmatpush3.bf16.msra.mxu0 %v18272_v44  ;;  %v9226_v44 = vld [vmem:[#allocation2 + $0xa9] sm:$0xff] }
 0x74f   : > { %16584 = vmatprep.subr.bf16.mxu0 %v18273_v57 }
 0x751   : > { %16553 = vmatmul.mubr.bf16.gmra.mrb[40].mxu0 %v20001_v29  ;;  %v18277_v29 = vld [vmem:[%s21111_s5 + $0x200] sm:$0xff]  }
 0x752   : > { %16556 = vmatprep.mubr.bf16.mxu0 %v20006_v54  ;;  %16585 = vmatpush3.bf16.msra.mxu0 %v18273_v57  ;;  %v8638_v54 = vld [vmem:[#allocation2 + $0x227] sm:$0xff]  ;;  %v9227_v57 = vld [vmem:[#allocation2 + $0xb1] sm:$0xff] }
 0x753   : > { %16586 = vmatprep.subr.bf16.mxu0 %v18274_v15 }
 0x756   : > { %16587 = vmatpush3.bf16.msra.mxu0 %v18274_v15  ;;  %v9228_v15 = vld [vmem:[#allocation2 + $0xc9] sm:$0xff] }
 0x757   : > { %16588 = vmatprep.subr.bf16.mxu0 %v18275_v37 }
 0x759   : > { %16557 = vmatmul.mubr.bf16.gmra.mrb[44].mxu0 %v20013_v60  ;;  %v8639_v60 = vld [vmem:[#allocation2 + $0x22f] sm:$0xff] }
 0x75a   : > { %16560 = vmatprep.mubr.bf16.mxu0 %v20015_v45  ;;  %16589 = vmatpush3.bf16.msra.mxu0 %v18275_v37  ;;  %v8655_v45 = vpack.c.bf16 %v8639_v60, %v8638_v54  ;;  %v9229_v37 = vld [vmem:[#allocation2 + $0xd1] sm:$0xff]  ;;  %v9230_v54 = vld [vmem:[#allocation2 + $0xe9] sm:$0xff] }
 0x75b   : > { %16590 = vmatprep.subr.bf16.mxu0 %v18276_v43  ;;  %v9231_v60 = vld [vmem:[#allocation2 + $0xf1] sm:$0xff] }
 0x75c   : > { %v9257_v14 = vpack.c.bf16 %v9231_v60, %v9230_v54  ;;  %v18296_v60 = vld [vmem:[%s21113_s7 + $0x18] sm:$0xff]  }
 0x75e   : > { %16591 = vmatpush3.bf16.msra.mxu0 %v18276_v43  ;;  %v9255_v43 = vpack.c.bf16 %v9227_v57, %v9226_v44  ;;  %v18295_v57 = vld [vmem:[%s21113_s7 + $0x10] sm:$0xff]  }
 0x75f   : > { %16624 = vmatprep.subr.bf16.mxu0 %v18277_v29 }
 0x761   : > { %16561 = vmatmul.mubr.bf16.gmra.mrb[48].mxu0 %v20019_v51  ;;  %v18286_v51 = vld [vmem:[%s21113_s7 + $0x48] sm:$0xff]  }
 0x762   : > { %16564 = vmatprep.mubr.bf16.mxu0 %v20021_v17  ;;  %16674 = vmatprep.subr.bf16.mxu1 %v18286_v51  ;;  %v18287_v17 = vld [vmem:[%s21113_s7 + $0x50] sm:$0xff]  }
 0x763   : > { %16675 = vmatpush3.bf16.msra.mxu1 %v18286_v51 }
 0x764   : > { %16676 = vmatprep.subr.bf16.mxu1 %v18287_v17 }
 0x767   : > { %16677 = vmatpush3.bf16.msra.mxu1 %v18287_v17  ;;  %v9234_v17 = vld [vmem:[#allocation2 + $0x129] sm:$0xff] }
 0x769   : > { %16565 = vmatmul.mubr.bf16.gmra.mrb[52].mxu0 %v20025_v5  ;;  %v18278_v5 = vld [vmem:[%s21111_s5 + $0x208] sm:$0xff]  }
 0x76a   : > { %16568 = vmatprep.mubr.bf16.mxu0 %v20027_v31  ;;  %v18288_v31 = vld [vmem:[%s21113_s7 + $0x58] sm:$0xff]  }
 0x76b   : > { %16678 = vmatprep.subr.bf16.mxu1 %v18288_v31 }
 0x76c   : > { %16679 = vmatpush3.bf16.msra.mxu1 %v18288_v31  ;;  %v9236_v31 = vld [vmem:[#allocation2 + $0x149] sm:$0xff] }
 0x76d   : > { %16680 = vmatprep.subr.bf16.mxu1 %v18289_v32 }
 0x770   : > { %16681 = vmatpush3.bf16.msra.mxu1 %v18289_v32 }
 0x771   : > { %16569 = vmatmul.mubr.bf16.gmra.mrb[56].mxu0 %v20031_v53  ;;  %v18279_v53 = vld [vmem:[%s21111_s5 + $0x210] sm:$0xff]   ;;  %16682 = vmatprep.subr.bf16.mxu1 %v18290_v61 }
 0x772   : > { %16572 = vmatprep.mubr.bf16.mxu0 %v20142_v35  ;;  %v8924_v35 = vld [vmem:[#allocation2 + $0xe8] sm:$0xff] }
 0x773   : > { %v8951_v0 = vpack.c.bf16 %v8925_v23, %v8924_v35  ;;  %v9242_v35 = vld [vmem:[#allocation2 + $0x1a9] sm:$0xff] }
 0x774   : > { %16683 = vmatpush3.bf16.msra.mxu1 %v18290_v61  ;;  %v9240_v61 = vld [vmem:[#allocation2 + $0x189] sm:$0xff] }
 0x775   : > { %16684 = vmatprep.subr.bf16.mxu1 %v18291_v50 }
 0x778   : > { %16685 = vmatpush3.bf16.msra.mxu1 %v18291_v50 }
 0x779   : > { %16573 = vmatmul.mubr.bf16.gmra.mrb[60].mxu0 %v8655_v45  ;;  %v9233_v45 = vld [vmem:[#allocation2 + $0x111] sm:$0xff] }
 0x77a   : > { %16592 = vmatprep.mubr.bf16.mxu0 %v20145_v8  ;;  %v8929_v8 = vld [vmem:[#allocation2 + $0x130] sm:$0xff] }
 0x781   : > { %16593 = vmatmul.mubr.bf16.vlgmr.msra.gmra.mrb[32].mxu0 %v20150_v56  ;;  %v8953_v56 = vpack.c.bf16 %v8929_v8, %v8928_v20  ;;  %v9247_v20 = vld [vmem:[#allocation2 + $0x1f1] sm:$0xff] }
 0x782   : > { %16625 = vmatpush3.bf16.msra.mxu0 %v18277_v29  ;;  %16596 = vmatprep.mubr.bf16.mxu0 %v20159_v3  ;;  %v8935_v3 = vld [vmem:[#allocation2 + $0x190] sm:$0xff]  ;;  %v9256_v29 = vpack.c.bf16 %v9229_v37, %v9228_v15 }
 0x783   : > { %16626 = vmatprep.subr.bf16.mxu0 %v18278_v5  ;;  %v8956_v13 = vpack.c.bf16 %v8935_v3, %v8934_v40  ;;  %v18292_v3 = vld [vmem:[%s21113_s7 + $0x78] sm:$0xff]  }
 0x784   : > { %16686 = vmatprep.subr.bf16.mxu1 %v18292_v3 }
 0x785   : > { %16687 = vmatpush3.bf16.msra.mxu1 %v18292_v3 }
 0x786   : > { %16627 = vmatpush3.bf16.msra.mxu0 %v18278_v5  ;;  %v9235_v5 = vld [vmem:[#allocation2 + $0x131] sm:$0xff] }
 0x787   : > { %16628 = vmatprep.subr.bf16.mxu0 %v18279_v53  ;;  %v9259_v18 = vpack.c.bf16 %v9235_v5, %v9234_v17 }
 0x789   : > { %16597 = vmatmul.mubr.bf16.gmra.mrb[36].mxu0 %v8949_v34  ;;  %v9238_v34 = vld [vmem:[#allocation2 + $0x169] sm:$0xff] }
 0x78a   : > { %16600 = vmatprep.mubr.bf16.mxu0 %v20170_v62  ;;  %16629 = vmatpush3.bf16.msra.mxu0 %v18279_v53  ;;  %v8939_v62 = vld [vmem:[#allocation2 + $0x1d0] sm:$0xff] }
 0x78b   : > { %16630 = vmatprep.subr.bf16.mxu0 %v18280_v12  ;;  %v8958_v30 = vpack.c.bf16 %v8939_v62, %v8938_v41  ;;  %v9237_v53 = vld [vmem:[#allocation2 + $0x151] sm:$0xff] }
 0x78c   : > { %v9260_v32 = vpack.c.bf16 %v9237_v53, %v9236_v31 }
 0x78e   : > { %16631 = vmatpush3.bf16.msra.mxu0 %v18280_v12  ;;  %v9239_v12 = vld [vmem:[#allocation2 + $0x171] sm:$0xff] }
 0x78f   : > { %16632 = vmatprep.subr.bf16.mxu0 %v18281_v48  ;;  %v9261_v23 = vpack.c.bf16 %v9239_v12, %v9238_v34 }
 0x791   : > { %16601 = vmatmul.mubr.bf16.gmra.mrb[40].mxu0 %v8951_v0  ;;  %v9243_v0 = vld [vmem:[#allocation2 + $0x1b1] sm:$0xff] }
 0x792   : > { %16604 = vmatprep.mubr.bf16.mxu0 %v8952_v27  ;;  %16633 = vmatpush3.bf16.msra.mxu0 %v18281_v48  ;;  %v9241_v48 = vld [vmem:[#allocation2 + $0x191] sm:$0xff] }
 0x793   : > { %16634 = vmatprep.subr.bf16.mxu0 %v18282_v39  ;;  %v9262_v36 = vpack.c.bf16 %v9241_v48, %v9240_v61  ;;  %v9245_v27 = vld [vmem:[#allocation2 + $0x1d1] sm:$0xff] }
 0x796   : > { %16635 = vmatpush3.bf16.msra.mxu0 %v18282_v39  ;;  %v9244_v39 = vld [vmem:[#allocation2 + $0x1c9] sm:$0xff] }
 0x797   : > { %16636 = vmatprep.subr.bf16.mxu0 %v18283_v7  ;;  %v9264_v8 = vpack.c.bf16 %v9245_v27, %v9244_v39 }
 0x799   : > { %16605 = vmatmul.mubr.bf16.gmra.mrb[44].mxu0 %v8953_v56  ;;  %v9265_v56 = vpack.c.bf16 %v9247_v20, %v9246_v52 }
 0x79a   : > { %16608 = vmatprep.mubr.bf16.mxu0 %v8954_v1  ;;  %16637 = vmatpush3.bf16.msra.mxu0 %v18283_v7  ;;  %v9263_v7 = vpack.c.bf16 %v9243_v0, %v9242_v35 }
 0x79b   : > { %16638 = vmatprep.subr.bf16.mxu0 %v18284_v16 }
 0x79e   : > { %16639 = vmatpush3.bf16.msra.mxu0 %v18284_v16  ;;  %v9251_v16 = vld [vmem:[#allocation2 + $0x231] sm:$0xff] }
 0x79f   : > { %v9267_v1 = vpack.c.bf16 %v9251_v16, %v9250_v46  ;;  %v18299_v46 = vld [vmem:[%s21113_s7 + $0x30] sm:$0xff]  }
 0x7a1   : > { %16609 = vmatmul.mubr.bf16.gmra.mrb[48].mxu0 %v8955_v33 }
 0x7a2   : > { %16612 = vmatprep.mubr.bf16.mxu0 %v8956_v13 }
 0x7a9   : > { %16613 = vmatmul.mubr.bf16.gmra.mrb[52].mxu0 %v8957_v4 }
 0x7aa   : > { %16616 = vmatprep.mubr.bf16.mxu0 %v8958_v30 }
 0x7b1   : > { %16617 = vmatmul.mubr.bf16.gmra.mrb[56].mxu0 %v8959_v58 }
 0x7b2   : > { %16620 = vmatprep.mubr.bf16.mxu0 %v8960_v47 }
 0x7b9   : > { %16621 = vmatmul.mubr.bf16.gmra.mrb[60].mxu0 %v20237_v55  ;;  %v9232_v55 = vld [vmem:[#allocation2 + $0x109] sm:$0xff] }
 0x7ba   : > { %16640 = vmatprep.mubr.bf16.mxu0 %v9252_v63  ;;  %v9258_v51 = vpack.c.bf16 %v9233_v45, %v9232_v55 }
 0x7c1   : > { %16641 = vmatmul.mubr.bf16.vlgmr.msra.gmra.mrb[32].mxu0 %v9253_v2 }
 0x7c2   : > { %16644 = vmatprep.mubr.bf16.mxu0 %v9254_v28 }
 0x7c9   : > { %16645 = vmatmul.mubr.bf16.gmra.mrb[36].mxu0 %v9255_v43 }
 0x7ca   : > { %16648 = vmatprep.mubr.bf16.mxu0 %v9256_v29 }
 0x7d1   : > { %16649 = vmatmul.mubr.bf16.gmra.mrb[40].mxu0 %v9257_v14 }
 0x7d2   : > { %16652 = vmatprep.mubr.bf16.mxu0 %v9258_v51 }
 0x7d9   : > { %16653 = vmatmul.mubr.bf16.gmra.mrb[44].mxu0 %v9259_v18 }
 0x7da   : > { %16656 = vmatprep.mubr.bf16.mxu0 %v9260_v32  ;;  %v18297_v32 = vld [vmem:[%s21113_s7 + $0x20] sm:$0xff]  }
 0x7e1   : > { %16657 = vmatmul.mubr.bf16.gmra.mrb[48].mxu0 %v9261_v23 }
 0x7e2   : > { %16660 = vmatprep.mubr.bf16.mxu0 %v9262_v36  ;;  %v18298_v36 = vld [vmem:[%s21113_s7 + $0x28] sm:$0xff]  }
 0x7e9   : > { %16661 = vmatmul.mubr.bf16.gmra.mrb[52].mxu0 %v9263_v7 }
 0x7ea   : > { %16664 = vmatprep.mubr.bf16.mxu0 %v9264_v8 }
 0x7f1   : > { %16665 = vmatmul.mubr.bf16.gmra.mrb[56].mxu0 %v9265_v56 }
 0x7f2   : > { %16668 = vmatprep.mubr.bf16.mxu0 %v20240_v11  ;;  %v18293_v11 = vld [vmem:[%s21113_s7] sm:$0xff]  }
 0x7f3   : > { %16720 = vmatprep.subr.bf16.mxu1 %v18293_v11 }
 0x7f9   : > { %16669 = vmatmul.mubr.bf16.gmra.mrb[60].mxu0 %v9267_v1 }
 0x894   : > { %v16642_v33 = vpop.f32.mrb[32].mxu0 }
 0x895   : > { %v9535_v40 = vadd.f32 %v16642_v33, %v20341_v49  ;;  %v9367_v13 = vpop.f32.mrb[33].mxu0  ;;  %v18300_v33 = vld [vmem:[%s21113_s7 + $0x38] sm:$0xff]  }
 0x896   : > { %v9533_v22 = vadd.f32 %v20341_v49, %v9367_v13  ;;  %v16643_v62 = vpop.f32.mrb[34].mxu0 }
 0x897   : > { %v9567_v38 = vmax.f32 %v9535_v40, 0.0  ;;  %v9536_v4 = vadd.f32 %v16643_v62, %v20341_v49  ;;  %v9370_v41 = vpop.f32.mrb[35].mxu0 }
 0x898   : > { %v9565_v30 = vmax.f32 %v9533_v22, 0.0  ;;  %v9534_v21 = vadd.f32 %v20341_v49, %v9370_v41 }
 0x899   : > { %9599 = vst [vmem:[#allocation2 + $0x48] sm:$0xff] %v9567_v38  ;;  %v9568_v9 = vmax.f32 %v9536_v4, 0.0 }
 0x89a   : > { %9597 = vst [vmem:[#allocation2 + $0x28] sm:$0xff] %v9565_v30  ;;  %v9566_v19 = vmax.f32 %v9534_v21, 0.0 }
 0x89b   : > { %9600 = vst [vmem:[#allocation2 + $0x50] sm:$0xff] %v9568_v9  ;;  %v9727_v58 = vpack.c.bf16 %v9568_v9, %v9567_v38  ;;  %v20398_v9 = vld [vmem:[%s21113_s7 + $0x80] sm:$0xff]  }
 0x89c   : > { %9598 = vst [vmem:[#allocation2 + $0x30] sm:$0xff] %v9566_v19  ;;  %v16646_v24 = vpop.f32.mrb[36].mxu0  ;;  %v9726_v47 = vpack.c.bf16 %v9566_v19, %v9565_v30 }
 0x89d   : > { %v9539_v10 = vadd.f32 %v16646_v24, %v20341_v49  ;;  %v9383_v63 = vpop.f32.mrb[37].mxu0 }
 0x89e   : > { %v9537_v25 = vadd.f32 %v20341_v49, %v9383_v63  ;;  %v16647_v6 = vpop.f32.mrb[38].mxu0  ;;  %16689 = vmatmul.mubr.bf16.vlgmr.msra.gmra.mrb[48].mxu1 %v9726_v47 }
 0x89f   : > { %v9571_v59 = vmax.f32 %v9539_v10, 0.0  ;;  %v9540_v42 = vadd.f32 %v16647_v6, %v20341_v49  ;;  %v9386_v2 = vpop.f32.mrb[39].mxu0  ;;  %16721 = vmatpush3.bf16.msra.mxu1 %v18293_v11  ;;  %16692 = vmatprep.mubr.bf16.mxu1 %v9727_v58 }
 0x8a0   : > { %v9569_v28 = vmax.f32 %v9537_v25, 0.0  ;;  %v9538_v44 = vadd.f32 %v20341_v49, %v9386_v2  ;;  %16722 = vmatprep.subr.bf16.mxu1 %v18294_v26 }
 0x8a1   : > { %9603 = vst [vmem:[#allocation2 + $0x88] sm:$0xff] %v9571_v59  ;;  %v9572_v15 = vmax.f32 %v9540_v42, 0.0 }
 0x8a2   : > { %9601 = vst [vmem:[#allocation2 + $0x68] sm:$0xff] %v9569_v28  ;;  %v9570_v37 = vmax.f32 %v9538_v44, 0.0 }
 0x8a3   : > { %9604 = vst [vmem:[#allocation2 + $0x90] sm:$0xff] %v9572_v15  ;;  %16723 = vmatpush3.bf16.msra.mxu1 %v18294_v26  ;;  %v9729_v43 = vpack.c.bf16 %v9572_v15, %v9571_v59 }
 0x8a4   : > { %9602 = vst [vmem:[#allocation2 + $0x70] sm:$0xff] %v9570_v37  ;;  %v16650_v29 = vpop.f32.mrb[40].mxu0  ;;  %v9728_v54 = vpack.c.bf16 %v9570_v37, %v9569_v28  ;;  %16724 = vmatprep.subr.bf16.mxu1 %v18295_v57 }
 0x8a5   : > { %v9543_v55 = vadd.f32 %v16650_v29, %v20341_v49  ;;  %v9399_v45 = vpop.f32.mrb[41].mxu0 }
 0x8a6   : > { %v9541_v14 = vadd.f32 %v20341_v49, %v9399_v45  ;;  %v16651_v51 = vpop.f32.mrb[42].mxu0  ;;  %16693 = vmatmul.mubr.bf16.gmra.mrb[52].mxu1 %v9728_v54 }
 0x8a7   : > { %v9575_v17 = vmax.f32 %v9543_v55, 0.0  ;;  %v9544_v5 = vadd.f32 %v16651_v51, %v20341_v49  ;;  %v9402_v31 = vpop.f32.mrb[43].mxu0  ;;  %16696 = vmatprep.mubr.bf16.mxu1 %v9729_v43  ;;  %16725 = vmatpush3.bf16.msra.mxu1 %v18295_v57 }
 0x8a8   : > { %v9573_v53 = vmax.f32 %v9541_v14, 0.0  ;;  %v9542_v18 = vadd.f32 %v20341_v49, %v9402_v31  ;;  %16726 = vmatprep.subr.bf16.mxu1 %v18296_v60 }
 0x8a9   : > { %9607 = vst [vmem:[#allocation2 + $0xc8] sm:$0xff] %v9575_v17  ;;  %v9576_v34 = vmax.f32 %v9544_v5, 0.0 }
 0x8aa   : > { %9605 = vst [vmem:[#allocation2 + $0xa8] sm:$0xff] %v9573_v53  ;;  %v20367_v12 = vmax.f32 %v9542_v18, 0.0 }
 0x8ab   : > { %9608 = vst [vmem:[#allocation2 + $0xd0] sm:$0xff] %v9576_v34  ;;  %v9731_v61 = vpack.c.bf16 %v9576_v34, %v9575_v17  ;;  %16727 = vmatpush3.bf16.msra.mxu1 %v18296_v60 }
 0x8ac   : > { %9606 = vst [vmem:[#allocation2 + $0xb0] sm:$0xff] %v20367_v12  ;;  %v16654_v48 = vpop.f32.mrb[44].mxu0  ;;  %v9730_v23 = vpack.c.bf16 %v20367_v12, %v9573_v53  ;;  %16728 = vmatprep.subr.bf16.mxu1 %v18297_v32 }
 0x8ad   : > { %v9547_v35 = vadd.f32 %v16654_v48, %v20341_v49  ;;  %v9415_v0 = vpop.f32.mrb[45].mxu0 }
 0x8ae   : > { %v9545_v39 = vadd.f32 %v20341_v49, %v9415_v0  ;;  %v16655_v27 = vpop.f32.mrb[46].mxu0  ;;  %16697 = vmatmul.mubr.bf16.gmra.mrb[56].mxu1 %v9730_v23 }
 0x8af   : > { %v9579_v7 = vmax.f32 %v9547_v35, 0.0  ;;  %v9548_v8 = vadd.f32 %v16655_v27, %v20341_v49  ;;  %v9418_v52 = vpop.f32.mrb[47].mxu0  ;;  %16700 = vmatprep.mubr.bf16.mxu1 %v9731_v61  ;;  %16729 = vmatpush3.bf16.msra.mxu1 %v18297_v32 }
 0x8b0   : > { %v9577_v20 = vmax.f32 %v9545_v39, 0.0  ;;  %v9546_v56 = vadd.f32 %v20341_v49, %v9418_v52  ;;  %16730 = vmatprep.subr.bf16.mxu1 %v18298_v36  ;;  %v9629_v52 = vld [vmem:[#allocation2 + $0x7] sm:$0xff] }
 0x8b1   : > { %9611 = vst [vmem:[#allocation2 + $0x108] sm:$0xff] %v9579_v7  ;;  %v20381_v16 = vmax.f32 %v9548_v8, 0.0 }
 0x8b2   : > { %9609 = vst [vmem:[#allocation2 + $0xe8] sm:$0xff] %v9577_v20  ;;  %v9578_v1 = vmax.f32 %v9546_v56, 0.0 }
 0x8b3   : > { %9612 = vst [vmem:[#allocation2 + $0x110] sm:$0xff] %v20381_v16  ;;  %v9733_v50 = vpack.c.bf16 %v20381_v16, %v9579_v7  ;;  %16731 = vmatpush3.bf16.msra.mxu1 %v18298_v36 }
 0x8b4   : > { %9610 = vst [vmem:[#allocation2 + $0xf0] sm:$0xff] %v9578_v1  ;;  %v16658_v3 = vpop.f32.mrb[48].mxu0  ;;  %v20385_v11 = vpack.c.bf16 %v9578_v1, %v9577_v20  ;;  %16732 = vmatprep.subr.bf16.mxu1 %v18299_v46  ;;  %v9630_v20 = vld [vmem:[#allocation2 + $0xf] sm:$0xff] }
 0x8b5   : > { %v9551_v40 = vadd.f32 %v16658_v3, %v20341_v49  ;;  %v9431_v13 = vpop.f32.mrb[49].mxu0  ;;  %v9661_v1 = vpack.c.bf16 %v9630_v20, %v9629_v52 }
 0x8b6   : > { %v9549_v22 = vadd.f32 %v20341_v49, %v9431_v13  ;;  %v16659_v62 = vpop.f32.mrb[50].mxu0  ;;  %16701 = vmatmul.mubr.bf16.gmra.mrb[60].mxu1 %v20385_v11  ;;  %v9631_v13 = vld [vmem:[#allocation2 + $0x27] sm:$0xff] }
 0x8b7   : > { %v9583_v38 = vmax.f32 %v9551_v40, 0.0  ;;  %v9552_v4 = vadd.f32 %v16659_v62, %v20341_v49  ;;  %v9434_v41 = vpop.f32.mrb[51].mxu0  ;;  %16704 = vmatprep.mubr.bf16.mxu1 %v9733_v50  ;;  %16733 = vmatpush3.bf16.msra.mxu1 %v18299_v46  ;;  %v9634_v40 = vld [vmem:[#allocation2 + $0x4f] sm:$0xff] }
 0x8b8   : > { %v9581_v30 = vmax.f32 %v9549_v22, 0.0  ;;  %v9550_v21 = vadd.f32 %v20341_v49, %v9434_v41  ;;  %16734 = vmatprep.subr.bf16.mxu1 %v18300_v33  ;;  %v9633_v22 = vld [vmem:[#allocation2 + $0x47] sm:$0xff]  ;;  %v9636_v41 = vld [vmem:[#allocation2 + $0x6f] sm:$0xff] }
 0x8b9   : > { %9615 = vst [vmem:[#allocation2 + $0x148] sm:$0xff] %v9583_v38  ;;  %v9584_v19 = vmax.f32 %v9552_v4, 0.0  ;;  %v18302_v62 = vld [vmem:[%s21113_s7 + $0x88] sm:$0xff]   ;;  %v18303_v4 = vld [vmem:[%s21113_s7 + $0x90] sm:$0xff]  }
 0x8ba   : > { %9613 = vst [vmem:[#allocation2 + $0x128] sm:$0xff] %v9581_v30  ;;  %v9582_v58 = vmax.f32 %v9550_v21, 0.0  ;;  %v9635_v21 = vld [vmem:[#allocation2 + $0x67] sm:$0xff] }
 0x8bb   : > { %9616 = vst [vmem:[#allocation2 + $0x150] sm:$0xff] %v9584_v19  ;;  %v20400_v24 = vpack.c.bf16 %v9584_v19, %v9583_v38  ;;  %16735 = vmatpush3.bf16.msra.mxu1 %v18300_v33  ;;  %v9632_v33 = vld [vmem:[#allocation2 + $0x2f] sm:$0xff]  ;;  %v20441_v38 = vpack.c.bf16 %v9634_v40, %v9633_v22  ;;  %v20449_v19 = vpack.c.bf16 %v9636_v41, %v9635_v21 }
 0x8bc   : > { %9614 = vst [vmem:[#allocation2 + $0x130] sm:$0xff] %v9582_v58  ;;  %v16662_v47 = vpop.f32.mrb[52].mxu0  ;;  %v20402_v26 = vpack.c.bf16 %v9582_v58, %v9581_v30  ;;  %16768 = vmatprep.subr.bf16.mxu1 %v20398_v9  ;;  %v9638_v30 = vld [vmem:[#allocation2 + $0x8f] sm:$0xff]  ;;  %v9637_v58 = vld [vmem:[#allocation2 + $0x87] sm:$0xff] }
 0x8bd   : > { %v9555_v10 = vadd.f32 %v16662_v47, %v20341_v49  ;;  %v9447_v63 = vpop.f32.mrb[53].mxu0  ;;  %v18304_v47 = vld [vmem:[%s21113_s7 + $0x98] sm:$0xff]   ;;  %v10178_v22 = vld [vmem:[#allocation2 + $0x29] sm:$0xff] }
 0x8be   : > { %v9553_v25 = vadd.f32 %v20341_v49, %v9447_v63  ;;  %v16663_v6 = vpop.f32.mrb[54].mxu0  ;;  %16705 = vmatmul.mubr.bf16.gmra.mrb[64].mxu1 %v20402_v26  ;;  %v9640_v63 = vld [vmem:[#allocation2 + $0xaf] sm:$0xff] }
 0x8bf   : > { %v9587_v59 = vmax.f32 %v9555_v10, 0.0  ;;  %v9556_v42 = vadd.f32 %v16663_v6, %v20341_v49  ;;  %v9450_v2 = vpop.f32.mrb[55].mxu0  ;;  %16708 = vmatprep.mubr.bf16.mxu1 %v20400_v24  ;;  %v18305_v10 = vld [vmem:[%s21113_s7 + $0xa0] sm:$0xff]   ;;  %v10181_v41 = vld [vmem:[#allocation2 + $0x51] sm:$0xff]  ;;  %v18310_v21 = vld [vmem:[%s21113_s7 + $0xc8] sm:$0xff]  }
 0x8c0   : > { %v9585_v28 = vmax.f32 %v9553_v25, 0.0  ;;  %v9554_v44 = vadd.f32 %v20341_v49, %v9450_v2  ;;  %v9642_v25 = vld [vmem:[#allocation2 + $0xcf] sm:$0xff]  ;;  %v9639_v6 = vld [vmem:[#allocation2 + $0xa7] sm:$0xff] }
 0x8c1   : > { %9619 = vst [vmem:[#allocation2 + $0x188] sm:$0xff] %v9587_v59  ;;  %v9588_v57 = vmax.f32 %v9556_v42, 0.0  ;;  %v9641_v42 = vld [vmem:[#allocation2 + $0xc7] sm:$0xff] }
 0x8c2   : > { %9617 = vst [vmem:[#allocation2 + $0x168] sm:$0xff] %v9585_v28  ;;  %v9586_v15 = vmax.f32 %v9554_v44, 0.0  ;;  %v18306_v2 = vld [vmem:[%s21113_s7 + $0xa8] sm:$0xff]   ;;  %v18307_v44 = vld [vmem:[%s21113_s7 + $0xb0] sm:$0xff]  }
 0x8c3   : > { %9620 = vst [vmem:[#allocation2 + $0x190] sm:$0xff] %v9588_v57  ;;  %v20411_v37 = vpack.c.bf16 %v9588_v57, %v9587_v59  ;;  %v20461_v59 = vpack.c.bf16 %v9640_v63, %v9639_v6  ;;  %v9644_v57 = vld [vmem:[#allocation2 + $0xef] sm:$0xff] }
 0x8c4   : > { %9618 = vst [vmem:[#allocation2 + $0x170] sm:$0xff] %v9586_v15  ;;  %v16666_v43 = vpop.f32.mrb[56].mxu0  ;;  %v20413_v29 = vpack.c.bf16 %v9586_v15, %v9585_v28  ;;  %v20466_v28 = vpack.c.bf16 %v9642_v25, %v9641_v42  ;;  %v9646_v15 = vld [vmem:[#allocation2 + $0x10f] sm:$0xff] }
 0x8c5   : > { %v9559_v54 = vadd.f32 %v16666_v43, %v20341_v49  ;;  %v9463_v60 = vpop.f32.mrb[57].mxu0  ;;  %v9643_v43 = vld [vmem:[#allocation2 + $0xe7] sm:$0xff]  ;;  %v10183_v63 = vld [vmem:[#allocation2 + $0x71] sm:$0xff] }
 0x8c6   : > { %v9557_v55 = vadd.f32 %v20341_v49, %v9463_v60  ;;  %v16667_v45 = vpop.f32.mrb[58].mxu0  ;;  %16709 = vmatmul.mubr.bf16.gmra.mrb[68].mxu1 %v20413_v29  ;;  %v9645_v60 = vld [vmem:[#allocation2 + $0x107] sm:$0xff]  ;;  %v10185_v6 = vld [vmem:[#allocation2 + $0x91] sm:$0xff] }
 0x8c7   : > { %v9591_v14 = vmax.f32 %v9559_v54, 0.0  ;;  %v9560_v51 = vadd.f32 %v16667_v45, %v20341_v49  ;;  %v9466_v17 = vpop.f32.mrb[59].mxu0  ;;  %16712 = vmatprep.mubr.bf16.mxu1 %v20411_v37  ;;  %v20473_v54 = vpack.c.bf16 %v9644_v57, %v9643_v43  ;;  %v20478_v45 = vpack.c.bf16 %v9646_v15, %v9645_v60  ;;  %v10184_v25 = vld [vmem:[#allocation2 + $0x89] sm:$0xff]  ;;  %v18313_v57 = vld [vmem:[%s21113_s7 + $0xe0] sm:$0xff]   ;;  %v10187_v43 = vld [vmem:[#allocation2 + $0xb1] sm:$0xff] }
 0x8c8   : > { %v9589_v5 = vmax.f32 %v9557_v55, 0.0  ;;  %v9558_v31 = vadd.f32 %v20341_v49, %v9466_v17  ;;  %v18308_v55 = vld [vmem:[%s21113_s7 + $0xb8] sm:$0xff]   ;;  %v9650_v17 = vld [vmem:[#allocation2 + $0x14f] sm:$0xff] }
 0x8c9   : > { %9623 = vst [vmem:[#allocation2 + $0x1c8] sm:$0xff] %v9591_v14  ;;  %v9592_v53 = vmax.f32 %v9560_v51, 0.0  ;;  %v9648_v51 = vld [vmem:[#allocation2 + $0x12f] sm:$0xff] }
 0x8ca   : > { %9621 = vst [vmem:[#allocation2 + $0x1a8] sm:$0xff] %v9589_v5  ;;  %v9590_v18 = vmax.f32 %v9558_v31, 0.0  ;;  %v10186_v15 = vld [vmem:[#allocation2 + $0xa9] sm:$0xff] }
 0x8cb   : > { %9624 = vst [vmem:[#allocation2 + $0x1d0] sm:$0xff] %v9592_v53  ;;  %v20421_v32 = vpack.c.bf16 %v9592_v53, %v9591_v14  ;;  %v18309_v14 = vld [vmem:[%s21113_s7 + $0xc0] sm:$0xff]   ;;  %v10188_v60 = vld [vmem:[#allocation2 + $0xc9] sm:$0xff] }
 0x8cc   : > { %9622 = vst [vmem:[#allocation2 + $0x1b0] sm:$0xff] %v9590_v18  ;;  %v16670_v34 = vpop.f32.mrb[60].mxu0  ;;  %v20423_v61 = vpack.c.bf16 %v9590_v18, %v9589_v5  ;;  %v9647_v5 = vld [vmem:[#allocation2 + $0x127] sm:$0xff] }
 0x8cd   : > { %v9563_v48 = vadd.f32 %v16670_v34, %v20341_v49  ;;  %v9479_v23 = vpop.f32.mrb[61].mxu0  ;;  %v20485_v31 = vpack.c.bf16 %v9648_v51, %v9647_v5  ;;  %v9649_v53 = vld [vmem:[#allocation2 + $0x147] sm:$0xff]  ;;  %v9652_v34 = vld [vmem:[#allocation2 + $0x16f] sm:$0xff] }
 0x8ce   : > { %v9561_v36 = vadd.f32 %v20341_v49, %v9479_v23  ;;  %v16671_v35 = vpop.f32.mrb[62].mxu0  ;;  %16713 = vmatmul.mubr.bf16.gmra.mrb[72].mxu1 %v20423_v61  ;;  %v20487_v18 = vpack.c.bf16 %v9650_v17, %v9649_v53  ;;  %v9651_v23 = vld [vmem:[#allocation2 + $0x167] sm:$0xff]  ;;  %v18315_v5 = vld [vmem:[%s21113_s7 + $0xf0] sm:$0xff]  }
 0x8cf   : > { %v9595_v0 = vmax.f32 %v9563_v48, 0.0  ;;  %v9564_v39 = vadd.f32 %v16671_v35, %v20341_v49  ;;  %v9482_v27 = vpop.f32.mrb[63].mxu0  ;;  %16716 = vmatprep.mubr.bf16.mxu1 %v20421_v32  ;;  %v9654_v48 = vld [vmem:[#allocation2 + $0x18f] sm:$0xff]  ;;  %v9653_v35 = vld [vmem:[#allocation2 + $0x187] sm:$0xff] }
 0x8d0   : > { %v9593_v7 = vmax.f32 %v9561_v36, 0.0  ;;  %v9562_v8 = vadd.f32 %v20341_v49, %v9482_v27  ;;  %v20436_v49 = vpack.c.bf16 %v9632_v33, %v9631_v13  ;;  %v20491_v36 = vpack.c.bf16 %v9652_v34, %v9651_v23  ;;  %v9657_v52 = vld [vmem:[#allocation2 + $0x1c7] sm:$0xff]  ;;  %v10191_v34 = vld [vmem:[#allocation2 + $0xf1] sm:$0xff] }
 0x8d1   : > { %9627 = vst [vmem:[#allocation2 + $0x208] sm:$0xff] %v9595_v0  ;;  %v9596_v56 = vmax.f32 %v9564_v39, 0.0  ;;  %v18314_v51 = vld [vmem:[%s21113_s7 + $0xe8] sm:$0xff]   ;;  %v10193_v23 = vld [vmem:[#allocation2 + $0x111] sm:$0xff] }
 0x8d2   : > { %9625 = vst [vmem:[#allocation2 + $0x1e8] sm:$0xff] %v9593_v7  ;;  %v9594_v46 = vmax.f32 %v9562_v8, 0.0  ;;  %v9658_v27 = vld [vmem:[#allocation2 + $0x1cf] sm:$0xff] }
 0x8d3   : > { %9628 = vst [vmem:[#allocation2 + $0x210] sm:$0xff] %v9596_v56  ;;  %v20431_v50 = vpack.c.bf16 %v9596_v56, %v9595_v0  ;;  %v20493_v0 = vpack.c.bf16 %v9654_v48, %v9653_v35  ;;  %v9656_v39 = vld [vmem:[#allocation2 + $0x1af] sm:$0xff]  ;;  %v20499_v20 = vpack.c.bf16 %v9658_v27, %v9657_v52 }
 0x8d4   : > { %9626 = vst [vmem:[#allocation2 + $0x1f0] sm:$0xff] %v9594_v46  ;;  %v20433_v3 = vpack.c.bf16 %v9594_v46, %v9593_v7  ;;  %v9655_v7 = vld [vmem:[#allocation2 + $0x1a7] sm:$0xff]  ;;  %v10177_v46 = vld [vmem:[#allocation2 + $0x11] sm:$0xff] }
 0x8d5   : > { %v20497_v8 = vpack.c.bf16 %v9656_v39, %v9655_v7  ;;  %v10176_v56 = vld [vmem:[#allocation2 + $0x9] sm:$0xff]  ;;  %v18316_v39 = vld [vmem:[%s21113_s7 + $0xf8] sm:$0xff]   ;;  %v18317_v7 = vld [vmem:[%s21113_s7 + $0x100] sm:$0xff]  }
 0x8d6   : > { %16717 = vmatmul.mubr.bf16.gmra.mrb[76].mxu1 %v20433_v3  ;;  %v10208_v40 = vpack.c.bf16 %v10177_v46, %v10176_v56  ;;  %v10190_v53 = vld [vmem:[#allocation2 + $0xe9] sm:$0xff]  ;;  %v10195_v56 = vld [vmem:[#allocation2 + $0x131] sm:$0xff] }
 0x8d7   : > { %16736 = vmatprep.mubr.bf16.mxu1 %v9661_v1  ;;  %v10192_v48 = vld [vmem:[#allocation2 + $0x109] sm:$0xff]  ;;  %v20542_v35 = vpack.c.bf16 %v10191_v34, %v10190_v53 }
 0x8d8   : > { %v20547_v27 = vpack.c.bf16 %v10193_v23, %v10192_v48  ;;  %v10194_v52 = vld [vmem:[#allocation2 + $0x129] sm:$0xff]  ;;  %v18324_v48 = vld [vmem:[%s21113_s7 + $0x138] sm:$0xff]   ;;  %v18325_v23 = vld [vmem:[%s21113_s7 + $0x140] sm:$0xff]  }
 0x8d9   : > { %v9659_v33 = vld [vmem:[#allocation2 + $0x1e7] sm:$0xff]  ;;  %v18323_v34 = vld [vmem:[%s21113_s7 + $0x130] sm:$0xff]  }
 0x8da   : > { %v10196_v46 = vld [vmem:[#allocation2 + $0x149] sm:$0xff] }
 0x8db   : > { %v9660_v1 = vld [vmem:[#allocation2 + $0x1ef] sm:$0xff] }
 0x8dc   : > { %v20503_v13 = vpack.c.bf16 %v9660_v1, %v9659_v33  ;;  %v10197_v1 = vld [vmem:[#allocation2 + $0x151] sm:$0xff]  ;;  %v20554_v33 = vpack.c.bf16 %v10195_v56, %v10194_v52  ;;  %v18322_v53 = vld [vmem:[%s21113_s7 + $0x128] sm:$0xff]  }
 0x8dd   : > { %v10512_v52 = vld [vmem:[#allocation2 + $0x207] sm:$0xff] }
 0x8de   : > { %16737 = vmatmul.mubr.bf16.vlgmr.msra.gmra.mrb[48].mxu1 %v20436_v49 }
 0x8df   : > { %16769 = vmatpush3.bf16.msra.mxu1 %v20398_v9  ;;  %16740 = vmatprep.mubr.bf16.mxu1 %v20441_v38  ;;  %v20454_v9 = vpack.c.bf16 %v9638_v30, %v9637_v58 }
 0x8e0   : > { %16770 = vmatprep.subr.bf16.mxu1 %v18302_v62 }
 0x8e3   : > { %16771 = vmatpush3.bf16.msra.mxu1 %v18302_v62  ;;  %v10179_v62 = vld [vmem:[#allocation2 + $0x31] sm:$0xff] }
 0x8e4   : > { %16772 = vmatprep.subr.bf16.mxu1 %v18303_v4  ;;  %v20506_v30 = vpack.c.bf16 %v10179_v62, %v10178_v22  ;;  %v10198_v22 = vld [vmem:[#allocation2 + $0x169] sm:$0xff]  ;;  %v10199_v62 = vld [vmem:[#allocation2 + $0x171] sm:$0xff] }
 0x8e6   : > { %16741 = vmatmul.mubr.bf16.gmra.mrb[52].mxu1 %v20449_v19 }
 0x8e7   : > { %16744 = vmatprep.mubr.bf16.mxu1 %v20454_v9  ;;  %16773 = vmatpush3.bf16.msra.mxu1 %v18303_v4  ;;  %v10180_v4 = vld [vmem:[#allocation2 + $0x49] sm:$0xff] }
 0x8e8   : > { %16774 = vmatprep.subr.bf16.mxu1 %v18304_v47  ;;  %v20511_v58 = vpack.c.bf16 %v10181_v41, %v10180_v4  ;;  %v10200_v4 = vld [vmem:[#allocation2 + $0x189] sm:$0xff]  ;;  %v10201_v41 = vld [vmem:[#allocation2 + $0x191] sm:$0xff] }
 0x8eb   : > { %16775 = vmatpush3.bf16.msra.mxu1 %v18304_v47  ;;  %v18311_v47 = vld [vmem:[%s21113_s7 + $0xd0] sm:$0xff]  }
 0x8ec   : > { %16776 = vmatprep.subr.bf16.mxu1 %v18305_v10 }
 0x8ee   : > { %16745 = vmatmul.mubr.bf16.gmra.mrb[56].mxu1 %v20461_v59 }
 0x8ef   : > { %16748 = vmatprep.mubr.bf16.mxu1 %v20466_v28  ;;  %16777 = vmatpush3.bf16.msra.mxu1 %v18305_v10  ;;  %v10182_v10 = vld [vmem:[#allocation2 + $0x69] sm:$0xff] }
 0x8f0   : > { %16778 = vmatprep.subr.bf16.mxu1 %v18306_v2  ;;  %v20518_v42 = vpack.c.bf16 %v10183_v63, %v10182_v10  ;;  %v10202_v10 = vld [vmem:[#allocation2 + $0x1a9] sm:$0xff]  ;;  %v10203_v63 = vld [vmem:[#allocation2 + $0x1b1] sm:$0xff] }
 0x8f3   : > { %16779 = vmatpush3.bf16.msra.mxu1 %v18306_v2  ;;  %v18312_v2 = vld [vmem:[%s21113_s7 + $0xd8] sm:$0xff]  }
 0x8f4   : > { %16780 = vmatprep.subr.bf16.mxu1 %v18307_v44 }
 0x8f6   : > { %16749 = vmatmul.mubr.bf16.gmra.mrb[60].mxu1 %v20473_v54 }
 0x8f7   : > { %16752 = vmatprep.mubr.bf16.mxu1 %v20478_v45  ;;  %16781 = vmatpush3.bf16.msra.mxu1 %v18307_v44  ;;  %v20523_v44 = vpack.c.bf16 %v10185_v6, %v10184_v25  ;;  %v10204_v25 = vld [vmem:[#allocation2 + $0x1c9] sm:$0xff]  ;;  %v10205_v6 = vld [vmem:[#allocation2 + $0x1d1] sm:$0xff] }
 0x8f8   : > { %16782 = vmatprep.subr.bf16.mxu1 %v18308_v55 }
 0x8fb   : > { %16783 = vmatpush3.bf16.msra.mxu1 %v18308_v55  ;;  %v10189_v55 = vld [vmem:[#allocation2 + $0xd1] sm:$0xff] }
 0x8fc   : > { %16816 = vmatprep.subr.bf16.mxu1 %v18309_v14  ;;  %v20535_v17 = vpack.c.bf16 %v10189_v55, %v10188_v60  ;;  %v18318_v55 = vld [vmem:[%s21113_s7 + $0x108] sm:$0xff]  }
 0x8fe   : > { %16753 = vmatmul.mubr.bf16.gmra.mrb[64].mxu1 %v20485_v31 }
 0x8ff   : > { %16756 = vmatprep.mubr.bf16.mxu1 %v20487_v18 }
 0x906   : > { %16757 = vmatmul.mubr.bf16.gmra.mrb[68].mxu1 %v20491_v36 }
 0x907   : > { %16760 = vmatprep.mubr.bf16.mxu1 %v20493_v0 }
 0x90e   : > { %16761 = vmatmul.mubr.bf16.gmra.mrb[72].mxu1 %v20497_v8 }
 0x90f   : > { %16764 = vmatprep.mubr.bf16.mxu1 %v20499_v20 }
 0x916   : > { %16765 = vmatmul.mubr.bf16.gmra.mrb[76].mxu1 %v20503_v13 }
 0x917   : > { %16784 = vmatprep.mubr.bf16.mxu1 %v10208_v40  ;;  %v20556_v40 = vpack.c.bf16 %v10197_v1, %v10196_v46  ;;  %v10788_v46 = vld [vmem:[#allocation2 + $0x28] sm:$0xff] }
 0x91e   : > { %16785 = vmatmul.mubr.bf16.vlgmr.msra.gmra.mrb[48].mxu1 %v20506_v30 }
 0x91f   : > { %16817 = vmatpush3.bf16.msra.mxu1 %v18309_v14  ;;  %16788 = vmatprep.mubr.bf16.mxu1 %v20511_v58  ;;  %v20530_v14 = vpack.c.bf16 %v10187_v43, %v10186_v15  ;;  %v10206_v15 = vld [vmem:[#allocation2 + $0x1e9] sm:$0xff]  ;;  %v10207_v43 = vld [vmem:[#allocation2 + $0x1f1] sm:$0xff] }
 0x920   : > { %16818 = vmatprep.subr.bf16.mxu1 %v18310_v21  ;;  %v20572_v60 = vpack.c.bf16 %v10207_v43, %v10206_v15  ;;  %v10795_v15 = vld [vmem:[#allocation2 + $0x90] sm:$0xff]  ;;  %v20629_v43 = vld [vmem:[#allocation2 + $0xa8] sm:$0xff] }
 0x923   : > { %16819 = vmatpush3.bf16.msra.mxu1 %v18310_v21  ;;  %v20560_v21 = vpack.c.bf16 %v10199_v62, %v10198_v22  ;;  %v10791_v22 = vld [vmem:[#allocation2 + $0x50] sm:$0xff] }
 0x924   : > { %16820 = vmatprep.subr.bf16.mxu1 %v18311_v47  ;;  %v10793_v62 = vld [vmem:[#allocation2 + $0x70] sm:$0xff] }
 0x926   : > { %16789 = vmatmul.mubr.bf16.gmra.mrb[52].mxu1 %v20518_v42 }
 0x927   : > { %16792 = vmatprep.mubr.bf16.mxu1 %v20523_v44  ;;  %16821 = vmatpush3.bf16.msra.mxu1 %v18311_v47  ;;  %v20562_v47 = vpack.c.bf16 %v10201_v41, %v10200_v4  ;;  %v10790_v4 = vld [vmem:[#allocation2 + $0x48] sm:$0xff] }
 0x928   : > { %16822 = vmatprep.subr.bf16.mxu1 %v18312_v2  ;;  %v20617_v41 = vpack.c.bf16 %v10791_v22, %v10790_v4  ;;  %v18356_v22 = vld [vmem:[%s21113_s7 + $0x238] sm:$0xff]   ;;  %v11725_v4 = vld [vmem:[#allocation2 + $0x170] sm:$0xff] }
 0x92b   : > { %16823 = vmatpush3.bf16.msra.mxu1 %v18312_v2  ;;  %v20566_v2 = vpack.c.bf16 %v10203_v63, %v10202_v10  ;;  %v10792_v10 = vld [vmem:[#allocation2 + $0x68] sm:$0xff] }
 0x92c   : > { %16824 = vmatprep.subr.bf16.mxu1 %v18313_v57  ;;  %v18326_v63 = vld [vmem:[%s21113_s7 + $0x148] sm:$0xff]  }
 0x92e   : > { %16793 = vmatmul.mubr.bf16.gmra.mrb[56].mxu1 %v20530_v14 }
 0x92f   : > { %16796 = vmatprep.mubr.bf16.mxu1 %v20535_v17  ;;  %16825 = vmatpush3.bf16.msra.mxu1 %v18313_v57  ;;  %v20568_v57 = vpack.c.bf16 %v10205_v6, %v10204_v25  ;;  %v20622_v25 = vpack.c.bf16 %v10793_v62, %v10792_v10  ;;  %v18327_v6 = vld [vmem:[%s21113_s7 + $0x150] sm:$0xff]   ;;  %v11724_v10 = vld [vmem:[#allocation2 + $0x168] sm:$0xff] }
 0x930   : > { %16826 = vmatprep.subr.bf16.mxu1 %v18314_v51 }
 0x933   : > { %16827 = vmatpush3.bf16.msra.mxu1 %v18314_v51  ;;  %v18319_v51 = vld [vmem:[%s21113_s7 + $0x110] sm:$0xff]  }
 0x934   : > { %16828 = vmatprep.subr.bf16.mxu1 %v18315_v5 }
 0x936   : > { %16797 = vmatmul.mubr.bf16.gmra.mrb[60].mxu1 %v20542_v35 }
 0x937   : > { %16800 = vmatprep.mubr.bf16.mxu1 %v20547_v27  ;;  %16829 = vmatpush3.bf16.msra.mxu1 %v18315_v5  ;;  %v18321_v5 = vld [vmem:[%s21113_s7 + $0x120] sm:$0xff]  }
 0x938   : > { %16830 = vmatprep.subr.bf16.mxu1 %v18316_v39 }
 0x93b   : > { %16831 = vmatpush3.bf16.msra.mxu1 %v18316_v39  ;;  %v10513_v39 = vld [vmem:[#allocation2 + $0x20f] sm:$0xff] }
 0x93c   : > { %16864 = vmatprep.subr.bf16.mxu1 %v18317_v7  ;;  %v20614_v56 = vpack.c.bf16 %v10513_v39, %v10512_v52  ;;  %v18330_v39 = vld [vmem:[%s21113_s7 + $0x168] sm:$0xff]  }
 0x93e   : > { %16801 = vmatmul.mubr.bf16.gmra.mrb[64].mxu1 %v20554_v33 }
 0x93f   : > { %16804 = vmatprep.mubr.bf16.mxu1 %v20556_v40 }
 0x946   : > { %16805 = vmatmul.mubr.bf16.gmra.mrb[68].mxu1 %v20560_v21 }
 0x947   : > { %16808 = vmatprep.mubr.bf16.mxu1 %v20562_v47 }
 0x94e   : > { %16809 = vmatmul.mubr.bf16.gmra.mrb[72].mxu1 %v20566_v2 }
 0x94f   : > { %16812 = vmatprep.mubr.bf16.mxu1 %v20568_v57 }
 0x956   : > { %16813 = vmatmul.mubr.bf16.gmra.mrb[76].mxu1 %v20572_v60 }
 0x957   : > { %16832 = vmatprep.mubr.bf16.mxu1 %v20436_v49  ;;  %v18320_v49 = vld [vmem:[%s21113_s7 + $0x118] sm:$0xff]  }
 0x95e   : > { %16833 = vmatmul.mubr.bf16.vlgmr.msra.gmra.mrb[48].mxu1 %v20441_v38 }
 0x95f   : > { %16865 = vmatpush3.bf16.msra.mxu1 %v18317_v7  ;;  %16836 = vmatprep.mubr.bf16.mxu1 %v20449_v19  ;;  %v10789_v7 = vld [vmem:[#allocation2 + $0x30] sm:$0xff] }
 0x960   : > { %16866 = vmatprep.subr.bf16.mxu1 %v18318_v55  ;;  %v10820_v1 = vpack.c.bf16 %v10789_v7, %v10788_v46  ;;  %v20652_v7 = vld [vmem:[#allocation2 + $0x108] sm:$0xff]  ;;  %v18332_v46 = vld [vmem:[%s21113_s7 + $0x178] sm:$0xff]  }
 0x961   : > { %v10827_v52 = vpack.c.bf16 %v20381_v16, %v20652_v7  ;;  %v18334_v16 = vld [vmem:[%s21113_s7 + $0x188] sm:$0xff]  }
 0x963   : > { %16867 = vmatpush3.bf16.msra.mxu1 %v18318_v55  ;;  %v10794_v55 = vld [vmem:[#allocation2 + $0x88] sm:$0xff] }
 0x964   : > { %16868 = vmatprep.subr.bf16.mxu1 %v18319_v51 }
 0x966   : > { %16837 = vmatmul.mubr.bf16.gmra.mrb[52].mxu1 %v20454_v9 }
 0x967   : > { %16840 = vmatprep.mubr.bf16.mxu1 %v20461_v59  ;;  %16869 = vmatpush3.bf16.msra.mxu1 %v18319_v51  ;;  %v20631_v51 = vpack.c.bf16 %v10795_v15, %v10794_v55  ;;  %v11729_v15 = vld [vmem:[#allocation2 + $0x1b0] sm:$0xff]  ;;  %v11728_v55 = vld [vmem:[#allocation2 + $0x1a8] sm:$0xff] }
 0x968   : > { %16870 = vmatprep.subr.bf16.mxu1 %v18320_v49 }
 0x96b   : > { %16871 = vmatpush3.bf16.msra.mxu1 %v18320_v49  ;;  %v18328_v49 = vld [vmem:[%s21113_s7 + $0x158] sm:$0xff]  }
 0x96c   : > { %16872 = vmatprep.subr.bf16.mxu1 %v18321_v5 }
 0x96e   : > { %16841 = vmatmul.mubr.bf16.gmra.mrb[56].mxu1 %v20466_v28 }
 0x96f   : > { %16844 = vmatprep.mubr.bf16.mxu1 %v20473_v54  ;;  %16873 = vmatpush3.bf16.msra.mxu1 %v18321_v5  ;;  %v10824_v5 = vpack.c.bf16 %v20367_v12, %v20629_v43  ;;  %v18331_v12 = vld [vmem:[%s21113_s7 + $0x170] sm:$0xff]  }
 0x970   : > { %16874 = vmatprep.subr.bf16.mxu1 %v18322_v53 }
 0x973   : > { %16875 = vmatpush3.bf16.msra.mxu1 %v18322_v53  ;;  %v18329_v53 = vld [vmem:[%s21113_s7 + $0x160] sm:$0xff]  }
 0x974   : > { %16876 = vmatprep.subr.bf16.mxu1 %v18323_v34 }
 0x976   : > { %16845 = vmatmul.mubr.bf16.gmra.mrb[60].mxu1 %v20478_v45 }
 0x977   : > { %16848 = vmatprep.mubr.bf16.mxu1 %v20485_v31  ;;  %16877 = vmatpush3.bf16.msra.mxu1 %v18323_v34  ;;  %v10799_v34 = vld [vmem:[#allocation2 + $0xd0] sm:$0xff] }
 0x978   : > { %16878 = vmatprep.subr.bf16.mxu1 %v18324_v48 }
 0x97b   : > { %16879 = vmatpush3.bf16.msra.mxu1 %v18324_v48  ;;  %v10798_v48 = vld [vmem:[#allocation2 + $0xc8] sm:$0xff] }
 0x97c   : > { %16912 = vmatprep.subr.bf16.mxu1 %v18325_v23 }
 0x97e   : > { %16849 = vmatmul.mubr.bf16.gmra.mrb[64].mxu1 %v20487_v18 }
 0x97f   : > { %16852 = vmatprep.mubr.bf16.mxu1 %v20491_v36 }
 0x986   : > { %16853 = vmatmul.mubr.bf16.gmra.mrb[68].mxu1 %v20493_v0 }
 0x987   : > { %16856 = vmatprep.mubr.bf16.mxu1 %v20497_v8 }
 0x98e   : > { %16857 = vmatmul.mubr.bf16.gmra.mrb[72].mxu1 %v20499_v20 }
 0x98f   : > { %16860 = vmatprep.mubr.bf16.mxu1 %v20503_v13 }
 0x996   : > { %16861 = vmatmul.mubr.bf16.gmra.mrb[76].mxu1 %v20614_v56 }
 0x997   : > { %16880 = vmatprep.mubr.bf16.mxu1 %v10820_v1  ;;  %v11722_v1 = vld [vmem:[#allocation2 + $0x148] sm:$0xff] }
 0x99e   : > { %16881 = vmatmul.mubr.bf16.vlgmr.msra.gmra.mrb[48].mxu1 %v20617_v41 }
 0x99f   : > { %16913 = vmatpush3.bf16.msra.mxu1 %v18325_v23  ;;  %16884 = vmatprep.mubr.bf16.mxu1 %v20622_v25  ;;  %v20642_v23 = vpack.c.bf16 %v10799_v34, %v10798_v48  ;;  %v11735_v34 = vld [vmem:[#allocation2 + $0x210] sm:$0xff]  ;;  %v11732_v48 = vld [vmem:[#allocation2 + $0x1e8] sm:$0xff] }
 0x9a0   : > { %16914 = vmatprep.subr.bf16.mxu1 %v18326_v63 }
 0x9a3   : > { %16915 = vmatpush3.bf16.msra.mxu1 %v18326_v63  ;;  %v11747_v63 = vpack.c.bf16 %v11725_v4, %v11724_v10  ;;  %v12043_v4 = vld [vmem:[#allocation2 + $0x231] sm:$0xff]  ;;  %v20785_v10 = vld [vmem:[%s21115_s9 + $0x2] sm:$0x3] }
 0x9a4   : > { %16916 = vmatprep.subr.bf16.mxu1 %v18327_v6  ;;  %15212 = vmatprep.mubr.bf16.mxu0 %v20785_v10 }
 0x9a6   : > { %16885 = vmatmul.mubr.bf16.gmra.mrb[52].mxu1 %v20631_v51 }
 0x9a7   : > { %16888 = vmatprep.mubr.bf16.mxu1 %v10824_v5  ;;  %16917 = vmatpush3.bf16.msra.mxu1 %v18327_v6 }
 0x9a8   : > { %16918 = vmatprep.subr.bf16.mxu1 %v18328_v49 }
 0x9ab   : > { %16919 = vmatpush3.bf16.msra.mxu1 %v18328_v49  ;;  %v11730_v49 = vld [vmem:[#allocation2 + $0x1c8] sm:$0xff] }
 0x9ac   : > { %16920 = vmatprep.subr.bf16.mxu1 %v18329_v53 }
 0x9ae   : > { %16889 = vmatmul.mubr.bf16.gmra.mrb[56].mxu1 %v20642_v23 }
 0x9af   : > { %16892 = vmatprep.mubr.bf16.mxu1 %v20385_v11  ;;  %16921 = vmatpush3.bf16.msra.mxu1 %v18329_v53  ;;  %v18333_v11 = vld [vmem:[%s21113_s7 + $0x180] sm:$0xff]   ;;  %v11733_v53 = vld [vmem:[#allocation2 + $0x1f0] sm:$0xff] }
 0x9b0   : > { %16922 = vmatprep.subr.bf16.mxu1 %v18330_v39 }
 0x9b3   : > { %16923 = vmatpush3.bf16.msra.mxu1 %v18330_v39  ;;  %v11734_v39 = vld [vmem:[#allocation2 + $0x208] sm:$0xff] }
 0x9b4   : > { %16924 = vmatprep.subr.bf16.mxu1 %v18331_v12 }
 0x9b6   : > { %16893 = vmatmul.mubr.bf16.gmra.mrb[60].mxu1 %v10827_v52 }
 0x9b7   : > { %16896 = vmatprep.mubr.bf16.mxu1 %v20402_v26  ;;  %16925 = vmatpush3.bf16.msra.mxu1 %v18331_v12  ;;  %v18336_v26 = vld [vmem:[%s21113_s7 + $0x198] sm:$0xff]   ;;  %v11752_v12 = vpack.c.bf16 %v11735_v34, %v11734_v39 }
 0x9b8   : > { %16926 = vmatprep.subr.bf16.mxu1 %v18332_v46 }
 0x9bb   : > { %16927 = vmatpush3.bf16.msra.mxu1 %v18332_v46  ;;  %v12012_v46 = vld [vmem:[#allocation2 + $0x49] sm:$0xff] }
 0x9bc   : > { %16960 = vmatprep.subr.bf16.mxu1 %v18333_v11 }
 0x9be   : > { %16897 = vmatmul.mubr.bf16.gmra.mrb[64].mxu1 %v20400_v24  ;;  %v18335_v24 = vld [vmem:[%s21113_s7 + $0x190] sm:$0xff]  }
 0x9bf   : > { %16900 = vmatprep.mubr.bf16.mxu1 %v20413_v29  ;;  %v18338_v29 = vld [vmem:[%s21113_s7 + $0x1a8] sm:$0xff]  }
 0x9c6   : > { %16901 = vmatmul.mubr.bf16.gmra.mrb[68].mxu1 %v20411_v37  ;;  %v18337_v37 = vld [vmem:[%s21113_s7 + $0x1a0] sm:$0xff]  }
 0x9c7   : > { %16904 = vmatprep.mubr.bf16.mxu1 %v20423_v61  ;;  %v18340_v61 = vld [vmem:[%s21113_s7 + $0x1b8] sm:$0xff]  }
 0x9ce   : > { %16905 = vmatmul.mubr.bf16.gmra.mrb[72].mxu1 %v20421_v32  ;;  %v18339_v32 = vld [vmem:[%s21113_s7 + $0x1b0] sm:$0xff]  }
 0x9cf   : > { %16908 = vmatprep.mubr.bf16.mxu1 %v20433_v3  ;;  %v11124_v3 = vld [vmem:[#allocation2 + $0x209] sm:$0xff] }
 0x9d6   : > { %16909 = vmatmul.mubr.bf16.gmra.mrb[76].mxu1 %v20431_v50  ;;  %v18341_v50 = vld [vmem:[%s21113_s7 + $0x1c0] sm:$0xff]  }
 0x9d7   : > { %16928 = vmatprep.mubr.bf16.mxu1 %v20506_v30  ;;  %v11125_v30 = vld [vmem:[#allocation2 + $0x211] sm:$0xff] }
 0x9de   : > { %16929 = vmatmul.mubr.bf16.vlgmr.msra.gmra.mrb[48].mxu1 %v20511_v58  ;;  %v20709_v58 = vpack.c.bf16 %v11125_v30, %v11124_v3  ;;  %v12019_v3 = vld [vmem:[#allocation2 + $0xb1] sm:$0xff]  ;;  %v12020_v30 = vld [vmem:[#allocation2 + $0xc9] sm:$0xff] }
 0x9df   : > { %16961 = vmatpush3.bf16.msra.mxu1 %v18333_v11  ;;  %16932 = vmatprep.mubr.bf16.mxu1 %v20518_v42  ;;  %v18342_v42 = vld [vmem:[%s21113_s7 + $0x1c8] sm:$0xff]   ;;  %v12013_v11 = vld [vmem:[#allocation2 + $0x51] sm:$0xff] }
 0x9e0   : > { %16962 = vmatprep.subr.bf16.mxu1 %v18334_v16 }
 0x9e3   : > { %16963 = vmatpush3.bf16.msra.mxu1 %v18334_v16  ;;  %v12044_v16 = vpack.c.bf16 %v12013_v11, %v12012_v46 }
 0x9e4   : > { %16964 = vmatprep.subr.bf16.mxu1 %v18335_v24 }
 0x9e6   : > { %16933 = vmatmul.mubr.bf16.gmra.mrb[52].mxu1 %v20523_v44  ;;  %v18343_v44 = vld [vmem:[%s21113_s7 + $0x1d0] sm:$0xff]  }
 0x9e7   : > { %16936 = vmatprep.mubr.bf16.mxu1 %v20530_v14  ;;  %16965 = vmatpush3.bf16.msra.mxu1 %v18335_v24  ;;  %v18353_v14 = vld [vmem:[%s21113_s7 + $0x220] sm:$0xff]   ;;  %v12014_v24 = vld [vmem:[#allocation2 + $0x69] sm:$0xff] }
 0x9e8   : > { %16966 = vmatprep.subr.bf16.mxu1 %v18336_v26 }
 0x9eb   : > { %16967 = vmatpush3.bf16.msra.mxu1 %v18336_v26  ;;  %v12015_v26 = vld [vmem:[#allocation2 + $0x71] sm:$0xff] }
 0x9ec   : > { %16968 = vmatprep.subr.bf16.mxu1 %v18337_v37 }
 0x9ee   : > { %16937 = vmatmul.mubr.bf16.gmra.mrb[56].mxu1 %v20535_v17  ;;  %v11717_v17 = vld [vmem:[#allocation2 + $0xf0] sm:$0xff] }
 0x9ef   : > { %16940 = vmatprep.mubr.bf16.mxu1 %v20542_v35  ;;  %16969 = vmatpush3.bf16.msra.mxu1 %v18337_v37  ;;  %v11719_v35 = vld [vmem:[#allocation2 + $0x110] sm:$0xff] }
 0x9f0   : > { %16970 = vmatprep.subr.bf16.mxu1 %v18338_v29  ;;  %v12016_v37 = vld [vmem:[#allocation2 + $0x89] sm:$0xff] }
 0x9f3   : > { %16971 = vmatpush3.bf16.msra.mxu1 %v18338_v29  ;;  %v12017_v29 = vld [vmem:[#allocation2 + $0x91] sm:$0xff] }
 0x9f4   : > { %16972 = vmatprep.subr.bf16.mxu1 %v18339_v32 }
 0x9f6   : > { %16941 = vmatmul.mubr.bf16.gmra.mrb[60].mxu1 %v20547_v27  ;;  %v11716_v27 = vld [vmem:[#allocation2 + $0xe8] sm:$0xff] }
 0x9f7   : > { %16944 = vmatprep.mubr.bf16.mxu1 %v20554_v33  ;;  %16973 = vmatpush3.bf16.msra.mxu1 %v18339_v32  ;;  %v11743_v33 = vpack.c.bf16 %v11717_v17, %v11716_v27  ;;  %v12045_v32 = vpack.c.bf16 %v12015_v26, %v12014_v24  ;;  %v12032_v17 = vld [vmem:[#allocation2 + $0x189] sm:$0xff] }
 0x9f8   : > { %16974 = vmatprep.subr.bf16.mxu1 %v18340_v61 }
 0x9fb   : > { %16975 = vmatpush3.bf16.msra.mxu1 %v18340_v61  ;;  %v12046_v61 = vpack.c.bf16 %v12017_v29, %v12016_v37 }
 0x9fc   : > { %17008 = vmatprep.subr.bf16.mxu1 %v18341_v50 }
 0x9fe   : > { %16945 = vmatmul.mubr.bf16.gmra.mrb[64].mxu1 %v20556_v40  ;;  %v18354_v40 = vld [vmem:[%s21113_s7 + $0x228] sm:$0xff]  }
 0x9ff   : > { %16948 = vmatprep.mubr.bf16.mxu1 %v20560_v21  ;;  %v11744_v21 = vpack.c.bf16 %v11719_v35, %v20652_v7  ;;  %v18403_v7 = vld [vmem:[#allocation2 + $0x8] sm:$0xff]  ;;  %v12033_v35 = vld [vmem:[#allocation2 + $0x191] sm:$0xff] }
 0xa00   : > { %v20778_v52 = vpack.c.bf16 %v18403_v7, %v18403_v7 }
 0xa06   : > { %16949 = vmatmul.mubr.bf16.gmra.mrb[68].mxu1 %v20562_v47  ;;  %v18355_v47 = vld [vmem:[%s21113_s7 + $0x230] sm:$0xff]  }
 0xa07   : > { %16952 = vmatprep.mubr.bf16.mxu1 %v20566_v2  ;;  %v11721_v2 = vld [vmem:[#allocation2 + $0x130] sm:$0xff] }
 0xa0e   : > { %16953 = vmatmul.mubr.bf16.gmra.mrb[72].mxu1 %v20568_v57  ;;  %v11723_v57 = vld [vmem:[#allocation2 + $0x150] sm:$0xff] }
 0xa0f   : > { %16956 = vmatprep.mubr.bf16.mxu1 %v20572_v60  ;;  %v11720_v60 = vld [vmem:[#allocation2 + $0x128] sm:$0xff]  ;;  %v11746_v62 = vpack.c.bf16 %v11723_v57, %v11722_v1  ;;  %v12039_v1 = vld [vmem:[#allocation2 + $0x1f1] sm:$0xff] }
 0xa16   : > { %16957 = vmatmul.mubr.bf16.gmra.mrb[76].mxu1 %v20709_v58 }
 0xa17   : > { %16976 = vmatprep.mubr.bf16.mxu1 %v20441_v38  ;;  %v18344_v38 = vld [vmem:[%s21113_s7 + $0x1d8] sm:$0xff]  }
 0xa1e   : > { %16977 = vmatmul.mubr.bf16.vlgmr.msra.gmra.mrb[48].mxu1 %v20449_v19  ;;  %v18345_v19 = vld [vmem:[%s21113_s7 + $0x1e0] sm:$0xff]  }
 0xa1f   : > { %17009 = vmatpush3.bf16.msra.mxu1 %v18341_v50  ;;  %16980 = vmatprep.mubr.bf16.mxu1 %v20454_v9  ;;  %v18346_v9 = vld [vmem:[%s21113_s7 + $0x1e8] sm:$0xff]  }
 0xa20   : > { %17010 = vmatprep.subr.bf16.mxu1 %v18342_v42  ;;  %v12018_v50 = vld [vmem:[#allocation2 + $0xa9] sm:$0xff] }
 0xa23   : > { %17011 = vmatpush3.bf16.msra.mxu1 %v18342_v42  ;;  %v12021_v42 = vld [vmem:[#allocation2 + $0xd1] sm:$0xff] }
 0xa24   : > { %17012 = vmatprep.subr.bf16.mxu1 %v18343_v44 }
 0xa26   : > { %16981 = vmatmul.mubr.bf16.gmra.mrb[52].mxu1 %v20461_v59  ;;  %v18347_v59 = vld [vmem:[%s21113_s7 + $0x1f0] sm:$0xff]  }
 0xa27   : > { %16984 = vmatprep.mubr.bf16.mxu1 %v20466_v28  ;;  %17013 = vmatpush3.bf16.msra.mxu1 %v18343_v44  ;;  %v18348_v28 = vld [vmem:[%s21113_s7 + $0x1f8] sm:$0xff]   ;;  %v12047_v44 = vpack.c.bf16 %v12019_v3, %v12018_v50 }
 0xa28   : > { %17014 = vmatprep.subr.bf16.mxu1 %v18344_v38 }
 0xa2b   : > { %17015 = vmatpush3.bf16.msra.mxu1 %v18344_v38  ;;  %v12048_v38 = vpack.c.bf16 %v12021_v42, %v12020_v30 }
 0xa2c   : > { %17016 = vmatprep.subr.bf16.mxu1 %v18345_v19 }
 0xa2e   : > { %16985 = vmatmul.mubr.bf16.gmra.mrb[56].mxu1 %v20473_v54  ;;  %v18349_v54 = vld [vmem:[%s21113_s7 + $0x200] sm:$0xff]  }
 0xa2f   : > { %16988 = vmatprep.mubr.bf16.mxu1 %v20478_v45  ;;  %17017 = vmatpush3.bf16.msra.mxu1 %v18345_v19  ;;  %v11430_v45 = vld [vmem:[#allocation2 + $0x227] sm:$0xff] }
 0xa30   : > { %17018 = vmatprep.subr.bf16.mxu1 %v18346_v9  ;;  %v12022_v19 = vld [vmem:[#allocation2 + $0xe9] sm:$0xff] }
 0xa33   : > { %17019 = vmatpush3.bf16.msra.mxu1 %v18346_v9  ;;  %v12023_v9 = vld [vmem:[#allocation2 + $0xf1] sm:$0xff] }
 0xa34   : > { %17020 = vmatprep.subr.bf16.mxu1 %v18347_v59 }
 0xa36   : > { %16989 = vmatmul.mubr.bf16.gmra.mrb[60].mxu1 %v20485_v31  ;;  %v11431_v31 = vld [vmem:[#allocation2 + $0x22f] sm:$0xff] }
 0xa37   : > { %16992 = vmatprep.mubr.bf16.mxu1 %v20487_v18  ;;  %17021 = vmatpush3.bf16.msra.mxu1 %v18347_v59  ;;  %v11447_v18 = vpack.c.bf16 %v11431_v31, %v11430_v45  ;;  %v12024_v59 = vld [vmem:[#allocation2 + $0x109] sm:$0xff] }
 0xa38   : > { %17022 = vmatprep.subr.bf16.mxu1 %v18348_v28  ;;  %v12026_v31 = vld [vmem:[#allocation2 + $0x129] sm:$0xff] }
 0xa3b   : > { %17023 = vmatpush3.bf16.msra.mxu1 %v18348_v28  ;;  %v12025_v28 = vld [vmem:[#allocation2 + $0x111] sm:$0xff] }
 0xa3c   : > { %17056 = vmatprep.subr.bf16.mxu1 %v18349_v54  ;;  %v12050_v45 = vpack.c.bf16 %v12025_v28, %v12024_v59 }
 0xa3e   : > { %16993 = vmatmul.mubr.bf16.gmra.mrb[64].mxu1 %v20491_v36  ;;  %v18350_v36 = vld [vmem:[%s21113_s7 + $0x208] sm:$0xff]  }
 0xa3f   : > { %16996 = vmatprep.mubr.bf16.mxu1 %v20493_v0  ;;  %v18351_v0 = vld [vmem:[%s21113_s7 + $0x210] sm:$0xff]  }
 0xa46   : > { %16997 = vmatmul.mubr.bf16.gmra.mrb[68].mxu1 %v20497_v8  ;;  %v11713_v8 = vld [vmem:[#allocation2 + $0xb0] sm:$0xff] }
 0xa47   : > { %17000 = vmatprep.mubr.bf16.mxu1 %v20499_v20  ;;  %v11741_v20 = vpack.c.bf16 %v11713_v8, %v20629_v43  ;;  %v11731_v43 = vld [vmem:[#allocation2 + $0x1d0] sm:$0xff] }
 0xa48   : > { %v11750_v5 = vpack.c.bf16 %v11731_v43, %v11730_v49 }
 0xa4e   : > { %17001 = vmatmul.mubr.bf16.gmra.mrb[72].mxu1 %v20503_v13  ;;  %v18352_v13 = vld [vmem:[%s21113_s7 + $0x218] sm:$0xff]  }
 0xa4f   : > { %17004 = vmatprep.mubr.bf16.mxu1 %v20614_v56  ;;  %v11745_v56 = vpack.c.bf16 %v11721_v2, %v11720_v60  ;;  %v12037_v2 = vld [vmem:[#allocation2 + $0x1d1] sm:$0xff] }
 0xa56   : > { %17005 = vmatmul.mubr.bf16.gmra.mrb[76].mxu1 %v11447_v18  ;;  %v12027_v18 = vld [vmem:[#allocation2 + $0x131] sm:$0xff] }
 0xa57   : > { %17024 = vmatprep.mubr.bf16.mxu1 %v20617_v41  ;;  %v11727_v41 = vld [vmem:[#allocation2 + $0x190] sm:$0xff]  ;;  %v12051_v8 = vpack.c.bf16 %v12027_v18, %v12026_v31 }
 0xa5e   : > { %17025 = vmatmul.mubr.bf16.vlgmr.msra.gmra.mrb[48].mxu1 %v20622_v25  ;;  %v11726_v25 = vld [vmem:[#allocation2 + $0x188] sm:$0xff] }
 0xa5f   : > { %17057 = vmatpush3.bf16.msra.mxu1 %v18349_v54  ;;  %17028 = vmatprep.mubr.bf16.mxu1 %v20631_v51  ;;  %v11748_v6 = vpack.c.bf16 %v11727_v41, %v11726_v25  ;;  %v11749_v51 = vpack.c.bf16 %v11729_v15, %v11728_v55  ;;  %v12049_v54 = vpack.c.bf16 %v12023_v9, %v12022_v19 }
 0xa60   : > { %17058 = vmatprep.subr.bf16.mxu1 %v18350_v36 }
 0xa63   : > { %17059 = vmatpush3.bf16.msra.mxu1 %v18350_v36  ;;  %v12028_v36 = vld [vmem:[#allocation2 + $0x149] sm:$0xff] }
 0xa64   : > { %17060 = vmatprep.subr.bf16.mxu1 %v18351_v0 }
 0xa66   : > { %17029 = vmatmul.mubr.bf16.gmra.mrb[52].mxu1 %v11741_v20 }
 0xa67   : > { %17032 = vmatprep.mubr.bf16.mxu1 %v20642_v23  ;;  %17061 = vmatpush3.bf16.msra.mxu1 %v18351_v0  ;;  %v11751_v23 = vpack.c.bf16 %v11733_v53, %v11732_v48  ;;  %v12029_v0 = vld [vmem:[#allocation2 + $0x151] sm:$0xff] }
 0xa68   : > { %17062 = vmatprep.subr.bf16.mxu1 %v18352_v13  ;;  %v12052_v20 = vpack.c.bf16 %v12029_v0, %v12028_v36 }
 0xa6b   : > { %17063 = vmatpush3.bf16.msra.mxu1 %v18352_v13  ;;  %v12030_v13 = vld [vmem:[#allocation2 + $0x169] sm:$0xff] }
 0xa6c   : > { %17064 = vmatprep.subr.bf16.mxu1 %v18353_v14 }
 0xa6e   : > { %17033 = vmatmul.mubr.bf16.gmra.mrb[56].mxu1 %v11743_v33  ;;  %v12054_v33 = vpack.c.bf16 %v12033_v35, %v12032_v17 }
 0xa6f   : > { %17036 = vmatprep.mubr.bf16.mxu1 %v11744_v21  ;;  %17065 = vmatpush3.bf16.msra.mxu1 %v18353_v14  ;;  %v12031_v14 = vld [vmem:[#allocation2 + $0x171] sm:$0xff] }
 0xa70   : > { %17066 = vmatprep.subr.bf16.mxu1 %v18354_v40  ;;  %v12053_v27 = vpack.c.bf16 %v12031_v14, %v12030_v13  ;;  %v12035_v21 = vld [vmem:[#allocation2 + $0x1b1] sm:$0xff] }
 0xa73   : > { %17067 = vmatpush3.bf16.msra.mxu1 %v18354_v40  ;;  %v12034_v40 = vld [vmem:[#allocation2 + $0x1a9] sm:$0xff] }
 0xa74   : > { %17068 = vmatprep.subr.bf16.mxu1 %v18355_v47  ;;  %v12055_v57 = vpack.c.bf16 %v12035_v21, %v12034_v40 }
 0xa76   : > { %17037 = vmatmul.mubr.bf16.gmra.mrb[60].mxu1 %v11745_v56  ;;  %v12038_v56 = vld [vmem:[#allocation2 + $0x1e9] sm:$0xff] }
 0xa77   : > { %17040 = vmatprep.mubr.bf16.mxu1 %v11746_v62  ;;  %17069 = vmatpush3.bf16.msra.mxu1 %v18355_v47  ;;  %v12036_v47 = vld [vmem:[#allocation2 + $0x1c9] sm:$0xff] }
 0xa78   : > { %17070 = vmatprep.subr.bf16.mxu1 %v18356_v22  ;;  %v12056_v60 = vpack.c.bf16 %v12037_v2, %v12036_v47  ;;  %v12042_v62 = vld [vmem:[#allocation2 + $0x229] sm:$0xff] }
 0xa79   : > { %v12059_v41 = vpack.c.bf16 %v12043_v4, %v12042_v62 }
 0xa7b   : > { %17071 = vmatpush3.bf16.msra.mxu1 %v18356_v22  ;;  %v12057_v22 = vpack.c.bf16 %v12039_v1, %v12038_v56 }
 0xa7e   : > { %17041 = vmatmul.mubr.bf16.gmra.mrb[64].mxu1 %v11747_v63  ;;  %v20791_v63 = vld [vmem:[%s21115_s9] sm:$0x3] }
 0xa7f   : > { %17044 = vmatprep.mubr.bf16.mxu1 %v11748_v6 }
 0xa86   : > { %17045 = vmatmul.mubr.bf16.gmra.mrb[68].mxu1 %v11749_v51 }
 0xa87   : > { %17048 = vmatprep.mubr.bf16.mxu1 %v11750_v5 }
 0xa8e   : > { %17049 = vmatmul.mubr.bf16.gmra.mrb[72].mxu1 %v11751_v23 }
 0xa8f   : > { %17052 = vmatprep.mubr.bf16.mxu1 %v11752_v12 }
 0xa96   : > { %17053 = vmatmul.mubr.bf16.gmra.mrb[76].mxu1 %v20778_v52 }
 0xa97   : > { %17072 = vmatprep.mubr.bf16.mxu1 %v12044_v16 }
 0xa9e   : > { %17073 = vmatmul.mubr.bf16.vlgmr.msra.gmra.mrb[48].mxu1 %v12045_v32 }
 0xa9f   : > { %17076 = vmatprep.mubr.bf16.mxu1 %v12046_v61 }
 0xaa6   : > { %17077 = vmatmul.mubr.bf16.gmra.mrb[52].mxu1 %v12047_v44 }
 0xaa7   : > { %17080 = vmatprep.mubr.bf16.mxu1 %v12048_v38 }
 0xaae   : > { %17081 = vmatmul.mubr.bf16.gmra.mrb[56].mxu1 %v12049_v54 }
 0xaaf   : > { %17084 = vmatprep.mubr.bf16.mxu1 %v12050_v45 }
 0xab6   : > { %17085 = vmatmul.mubr.bf16.gmra.mrb[60].mxu1 %v12051_v8 }
 0xab7   : > { %17088 = vmatprep.mubr.bf16.mxu1 %v12052_v20 }
 0xabe   : > { %17089 = vmatmul.mubr.bf16.gmra.mrb[64].mxu1 %v12053_v27 }
 0xabf   : > { %17092 = vmatprep.mubr.bf16.mxu1 %v12054_v33 }
 0xac6   : > { %17093 = vmatmul.mubr.bf16.gmra.mrb[68].mxu1 %v12055_v57 }
 0xac7   : > { %17096 = vmatprep.mubr.bf16.mxu1 %v12056_v60 }
 0xace   : > { %17097 = vmatmul.mubr.bf16.gmra.mrb[72].mxu1 %v12057_v22 }
 0xacf   : > { %17100 = vmatprep.mubr.bf16.mxu1 %v20709_v58  ;;  %v20797_v58 = vld [vmem:[%s21114_s8] ss:$0 sm:$0xff] }
 0xad6   : > { %17101 = vmatmul.mubr.bf16.gmra.mrb[76].mxu1 %v12059_v41 }
 0xad7   : > { %15230 = vmatprep.mubr.bf16.mxu1 %v20791_v63 }
 0xb71   : > { %v17074_v25 = vpop.f32.mrb[48].mxu1 }
 0xb72   : > { %v12327_v6 = vadd.f32 %v17074_v25, %v20797_v58  ;;  %v12159_v15 = vpop.f32.mrb[49].mxu1 }
 0xb73   : > { %v12325_v43 = vadd.f32 %v20797_v58, %v12159_v15  ;;  %v17075_v55 = vpop.f32.mrb[50].mxu1 }
 0xb74   : > { %v12359_v51 = vmax.f32 %v12327_v6, 0.0  ;;  %v12328_v49 = vadd.f32 %v17075_v55, %v20797_v58  ;;  %v12162_v5 = vpop.f32.mrb[51].mxu1  ;;  %v12421_v55 = vld [vmem:[#allocation2 + $0x7] sm:$0xff] }
 0xb75   : > { %v12357_v53 = vmax.f32 %v12325_v43, 0.0  ;;  %v12326_v34 = vadd.f32 %v20797_v58, %v12162_v5 }
 0xb76   : > { %12391 = vst [vmem:[#allocation2 + $0x48] sm:$0xff] %v12359_v51  ;;  %v12360_v48 = vmax.f32 %v12328_v49, 0.0 }
 0xb77   : > { %12389 = vst [vmem:[#allocation2 + $0x28] sm:$0xff] %v12357_v53  ;;  %v12358_v23 = vmax.f32 %v12326_v34, 0.0 }
 0xb78   : > { %12392 = vst [vmem:[#allocation2 + $0x50] sm:$0xff] %v12360_v48  ;;  %v20803_v39 = vpack.c.bf16 %v12360_v48, %v12359_v51  ;;  %v12422_v51 = vld [vmem:[#allocation2 + $0xf] sm:$0xff] }
 0xb79   : > { %12390 = vst [vmem:[#allocation2 + $0x30] sm:$0xff] %v12358_v23  ;;  %v17078_v12 = vpop.f32.mrb[52].mxu1  ;;  %v20805_v7 = vpack.c.bf16 %v12358_v23, %v12357_v53 }
 0xb7a   : > { %v12331_v46 = vadd.f32 %v17078_v12, %v20797_v58  ;;  %v12175_v11 = vpop.f32.mrb[53].mxu1  ;;  %v12453_v12 = vpack.c.bf16 %v12422_v51, %v12421_v55 }
 0xb7b   : > { %v12329_v16 = vadd.f32 %v20797_v58, %v12175_v11  ;;  %v17079_v24 = vpop.f32.mrb[54].mxu1 }
 0xb7c   : > { %v12363_v26 = vmax.f32 %v12331_v46, 0.0  ;;  %v12332_v37 = vadd.f32 %v17079_v24, %v20797_v58  ;;  %v12178_v29 = vpop.f32.mrb[55].mxu1 }
 0xb7d   : > { %v12361_v32 = vmax.f32 %v12329_v16, 0.0  ;;  %v12330_v61 = vadd.f32 %v20797_v58, %v12178_v29 }
 0xb7e   : > { %12395 = vst [vmem:[#allocation2 + $0x88] sm:$0xff] %v12363_v26  ;;  %v12364_v50 = vmax.f32 %v12332_v37, 0.0 }
 0xb7f   : > { %12393 = vst [vmem:[#allocation2 + $0x68] sm:$0xff] %v12361_v32  ;;  %v12362_v3 = vmax.f32 %v12330_v61, 0.0 }
 0xb80   : > { %12396 = vst [vmem:[#allocation2 + $0x90] sm:$0xff] %v12364_v50  ;;  %v20811_v30 = vpack.c.bf16 %v12364_v50, %v12363_v26 }
 0xb81   : > { %12394 = vst [vmem:[#allocation2 + $0x70] sm:$0xff] %v12362_v3  ;;  %v17082_v42 = vpop.f32.mrb[56].mxu1  ;;  %v20813_v44 = vpack.c.bf16 %v12362_v3, %v12361_v32 }
 0xb82   : > { %v12335_v38 = vadd.f32 %v17082_v42, %v20797_v58  ;;  %v12191_v19 = vpop.f32.mrb[57].mxu1 }
 0xb83   : > { %v12333_v9 = vadd.f32 %v20797_v58, %v12191_v19  ;;  %v17083_v59 = vpop.f32.mrb[58].mxu1 }
 0xb84   : > { %v12367_v28 = vmax.f32 %v12335_v38, 0.0  ;;  %v12336_v54 = vadd.f32 %v17083_v59, %v20797_v58  ;;  %v12194_v45 = vpop.f32.mrb[59].mxu1  ;;  %v12424_v59 = vld [vmem:[#allocation2 + $0x2f] sm:$0xff] }
 0xb85   : > { %v12365_v31 = vmax.f32 %v12333_v9, 0.0  ;;  %v12334_v18 = vadd.f32 %v20797_v58, %v12194_v45 }
 0xb86   : > { %12399 = vst [vmem:[#allocation2 + $0xc8] sm:$0xff] %v12367_v28  ;;  %v12368_v36 = vmax.f32 %v12336_v54, 0.0 }
 0xb87   : > { %12397 = vst [vmem:[#allocation2 + $0xa8] sm:$0xff] %v12365_v31  ;;  %v12366_v0 = vmax.f32 %v12334_v18, 0.0 }
 0xb88   : > { %12400 = vst [vmem:[#allocation2 + $0xd0] sm:$0xff] %v12368_v36  ;;  %v20819_v8 = vpack.c.bf16 %v12368_v36, %v12367_v28 }
 0xb89   : > { %12398 = vst [vmem:[#allocation2 + $0xb0] sm:$0xff] %v12366_v0  ;;  %v17086_v20 = vpop.f32.mrb[60].mxu1  ;;  %v20821_v13 = vpack.c.bf16 %v12366_v0, %v12365_v31  ;;  %v12423_v0 = vld [vmem:[#allocation2 + $0x27] sm:$0xff] }
 0xb8a   : > { %v12339_v14 = vadd.f32 %v17086_v20, %v20797_v58  ;;  %v12207_v17 = vpop.f32.mrb[61].mxu1 }
 0xb8b   : > { %v12337_v35 = vadd.f32 %v20797_v58, %v12207_v17  ;;  %v17087_v27 = vpop.f32.mrb[62].mxu1 }
 0xb8c   : > { %v12371_v33 = vmax.f32 %v12339_v14, 0.0  ;;  %v12340_v40 = vadd.f32 %v17087_v27, %v20797_v58  ;;  %v12210_v21 = vpop.f32.mrb[63].mxu1 }
 0xb8d   : > { %v12369_v47 = vmax.f32 %v12337_v35, 0.0  ;;  %v12338_v2 = vadd.f32 %v20797_v58, %v12210_v21  ;;  %v20858_v35 = vpack.c.bf16 %v12424_v59, %v12423_v0 }
 0xb8e   : > { %12403 = vst [vmem:[#allocation2 + $0x108] sm:$0xff] %v12371_v33  ;;  %v12372_v57 = vmax.f32 %v12340_v40, 0.0 }
 0xb8f   : > { %12401 = vst [vmem:[#allocation2 + $0xe8] sm:$0xff] %v12369_v47  ;;  %v12370_v60 = vmax.f32 %v12338_v2, 0.0 }
 0xb90   : > { %12404 = vst [vmem:[#allocation2 + $0x110] sm:$0xff] %v12372_v57  ;;  %v20827_v56 = vpack.c.bf16 %v12372_v57, %v12371_v33 }
 0xb91   : > { %12402 = vst [vmem:[#allocation2 + $0xf0] sm:$0xff] %v12370_v60  ;;  %v17090_v1 = vpop.f32.mrb[64].mxu1  ;;  %v20829_v22 = vpack.c.bf16 %v12370_v60, %v12369_v47 }
 0xb92   : > { %v12343_v62 = vadd.f32 %v17090_v1, %v20797_v58  ;;  %v12223_v4 = vpop.f32.mrb[65].mxu1  ;;  %15196 = vmatprep.subr.bf16.mxu0 %v20827_v56 }
 0xb93   : > { %v12341_v41 = vadd.f32 %v20797_v58, %v12223_v4  ;;  %v17091_v25 = vpop.f32.mrb[66].mxu1  ;;  %15197 = vmatpush3.bf16.xpose.msra.mxu0 %v20778_v52 }
 0xb94   : > { %v12375_v6 = vmax.f32 %v12343_v62, 0.0  ;;  %v12344_v15 = vadd.f32 %v17091_v25, %v20797_v58  ;;  %v12226_v43 = vpop.f32.mrb[67].mxu1 }
 0xb95   : > { %v12373_v49 = vmax.f32 %v12341_v41, 0.0  ;;  %v12342_v5 = vadd.f32 %v20797_v58, %v12226_v43  ;;  %v12437_v48 = vld [vmem:[#allocation2 + $0x107] sm:$0xff]  ;;  %v12426_v41 = vld [vmem:[#allocation2 + $0x4f] sm:$0xff] }
 0xb96   : > { %12407 = vst [vmem:[#allocation2 + $0x148] sm:$0xff] %v12375_v6  ;;  %v12376_v53 = vmax.f32 %v12344_v15, 0.0  ;;  %v12425_v43 = vld [vmem:[#allocation2 + $0x47] sm:$0xff] }
 0xb97   : > { %12405 = vst [vmem:[#allocation2 + $0x128] sm:$0xff] %v12373_v49  ;;  %v12374_v34 = vmax.f32 %v12342_v5, 0.0  ;;  %v12438_v23 = vld [vmem:[#allocation2 + $0x10f] sm:$0xff]  ;;  %v20875_v5 = vpack.c.bf16 %v12426_v41, %v12425_v43 }
 0xb98   : > { %12408 = vst [vmem:[#allocation2 + $0x150] sm:$0xff] %v12376_v53  ;;  %v20837_v46 = vpack.c.bf16 %v12438_v23, %v12437_v48  ;;  %v20839_v11 = vpack.c.bf16 %v12376_v53, %v12375_v6 }
 0xb99   : > { %12406 = vst [vmem:[#allocation2 + $0x130] sm:$0xff] %v12374_v34  ;;  %v17094_v16 = vpop.f32.mrb[68].mxu1  ;;  %v20841_v24 = vpack.c.bf16 %v12374_v34, %v12373_v49 }
 0xb9a   : > { %v12347_v26 = vadd.f32 %v17094_v16, %v20797_v58  ;;  %v12239_v37 = vpop.f32.mrb[69].mxu1  ;;  %15214 = vmatprep.subr.bf16.mxu1 %v20837_v46 }
 0xb9b   : > { %v12345_v29 = vadd.f32 %v20797_v58, %v12239_v37  ;;  %v17095_v32 = vpop.f32.mrb[70].mxu1  ;;  %15215 = vmatpush3.bf16.xpose.msra.mxu1 %v12453_v12  ;;  %15198 = vmatprep.subr.bf16.mxu0 %v20841_v24 }
 0xb9c   : > { %v12379_v61 = vmax.f32 %v12347_v26, 0.0  ;;  %v12348_v50 = vadd.f32 %v17095_v32, %v20797_v58  ;;  %v12242_v3 = vpop.f32.mrb[71].mxu1  ;;  %15199 = vmatpush3.bf16.xpose.msra.mxu0 %v20805_v7 }
 0xb9d   : > { %v12377_v42 = vmax.f32 %v12345_v29, 0.0  ;;  %v12346_v38 = vadd.f32 %v20797_v58, %v12242_v3  ;;  %15200 = vmatprep.subr.bf16.mxu0 %v20839_v11  ;;  %v12441_v27 = vld [vmem:[#allocation2 + $0x147] sm:$0xff] }
 0xb9e   : > { %12411 = vst [vmem:[#allocation2 + $0x188] sm:$0xff] %v12379_v61  ;;  %v12380_v19 = vmax.f32 %v12348_v50, 0.0  ;;  %v12439_v28 = vld [vmem:[#allocation2 + $0x127] sm:$0xff]  ;;  %v12428_v50 = vld [vmem:[#allocation2 + $0x6f] sm:$0xff] }
 0xb9f   : > { %12409 = vst [vmem:[#allocation2 + $0x168] sm:$0xff] %v12377_v42  ;;  %v12378_v9 = vmax.f32 %v12346_v38, 0.0  ;;  %v12442_v45 = vld [vmem:[#allocation2 + $0x14f] sm:$0xff]  ;;  %v12427_v38 = vld [vmem:[#allocation2 + $0x67] sm:$0xff] }
 0xba0   : > { %12412 = vst [vmem:[#allocation2 + $0x190] sm:$0xff] %v12380_v19  ;;  %v12440_v54 = vld [vmem:[#allocation2 + $0x12f] sm:$0xff]  ;;  %v20851_v31 = vpack.c.bf16 %v12380_v19, %v12379_v61  ;;  %v20862_v21 = vpack.c.bf16 %v12442_v45, %v12441_v27  ;;  %v12429_v45 = vld [vmem:[#allocation2 + $0x87] sm:$0xff] }
 0xba1   : > { %12410 = vst [vmem:[#allocation2 + $0x170] sm:$0xff] %v12378_v9  ;;  %v17098_v18 = vpop.f32.mrb[72].mxu1  ;;  %v20853_v36 = vpack.c.bf16 %v12440_v54, %v12439_v28  ;;  %v20855_v20 = vpack.c.bf16 %v12378_v9, %v12377_v42  ;;  %v20890_v9 = vpack.c.bf16 %v12428_v50, %v12427_v38  ;;  %v12430_v28 = vld [vmem:[#allocation2 + $0x8f] sm:$0xff] }
 0xba2   : > { %v12351_v14 = vadd.f32 %v17098_v18, %v20797_v58  ;;  %v12255_v17 = vpop.f32.mrb[73].mxu1  ;;  %v20898_v18 = vpack.c.bf16 %v12430_v28, %v12429_v45  ;;  %v12622_v50 = vld [vmem:[#allocation2 + $0x149] sm:$0xff]  ;;  %v12607_v28 = vld [vmem:[#allocation2 + $0x51] sm:$0xff] }
 0xba3   : > { %v12349_v33 = vadd.f32 %v20797_v58, %v12255_v17  ;;  %v17099_v40 = vpop.f32.mrb[74].mxu1  ;;  %15216 = vmatprep.subr.bf16.mxu1 %v20853_v36  ;;  %v12432_v17 = vld [vmem:[#allocation2 + $0xaf] sm:$0xff] }
 0xba4   : > { %v12383_v47 = vmax.f32 %v12351_v14, 0.0  ;;  %v12352_v2 = vadd.f32 %v17099_v40, %v20797_v58  ;;  %v12258_v57 = vpop.f32.mrb[75].mxu1  ;;  %15217 = vmatpush3.bf16.xpose.msra.mxu1 %v20858_v35  ;;  %15201 = vmatpush3.bf16.xpose.msra.mxu0 %v20803_v39 }
 0xba5   : > { %v12381_v60 = vmax.f32 %v12349_v33, 0.0  ;;  %v12350_v1 = vadd.f32 %v20797_v58, %v12258_v57  ;;  %15218 = vmatprep.subr.bf16.mxu1 %v20862_v21  ;;  %15202 = vmatprep.subr.bf16.mxu0 %v20855_v20  ;;  %v12431_v33 = vld [vmem:[#allocation2 + $0xa7] sm:$0xff]  ;;  %v12434_v57 = vld [vmem:[#allocation2 + $0xcf] sm:$0xff] }
 0xba6   : > { %12415 = vst [vmem:[#allocation2 + $0x1c8] sm:$0xff] %v12383_v47  ;;  %v12384_v62 = vmax.f32 %v12352_v2, 0.0  ;;  %v12443_v53 = vld [vmem:[#allocation2 + $0x167] sm:$0xff]  ;;  %v20906_v40 = vpack.c.bf16 %v12432_v17, %v12431_v33  ;;  %v12609_v17 = vld [vmem:[#allocation2 + $0x71] sm:$0xff] }
 0xba7   : > { %12413 = vst [vmem:[#allocation2 + $0x1a8] sm:$0xff] %v12381_v60  ;;  %v12382_v4 = vmax.f32 %v12350_v1, 0.0  ;;  %v12446_v3 = vld [vmem:[#allocation2 + $0x18f] sm:$0xff] }
 0xba8   : > { %12416 = vst [vmem:[#allocation2 + $0x1d0] sm:$0xff] %v12384_v62  ;;  %v12444_v25 = vld [vmem:[#allocation2 + $0x16f] sm:$0xff]  ;;  %v20870_v6 = vpack.c.bf16 %v12384_v62, %v12383_v47 }
 0xba9   : > { %12414 = vst [vmem:[#allocation2 + $0x1b0] sm:$0xff] %v12382_v4  ;;  %v17102_v15 = vpop.f32.mrb[76].mxu1  ;;  %v20872_v55 = vpack.c.bf16 %v12382_v4, %v12381_v60  ;;  %v20878_v23 = vpack.c.bf16 %v12444_v25, %v12443_v53  ;;  %v12618_v1 = vld [vmem:[#allocation2 + $0x109] sm:$0xff]  ;;  %v12619_v62 = vld [vmem:[#allocation2 + $0x111] sm:$0xff] }
 0xbaa   : > { %v12355_v51 = vadd.f32 %v17102_v15, %v20797_v58  ;;  %v12271_v49 = vpop.f32.mrb[77].mxu1  ;;  %v12433_v4 = vld [vmem:[#allocation2 + $0xc7] sm:$0xff]  ;;  %v20918_v43 = vpack.c.bf16 %v12619_v62, %v12618_v1  ;;  %v12436_v53 = vld [vmem:[#allocation2 + $0xef] sm:$0xff] }
 0xbab   : > { %v12353_v34 = vadd.f32 %v20797_v58, %v12271_v49  ;;  %v17103_v48 = vpop.f32.mrb[78].mxu1  ;;  %v20914_v41 = vpack.c.bf16 %v12434_v57, %v12433_v4  ;;  %v12603_v49 = vld [vmem:[#allocation2 + $0x11] sm:$0xff] }
 0xbac   : > { %v12387_v12 = vmax.f32 %v12355_v51, 0.0  ;;  %v12356_v16 = vadd.f32 %v17103_v48, %v20797_v58  ;;  %v12274_v26 = vpop.f32.mrb[79].mxu1  ;;  %15219 = vmatpush3.bf16.xpose.msra.mxu1 %v20875_v5  ;;  %15203 = vmatpush3.bf16.xpose.msra.mxu0 %v20813_v44  ;;  %v12602_v51 = vld [vmem:[#allocation2 + $0x9] sm:$0xff]  ;;  %v12627_v33 = vld [vmem:[#allocation2 + $0x191] sm:$0xff] }
 0xbad   : > { %v12385_v37 = vmax.f32 %v12353_v34, 0.0  ;;  %v12354_v29 = vadd.f32 %v20797_v58, %v12274_v26  ;;  %15220 = vmatprep.subr.bf16.mxu1 %v20878_v23  ;;  %15204 = vmatprep.subr.bf16.mxu0 %v20851_v31  ;;  %v12445_v58 = vld [vmem:[#allocation2 + $0x187] sm:$0xff]  ;;  %v12634_v34 = vpack.c.bf16 %v12603_v49, %v12602_v51  ;;  %v12611_v1 = vld [vmem:[#allocation2 + $0x91] sm:$0xff] }
 0xbae   : > { %12419 = vst [vmem:[#allocation2 + $0x208] sm:$0xff] %v12387_v12  ;;  %v12388_v32 = vmax.f32 %v12356_v16, 0.0  ;;  %v20892_v59 = vpack.c.bf16 %v12446_v3, %v12445_v58  ;;  %v12447_v0 = vld [vmem:[#allocation2 + $0x1a7] sm:$0xff] }
 0xbaf   : > { %12417 = vst [vmem:[#allocation2 + $0x1e8] sm:$0xff] %v12385_v37  ;;  %v12386_v61 = vmax.f32 %v12354_v29, 0.0  ;;  %v12450_v27 = vld [vmem:[#allocation2 + $0x1cf] sm:$0xff]  ;;  %v12449_v47 = vld [vmem:[#allocation2 + $0x1c7] sm:$0xff]  ;;  %v20932_v29 = vld [vmem:[%s21115_s9 + $0x4] sm:$0x3] }
 0xbb0   : > { %12420 = vst [vmem:[#allocation2 + $0x210] sm:$0xff] %v12388_v32  ;;  %v20886_v42 = vpack.c.bf16 %v12388_v32, %v12387_v12  ;;  %v12448_v54 = vld [vmem:[#allocation2 + $0x1af] sm:$0xff]  ;;  %v20908_v2 = vpack.c.bf16 %v12450_v27, %v12449_v47  ;;  %v12435_v16 = vld [vmem:[#allocation2 + $0xe7] sm:$0xff] }
 0xbb1   : > { %12418 = vst [vmem:[#allocation2 + $0x1f0] sm:$0xff] %v12386_v61  ;;  %v20888_v19 = vpack.c.bf16 %v12386_v61, %v12385_v37  ;;  %v20900_v14 = vpack.c.bf16 %v12448_v54, %v12447_v0  ;;  %v12620_v48 = vld [vmem:[#allocation2 + $0x129] sm:$0xff]  ;;  %v12621_v12 = vld [vmem:[#allocation2 + $0x131] sm:$0xff]  ;;  %v20924_v26 = vpack.c.bf16 %v12436_v53, %v12435_v16  ;;  %v20946_v58 = vld [vmem:[%s21115_s9 + $0x6] sm:$0x3] }
 0xbb2   : > { %v20927_v37 = vpack.c.bf16 %v12621_v12, %v12620_v48  ;;  %v12604_v32 = vld [vmem:[#allocation2 + $0x29] sm:$0xff]  ;;  %v12605_v61 = vld [vmem:[#allocation2 + $0x31] sm:$0xff] }
 0xbb3   : > { %v20938_v3 = vpack.c.bf16 %v12605_v61, %v12604_v32  ;;  %v12625_v54 = vld [vmem:[#allocation2 + $0x171] sm:$0xff]  ;;  %v12626_v27 = vld [vmem:[#allocation2 + $0x189] sm:$0xff] }
 0xbb4   : > { %15221 = vmatpush3.bf16.xpose.msra.mxu1 %v20890_v9  ;;  %15205 = vmatpush3.bf16.xpose.msra.mxu0 %v20811_v30  ;;  %v20963_v57 = vpack.c.bf16 %v12627_v33, %v12626_v27  ;;  %v12628_v62 = vld [vmem:[#allocation2 + $0x1a9] sm:$0xff]  ;;  %v12629_v4 = vld [vmem:[#allocation2 + $0x1b1] sm:$0xff] }
 0xbb5   : > { %15222 = vmatprep.subr.bf16.mxu1 %v20892_v59  ;;  %15206 = vmatprep.subr.bf16.mxu0 %v20872_v55  ;;  %v20971_v51 = vpack.c.bf16 %v12629_v4, %v12628_v62  ;;  %v12612_v49 = vld [vmem:[#allocation2 + $0xa9] sm:$0xff]  ;;  %v12613_v53 = vld [vmem:[#allocation2 + $0xb1] sm:$0xff] }
 0xbb6   : > { %v12451_v25 = vld [vmem:[#allocation2 + $0x1e7] sm:$0xff]  ;;  %v12631_v48 = vld [vmem:[#allocation2 + $0x1d1] sm:$0xff]  ;;  %v20977_v12 = vpack.c.bf16 %v12613_v53, %v12612_v49 }
 0xbb7   : > { %v12614_v32 = vld [vmem:[#allocation2 + $0xc9] sm:$0xff]  ;;  %v12615_v61 = vld [vmem:[#allocation2 + $0xd1] sm:$0xff] }
 0xbb8   : > { %v12452_v60 = vld [vmem:[#allocation2 + $0x1ef] sm:$0xff] }
 0xbb9   : > { %v20916_v15 = vpack.c.bf16 %v12452_v60, %v12451_v25  ;;  %v12610_v60 = vld [vmem:[#allocation2 + $0x89] sm:$0xff] }
 0xbba   : > { %v20969_v25 = vpack.c.bf16 %v12611_v1, %v12610_v60  ;;  %v14242_v60 = vld [vmem:[%s21115_s9 + $0x8] sm:$0x3] }
 0xbbb   : > { %v13079_v4 = vld [vmem:[#allocation2 + $0x108] sm:$0xff] }
 0xbbc   : > { %15223 = vmatpush3.bf16.xpose.msra.mxu1 %v20898_v18  ;;  %15207 = vmatpush3.bf16.xpose.msra.mxu0 %v20821_v13 }
 0xbbd   : > { %15224 = vmatprep.subr.bf16.mxu1 %v20900_v14  ;;  %15208 = vmatprep.subr.bf16.mxu0 %v20870_v6 }
 0xbc4   : > { %15225 = vmatpush3.bf16.xpose.msra.mxu1 %v20906_v40  ;;  %15209 = vmatpush3.bf16.xpose.msra.mxu0 %v20819_v8 }
 0xbc5   : > { %15226 = vmatprep.subr.bf16.mxu1 %v20908_v2  ;;  %15210 = vmatprep.subr.bf16.mxu0 %v20888_v19 }
 0xbcc   : > { %15227 = vmatpush3.bf16.xpose.msra.mxu1 %v20914_v41  ;;  %15211 = vmatpush3.bf16.xpose.msra.mxu0 %v20829_v22 }
 0xbcd   : > { %15228 = vmatprep.subr.bf16.mxu1 %v20916_v15  ;;  %15232 = vmatprep.subr.bf16.mxu0 %v20918_v43 }
 0xbd3   : > { %15213 = vmatmul.mubr.bf16.vlgmr.msra.gmra.mrb[64].mxu0 %v20785_v10  ;;  %v12623_v10 = vld [vmem:[#allocation2 + $0x151] sm:$0xff] }
 0xbd4   : > { %15229 = vmatpush3.bf16.xpose.msra.mxu1 %v20924_v26  ;;  %15233 = vmatpush3.bf16.xpose.msra.mxu0 %v12634_v34  ;;  %v20941_v38 = vpack.c.bf16 %v12623_v10, %v12622_v50  ;;  %v12630_v34 = vld [vmem:[#allocation2 + $0x1c9] sm:$0xff]  ;;  %v12633_v10 = vld [vmem:[#allocation2 + $0x1f1] sm:$0xff] }
 0xbd5   : > { %15250 = vmatprep.subr.bf16.mxu1 %v20853_v36  ;;  %15234 = vmatprep.subr.bf16.mxu0 %v20927_v37  ;;  %v12606_v36 = vld [vmem:[#allocation2 + $0x49] sm:$0xff]  ;;  %v20979_v16 = vpack.c.bf16 %v12631_v48, %v12630_v34 }
 0xbd6   : > { %15248 = vmatprep.mubr.bf16.mxu0 %v20932_v29  ;;  %v20953_v45 = vpack.c.bf16 %v12607_v28, %v12606_v36  ;;  %v12632_v50 = vld [vmem:[#allocation2 + $0x1e9] sm:$0xff]  ;;  %v20985_v36 = vpack.c.bf16 %v12615_v61, %v12614_v32 }
 0xbd7   : > { %v20987_v28 = vpack.c.bf16 %v12633_v10, %v12632_v50  ;;  %v13082_v34 = vld [vmem:[#allocation2 + $0x130] sm:$0xff]  ;;  %v13081_v48 = vld [vmem:[#allocation2 + $0x128] sm:$0xff]  ;;  %v18413_v10 = vmov 0  }
 0xbd8   : > { %v13106_v32 = vpack.c.bf16 %v13082_v34, %v13081_v48  ;;  %18140 = vset.pattern.permute.xlu0 %v18413_v10 }
 0xbdb   : > { %15231 = vmatmul.mubr.bf16.vlgmr.msra.gmra.mrb[80].mxu1 %v20791_v63  ;;  %v12624_v63 = vld [vmem:[#allocation2 + $0x169] sm:$0xff] }
 0xbdc   : > { %15251 = vmatpush3.bf16.xpose.msra.mxu1 %v20858_v35  ;;  %15235 = vmatpush3.bf16.xpose.msra.mxu0 %v20938_v3  ;;  %v20955_v0 = vpack.c.bf16 %v12625_v54, %v12624_v63  ;;  %v12608_v35 = vld [vmem:[#allocation2 + $0x69] sm:$0xff]  ;;  %v12617_v54 = vld [vmem:[#allocation2 + $0xf1] sm:$0xff] }
 0xbdd   : > { %15252 = vmatprep.subr.bf16.mxu1 %v20862_v21  ;;  %15236 = vmatprep.subr.bf16.mxu0 %v20941_v38  ;;  %v20961_v47 = vpack.c.bf16 %v12609_v17, %v12608_v35  ;;  %v12616_v63 = vld [vmem:[#allocation2 + $0xe9] sm:$0xff] }
 0xbde   : > { %15266 = vmatprep.mubr.bf16.mxu1 %v20946_v58  ;;  %v12726_v35 = vld [vmem:[#allocation2 + $0x20f] sm:$0xff]  ;;  %v12725_v17 = vld [vmem:[#allocation2 + $0x207] sm:$0xff]  ;;  %v20993_v27 = vpack.c.bf16 %v12617_v54, %v12616_v63 }
 0xbdf   : > { %v20995_v33 = vpack.c.bf16 %v12726_v35, %v12725_v17  ;;  %v13190_v54 = vld [vmem:[#allocation2 + $0x229] sm:$0xff]  ;;  %v13191_v35 = vld [vmem:[#allocation2 + $0x231] sm:$0xff] }
 0xbe4   : > { %15253 = vmatpush3.bf16.xpose.msra.mxu1 %v20875_v5  ;;  %15237 = vmatpush3.bf16.xpose.msra.mxu0 %v20953_v45 }
 0xbe5   : > { %15254 = vmatprep.subr.bf16.mxu1 %v20878_v23  ;;  %15238 = vmatprep.subr.bf16.mxu0 %v20955_v0 }
 0xbec   : > { %15255 = vmatpush3.bf16.xpose.msra.mxu1 %v20890_v9  ;;  %15239 = vmatpush3.bf16.xpose.msra.mxu0 %v20961_v47 }
 0xbed   : > { %15256 = vmatprep.subr.bf16.mxu1 %v20892_v59  ;;  %15240 = vmatprep.subr.bf16.mxu0 %v20963_v57 }
 0xbf4   : > { %15257 = vmatpush3.bf16.xpose.msra.mxu1 %v20898_v18  ;;  %15241 = vmatpush3.bf16.xpose.msra.mxu0 %v20969_v25 }
 0xbf5   : > { %15258 = vmatprep.subr.bf16.mxu1 %v20900_v14  ;;  %15242 = vmatprep.subr.bf16.mxu0 %v20971_v51 }
 0xbfc   : > { %15259 = vmatpush3.bf16.xpose.msra.mxu1 %v20906_v40  ;;  %15243 = vmatpush3.bf16.xpose.msra.mxu0 %v20977_v12 }
 0xbfd   : > { %15260 = vmatprep.subr.bf16.mxu1 %v20908_v2  ;;  %15244 = vmatprep.subr.bf16.mxu0 %v20979_v16 }
 0xc04   : > { %15261 = vmatpush3.bf16.xpose.msra.mxu1 %v20914_v41  ;;  %15245 = vmatpush3.bf16.xpose.msra.mxu0 %v20985_v36 }
 0xc05   : > { %15262 = vmatprep.subr.bf16.mxu1 %v20916_v15  ;;  %15246 = vmatprep.subr.bf16.mxu0 %v20987_v28 }
 0xc0c   : > { %15263 = vmatpush3.bf16.xpose.msra.mxu1 %v20924_v26  ;;  %15247 = vmatpush3.bf16.xpose.msra.mxu0 %v20993_v27 }
 0xc0d   : > { %15264 = vmatprep.subr.bf16.mxu1 %v20995_v33  ;;  %15268 = vmatprep.subr.bf16.mxu0 %v20841_v24  ;;  %v14243_v24 = vld [vmem:[%s21115_s9 + $0xa] sm:$0x3] }
 0xc13   : > { %15249 = vmatmul.mubr.bf16.vlgmr.msra.gmra.mrb[68].mxu0 %v20932_v29 }
 0xc14   : > { %15265 = vmatpush3.bf16.xpose.msra.mxu1 %v20837_v46  ;;  %15269 = vmatpush3.bf16.xpose.msra.mxu0 %v20805_v7  ;;  %v12912_v7 = vld [vmem:[#allocation2 + $0x211] sm:$0xff] }
 0xc15   : > { %15286 = vmatprep.subr.bf16.mxu1 %v20927_v37  ;;  %15270 = vmatprep.subr.bf16.mxu0 %v20839_v11  ;;  %v13070_v46 = vld [vmem:[#allocation2 + $0x70] sm:$0xff] }
 0xc16   : > { %15284 = vmatprep.mubr.bf16.mxu0 %v14242_v60 }
 0xc1b   : > { %15267 = vmatmul.mubr.bf16.vlgmr.msra.gmra.mrb[84].mxu1 %v20946_v58  ;;  %v13077_v58 = vld [vmem:[#allocation2 + $0xe8] sm:$0xff] }
 0xc1c   : > { %15287 = vmatpush3.bf16.xpose.msra.mxu1 %v20938_v3  ;;  %15271 = vmatpush3.bf16.xpose.msra.mxu0 %v20803_v39  ;;  %v12911_v39 = vld [vmem:[#allocation2 + $0x209] sm:$0xff] }
 0xc1d   : > { %15288 = vmatprep.subr.bf16.mxu1 %v20941_v38  ;;  %15272 = vmatprep.subr.bf16.mxu0 %v20855_v20  ;;  %v12987_v3 = vld [vmem:[#allocation2 + $0x10f] sm:$0xff] }
 0xc1e   : > { %15302 = vmatprep.mubr.bf16.mxu1 %v14243_v24 }
 0xc24   : > { %15289 = vmatpush3.bf16.xpose.msra.mxu1 %v20953_v45  ;;  %15273 = vmatpush3.bf16.xpose.msra.mxu0 %v20813_v44  ;;  %v21046_v44 = vld [vmem:[%s21115_s9 + $0xc] sm:$0x3] }
 0xc25   : > { %15290 = vmatprep.subr.bf16.mxu1 %v20955_v0  ;;  %15274 = vmatprep.subr.bf16.mxu0 %v20851_v31 }
 0xc2c   : > { %15291 = vmatpush3.bf16.xpose.msra.mxu1 %v20961_v47  ;;  %15275 = vmatpush3.bf16.xpose.msra.mxu0 %v20811_v30  ;;  %v21037_v30 = vpack.c.bf16 %v12912_v7, %v12911_v39 }
 0xc2d   : > { %15292 = vmatprep.subr.bf16.mxu1 %v20963_v57  ;;  %15276 = vmatprep.subr.bf16.mxu0 %v20872_v55 }
 0xc34   : > { %15293 = vmatpush3.bf16.xpose.msra.mxu1 %v20969_v25  ;;  %15277 = vmatpush3.bf16.xpose.msra.mxu0 %v20821_v13  ;;  %v13067_v13 = vld [vmem:[#allocation2 + $0x48] sm:$0xff] }
 0xc35   : > { %15294 = vmatprep.subr.bf16.mxu1 %v20971_v51  ;;  %15278 = vmatprep.subr.bf16.mxu0 %v20870_v6 }
 0xc3c   : > { %15295 = vmatpush3.bf16.xpose.msra.mxu1 %v20977_v12  ;;  %15279 = vmatpush3.bf16.xpose.msra.mxu0 %v20819_v8  ;;  %v13068_v8 = vld [vmem:[#allocation2 + $0x50] sm:$0xff] }
 0xc3d   : > { %15296 = vmatprep.subr.bf16.mxu1 %v20979_v16  ;;  %15280 = vmatprep.subr.bf16.mxu0 %v20888_v19 }
 0xc44   : > { %15297 = vmatpush3.bf16.xpose.msra.mxu1 %v20985_v36  ;;  %15281 = vmatpush3.bf16.xpose.msra.mxu0 %v20829_v22  ;;  %v21056_v22 = vld [vmem:[%s21115_s9 + $0xe] sm:$0x3] }
 0xc45   : > { %15298 = vmatprep.subr.bf16.mxu1 %v20987_v28  ;;  %15282 = vmatprep.subr.bf16.mxu0 %v20886_v42 }
 0xc4c   : > { %15299 = vmatpush3.bf16.xpose.msra.mxu1 %v20993_v27  ;;  %15283 = vmatpush3.bf16.xpose.msra.mxu0 %v20827_v56  ;;  %v13099_v56 = vpack.c.bf16 %v13068_v8, %v13067_v13 }
 0xc4d   : > { %15300 = vmatprep.subr.bf16.mxu1 %v21037_v30  ;;  %15304 = vmatprep.subr.bf16.mxu0 %v20862_v21 }
 0xc53   : > { %15285 = vmatmul.mubr.bf16.vlgmr.msra.gmra.mrb[72].mxu0 %v14242_v60 }
 0xc54   : > { %15301 = vmatpush3.bf16.xpose.msra.mxu1 %v20918_v43  ;;  %15305 = vmatpush3.bf16.xpose.msra.mxu0 %v20875_v5  ;;  %v13072_v5 = vld [vmem:[#allocation2 + $0x90] sm:$0xff] }
 0xc55   : > { %15322 = vmatprep.subr.bf16.mxu1 %v20839_v11  ;;  %15306 = vmatprep.subr.bf16.mxu0 %v20878_v23  ;;  %v13069_v11 = vld [vmem:[#allocation2 + $0x68] sm:$0xff] }
 0xc56   : > { %15320 = vmatprep.mubr.bf16.mxu0 %v21046_v44  ;;  %v13100_v21 = vpack.c.bf16 %v13070_v46, %v13069_v11  ;;  %v13071_v23 = vld [vmem:[#allocation2 + $0x88] sm:$0xff] }
 0xc57   : > { %v13101_v29 = vpack.c.bf16 %v13072_v5, %v13071_v23 }
 0xc5b   : > { %15303 = vmatmul.mubr.bf16.vlgmr.msra.gmra.mrb[88].mxu1 %v14243_v24 }
 0xc5c   : > { %15323 = vmatpush3.bf16.xpose.msra.mxu1 %v13099_v56  ;;  %15307 = vmatpush3.bf16.xpose.msra.mxu0 %v20890_v9  ;;  %v13073_v9 = vld [vmem:[#allocation2 + $0xa8] sm:$0xff] }
 0xc5d   : > { %15324 = vmatprep.subr.bf16.mxu1 %v20855_v20  ;;  %15308 = vmatprep.subr.bf16.mxu0 %v20892_v59  ;;  %v13074_v20 = vld [vmem:[#allocation2 + $0xb0] sm:$0xff] }
 0xc5e   : > { %15338 = vmatprep.mubr.bf16.mxu1 %v21056_v22  ;;  %v13102_v59 = vpack.c.bf16 %v13074_v20, %v13073_v9 }
 0xc64   : > { %15325 = vmatpush3.bf16.xpose.msra.mxu1 %v13100_v21  ;;  %15309 = vmatpush3.bf16.xpose.msra.mxu0 %v20898_v18  ;;  %v13075_v18 = vld [vmem:[#allocation2 + $0xc8] sm:$0xff] }
 0xc65   : > { %15326 = vmatprep.subr.bf16.mxu1 %v20851_v31  ;;  %15310 = vmatprep.subr.bf16.mxu0 %v20900_v14  ;;  %v13076_v31 = vld [vmem:[#allocation2 + $0xd0] sm:$0xff] }
 0xc66   : > { %v13103_v14 = vpack.c.bf16 %v13076_v31, %v13075_v18 }
 0xc6c   : > { %15327 = vmatpush3.bf16.xpose.msra.mxu1 %v13101_v29  ;;  %15311 = vmatpush3.bf16.xpose.msra.mxu0 %v20906_v40  ;;  %v13005_v40 = vld [vmem:[#allocation2 + $0x22f] sm:$0xff] }
 0xc6d   : > { %15328 = vmatprep.subr.bf16.mxu1 %v20872_v55  ;;  %15312 = vmatprep.subr.bf16.mxu0 %v20908_v2  ;;  %v13004_v55 = vld [vmem:[#allocation2 + $0x227] sm:$0xff]  ;;  %v13078_v2 = vld [vmem:[#allocation2 + $0xf0] sm:$0xff] }
 0xc6e   : > { %v13021_v1 = vpack.c.bf16 %v13005_v40, %v13004_v55 }
 0xc74   : > { %15329 = vmatpush3.bf16.xpose.msra.mxu1 %v13102_v59  ;;  %15313 = vmatpush3.bf16.xpose.msra.mxu0 %v20914_v41  ;;  %v12986_v41 = vld [vmem:[#allocation2 + $0x107] sm:$0xff] }
 0xc75   : > { %15330 = vmatprep.subr.bf16.mxu1 %v20870_v6  ;;  %15314 = vmatprep.subr.bf16.mxu0 %v20916_v15  ;;  %v13104_v6 = vpack.c.bf16 %v13078_v2, %v13077_v58  ;;  %v13012_v62 = vpack.c.bf16 %v12987_v3, %v12986_v41  ;;  %v13080_v15 = vld [vmem:[#allocation2 + $0x110] sm:$0xff] }
 0xc76   : > { %v13105_v49 = vpack.c.bf16 %v13080_v15, %v13079_v4 }
 0xc7c   : > { %15331 = vmatpush3.bf16.xpose.msra.mxu1 %v13103_v14  ;;  %15315 = vmatpush3.bf16.xpose.msra.mxu0 %v20924_v26  ;;  %v12989_v26 = vld [vmem:[#allocation2 + $0x12f] sm:$0xff] }
 0xc7d   : > { %15332 = vmatprep.subr.bf16.mxu1 %v20888_v19  ;;  %15316 = vmatprep.subr.bf16.mxu0 %v20995_v33  ;;  %v12988_v19 = vld [vmem:[#allocation2 + $0x127] sm:$0xff] }
 0xc7e   : > { %v13013_v53 = vpack.c.bf16 %v12989_v26, %v12988_v19 }
 0xc84   : > { %15333 = vmatpush3.bf16.xpose.msra.mxu1 %v13104_v6  ;;  %15317 = vmatpush3.bf16.xpose.msra.mxu0 %v13012_v62 }
 0xc85   : > { %15334 = vmatprep.subr.bf16.mxu1 %v20886_v42  ;;  %15318 = vmatprep.subr.bf16.mxu0 %v13021_v1  ;;  %v14246_v42 = vld [vmem:[%s21115_s9 + $0x10] sm:$0x3] }
 0xc8c   : > { %15335 = vmatpush3.bf16.xpose.msra.mxu1 %v13105_v49  ;;  %15319 = vmatpush3.bf16.xpose.msra.mxu0 %v13013_v53 }
 0xc8d   : > { %15336 = vmatprep.subr.bf16.mxu1 %v20778_v52  ;;  %15340 = vmatprep.subr.bf16.mxu0 %v20941_v38 }
 0xc93   : > { %15321 = vmatmul.mubr.bf16.vlgmr.msra.gmra.mrb[76].mxu0 %v21046_v44 }
 0xc94   : > { %15337 = vmatpush3.bf16.xpose.msra.mxu1 %v13106_v32  ;;  %15341 = vmatpush3.bf16.xpose.msra.mxu0 %v20953_v45  ;;  %v13253_v45 = vld [vmem:[%s21116_s10] sm:$0xf] }
 0xc95   : > { %15342 = vmatprep.subr.bf16.mxu0 %v20955_v0  ;;  %15356 = vmatprep.mubr.bf16.mxu0 %v14246_v42 }
 0xc96   : > { %13256 = vperm.xlu0 %18140, %v13253_v45  }
 0xc9b   : > { %15339 = vmatmul.mubr.bf16.vlgmr.msra.gmra.mrb[92].mxu1 %v21056_v22 }
 0xc9c   : > { %15343 = vmatpush3.bf16.xpose.msra.mxu0 %v20961_v47 }
 0xc9d   : > { %15344 = vmatprep.subr.bf16.mxu0 %v20963_v57 }
 0xca4   : > { %15345 = vmatpush3.bf16.xpose.msra.mxu0 %v20969_v25 }
 0xca5   : > { %15346 = vmatprep.subr.bf16.mxu0 %v20971_v51 }
 0xca6   : > { %v12554_v52 = vpop.f32.mrb[64].mxu0 }
 0xca7   : > { %v12556_v38 = vpop.f32.mrb[65].mxu0 }
 0xca8   : > { %v12558_v61 = vpop.f32.mrb[66].mxu0 }
 0xca9   : > { %v12559_v50 = vpop.f32.mrb[67].mxu0 }
 0xcac   : > { %15347 = vmatpush3.bf16.xpose.msra.mxu0 %v20977_v12  ;;  %v13207_v12 = vpack.c.bf16 %v13191_v35, %v13190_v54 }
 0xcad   : > { %15348 = vmatprep.subr.bf16.mxu0 %v20979_v16 }
 0xcae   : > { %v12595_v0 = vpop.f32.mrb[80].mxu1 }
 0xcaf   : > { %v12596_v47 = vadd.f32 %v12595_v0, %v12554_v52  ;;  %v12597_v57 = vpop.f32.mrb[81].mxu1 }
 0xcb0   : > { %v12598_v25 = vadd.f32 %v12597_v57, %v12556_v38  ;;  %v12599_v51 = vpop.f32.mrb[82].mxu1 }
 0xcb1   : > { %v12600_v63 = vpop.f32.mrb[83].mxu1 }
 0xcb4   : > { %15349 = vmatpush3.bf16.xpose.msra.mxu0 %v20985_v36 }
 0xcb5   : > { %15350 = vmatprep.subr.bf16.mxu0 %v20987_v28 }
 0xcbc   : > { %15351 = vmatpush3.bf16.xpose.msra.mxu0 %v20993_v27 }
 0xcbd   : > { %15352 = vmatprep.subr.bf16.mxu0 %v21037_v30 }
 0xcc4   : > { %15353 = vmatpush3.bf16.xpose.msra.mxu0 %v20918_v43 }
 0xcc5   : > { %15354 = vmatprep.subr.bf16.mxu0 %v13207_v12 }
 0xccc   : > { %15355 = vmatpush3.bf16.xpose.msra.mxu0 %v20927_v37 }
 0xcd3   : > { %15357 = vmatmul.mubr.bf16.vlgmr.msra.gmra.mrb[80].mxu0 %v14246_v42 }
 0xce6   : > { %v12686_v16 = vpop.f32.mrb[68].mxu0 }
 0xce7   : > { %v12693_v17 = vadd.f32 %v12686_v16, %v12596_v47  ;;  %v12688_v33 = vpop.f32.mrb[69].mxu0 }
 0xce8   : > { %v12694_v60 = vadd.f32 %v12688_v33, %v12598_v25  ;;  %v12690_v36 = vpop.f32.mrb[70].mxu0 }
 0xce9   : > { %v12691_v24 = vpop.f32.mrb[71].mxu0 }
 0xcee   : > { %v12779_v28 = vpop.f32.mrb[84].mxu1 }
 0xcef   : > { %v12786_v39 = vadd.f32 %v12779_v28, %v12693_v17  ;;  %v12781_v27 = vpop.f32.mrb[85].mxu1 }
 0xcf0   : > { %v12787_v7 = vadd.f32 %v12781_v27, %v12694_v60  ;;  %v12783_v30 = vpop.f32.mrb[86].mxu1 }
 0xcf1   : > { %v12784_v44 = vpop.f32.mrb[87].mxu1 }
 0xd15   : > { %v13257_v6 = vpop.permute.xlu0 %13256 }
 0xd26   : > { %v12872_v8 = vpop.f32.mrb[72].mxu0 }
 0xd27   : > { %v12879_v13 = vadd.f32 %v12872_v8, %v12786_v39  ;;  %v12874_v56 = vpop.f32.mrb[73].mxu0 }
 0xd28   : > { %v12880_v43 = vadd.f32 %v12874_v56, %v12787_v7  ;;  %v12876_v22 = vpop.f32.mrb[74].mxu0 }
 0xd29   : > { %v12877_v46 = vpop.f32.mrb[75].mxu0 }
 0xd2e   : > { %v12965_v37 = vpop.f32.mrb[88].mxu1 }
 0xd2f   : > { %v12972_v11 = vadd.f32 %v12965_v37, %v12879_v13  ;;  %v12967_v21 = vpop.f32.mrb[89].mxu1 }
 0xd30   : > { %v12973_v5 = vadd.f32 %v12967_v21, %v12880_v43  ;;  %v12969_v23 = vpop.f32.mrb[90].mxu1 }
 0xd31   : > { %v12970_v29 = vpop.f32.mrb[91].mxu1 }
 0xd66   : > { %v13058_v20 = vpop.f32.mrb[76].mxu0 }
 0xd67   : > { %v13065_v9 = vadd.f32 %v13058_v20, %v12972_v11  ;;  %v13060_v59 = vpop.f32.mrb[77].mxu0 }
 0xd68   : > { %v13066_v31 = vadd.f32 %v13060_v59, %v12973_v5  ;;  %v13062_v18 = vpop.f32.mrb[78].mxu0 }
 0xd69   : > { %v13063_v14 = vpop.f32.mrb[79].mxu0 }
 0xd6e   : > { %v13151_v55 = vpop.f32.mrb[92].mxu1 }
 0xd6f   : > { %v13158_v40 = vadd.f32 %v13151_v55, %v13065_v9  ;;  %v13153_v2 = vpop.f32.mrb[93].mxu1 }
 0xd70   : > { %v13159_v3 = vadd.f32 %v13153_v2, %v13066_v31  ;;  %v13155_v58 = vpop.f32.mrb[94].mxu1 }
 0xd71   : > { %v13156_v41 = vpop.f32.mrb[95].mxu1 }
 0xda6   : > { %v13244_v1 = vpop.f32.mrb[80].mxu0 }
 0xda7   : > { %v13251_v62 = vadd.f32 %v13244_v1, %v13158_v40  ;;  %v13246_v15 = vpop.f32.mrb[81].mxu0 }
 0xda8   : > { %v13252_v26 = vadd.f32 %v13246_v15, %v13159_v3  ;;  %v13248_v4 = vpop.f32.mrb[82].mxu0 }
 0xda9   : > { %v13259_v19 = vadd.f32 %v13257_v6, %v13251_v62  ;;  %v13249_v49 = vpop.f32.mrb[83].mxu0 }
 0xdaa   : > { %v13260_v53 = vadd.f32 %v13257_v6, %v13252_v26 }
 0xdac   : > { %v13263_v34 = vcombine.low %v13259_v19, %v13260_v53 }
 0xdae   : > { %13265 = vst [vmem:[%s386_s29] sm:$0xff] %v13263_v34 }
 0xdaf PF: > { %s21_s17 = sadd.s32 1, %s18410_s17  }
 0xdb0   : > { %p18_p4 = scmp.ge.s32.totalorder %s21_s17, 4  }
 0xdb2   :  { %20 = sbr.rel (!%p18_p4) target bundleno = 1 (0x1), region = 137 }

</bundles_post_ra>
